<compile_context>
chip_gen: v6e
topology: v6e:2x2x1
jax: 0.10.0
libtpu: 0.0.40
codegen_flags: <defaults>
</compile_context>

<pallas_src>
import functools

import numpy as np
import jax
import jax.numpy as jnp
from jax.experimental import pallas as pl
from jax.experimental.pallas import tpu as pltpu


# ----------------------------- config (small demo sizes) ---------------------
class Cfg:
    num_features_mixed4f = 64     # real I3D Mixed_4f: 832 (kept small here)
    num_features_mixed5c = 128    # real I3D Mixed_5c: 1024
    use_i3d_tail = False          # Mixed_5b/5c tail not used
    crop_size = (4, 4)            # RoI pool output (K, K)
    out_feature_temp_size = 4     # T_fm = T // 4
    out_feature_size = (8, 8)     # (OH, OW) backbone feature-map spatial size
    num_person_boxes = 3
    num_actions = 8
    dropout_prob = 0.5


def _round_up(x, m):
    return (x + m - 1) // m * m


# ----------------------------- Pallas kernel ----------------------------------
def fused_roi_head_kernel(fidx_ref, bh_ref, bw_ref, fm_ref, w_ref, b_ref,
                          out_ref, *, K, OH, OW, T_fm):
    """One actor per grid step.

    fm_ref : (B*T_fm, OW, OH, Cp)  whole feature map, VMEM-resident (constant block).
    fidx_ref / bh_ref / bw_ref : SMEM scalar-prefetch tables
        fidx : per-ROI frame index
        bh   : per-(ROI, ph) (hstart, hend)   -- h bounds depend only on ph
        bw   : per-(ROI, pw) (wstart, wend)   -- w bounds depend only on pw
    w_ref  : (Cp, NAp)  linear weight (transposed, mean scale folded in, zero-padded)
    b_ref  : (1, NAp)   bias (zero-padded)
    out_ref: (1, 1, NAp) scores for this actor.
    """
    a = pl.program_id(0)
    Cp = fm_ref.shape[-1]
    h_idx = jax.lax.broadcasted_iota(jnp.int32, (OH, 1), 0)
    neg_inf = jnp.full((OH, Cp), -jnp.inf, jnp.float32)

    acc = jnp.zeros((1, Cp), jnp.float32)       # running sum over T_fm*K*K bins

    for t in range(T_fm):                        # static, small
        r = a * T_fm + t
        f = fidx_ref[r]

        # Load the frame as OW single-vreg (OH, Cp) planes (reused by every pw).
        planes = [fm_ref[f, w] for w in range(OW)]

        # ---- Stage 1: per-pw masked max over W (shared across all ph) ----------
        col_max = []
        col_empty = []
        for pw in range(K):
            ws = bw_ref[(r * K + pw) * 2 + 0]
            we = bw_ref[(r * K + pw) * 2 + 1]
            cmax = neg_inf
            for w in range(OW):
                wi = jnp.int32(w)
                sel = jnp.logical_and(wi >= ws, wi < we)     # scalar select
                cmax = jnp.maximum(cmax, jnp.where(sel, planes[w], neg_inf))
            col_max.append(cmax)                             # (OH, Cp)
            col_empty.append(we <= ws)

        # ---- Stage 2: per-(ph, pw) masked max over H; accumulate bin sums ------
        for ph in range(K):
            hs = bh_ref[(r * K + ph) * 2 + 0]
            he = bh_ref[(r * K + ph) * 2 + 1]
            hmask = jnp.logical_and(h_idx >= hs, h_idx < he)  # (OH, 1)
            h_empty = he <= hs
            for pw in range(K):
                bmax = jnp.max(jnp.where(hmask, col_max[pw], -jnp.inf),
                               axis=0, keepdims=True)         # (1, Cp)
                empty = jnp.logical_or(h_empty, col_empty[pw])
                acc = acc + jnp.where(empty, 0.0, bmax)       # empty bin -> 0

    # Fused head: AvgPool3d mean is folded into w_ref; NA is lane-padded to 128.
    out_ref[0] = (jnp.dot(acc, w_ref[...], preferred_element_type=jnp.float32)
                  + b_ref[...])


# ----------------------------- glue helpers ----------------------------------
def roi_bin_bounds(boxes, K, H, W):
    """torchvision RoIPool integer bin bounds (spatial_scale=1)."""
    x1, y1, x2, y2 = boxes[:, 0], boxes[:, 1], boxes[:, 2], boxes[:, 3]
    rsw = np.round(x1).astype(np.int64)
    rsh = np.round(y1).astype(np.int64)
    rew = np.round(x2).astype(np.int64)
    reh = np.round(y2).astype(np.int64)
    roi_w = np.maximum(rew - rsw + 1, 1).astype(np.float64)
    roi_h = np.maximum(reh - rsh + 1, 1).astype(np.float64)
    bin_h = roi_h / K
    bin_w = roi_w / K
    n = boxes.shape[0]
    bounds = np.zeros((n, K, K, 4), np.int32)
    for ph in range(K):
        hs = np.clip(np.floor(ph * bin_h).astype(np.int64) + rsh, 0, H)
        he = np.clip(np.ceil((ph + 1) * bin_h).astype(np.int64) + rsh, 0, H)
        for pw in range(K):
            ws = np.clip(np.floor(pw * bin_w).astype(np.int64) + rsw, 0, W)
            we = np.clip(np.ceil((pw + 1) * bin_w).astype(np.int64) + rsw, 0, W)
            bounds[:, ph, pw, 0] = hs
            bounds[:, ph, pw, 1] = he
            bounds[:, ph, pw, 2] = ws
            bounds[:, ph, pw, 3] = we
    return bounds


def backbone_standin(imgs, proj_w, cfg):
    # TODO(synk): the pretrained I3D Mixed_4f backbone (external pytorch_i3d module
    # + rgb_imagenet.pt checkpoint) has no clean in-script equivalent; replaced by a
    # deterministic stand-in that reproduces its output layout / strides
    # (temporal stride 4, spatial -> (OH, OW), C = num_features_mixed4f).
    B, Cin, T, H, W = imgs.shape
    T_fm = cfg.out_feature_temp_size
    OH, OW = cfg.out_feature_size
    x = imgs[:, :, 3::4, :, :]                                  # (B, 3, T_fm, H, W)
    fh, fw = H // OH, W // OW
    x = x.reshape(B, Cin, T_fm, OH, fh, OW, fw).mean(axis=(4, 6))
    x = jnp.transpose(x, (0, 2, 3, 4, 1)).reshape(B * T_fm, OH * OW, Cin)
    return x @ proj_w                                           # (B*T_fm, OH*OW, C)


# ----------------------------- forward ---------------------------------------
def basenet_forward(batch, params, cfg):
    imgs, person_boxes, num_boxes_per_frame, action_labels = batch
    B = imgs.shape[0]
    T = imgs.shape[2]
    N = cfg.num_person_boxes
    T_fm = cfg.out_feature_temp_size
    OH, OW = cfg.out_feature_size
    K = cfg.crop_size[0]
    C = cfg.num_features_mixed4f
    NA = cfg.num_actions
    Cp = _round_up(C, 128)        # lane-pad channels
    NAp = _round_up(NA, 128)      # lane-pad actions (dense output stores)

    nbpf = np.asarray(num_boxes_per_frame)
    al = np.asarray(action_labels)
    labels_list, num_actors_list = [], []
    for b in range(B):
        n_b = int(nbpf[b][15])
        labels_list.append(al[b][15][:n_b])
        num_actors_list.append(n_b)
    labels = jnp.asarray(np.concatenate(labels_list))
    num_actors = sum(num_actors_list)

    feature_map = backbone_standin(imgs, params["proj_w"], cfg)  # (B*T_fm, OH*OW, C)

    # --- ROI bookkeeping (host-side, mirrors the PyTorch python loops) ---------
    boxes = np.asarray(person_boxes).reshape(B * T, N, 4)
    boxes_idx, boxes_to_map = [], []
    for b in range(B):
        for i in range(N):
            if i < nbpf[b][15]:
                for frame in range(b * T, (b + 1) * T):
                    if (frame + 1) % 4 == 0:
                        boxes_idx.append((frame + 1) // 4 - 1)
                        boxes_to_map.append(boxes[frame][i])
    frame_idx = np.asarray(boxes_idx, np.int32)                  # (num_rois,)
    boxes_to_map = np.stack(boxes_to_map).astype(np.float32)     # (num_rois, 4)
    num_rois = frame_idx.shape[0]
    assert num_rois == num_actors * T_fm                         # actor-major, T_fm-minor

    bounds = roi_bin_bounds(boxes_to_map, K, OH, OW)             # (num_rois, K, K, 4)
    # h bounds depend only on ph, w bounds only on pw -> compact per-axis tables.
    bh = np.ascontiguousarray(bounds[:, :, 0, 0:2]).reshape(-1).astype(np.int32)
    bw = np.ascontiguousarray(bounds[:, 0, :, 2:4]).reshape(-1).astype(np.int32)

    # Whole feature map, w-major channels-last, lane-padded: (B*T_fm, OW, OH, Cp).
    # TODO(synk): on v6e/v7x this could be kept bf16 to halve DMA/VMEM; kept f32 so
    # the same code stays optimal on v5e (no bf16 VPU).
    fm = feature_map.reshape(B * T_fm, OH, OW, C)
    fm = jnp.transpose(fm, (0, 2, 1, 3))
    fm = jnp.pad(fm, ((0, 0), (0, 0), (0, 0), (0, Cp - C))).astype(jnp.float32)

    # Fold the AvgPool3d mean (1/(T_fm*K*K)) into the linear weight; zero-pad.
    inv = 1.0 / float(T_fm * K * K)
    w_t = (params["linear_w"].T * inv).astype(jnp.float32)       # (C, NA)
    w_pad = jnp.pad(w_t, ((0, Cp - C), (0, NAp - NA)))
    b_pad = jnp.pad(params["linear_b"].reshape(1, NA).astype(jnp.float32),
                    ((0, 0), (0, NAp - NA)))

    # TODO(synk): cfg.use_i3d_tail Mixed_5b/5c path not implemented (external I3D modules).
    # TODO(synk): nn.Dropout treated as identity (eval-mode forward).

    BT = B * T_fm
    scores_padded = pl.pallas_call(
        functools.partial(fused_roi_head_kernel, K=K, OH=OH, OW=OW, T_fm=T_fm),
        out_shape=jax.ShapeDtypeStruct((num_actors, 1, NAp), jnp.float32),
        grid_spec=pltpu.PrefetchScalarGridSpec(
            num_scalar_prefetch=3,
            grid=(num_actors,),
            in_specs=[
                # Whole FM: constant block index -> stays resident in VMEM.
                pl.BlockSpec((BT, OW, OH, Cp), lambda a, fi, bh, bw: (0, 0, 0, 0)),
                pl.BlockSpec((Cp, NAp), lambda a, fi, bh, bw: (0, 0)),
                pl.BlockSpec((1, NAp), lambda a, fi, bh, bw: (0, 0)),
            ],
            out_specs=pl.BlockSpec((1, 1, NAp), lambda a, fi, bh, bw: (a, 0, 0)),
        ),
        compiler_params=pltpu.CompilerParams(
            dimension_semantics=("parallel",)),
    )(
        jnp.asarray(frame_idx),
        jnp.asarray(bh),
        jnp.asarray(bw),
        fm,
        w_pad,
        b_pad,
    )
    scores = scores_padded.reshape(num_actors, NAp)[:, :NA]

    return scores, labels, num_actors_list, (feature_map, frame_idx, bounds)


# ----------------------------- reference (pure numpy) -------------------------
def reference_scores(feature_map, frame_idx, bounds, num_actors, cfg, w, b):
    T_fm = cfg.out_feature_temp_size
    OH, OW = cfg.out_feature_size
    K = cfg.crop_size[0]
    C = cfg.num_features_mixed4f
    fm = np.asarray(feature_map).reshape(-1, OH, OW, C)
    n = frame_idx.shape[0]
    pooled = np.zeros((n, K * K, C), np.float32)
    for r in range(n):
        f = int(frame_idx[r])
        for ph in range(K):
            for pw in range(K):
                hs, he, ws, we = bounds[r, ph, pw]
                if he > hs and we > ws:
                    pooled[r, ph * K + pw] = fm[f, hs:he, ws:we].max(axis=(0, 1))
    feats = pooled.reshape(num_actors, T_fm * K * K, C).mean(axis=1)
    return feats @ np.asarray(w).T + np.asarray(b)


# ----------------------------- main -------------------------------------------
if __name__ == "__main__":
    cfg = Cfg()
    B, T = 2, 16
    H = W = 32
    N = cfg.num_person_boxes
    C = cfg.num_features_mixed4f
    NA = cfg.num_actions
    OH, OW = cfg.out_feature_size

    key = jax.random.PRNGKey(0)
    k1, k2, k3, k4, k5 = jax.random.split(key, 5)

    imgs = jax.random.normal(k1, (B, 3, T, H, W), jnp.float32)          # NCTHW
    xy1 = jax.random.uniform(k2, (B, T, N, 2), minval=0.0, maxval=OW / 2)
    wh = jax.random.uniform(k3, (B, T, N, 2), minval=1.0, maxval=OW / 2)
    person_boxes = jnp.concatenate(
        [xy1, jnp.minimum(xy1 + wh, OW - 1.0)], axis=-1)                 # (x1,y1,x2,y2)
    nbpf = np.zeros((B, T), np.int32)
    nbpf[:, 15] = [2, 1]
    num_boxes_per_frame = jnp.asarray(nbpf)
    action_labels = jax.random.randint(k4, (B, T, N), 0, NA, dtype=jnp.int32)

    # Parameters (deterministic): Linear kaiming-normal weight, zero bias;
    # stand-in backbone projection weight.
    kw, kp = jax.random.split(k5)
    params = {
        "linear_w": (jax.random.normal(kw, (NA, C), jnp.float32)
                     * np.sqrt(2.0 / C)).astype(jnp.float32),
        "linear_b": jnp.zeros((NA,), jnp.float32),
        "proj_w": (jax.random.normal(kp, (3, C), jnp.float32) * 0.1).astype(jnp.float32),
    }

    batch = (imgs, person_boxes, num_boxes_per_frame, action_labels)
    scores, labels, num_actors_list, aux = basenet_forward(batch, params, cfg)
    scores = jax.block_until_ready(scores)

    feature_map, frame_idx, bounds = aux
    ref = reference_scores(feature_map, frame_idx, bounds, sum(num_actors_list),
                           cfg, params["linear_w"], params["linear_b"])
    np.testing.assert_allclose(np.asarray(scores), ref, rtol=1e-4, atol=1e-4)
    assert labels.shape[0] == sum(num_actors_list)

    print("KERNEL_OK")
</pallas_src>

<mosaic_0001>
module attributes {stable_mosaic.version = 11 : i64} {
  func.func @fused_roi_head_kernel(%arg0: i32, %arg1: memref<12xi32, #tpu.memory_space<smem>>, %arg2: memref<96xi32, #tpu.memory_space<smem>>, %arg3: memref<96xi32, #tpu.memory_space<smem>>, %arg4: memref<8x8x8x128xf32, #tpu.memory_space<vmem>>, %arg5: memref<128x128xf32, #tpu.memory_space<vmem>>, %arg6: memref<1x128xf32, #tpu.memory_space<vmem>>, %arg7: memref<1x1x128xf32, #tpu.memory_space<vmem>>) attributes {dimension_semantics = [#tpu.dimension_semantics<parallel>], iteration_bounds = array<i64: 3>, scalar_prefetch = 3 : i64, scratch_operands = 0 : i64, tpu.core_type = #tpu.core_type<tc>, window_params = [{pipeline_mode = #tpu.pipeline_mode<synchronous>, transform_indices = @transform_0, window_bounds = array<i64: 8, 8, 8, 128>}, {pipeline_mode = #tpu.pipeline_mode<synchronous>, transform_indices = @transform_1, window_bounds = array<i64: 128, 128>}, {pipeline_mode = #tpu.pipeline_mode<synchronous>, transform_indices = @transform_2, window_bounds = array<i64: 1, 128>}, {transform_indices = @transform_3, window_bounds = array<i64: 1, 1, 128>}]} {
    %0 = tpu.iota {dimensions = array<i32: 0>} : vector<8x1xi32>
    %cst = arith.constant 0xFF800000 : f32
    %1 = vector.broadcast %cst : f32 to vector<8x128xf32>
    %cst_0 = arith.constant 0.000000e+00 : f32
    %2 = vector.broadcast %cst_0 : f32 to vector<1x128xf32>
    %c4_i32 = arith.constant 4 : i32
    %3 = arith.muli %arg0, %c4_i32 : i32
    %c0_i32 = arith.constant 0 : i32
    %4 = arith.addi %3, %c0_i32 : i32
    %5 = arith.index_cast %4 : i32 to index
    %6 = memref.load %arg1[%5] : memref<12xi32, #tpu.memory_space<smem>>
    %7 = arith.index_cast %6 : i32 to index
    %c0 = arith.constant 0 : index
    %c0_1 = arith.constant 0 : index
    %c0_2 = arith.constant 0 : index
    %8 = vector.load %arg4[%7, %c0, %c0_1, %c0_2] : memref<8x8x8x128xf32, #tpu.memory_space<vmem>>, vector<1x1x8x128xf32>
    %9 = vector.shape_cast %8 : vector<1x1x8x128xf32> to vector<8x128xf32>
    %10 = arith.index_cast %6 : i32 to index
    %c1 = arith.constant 1 : index
    %c0_3 = arith.constant 0 : index
    %c0_4 = arith.constant 0 : index
    %11 = vector.load %arg4[%10, %c1, %c0_3, %c0_4] : memref<8x8x8x128xf32, #tpu.memory_space<vmem>>, vector<1x1x8x128xf32>
    %12 = vector.shape_cast %11 : vector<1x1x8x128xf32> to vector<8x128xf32>
    %13 = arith.index_cast %6 : i32 to index
    %c2 = arith.constant 2 : index
    %c0_5 = arith.constant 0 : index
    %c0_6 = arith.constant 0 : index
    %14 = vector.load %arg4[%13, %c2, %c0_5, %c0_6] : memref<8x8x8x128xf32, #tpu.memory_space<vmem>>, vector<1x1x8x128xf32>
    %15 = vector.shape_cast %14 : vector<1x1x8x128xf32> to vector<8x128xf32>
    %16 = arith.index_cast %6 : i32 to index
    %c3 = arith.constant 3 : index
    %c0_7 = arith.constant 0 : index
    %c0_8 = arith.constant 0 : index
    %17 = vector.load %arg4[%16, %c3, %c0_7, %c0_8] : memref<8x8x8x128xf32, #tpu.memory_space<vmem>>, vector<1x1x8x128xf32>
    %18 = vector.shape_cast %17 : vector<1x1x8x128xf32> to vector<8x128xf32>
    %19 = arith.index_cast %6 : i32 to index
    %c4 = arith.constant 4 : index
    %c0_9 = arith.constant 0 : index
    %c0_10 = arith.constant 0 : index
    %20 = vector.load %arg4[%19, %c4, %c0_9, %c0_10] : memref<8x8x8x128xf32, #tpu.memory_space<vmem>>, vector<1x1x8x128xf32>
    %21 = vector.shape_cast %20 : vector<1x1x8x128xf32> to vector<8x128xf32>
    %22 = arith.index_cast %6 : i32 to index
    %c5 = arith.constant 5 : index
    %c0_11 = arith.constant 0 : index
    %c0_12 = arith.constant 0 : index
    %23 = vector.load %arg4[%22, %c5, %c0_11, %c0_12] : memref<8x8x8x128xf32, #tpu.memory_space<vmem>>, vector<1x1x8x128xf32>
    %24 = vector.shape_cast %23 : vector<1x1x8x128xf32> to vector<8x128xf32>
    %25 = arith.index_cast %6 : i32 to index
    %c6 = arith.constant 6 : index
    %c0_13 = arith.constant 0 : index
    %c0_14 = arith.constant 0 : index
    %26 = vector.load %arg4[%25, %c6, %c0_13, %c0_14] : memref<8x8x8x128xf32, #tpu.memory_space<vmem>>, vector<1x1x8x128xf32>
    %27 = vector.shape_cast %26 : vector<1x1x8x128xf32> to vector<8x128xf32>
    %28 = arith.index_cast %6 : i32 to index
    %c7 = arith.constant 7 : index
    %c0_15 = arith.constant 0 : index
    %c0_16 = arith.constant 0 : index
    %29 = vector.load %arg4[%28, %c7, %c0_15, %c0_16] : memref<8x8x8x128xf32, #tpu.memory_space<vmem>>, vector<1x1x8x128xf32>
    %30 = vector.shape_cast %29 : vector<1x1x8x128xf32> to vector<8x128xf32>
    %c4_i32_17 = arith.constant 4 : i32
    %31 = arith.muli %4, %c4_i32_17 : i32
    %c0_i32_18 = arith.constant 0 : i32
    %32 = arith.addi %31, %c0_i32_18 : i32
    %c2_i32 = arith.constant 2 : i32
    %33 = arith.muli %32, %c2_i32 : i32
    %c0_i32_19 = arith.constant 0 : i32
    %34 = arith.addi %33, %c0_i32_19 : i32
    %35 = arith.index_cast %34 : i32 to index
    %36 = memref.load %arg3[%35] : memref<96xi32, #tpu.memory_space<smem>>
    %c4_i32_20 = arith.constant 4 : i32
    %37 = arith.muli %4, %c4_i32_20 : i32
    %c0_i32_21 = arith.constant 0 : i32
    %38 = arith.addi %37, %c0_i32_21 : i32
    %c2_i32_22 = arith.constant 2 : i32
    %39 = arith.muli %38, %c2_i32_22 : i32
    %c1_i32 = arith.constant 1 : i32
    %40 = arith.addi %39, %c1_i32 : i32
    %41 = arith.index_cast %40 : i32 to index
    %42 = memref.load %arg3[%41] : memref<96xi32, #tpu.memory_space<smem>>
    %c0_i32_23 = arith.constant 0 : i32
    %43 = arith.cmpi sge, %c0_i32_23, %36 : i32
    %c0_i32_24 = arith.constant 0 : i32
    %44 = arith.cmpi slt, %c0_i32_24, %42 : i32
    %45 = arith.andi %43, %44 : i1
    %46 = arith.select %45, %9, %1 : vector<8x128xf32>
    %47 = arith.maximumf %1, %46 : vector<8x128xf32>
    %c1_i32_25 = arith.constant 1 : i32
    %48 = arith.cmpi sge, %c1_i32_25, %36 : i32
    %c1_i32_26 = arith.constant 1 : i32
    %49 = arith.cmpi slt, %c1_i32_26, %42 : i32
    %50 = arith.andi %48, %49 : i1
    %51 = arith.select %50, %12, %1 : vector<8x128xf32>
    %52 = arith.maximumf %47, %51 : vector<8x128xf32>
    %c2_i32_27 = arith.constant 2 : i32
    %53 = arith.cmpi sge, %c2_i32_27, %36 : i32
    %c2_i32_28 = arith.constant 2 : i32
    %54 = arith.cmpi slt, %c2_i32_28, %42 : i32
    %55 = arith.andi %53, %54 : i1
    %56 = arith.select %55, %15, %1 : vector<8x128xf32>
    %57 = arith.maximumf %52, %56 : vector<8x128xf32>
    %c3_i32 = arith.constant 3 : i32
    %58 = arith.cmpi sge, %c3_i32, %36 : i32
    %c3_i32_29 = arith.constant 3 : i32
    %59 = arith.cmpi slt, %c3_i32_29, %42 : i32
    %60 = arith.andi %58, %59 : i1
    %61 = arith.select %60, %18, %1 : vector<8x128xf32>
    %62 = arith.maximumf %57, %61 : vector<8x128xf32>
    %c4_i32_30 = arith.constant 4 : i32
    %63 = arith.cmpi sge, %c4_i32_30, %36 : i32
    %c4_i32_31 = arith.constant 4 : i32
    %64 = arith.cmpi slt, %c4_i32_31, %42 : i32
    %65 = arith.andi %63, %64 : i1
    %66 = arith.select %65, %21, %1 : vector<8x128xf32>
    %67 = arith.maximumf %62, %66 : vector<8x128xf32>
    %c5_i32 = arith.constant 5 : i32
    %68 = arith.cmpi sge, %c5_i32, %36 : i32
    %c5_i32_32 = arith.constant 5 : i32
    %69 = arith.cmpi slt, %c5_i32_32, %42 : i32
    %70 = arith.andi %68, %69 : i1
    %71 = arith.select %70, %24, %1 : vector<8x128xf32>
    %72 = arith.maximumf %67, %71 : vector<8x128xf32>
    %c6_i32 = arith.constant 6 : i32
    %73 = arith.cmpi sge, %c6_i32, %36 : i32
    %c6_i32_33 = arith.constant 6 : i32
    %74 = arith.cmpi slt, %c6_i32_33, %42 : i32
    %75 = arith.andi %73, %74 : i1
    %76 = arith.select %75, %27, %1 : vector<8x128xf32>
    %77 = arith.maximumf %72, %76 : vector<8x128xf32>
    %c7_i32 = arith.constant 7 : i32
    %78 = arith.cmpi sge, %c7_i32, %36 : i32
    %c7_i32_34 = arith.constant 7 : i32
    %79 = arith.cmpi slt, %c7_i32_34, %42 : i32
    %80 = arith.andi %78, %79 : i1
    %81 = arith.select %80, %30, %1 : vector<8x128xf32>
    %82 = arith.maximumf %77, %81 : vector<8x128xf32>
    %83 = arith.cmpi sle, %42, %36 : i32
    %c4_i32_35 = arith.constant 4 : i32
    %84 = arith.muli %4, %c4_i32_35 : i32
    %c1_i32_36 = arith.constant 1 : i32
    %85 = arith.addi %84, %c1_i32_36 : i32
    %c2_i32_37 = arith.constant 2 : i32
    %86 = arith.muli %85, %c2_i32_37 : i32
    %c0_i32_38 = arith.constant 0 : i32
    %87 = arith.addi %86, %c0_i32_38 : i32
    %88 = arith.index_cast %87 : i32 to index
    %89 = memref.load %arg3[%88] : memref<96xi32, #tpu.memory_space<smem>>
    %c4_i32_39 = arith.constant 4 : i32
    %90 = arith.muli %4, %c4_i32_39 : i32
    %c1_i32_40 = arith.constant 1 : i32
    %91 = arith.addi %90, %c1_i32_40 : i32
    %c2_i32_41 = arith.constant 2 : i32
    %92 = arith.muli %91, %c2_i32_41 : i32
    %c1_i32_42 = arith.constant 1 : i32
    %93 = arith.addi %92, %c1_i32_42 : i32
    %94 = arith.index_cast %93 : i32 to index
    %95 = memref.load %arg3[%94] : memref<96xi32, #tpu.memory_space<smem>>
    %c0_i32_43 = arith.constant 0 : i32
    %96 = arith.cmpi sge, %c0_i32_43, %89 : i32
    %c0_i32_44 = arith.constant 0 : i32
    %97 = arith.cmpi slt, %c0_i32_44, %95 : i32
    %98 = arith.andi %96, %97 : i1
    %99 = arith.select %98, %9, %1 : vector<8x128xf32>
    %100 = arith.maximumf %1, %99 : vector<8x128xf32>
    %c1_i32_45 = arith.constant 1 : i32
    %101 = arith.cmpi sge, %c1_i32_45, %89 : i32
    %c1_i32_46 = arith.constant 1 : i32
    %102 = arith.cmpi slt, %c1_i32_46, %95 : i32
    %103 = arith.andi %101, %102 : i1
    %104 = arith.select %103, %12, %1 : vector<8x128xf32>
    %105 = arith.maximumf %100, %104 : vector<8x128xf32>
    %c2_i32_47 = arith.constant 2 : i32
    %106 = arith.cmpi sge, %c2_i32_47, %89 : i32
    %c2_i32_48 = arith.constant 2 : i32
    %107 = arith.cmpi slt, %c2_i32_48, %95 : i32
    %108 = arith.andi %106, %107 : i1
    %109 = arith.select %108, %15, %1 : vector<8x128xf32>
    %110 = arith.maximumf %105, %109 : vector<8x128xf32>
    %c3_i32_49 = arith.constant 3 : i32
    %111 = arith.cmpi sge, %c3_i32_49, %89 : i32
    %c3_i32_50 = arith.constant 3 : i32
    %112 = arith.cmpi slt, %c3_i32_50, %95 : i32
    %113 = arith.andi %111, %112 : i1
    %114 = arith.select %113, %18, %1 : vector<8x128xf32>
    %115 = arith.maximumf %110, %114 : vector<8x128xf32>
    %c4_i32_51 = arith.constant 4 : i32
    %116 = arith.cmpi sge, %c4_i32_51, %89 : i32
    %c4_i32_52 = arith.constant 4 : i32
    %117 = arith.cmpi slt, %c4_i32_52, %95 : i32
    %118 = arith.andi %116, %117 : i1
    %119 = arith.select %118, %21, %1 : vector<8x128xf32>
    %120 = arith.maximumf %115, %119 : vector<8x128xf32>
    %c5_i32_53 = arith.constant 5 : i32
    %121 = arith.cmpi sge, %c5_i32_53, %89 : i32
    %c5_i32_54 = arith.constant 5 : i32
    %122 = arith.cmpi slt, %c5_i32_54, %95 : i32
    %123 = arith.andi %121, %122 : i1
    %124 = arith.select %123, %24, %1 : vector<8x128xf32>
    %125 = arith.maximumf %120, %124 : vector<8x128xf32>
    %c6_i32_55 = arith.constant 6 : i32
    %126 = arith.cmpi sge, %c6_i32_55, %89 : i32
    %c6_i32_56 = arith.constant 6 : i32
    %127 = arith.cmpi slt, %c6_i32_56, %95 : i32
    %128 = arith.andi %126, %127 : i1
    %129 = arith.select %128, %27, %1 : vector<8x128xf32>
    %130 = arith.maximumf %125, %129 : vector<8x128xf32>
    %c7_i32_57 = arith.constant 7 : i32
    %131 = arith.cmpi sge, %c7_i32_57, %89 : i32
    %c7_i32_58 = arith.constant 7 : i32
    %132 = arith.cmpi slt, %c7_i32_58, %95 : i32
    %133 = arith.andi %131, %132 : i1
    %134 = arith.select %133, %30, %1 : vector<8x128xf32>
    %135 = arith.maximumf %130, %134 : vector<8x128xf32>
    %136 = arith.cmpi sle, %95, %89 : i32
    %c4_i32_59 = arith.constant 4 : i32
    %137 = arith.muli %4, %c4_i32_59 : i32
    %c2_i32_60 = arith.constant 2 : i32
    %138 = arith.addi %137, %c2_i32_60 : i32
    %c2_i32_61 = arith.constant 2 : i32
    %139 = arith.muli %138, %c2_i32_61 : i32
    %c0_i32_62 = arith.constant 0 : i32
    %140 = arith.addi %139, %c0_i32_62 : i32
    %141 = arith.index_cast %140 : i32 to index
    %142 = memref.load %arg3[%141] : memref<96xi32, #tpu.memory_space<smem>>
    %c4_i32_63 = arith.constant 4 : i32
    %143 = arith.muli %4, %c4_i32_63 : i32
    %c2_i32_64 = arith.constant 2 : i32
    %144 = arith.addi %143, %c2_i32_64 : i32
    %c2_i32_65 = arith.constant 2 : i32
    %145 = arith.muli %144, %c2_i32_65 : i32
    %c1_i32_66 = arith.constant 1 : i32
    %146 = arith.addi %145, %c1_i32_66 : i32
    %147 = arith.index_cast %146 : i32 to index
    %148 = memref.load %arg3[%147] : memref<96xi32, #tpu.memory_space<smem>>
    %c0_i32_67 = arith.constant 0 : i32
    %149 = arith.cmpi sge, %c0_i32_67, %142 : i32
    %c0_i32_68 = arith.constant 0 : i32
    %150 = arith.cmpi slt, %c0_i32_68, %148 : i32
    %151 = arith.andi %149, %150 : i1
    %152 = arith.select %151, %9, %1 : vector<8x128xf32>
    %153 = arith.maximumf %1, %152 : vector<8x128xf32>
    %c1_i32_69 = arith.constant 1 : i32
    %154 = arith.cmpi sge, %c1_i32_69, %142 : i32
    %c1_i32_70 = arith.constant 1 : i32
    %155 = arith.cmpi slt, %c1_i32_70, %148 : i32
    %156 = arith.andi %154, %155 : i1
    %157 = arith.select %156, %12, %1 : vector<8x128xf32>
    %158 = arith.maximumf %153, %157 : vector<8x128xf32>
    %c2_i32_71 = arith.constant 2 : i32
    %159 = arith.cmpi sge, %c2_i32_71, %142 : i32
    %c2_i32_72 = arith.constant 2 : i32
    %160 = arith.cmpi slt, %c2_i32_72, %148 : i32
    %161 = arith.andi %159, %160 : i1
    %162 = arith.select %161, %15, %1 : vector<8x128xf32>
    %163 = arith.maximumf %158, %162 : vector<8x128xf32>
    %c3_i32_73 = arith.constant 3 : i32
    %164 = arith.cmpi sge, %c3_i32_73, %142 : i32
    %c3_i32_74 = arith.constant 3 : i32
    %165 = arith.cmpi slt, %c3_i32_74, %148 : i32
    %166 = arith.andi %164, %165 : i1
    %167 = arith.select %166, %18, %1 : vector<8x128xf32>
    %168 = arith.maximumf %163, %167 : vector<8x128xf32>
    %c4_i32_75 = arith.constant 4 : i32
    %169 = arith.cmpi sge, %c4_i32_75, %142 : i32
    %c4_i32_76 = arith.constant 4 : i32
    %170 = arith.cmpi slt, %c4_i32_76, %148 : i32
    %171 = arith.andi %169, %170 : i1
    %172 = arith.select %171, %21, %1 : vector<8x128xf32>
    %173 = arith.maximumf %168, %172 : vector<8x128xf32>
    %c5_i32_77 = arith.constant 5 : i32
    %174 = arith.cmpi sge, %c5_i32_77, %142 : i32
    %c5_i32_78 = arith.constant 5 : i32
    %175 = arith.cmpi slt, %c5_i32_78, %148 : i32
    %176 = arith.andi %174, %175 : i1
    %177 = arith.select %176, %24, %1 : vector<8x128xf32>
    %178 = arith.maximumf %173, %177 : vector<8x128xf32>
    %c6_i32_79 = arith.constant 6 : i32
    %179 = arith.cmpi sge, %c6_i32_79, %142 : i32
    %c6_i32_80 = arith.constant 6 : i32
    %180 = arith.cmpi slt, %c6_i32_80, %148 : i32
    %181 = arith.andi %179, %180 : i1
    %182 = arith.select %181, %27, %1 : vector<8x128xf32>
    %183 = arith.maximumf %178, %182 : vector<8x128xf32>
    %c7_i32_81 = arith.constant 7 : i32
    %184 = arith.cmpi sge, %c7_i32_81, %142 : i32
    %c7_i32_82 = arith.constant 7 : i32
    %185 = arith.cmpi slt, %c7_i32_82, %148 : i32
    %186 = arith.andi %184, %185 : i1
    %187 = arith.select %186, %30, %1 : vector<8x128xf32>
    %188 = arith.maximumf %183, %187 : vector<8x128xf32>
    %189 = arith.cmpi sle, %148, %142 : i32
    %c4_i32_83 = arith.constant 4 : i32
    %190 = arith.muli %4, %c4_i32_83 : i32
    %c3_i32_84 = arith.constant 3 : i32
    %191 = arith.addi %190, %c3_i32_84 : i32
    %c2_i32_85 = arith.constant 2 : i32
    %192 = arith.muli %191, %c2_i32_85 : i32
    %c0_i32_86 = arith.constant 0 : i32
    %193 = arith.addi %192, %c0_i32_86 : i32
    %194 = arith.index_cast %193 : i32 to index
    %195 = memref.load %arg3[%194] : memref<96xi32, #tpu.memory_space<smem>>
    %c4_i32_87 = arith.constant 4 : i32
    %196 = arith.muli %4, %c4_i32_87 : i32
    %c3_i32_88 = arith.constant 3 : i32
    %197 = arith.addi %196, %c3_i32_88 : i32
    %c2_i32_89 = arith.constant 2 : i32
    %198 = arith.muli %197, %c2_i32_89 : i32
    %c1_i32_90 = arith.constant 1 : i32
    %199 = arith.addi %198, %c1_i32_90 : i32
    %200 = arith.index_cast %199 : i32 to index
    %201 = memref.load %arg3[%200] : memref<96xi32, #tpu.memory_space<smem>>
    %c0_i32_91 = arith.constant 0 : i32
    %202 = arith.cmpi sge, %c0_i32_91, %195 : i32
    %c0_i32_92 = arith.constant 0 : i32
    %203 = arith.cmpi slt, %c0_i32_92, %201 : i32
    %204 = arith.andi %202, %203 : i1
    %205 = arith.select %204, %9, %1 : vector<8x128xf32>
    %206 = arith.maximumf %1, %205 : vector<8x128xf32>
    %c1_i32_93 = arith.constant 1 : i32
    %207 = arith.cmpi sge, %c1_i32_93, %195 : i32
    %c1_i32_94 = arith.constant 1 : i32
    %208 = arith.cmpi slt, %c1_i32_94, %201 : i32
    %209 = arith.andi %207, %208 : i1
    %210 = arith.select %209, %12, %1 : vector<8x128xf32>
    %211 = arith.maximumf %206, %210 : vector<8x128xf32>
    %c2_i32_95 = arith.constant 2 : i32
    %212 = arith.cmpi sge, %c2_i32_95, %195 : i32
    %c2_i32_96 = arith.constant 2 : i32
    %213 = arith.cmpi slt, %c2_i32_96, %201 : i32
    %214 = arith.andi %212, %213 : i1
    %215 = arith.select %214, %15, %1 : vector<8x128xf32>
    %216 = arith.maximumf %211, %215 : vector<8x128xf32>
    %c3_i32_97 = arith.constant 3 : i32
    %217 = arith.cmpi sge, %c3_i32_97, %195 : i32
    %c3_i32_98 = arith.constant 3 : i32
    %218 = arith.cmpi slt, %c3_i32_98, %201 : i32
    %219 = arith.andi %217, %218 : i1
    %220 = arith.select %219, %18, %1 : vector<8x128xf32>
    %221 = arith.maximumf %216, %220 : vector<8x128xf32>
    %c4_i32_99 = arith.constant 4 : i32
    %222 = arith.cmpi sge, %c4_i32_99, %195 : i32
    %c4_i32_100 = arith.constant 4 : i32
    %223 = arith.cmpi slt, %c4_i32_100, %201 : i32
    %224 = arith.andi %222, %223 : i1
    %225 = arith.select %224, %21, %1 : vector<8x128xf32>
    %226 = arith.maximumf %221, %225 : vector<8x128xf32>
    %c5_i32_101 = arith.constant 5 : i32
    %227 = arith.cmpi sge, %c5_i32_101, %195 : i32
    %c5_i32_102 = arith.constant 5 : i32
    %228 = arith.cmpi slt, %c5_i32_102, %201 : i32
    %229 = arith.andi %227, %228 : i1
    %230 = arith.select %229, %24, %1 : vector<8x128xf32>
    %231 = arith.maximumf %226, %230 : vector<8x128xf32>
    %c6_i32_103 = arith.constant 6 : i32
    %232 = arith.cmpi sge, %c6_i32_103, %195 : i32
    %c6_i32_104 = arith.constant 6 : i32
    %233 = arith.cmpi slt, %c6_i32_104, %201 : i32
    %234 = arith.andi %232, %233 : i1
    %235 = arith.select %234, %27, %1 : vector<8x128xf32>
    %236 = arith.maximumf %231, %235 : vector<8x128xf32>
    %c7_i32_105 = arith.constant 7 : i32
    %237 = arith.cmpi sge, %c7_i32_105, %195 : i32
    %c7_i32_106 = arith.constant 7 : i32
    %238 = arith.cmpi slt, %c7_i32_106, %201 : i32
    %239 = arith.andi %237, %238 : i1
    %240 = arith.select %239, %30, %1 : vector<8x128xf32>
    %241 = arith.maximumf %236, %240 : vector<8x128xf32>
    %242 = arith.cmpi sle, %201, %195 : i32
    %c4_i32_107 = arith.constant 4 : i32
    %243 = arith.muli %4, %c4_i32_107 : i32
    %c0_i32_108 = arith.constant 0 : i32
    %244 = arith.addi %243, %c0_i32_108 : i32
    %c2_i32_109 = arith.constant 2 : i32
    %245 = arith.muli %244, %c2_i32_109 : i32
    %c0_i32_110 = arith.constant 0 : i32
    %246 = arith.addi %245, %c0_i32_110 : i32
    %247 = arith.index_cast %246 : i32 to index
    %248 = memref.load %arg2[%247] : memref<96xi32, #tpu.memory_space<smem>>
    %c4_i32_111 = arith.constant 4 : i32
    %249 = arith.muli %4, %c4_i32_111 : i32
    %c0_i32_112 = arith.constant 0 : i32
    %250 = arith.addi %249, %c0_i32_112 : i32
    %c2_i32_113 = arith.constant 2 : i32
    %251 = arith.muli %250, %c2_i32_113 : i32
    %c1_i32_114 = arith.constant 1 : i32
    %252 = arith.addi %251, %c1_i32_114 : i32
    %253 = arith.index_cast %252 : i32 to index
    %254 = memref.load %arg2[%253] : memref<96xi32, #tpu.memory_space<smem>>
    %255 = vector.broadcast %248 : i32 to vector<8x1xi32>
    %256 = arith.cmpi sge, %0, %255 : vector<8x1xi32>
    %257 = vector.broadcast %254 : i32 to vector<8x1xi32>
    %258 = arith.cmpi slt, %0, %257 : vector<8x1xi32>
    %259 = arith.andi %256, %258 : vector<8x1xi1>
    %260 = arith.cmpi sle, %254, %248 : i32
    %cst_115 = arith.constant 0xFF800000 : f32
    %261 = vector.shape_cast %259 : vector<8x1xi1> to vector<8x1xi1>
    %262 = vector.broadcast %261 : vector<8x1xi1> to vector<8x128xi1>
    %263 = vector.broadcast %cst_115 : f32 to vector<8x128xf32>
    %264 = arith.select %262, %82, %263 : vector<8x128xi1>, vector<8x128xf32>
    %cst_116 = arith.constant dense<0xFF800000> : vector<128xf32>
    %265 = vector.multi_reduction <maximumf>, %264, %cst_116 [0] : vector<8x128xf32> to vector<128xf32>
    %266 = vector.shape_cast %265 : vector<128xf32> to vector<1x128xf32>
    %267 = arith.ori %260, %83 : i1
    %cst_117 = arith.constant 0.000000e+00 : f32
    %268 = vector.broadcast %cst_117 : f32 to vector<1x128xf32>
    %269 = arith.select %267, %268, %266 : vector<1x128xf32>
    %270 = arith.addf %2, %269 : vector<1x128xf32>
    %cst_118 = arith.constant 0xFF800000 : f32
    %271 = vector.shape_cast %259 : vector<8x1xi1> to vector<8x1xi1>
    %272 = vector.broadcast %271 : vector<8x1xi1> to vector<8x128xi1>
    %273 = vector.broadcast %cst_118 : f32 to vector<8x128xf32>
    %274 = arith.select %272, %135, %273 : vector<8x128xi1>, vector<8x128xf32>
    %cst_119 = arith.constant dense<0xFF800000> : vector<128xf32>
    %275 = vector.multi_reduction <maximumf>, %274, %cst_119 [0] : vector<8x128xf32> to vector<128xf32>
    %276 = vector.shape_cast %275 : vector<128xf32> to vector<1x128xf32>
    %277 = arith.ori %260, %136 : i1
    %cst_120 = arith.constant 0.000000e+00 : f32
    %278 = vector.broadcast %cst_120 : f32 to vector<1x128xf32>
    %279 = arith.select %277, %278, %276 : vector<1x128xf32>
    %280 = arith.addf %270, %279 : vector<1x128xf32>
    %cst_121 = arith.constant 0xFF800000 : f32
    %281 = vector.shape_cast %259 : vector<8x1xi1> to vector<8x1xi1>
    %282 = vector.broadcast %281 : vector<8x1xi1> to vector<8x128xi1>
    %283 = vector.broadcast %cst_121 : f32 to vector<8x128xf32>
    %284 = arith.select %282, %188, %283 : vector<8x128xi1>, vector<8x128xf32>
    %cst_122 = arith.constant dense<0xFF800000> : vector<128xf32>
    %285 = vector.multi_reduction <maximumf>, %284, %cst_122 [0] : vector<8x128xf32> to vector<128xf32>
    %286 = vector.shape_cast %285 : vector<128xf32> to vector<1x128xf32>
    %287 = arith.ori %260, %189 : i1
    %cst_123 = arith.constant 0.000000e+00 : f32
    %288 = vector.broadcast %cst_123 : f32 to vector<1x128xf32>
    %289 = arith.select %287, %288, %286 : vector<1x128xf32>
    %290 = arith.addf %280, %289 : vector<1x128xf32>
    %cst_124 = arith.constant 0xFF800000 : f32
    %291 = vector.shape_cast %259 : vector<8x1xi1> to vector<8x1xi1>
    %292 = vector.broadcast %291 : vector<8x1xi1> to vector<8x128xi1>
    %293 = vector.broadcast %cst_124 : f32 to vector<8x128xf32>
    %294 = arith.select %292, %241, %293 : vector<8x128xi1>, vector<8x128xf32>
    %cst_125 = arith.constant dense<0xFF800000> : vector<128xf32>
    %295 = vector.multi_reduction <maximumf>, %294, %cst_125 [0] : vector<8x128xf32> to vector<128xf32>
    %296 = vector.shape_cast %295 : vector<128xf32> to vector<1x128xf32>
    %297 = arith.ori %260, %242 : i1
    %cst_126 = arith.constant 0.000000e+00 : f32
    %298 = vector.broadcast %cst_126 : f32 to vector<1x128xf32>
    %299 = arith.select %297, %298, %296 : vector<1x128xf32>
    %300 = arith.addf %290, %299 : vector<1x128xf32>
    %c4_i32_127 = arith.constant 4 : i32
    %301 = arith.muli %4, %c4_i32_127 : i32
    %c1_i32_128 = arith.constant 1 : i32
    %302 = arith.addi %301, %c1_i32_128 : i32
    %c2_i32_129 = arith.constant 2 : i32
    %303 = arith.muli %302, %c2_i32_129 : i32
    %c0_i32_130 = arith.constant 0 : i32
    %304 = arith.addi %303, %c0_i32_130 : i32
    %305 = arith.index_cast %304 : i32 to index
    %306 = memref.load %arg2[%305] : memref<96xi32, #tpu.memory_space<smem>>
    %c4_i32_131 = arith.constant 4 : i32
    %307 = arith.muli %4, %c4_i32_131 : i32
    %c1_i32_132 = arith.constant 1 : i32
    %308 = arith.addi %307, %c1_i32_132 : i32
    %c2_i32_133 = arith.constant 2 : i32
    %309 = arith.muli %308, %c2_i32_133 : i32
    %c1_i32_134 = arith.constant 1 : i32
    %310 = arith.addi %309, %c1_i32_134 : i32
    %311 = arith.index_cast %310 : i32 to index
    %312 = memref.load %arg2[%311] : memref<96xi32, #tpu.memory_space<smem>>
    %313 = vector.broadcast %306 : i32 to vector<8x1xi32>
    %314 = arith.cmpi sge, %0, %313 : vector<8x1xi32>
    %315 = vector.broadcast %312 : i32 to vector<8x1xi32>
    %316 = arith.cmpi slt, %0, %315 : vector<8x1xi32>
    %317 = arith.andi %314, %316 : vector<8x1xi1>
    %318 = arith.cmpi sle, %312, %306 : i32
    %cst_135 = arith.constant 0xFF800000 : f32
    %319 = vector.shape_cast %317 : vector<8x1xi1> to vector<8x1xi1>
    %320 = vector.broadcast %319 : vector<8x1xi1> to vector<8x128xi1>
    %321 = vector.broadcast %cst_135 : f32 to vector<8x128xf32>
    %322 = arith.select %320, %82, %321 : vector<8x128xi1>, vector<8x128xf32>
    %cst_136 = arith.constant dense<0xFF800000> : vector<128xf32>
    %323 = vector.multi_reduction <maximumf>, %322, %cst_136 [0] : vector<8x128xf32> to vector<128xf32>
    %324 = vector.shape_cast %323 : vector<128xf32> to vector<1x128xf32>
    %325 = arith.ori %318, %83 : i1
    %cst_137 = arith.constant 0.000000e+00 : f32
    %326 = vector.broadcast %cst_137 : f32 to vector<1x128xf32>
    %327 = arith.select %325, %326, %324 : vector<1x128xf32>
    %328 = arith.addf %300, %327 : vector<1x128xf32>
    %cst_138 = arith.constant 0xFF800000 : f32
    %329 = vector.shape_cast %317 : vector<8x1xi1> to vector<8x1xi1>
    %330 = vector.broadcast %329 : vector<8x1xi1> to vector<8x128xi1>
    %331 = vector.broadcast %cst_138 : f32 to vector<8x128xf32>
    %332 = arith.select %330, %135, %331 : vector<8x128xi1>, vector<8x128xf32>
    %cst_139 = arith.constant dense<0xFF800000> : vector<128xf32>
    %333 = vector.multi_reduction <maximumf>, %332, %cst_139 [0] : vector<8x128xf32> to vector<128xf32>
    %334 = vector.shape_cast %333 : vector<128xf32> to vector<1x128xf32>
    %335 = arith.ori %318, %136 : i1
    %cst_140 = arith.constant 0.000000e+00 : f32
    %336 = vector.broadcast %cst_140 : f32 to vector<1x128xf32>
    %337 = arith.select %335, %336, %334 : vector<1x128xf32>
    %338 = arith.addf %328, %337 : vector<1x128xf32>
    %cst_141 = arith.constant 0xFF800000 : f32
    %339 = vector.shape_cast %317 : vector<8x1xi1> to vector<8x1xi1>
    %340 = vector.broadcast %339 : vector<8x1xi1> to vector<8x128xi1>
    %341 = vector.broadcast %cst_141 : f32 to vector<8x128xf32>
    %342 = arith.select %340, %188, %341 : vector<8x128xi1>, vector<8x128xf32>
    %cst_142 = arith.constant dense<0xFF800000> : vector<128xf32>
    %343 = vector.multi_reduction <maximumf>, %342, %cst_142 [0] : vector<8x128xf32> to vector<128xf32>
    %344 = vector.shape_cast %343 : vector<128xf32> to vector<1x128xf32>
    %345 = arith.ori %318, %189 : i1
    %cst_143 = arith.constant 0.000000e+00 : f32
    %346 = vector.broadcast %cst_143 : f32 to vector<1x128xf32>
    %347 = arith.select %345, %346, %344 : vector<1x128xf32>
    %348 = arith.addf %338, %347 : vector<1x128xf32>
    %cst_144 = arith.constant 0xFF800000 : f32
    %349 = vector.shape_cast %317 : vector<8x1xi1> to vector<8x1xi1>
    %350 = vector.broadcast %349 : vector<8x1xi1> to vector<8x128xi1>
    %351 = vector.broadcast %cst_144 : f32 to vector<8x128xf32>
    %352 = arith.select %350, %241, %351 : vector<8x128xi1>, vector<8x128xf32>
    %cst_145 = arith.constant dense<0xFF800000> : vector<128xf32>
    %353 = vector.multi_reduction <maximumf>, %352, %cst_145 [0] : vector<8x128xf32> to vector<128xf32>
    %354 = vector.shape_cast %353 : vector<128xf32> to vector<1x128xf32>
    %355 = arith.ori %318, %242 : i1
    %cst_146 = arith.constant 0.000000e+00 : f32
    %356 = vector.broadcast %cst_146 : f32 to vector<1x128xf32>
    %357 = arith.select %355, %356, %354 : vector<1x128xf32>
    %358 = arith.addf %348, %357 : vector<1x128xf32>
    %c4_i32_147 = arith.constant 4 : i32
    %359 = arith.muli %4, %c4_i32_147 : i32
    %c2_i32_148 = arith.constant 2 : i32
    %360 = arith.addi %359, %c2_i32_148 : i32
    %c2_i32_149 = arith.constant 2 : i32
    %361 = arith.muli %360, %c2_i32_149 : i32
    %c0_i32_150 = arith.constant 0 : i32
    %362 = arith.addi %361, %c0_i32_150 : i32
    %363 = arith.index_cast %362 : i32 to index
    %364 = memref.load %arg2[%363] : memref<96xi32, #tpu.memory_space<smem>>
    %c4_i32_151 = arith.constant 4 : i32
    %365 = arith.muli %4, %c4_i32_151 : i32
    %c2_i32_152 = arith.constant 2 : i32
    %366 = arith.addi %365, %c2_i32_152 : i32
    %c2_i32_153 = arith.constant 2 : i32
    %367 = arith.muli %366, %c2_i32_153 : i32
    %c1_i32_154 = arith.constant 1 : i32
    %368 = arith.addi %367, %c1_i32_154 : i32
    %369 = arith.index_cast %368 : i32 to index
    %370 = memref.load %arg2[%369] : memref<96xi32, #tpu.memory_space<smem>>
    %371 = vector.broadcast %364 : i32 to vector<8x1xi32>
    %372 = arith.cmpi sge, %0, %371 : vector<8x1xi32>
    %373 = vector.broadcast %370 : i32 to vector<8x1xi32>
    %374 = arith.cmpi slt, %0, %373 : vector<8x1xi32>
    %375 = arith.andi %372, %374 : vector<8x1xi1>
    %376 = arith.cmpi sle, %370, %364 : i32
    %cst_155 = arith.constant 0xFF800000 : f32
    %377 = vector.shape_cast %375 : vector<8x1xi1> to vector<8x1xi1>
    %378 = vector.broadcast %377 : vector<8x1xi1> to vector<8x128xi1>
    %379 = vector.broadcast %cst_155 : f32 to vector<8x128xf32>
    %380 = arith.select %378, %82, %379 : vector<8x128xi1>, vector<8x128xf32>
    %cst_156 = arith.constant dense<0xFF800000> : vector<128xf32>
    %381 = vector.multi_reduction <maximumf>, %380, %cst_156 [0] : vector<8x128xf32> to vector<128xf32>
    %382 = vector.shape_cast %381 : vector<128xf32> to vector<1x128xf32>
    %383 = arith.ori %376, %83 : i1
    %cst_157 = arith.constant 0.000000e+00 : f32
    %384 = vector.broadcast %cst_157 : f32 to vector<1x128xf32>
    %385 = arith.select %383, %384, %382 : vector<1x128xf32>
    %386 = arith.addf %358, %385 : vector<1x128xf32>
    %cst_158 = arith.constant 0xFF800000 : f32
    %387 = vector.shape_cast %375 : vector<8x1xi1> to vector<8x1xi1>
    %388 = vector.broadcast %387 : vector<8x1xi1> to vector<8x128xi1>
    %389 = vector.broadcast %cst_158 : f32 to vector<8x128xf32>
    %390 = arith.select %388, %135, %389 : vector<8x128xi1>, vector<8x128xf32>
    %cst_159 = arith.constant dense<0xFF800000> : vector<128xf32>
    %391 = vector.multi_reduction <maximumf>, %390, %cst_159 [0] : vector<8x128xf32> to vector<128xf32>
    %392 = vector.shape_cast %391 : vector<128xf32> to vector<1x128xf32>
    %393 = arith.ori %376, %136 : i1
    %cst_160 = arith.constant 0.000000e+00 : f32
    %394 = vector.broadcast %cst_160 : f32 to vector<1x128xf32>
    %395 = arith.select %393, %394, %392 : vector<1x128xf32>
    %396 = arith.addf %386, %395 : vector<1x128xf32>
    %cst_161 = arith.constant 0xFF800000 : f32
    %397 = vector.shape_cast %375 : vector<8x1xi1> to vector<8x1xi1>
    %398 = vector.broadcast %397 : vector<8x1xi1> to vector<8x128xi1>
    %399 = vector.broadcast %cst_161 : f32 to vector<8x128xf32>
    %400 = arith.select %398, %188, %399 : vector<8x128xi1>, vector<8x128xf32>
    %cst_162 = arith.constant dense<0xFF800000> : vector<128xf32>
    %401 = vector.multi_reduction <maximumf>, %400, %cst_162 [0] : vector<8x128xf32> to vector<128xf32>
    %402 = vector.shape_cast %401 : vector<128xf32> to vector<1x128xf32>
    %403 = arith.ori %376, %189 : i1
    %cst_163 = arith.constant 0.000000e+00 : f32
    %404 = vector.broadcast %cst_163 : f32 to vector<1x128xf32>
    %405 = arith.select %403, %404, %402 : vector<1x128xf32>
    %406 = arith.addf %396, %405 : vector<1x128xf32>
    %cst_164 = arith.constant 0xFF800000 : f32
    %407 = vector.shape_cast %375 : vector<8x1xi1> to vector<8x1xi1>
    %408 = vector.broadcast %407 : vector<8x1xi1> to vector<8x128xi1>
    %409 = vector.broadcast %cst_164 : f32 to vector<8x128xf32>
    %410 = arith.select %408, %241, %409 : vector<8x128xi1>, vector<8x128xf32>
    %cst_165 = arith.constant dense<0xFF800000> : vector<128xf32>
    %411 = vector.multi_reduction <maximumf>, %410, %cst_165 [0] : vector<8x128xf32> to vector<128xf32>
    %412 = vector.shape_cast %411 : vector<128xf32> to vector<1x128xf32>
    %413 = arith.ori %376, %242 : i1
    %cst_166 = arith.constant 0.000000e+00 : f32
    %414 = vector.broadcast %cst_166 : f32 to vector<1x128xf32>
    %415 = arith.select %413, %414, %412 : vector<1x128xf32>
    %416 = arith.addf %406, %415 : vector<1x128xf32>
    %c4_i32_167 = arith.constant 4 : i32
    %417 = arith.muli %4, %c4_i32_167 : i32
    %c3_i32_168 = arith.constant 3 : i32
    %418 = arith.addi %417, %c3_i32_168 : i32
    %c2_i32_169 = arith.constant 2 : i32
    %419 = arith.muli %418, %c2_i32_169 : i32
    %c0_i32_170 = arith.constant 0 : i32
    %420 = arith.addi %419, %c0_i32_170 : i32
    %421 = arith.index_cast %420 : i32 to index
    %422 = memref.load %arg2[%421] : memref<96xi32, #tpu.memory_space<smem>>
    %c4_i32_171 = arith.constant 4 : i32
    %423 = arith.muli %4, %c4_i32_171 : i32
    %c3_i32_172 = arith.constant 3 : i32
    %424 = arith.addi %423, %c3_i32_172 : i32
    %c2_i32_173 = arith.constant 2 : i32
    %425 = arith.muli %424, %c2_i32_173 : i32
    %c1_i32_174 = arith.constant 1 : i32
    %426 = arith.addi %425, %c1_i32_174 : i32
    %427 = arith.index_cast %426 : i32 to index
    %428 = memref.load %arg2[%427] : memref<96xi32, #tpu.memory_space<smem>>
    %429 = vector.broadcast %422 : i32 to vector<8x1xi32>
    %430 = arith.cmpi sge, %0, %429 : vector<8x1xi32>
    %431 = vector.broadcast %428 : i32 to vector<8x1xi32>
    %432 = arith.cmpi slt, %0, %431 : vector<8x1xi32>
    %433 = arith.andi %430, %432 : vector<8x1xi1>
    %434 = arith.cmpi sle, %428, %422 : i32
    %cst_175 = arith.constant 0xFF800000 : f32
    %435 = vector.shape_cast %433 : vector<8x1xi1> to vector<8x1xi1>
    %436 = vector.broadcast %435 : vector<8x1xi1> to vector<8x128xi1>
    %437 = vector.broadcast %cst_175 : f32 to vector<8x128xf32>
    %438 = arith.select %436, %82, %437 : vector<8x128xi1>, vector<8x128xf32>
    %cst_176 = arith.constant dense<0xFF800000> : vector<128xf32>
    %439 = vector.multi_reduction <maximumf>, %438, %cst_176 [0] : vector<8x128xf32> to vector<128xf32>
    %440 = vector.shape_cast %439 : vector<128xf32> to vector<1x128xf32>
    %441 = arith.ori %434, %83 : i1
    %cst_177 = arith.constant 0.000000e+00 : f32
    %442 = vector.broadcast %cst_177 : f32 to vector<1x128xf32>
    %443 = arith.select %441, %442, %440 : vector<1x128xf32>
    %444 = arith.addf %416, %443 : vector<1x128xf32>
    %cst_178 = arith.constant 0xFF800000 : f32
    %445 = vector.shape_cast %433 : vector<8x1xi1> to vector<8x1xi1>
    %446 = vector.broadcast %445 : vector<8x1xi1> to vector<8x128xi1>
    %447 = vector.broadcast %cst_178 : f32 to vector<8x128xf32>
    %448 = arith.select %446, %135, %447 : vector<8x128xi1>, vector<8x128xf32>
    %cst_179 = arith.constant dense<0xFF800000> : vector<128xf32>
    %449 = vector.multi_reduction <maximumf>, %448, %cst_179 [0] : vector<8x128xf32> to vector<128xf32>
    %450 = vector.shape_cast %449 : vector<128xf32> to vector<1x128xf32>
    %451 = arith.ori %434, %136 : i1
    %cst_180 = arith.constant 0.000000e+00 : f32
    %452 = vector.broadcast %cst_180 : f32 to vector<1x128xf32>
    %453 = arith.select %451, %452, %450 : vector<1x128xf32>
    %454 = arith.addf %444, %453 : vector<1x128xf32>
    %cst_181 = arith.constant 0xFF800000 : f32
    %455 = vector.shape_cast %433 : vector<8x1xi1> to vector<8x1xi1>
    %456 = vector.broadcast %455 : vector<8x1xi1> to vector<8x128xi1>
    %457 = vector.broadcast %cst_181 : f32 to vector<8x128xf32>
    %458 = arith.select %456, %188, %457 : vector<8x128xi1>, vector<8x128xf32>
    %cst_182 = arith.constant dense<0xFF800000> : vector<128xf32>
    %459 = vector.multi_reduction <maximumf>, %458, %cst_182 [0] : vector<8x128xf32> to vector<128xf32>
    %460 = vector.shape_cast %459 : vector<128xf32> to vector<1x128xf32>
    %461 = arith.ori %434, %189 : i1
    %cst_183 = arith.constant 0.000000e+00 : f32
    %462 = vector.broadcast %cst_183 : f32 to vector<1x128xf32>
    %463 = arith.select %461, %462, %460 : vector<1x128xf32>
    %464 = arith.addf %454, %463 : vector<1x128xf32>
    %cst_184 = arith.constant 0xFF800000 : f32
    %465 = vector.shape_cast %433 : vector<8x1xi1> to vector<8x1xi1>
    %466 = vector.broadcast %465 : vector<8x1xi1> to vector<8x128xi1>
    %467 = vector.broadcast %cst_184 : f32 to vector<8x128xf32>
    %468 = arith.select %466, %241, %467 : vector<8x128xi1>, vector<8x128xf32>
    %cst_185 = arith.constant dense<0xFF800000> : vector<128xf32>
    %469 = vector.multi_reduction <maximumf>, %468, %cst_185 [0] : vector<8x128xf32> to vector<128xf32>
    %470 = vector.shape_cast %469 : vector<128xf32> to vector<1x128xf32>
    %471 = arith.ori %434, %242 : i1
    %cst_186 = arith.constant 0.000000e+00 : f32
    %472 = vector.broadcast %cst_186 : f32 to vector<1x128xf32>
    %473 = arith.select %471, %472, %470 : vector<1x128xf32>
    %474 = arith.addf %464, %473 : vector<1x128xf32>
    %c4_i32_187 = arith.constant 4 : i32
    %475 = arith.muli %arg0, %c4_i32_187 : i32
    %c1_i32_188 = arith.constant 1 : i32
    %476 = arith.addi %475, %c1_i32_188 : i32
    %477 = arith.index_cast %476 : i32 to index
    %478 = memref.load %arg1[%477] : memref<12xi32, #tpu.memory_space<smem>>
    %479 = arith.index_cast %478 : i32 to index
    %c0_189 = arith.constant 0 : index
    %c0_190 = arith.constant 0 : index
    %c0_191 = arith.constant 0 : index
    %480 = vector.load %arg4[%479, %c0_189, %c0_190, %c0_191] : memref<8x8x8x128xf32, #tpu.memory_space<vmem>>, vector<1x1x8x128xf32>
    %481 = vector.shape_cast %480 : vector<1x1x8x128xf32> to vector<8x128xf32>
    %482 = arith.index_cast %478 : i32 to index
    %c1_192 = arith.constant 1 : index
    %c0_193 = arith.constant 0 : index
    %c0_194 = arith.constant 0 : index
    %483 = vector.load %arg4[%482, %c1_192, %c0_193, %c0_194] : memref<8x8x8x128xf32, #tpu.memory_space<vmem>>, vector<1x1x8x128xf32>
    %484 = vector.shape_cast %483 : vector<1x1x8x128xf32> to vector<8x128xf32>
    %485 = arith.index_cast %478 : i32 to index
    %c2_195 = arith.constant 2 : index
    %c0_196 = arith.constant 0 : index
    %c0_197 = arith.constant 0 : index
    %486 = vector.load %arg4[%485, %c2_195, %c0_196, %c0_197] : memref<8x8x8x128xf32, #tpu.memory_space<vmem>>, vector<1x1x8x128xf32>
    %487 = vector.shape_cast %486 : vector<1x1x8x128xf32> to vector<8x128xf32>
    %488 = arith.index_cast %478 : i32 to index
    %c3_198 = arith.constant 3 : index
    %c0_199 = arith.constant 0 : index
    %c0_200 = arith.constant 0 : index
    %489 = vector.load %arg4[%488, %c3_198, %c0_199, %c0_200] : memref<8x8x8x128xf32, #tpu.memory_space<vmem>>, vector<1x1x8x128xf32>
    %490 = vector.shape_cast %489 : vector<1x1x8x128xf32> to vector<8x128xf32>
    %491 = arith.index_cast %478 : i32 to index
    %c4_201 = arith.constant 4 : index
    %c0_202 = arith.constant 0 : index
    %c0_203 = arith.constant 0 : index
    %492 = vector.load %arg4[%491, %c4_201, %c0_202, %c0_203] : memref<8x8x8x128xf32, #tpu.memory_space<vmem>>, vector<1x1x8x128xf32>
    %493 = vector.shape_cast %492 : vector<1x1x8x128xf32> to vector<8x128xf32>
    %494 = arith.index_cast %478 : i32 to index
    %c5_204 = arith.constant 5 : index
    %c0_205 = arith.constant 0 : index
    %c0_206 = arith.constant 0 : index
    %495 = vector.load %arg4[%494, %c5_204, %c0_205, %c0_206] : memref<8x8x8x128xf32, #tpu.memory_space<vmem>>, vector<1x1x8x128xf32>
    %496 = vector.shape_cast %495 : vector<1x1x8x128xf32> to vector<8x128xf32>
    %497 = arith.index_cast %478 : i32 to index
    %c6_207 = arith.constant 6 : index
    %c0_208 = arith.constant 0 : index
    %c0_209 = arith.constant 0 : index
    %498 = vector.load %arg4[%497, %c6_207, %c0_208, %c0_209] : memref<8x8x8x128xf32, #tpu.memory_space<vmem>>, vector<1x1x8x128xf32>
    %499 = vector.shape_cast %498 : vector<1x1x8x128xf32> to vector<8x128xf32>
    %500 = arith.index_cast %478 : i32 to index
    %c7_210 = arith.constant 7 : index
    %c0_211 = arith.constant 0 : index
    %c0_212 = arith.constant 0 : index
    %501 = vector.load %arg4[%500, %c7_210, %c0_211, %c0_212] : memref<8x8x8x128xf32, #tpu.memory_space<vmem>>, vector<1x1x8x128xf32>
    %502 = vector.shape_cast %501 : vector<1x1x8x128xf32> to vector<8x128xf32>
    %c4_i32_213 = arith.constant 4 : i32
    %503 = arith.muli %476, %c4_i32_213 : i32
    %c0_i32_214 = arith.constant 0 : i32
    %504 = arith.addi %503, %c0_i32_214 : i32
    %c2_i32_215 = arith.constant 2 : i32
    %505 = arith.muli %504, %c2_i32_215 : i32
    %c0_i32_216 = arith.constant 0 : i32
    %506 = arith.addi %505, %c0_i32_216 : i32
    %507 = arith.index_cast %506 : i32 to index
    %508 = memref.load %arg3[%507] : memref<96xi32, #tpu.memory_space<smem>>
    %c4_i32_217 = arith.constant 4 : i32
    %509 = arith.muli %476, %c4_i32_217 : i32
    %c0_i32_218 = arith.constant 0 : i32
    %510 = arith.addi %509, %c0_i32_218 : i32
    %c2_i32_219 = arith.constant 2 : i32
    %511 = arith.muli %510, %c2_i32_219 : i32
    %c1_i32_220 = arith.constant 1 : i32
    %512 = arith.addi %511, %c1_i32_220 : i32
    %513 = arith.index_cast %512 : i32 to index
    %514 = memref.load %arg3[%513] : memref<96xi32, #tpu.memory_space<smem>>
    %c0_i32_221 = arith.constant 0 : i32
    %515 = arith.cmpi sge, %c0_i32_221, %508 : i32
    %c0_i32_222 = arith.constant 0 : i32
    %516 = arith.cmpi slt, %c0_i32_222, %514 : i32
    %517 = arith.andi %515, %516 : i1
    %518 = arith.select %517, %481, %1 : vector<8x128xf32>
    %519 = arith.maximumf %1, %518 : vector<8x128xf32>
    %c1_i32_223 = arith.constant 1 : i32
    %520 = arith.cmpi sge, %c1_i32_223, %508 : i32
    %c1_i32_224 = arith.constant 1 : i32
    %521 = arith.cmpi slt, %c1_i32_224, %514 : i32
    %522 = arith.andi %520, %521 : i1
    %523 = arith.select %522, %484, %1 : vector<8x128xf32>
    %524 = arith.maximumf %519, %523 : vector<8x128xf32>
    %c2_i32_225 = arith.constant 2 : i32
    %525 = arith.cmpi sge, %c2_i32_225, %508 : i32
    %c2_i32_226 = arith.constant 2 : i32
    %526 = arith.cmpi slt, %c2_i32_226, %514 : i32
    %527 = arith.andi %525, %526 : i1
    %528 = arith.select %527, %487, %1 : vector<8x128xf32>
    %529 = arith.maximumf %524, %528 : vector<8x128xf32>
    %c3_i32_227 = arith.constant 3 : i32
    %530 = arith.cmpi sge, %c3_i32_227, %508 : i32
    %c3_i32_228 = arith.constant 3 : i32
    %531 = arith.cmpi slt, %c3_i32_228, %514 : i32
    %532 = arith.andi %530, %531 : i1
    %533 = arith.select %532, %490, %1 : vector<8x128xf32>
    %534 = arith.maximumf %529, %533 : vector<8x128xf32>
    %c4_i32_229 = arith.constant 4 : i32
    %535 = arith.cmpi sge, %c4_i32_229, %508 : i32
    %c4_i32_230 = arith.constant 4 : i32
    %536 = arith.cmpi slt, %c4_i32_230, %514 : i32
    %537 = arith.andi %535, %536 : i1
    %538 = arith.select %537, %493, %1 : vector<8x128xf32>
    %539 = arith.maximumf %534, %538 : vector<8x128xf32>
    %c5_i32_231 = arith.constant 5 : i32
    %540 = arith.cmpi sge, %c5_i32_231, %508 : i32
    %c5_i32_232 = arith.constant 5 : i32
    %541 = arith.cmpi slt, %c5_i32_232, %514 : i32
    %542 = arith.andi %540, %541 : i1
    %543 = arith.select %542, %496, %1 : vector<8x128xf32>
    %544 = arith.maximumf %539, %543 : vector<8x128xf32>
    %c6_i32_233 = arith.constant 6 : i32
    %545 = arith.cmpi sge, %c6_i32_233, %508 : i32
    %c6_i32_234 = arith.constant 6 : i32
    %546 = arith.cmpi slt, %c6_i32_234, %514 : i32
    %547 = arith.andi %545, %546 : i1
    %548 = arith.select %547, %499, %1 : vector<8x128xf32>
    %549 = arith.maximumf %544, %548 : vector<8x128xf32>
    %c7_i32_235 = arith.constant 7 : i32
    %550 = arith.cmpi sge, %c7_i32_235, %508 : i32
    %c7_i32_236 = arith.constant 7 : i32
    %551 = arith.cmpi slt, %c7_i32_236, %514 : i32
    %552 = arith.andi %550, %551 : i1
    %553 = arith.select %552, %502, %1 : vector<8x128xf32>
    %554 = arith.maximumf %549, %553 : vector<8x128xf32>
    %555 = arith.cmpi sle, %514, %508 : i32
    %c4_i32_237 = arith.constant 4 : i32
    %556 = arith.muli %476, %c4_i32_237 : i32
    %c1_i32_238 = arith.constant 1 : i32
    %557 = arith.addi %556, %c1_i32_238 : i32
    %c2_i32_239 = arith.constant 2 : i32
    %558 = arith.muli %557, %c2_i32_239 : i32
    %c0_i32_240 = arith.constant 0 : i32
    %559 = arith.addi %558, %c0_i32_240 : i32
    %560 = arith.index_cast %559 : i32 to index
    %561 = memref.load %arg3[%560] : memref<96xi32, #tpu.memory_space<smem>>
    %c4_i32_241 = arith.constant 4 : i32
    %562 = arith.muli %476, %c4_i32_241 : i32
    %c1_i32_242 = arith.constant 1 : i32
    %563 = arith.addi %562, %c1_i32_242 : i32
    %c2_i32_243 = arith.constant 2 : i32
    %564 = arith.muli %563, %c2_i32_243 : i32
    %c1_i32_244 = arith.constant 1 : i32
    %565 = arith.addi %564, %c1_i32_244 : i32
    %566 = arith.index_cast %565 : i32 to index
    %567 = memref.load %arg3[%566] : memref<96xi32, #tpu.memory_space<smem>>
    %c0_i32_245 = arith.constant 0 : i32
    %568 = arith.cmpi sge, %c0_i32_245, %561 : i32
    %c0_i32_246 = arith.constant 0 : i32
    %569 = arith.cmpi slt, %c0_i32_246, %567 : i32
    %570 = arith.andi %568, %569 : i1
    %571 = arith.select %570, %481, %1 : vector<8x128xf32>
    %572 = arith.maximumf %1, %571 : vector<8x128xf32>
    %c1_i32_247 = arith.constant 1 : i32
    %573 = arith.cmpi sge, %c1_i32_247, %561 : i32
    %c1_i32_248 = arith.constant 1 : i32
    %574 = arith.cmpi slt, %c1_i32_248, %567 : i32
    %575 = arith.andi %573, %574 : i1
    %576 = arith.select %575, %484, %1 : vector<8x128xf32>
    %577 = arith.maximumf %572, %576 : vector<8x128xf32>
    %c2_i32_249 = arith.constant 2 : i32
    %578 = arith.cmpi sge, %c2_i32_249, %561 : i32
    %c2_i32_250 = arith.constant 2 : i32
    %579 = arith.cmpi slt, %c2_i32_250, %567 : i32
    %580 = arith.andi %578, %579 : i1
    %581 = arith.select %580, %487, %1 : vector<8x128xf32>
    %582 = arith.maximumf %577, %581 : vector<8x128xf32>
    %c3_i32_251 = arith.constant 3 : i32
    %583 = arith.cmpi sge, %c3_i32_251, %561 : i32
    %c3_i32_252 = arith.constant 3 : i32
    %584 = arith.cmpi slt, %c3_i32_252, %567 : i32
    %585 = arith.andi %583, %584 : i1
    %586 = arith.select %585, %490, %1 : vector<8x128xf32>
    %587 = arith.maximumf %582, %586 : vector<8x128xf32>
    %c4_i32_253 = arith.constant 4 : i32
    %588 = arith.cmpi sge, %c4_i32_253, %561 : i32
    %c4_i32_254 = arith.constant 4 : i32
    %589 = arith.cmpi slt, %c4_i32_254, %567 : i32
    %590 = arith.andi %588, %589 : i1
    %591 = arith.select %590, %493, %1 : vector<8x128xf32>
    %592 = arith.maximumf %587, %591 : vector<8x128xf32>
    %c5_i32_255 = arith.constant 5 : i32
    %593 = arith.cmpi sge, %c5_i32_255, %561 : i32
    %c5_i32_256 = arith.constant 5 : i32
    %594 = arith.cmpi slt, %c5_i32_256, %567 : i32
    %595 = arith.andi %593, %594 : i1
    %596 = arith.select %595, %496, %1 : vector<8x128xf32>
    %597 = arith.maximumf %592, %596 : vector<8x128xf32>
    %c6_i32_257 = arith.constant 6 : i32
    %598 = arith.cmpi sge, %c6_i32_257, %561 : i32
    %c6_i32_258 = arith.constant 6 : i32
    %599 = arith.cmpi slt, %c6_i32_258, %567 : i32
    %600 = arith.andi %598, %599 : i1
    %601 = arith.select %600, %499, %1 : vector<8x128xf32>
    %602 = arith.maximumf %597, %601 : vector<8x128xf32>
    %c7_i32_259 = arith.constant 7 : i32
    %603 = arith.cmpi sge, %c7_i32_259, %561 : i32
    %c7_i32_260 = arith.constant 7 : i32
    %604 = arith.cmpi slt, %c7_i32_260, %567 : i32
    %605 = arith.andi %603, %604 : i1
    %606 = arith.select %605, %502, %1 : vector<8x128xf32>
    %607 = arith.maximumf %602, %606 : vector<8x128xf32>
    %608 = arith.cmpi sle, %567, %561 : i32
    %c4_i32_261 = arith.constant 4 : i32
    %609 = arith.muli %476, %c4_i32_261 : i32
    %c2_i32_262 = arith.constant 2 : i32
    %610 = arith.addi %609, %c2_i32_262 : i32
    %c2_i32_263 = arith.constant 2 : i32
    %611 = arith.muli %610, %c2_i32_263 : i32
    %c0_i32_264 = arith.constant 0 : i32
    %612 = arith.addi %611, %c0_i32_264 : i32
    %613 = arith.index_cast %612 : i32 to index
    %614 = memref.load %arg3[%613] : memref<96xi32, #tpu.memory_space<smem>>
    %c4_i32_265 = arith.constant 4 : i32
    %615 = arith.muli %476, %c4_i32_265 : i32
    %c2_i32_266 = arith.constant 2 : i32
    %616 = arith.addi %615, %c2_i32_266 : i32
    %c2_i32_267 = arith.constant 2 : i32
    %617 = arith.muli %616, %c2_i32_267 : i32
    %c1_i32_268 = arith.constant 1 : i32
    %618 = arith.addi %617, %c1_i32_268 : i32
    %619 = arith.index_cast %618 : i32 to index
    %620 = memref.load %arg3[%619] : memref<96xi32, #tpu.memory_space<smem>>
    %c0_i32_269 = arith.constant 0 : i32
    %621 = arith.cmpi sge, %c0_i32_269, %614 : i32
    %c0_i32_270 = arith.constant 0 : i32
    %622 = arith.cmpi slt, %c0_i32_270, %620 : i32
    %623 = arith.andi %621, %622 : i1
    %624 = arith.select %623, %481, %1 : vector<8x128xf32>
    %625 = arith.maximumf %1, %624 : vector<8x128xf32>
    %c1_i32_271 = arith.constant 1 : i32
    %626 = arith.cmpi sge, %c1_i32_271, %614 : i32
    %c1_i32_272 = arith.constant 1 : i32
    %627 = arith.cmpi slt, %c1_i32_272, %620 : i32
    %628 = arith.andi %626, %627 : i1
    %629 = arith.select %628, %484, %1 : vector<8x128xf32>
    %630 = arith.maximumf %625, %629 : vector<8x128xf32>
    %c2_i32_273 = arith.constant 2 : i32
    %631 = arith.cmpi sge, %c2_i32_273, %614 : i32
    %c2_i32_274 = arith.constant 2 : i32
    %632 = arith.cmpi slt, %c2_i32_274, %620 : i32
    %633 = arith.andi %631, %632 : i1
    %634 = arith.select %633, %487, %1 : vector<8x128xf32>
    %635 = arith.maximumf %630, %634 : vector<8x128xf32>
    %c3_i32_275 = arith.constant 3 : i32
    %636 = arith.cmpi sge, %c3_i32_275, %614 : i32
    %c3_i32_276 = arith.constant 3 : i32
    %637 = arith.cmpi slt, %c3_i32_276, %620 : i32
    %638 = arith.andi %636, %637 : i1
    %639 = arith.select %638, %490, %1 : vector<8x128xf32>
    %640 = arith.maximumf %635, %639 : vector<8x128xf32>
    %c4_i32_277 = arith.constant 4 : i32
    %641 = arith.cmpi sge, %c4_i32_277, %614 : i32
    %c4_i32_278 = arith.constant 4 : i32
    %642 = arith.cmpi slt, %c4_i32_278, %620 : i32
    %643 = arith.andi %641, %642 : i1
    %644 = arith.select %643, %493, %1 : vector<8x128xf32>
    %645 = arith.maximumf %640, %644 : vector<8x128xf32>
    %c5_i32_279 = arith.constant 5 : i32
    %646 = arith.cmpi sge, %c5_i32_279, %614 : i32
    %c5_i32_280 = arith.constant 5 : i32
    %647 = arith.cmpi slt, %c5_i32_280, %620 : i32
    %648 = arith.andi %646, %647 : i1
    %649 = arith.select %648, %496, %1 : vector<8x128xf32>
    %650 = arith.maximumf %645, %649 : vector<8x128xf32>
    %c6_i32_281 = arith.constant 6 : i32
    %651 = arith.cmpi sge, %c6_i32_281, %614 : i32
    %c6_i32_282 = arith.constant 6 : i32
    %652 = arith.cmpi slt, %c6_i32_282, %620 : i32
    %653 = arith.andi %651, %652 : i1
    %654 = arith.select %653, %499, %1 : vector<8x128xf32>
    %655 = arith.maximumf %650, %654 : vector<8x128xf32>
    %c7_i32_283 = arith.constant 7 : i32
    %656 = arith.cmpi sge, %c7_i32_283, %614 : i32
    %c7_i32_284 = arith.constant 7 : i32
    %657 = arith.cmpi slt, %c7_i32_284, %620 : i32
    %658 = arith.andi %656, %657 : i1
    %659 = arith.select %658, %502, %1 : vector<8x128xf32>
    %660 = arith.maximumf %655, %659 : vector<8x128xf32>
    %661 = arith.cmpi sle, %620, %614 : i32
    %c4_i32_285 = arith.constant 4 : i32
    %662 = arith.muli %476, %c4_i32_285 : i32
    %c3_i32_286 = arith.constant 3 : i32
    %663 = arith.addi %662, %c3_i32_286 : i32
    %c2_i32_287 = arith.constant 2 : i32
    %664 = arith.muli %663, %c2_i32_287 : i32
    %c0_i32_288 = arith.constant 0 : i32
    %665 = arith.addi %664, %c0_i32_288 : i32
    %666 = arith.index_cast %665 : i32 to index
    %667 = memref.load %arg3[%666] : memref<96xi32, #tpu.memory_space<smem>>
    %c4_i32_289 = arith.constant 4 : i32
    %668 = arith.muli %476, %c4_i32_289 : i32
    %c3_i32_290 = arith.constant 3 : i32
    %669 = arith.addi %668, %c3_i32_290 : i32
    %c2_i32_291 = arith.constant 2 : i32
    %670 = arith.muli %669, %c2_i32_291 : i32
    %c1_i32_292 = arith.constant 1 : i32
    %671 = arith.addi %670, %c1_i32_292 : i32
    %672 = arith.index_cast %671 : i32 to index
    %673 = memref.load %arg3[%672] : memref<96xi32, #tpu.memory_space<smem>>
    %c0_i32_293 = arith.constant 0 : i32
    %674 = arith.cmpi sge, %c0_i32_293, %667 : i32
    %c0_i32_294 = arith.constant 0 : i32
    %675 = arith.cmpi slt, %c0_i32_294, %673 : i32
    %676 = arith.andi %674, %675 : i1
    %677 = arith.select %676, %481, %1 : vector<8x128xf32>
    %678 = arith.maximumf %1, %677 : vector<8x128xf32>
    %c1_i32_295 = arith.constant 1 : i32
    %679 = arith.cmpi sge, %c1_i32_295, %667 : i32
    %c1_i32_296 = arith.constant 1 : i32
    %680 = arith.cmpi slt, %c1_i32_296, %673 : i32
    %681 = arith.andi %679, %680 : i1
    %682 = arith.select %681, %484, %1 : vector<8x128xf32>
    %683 = arith.maximumf %678, %682 : vector<8x128xf32>
    %c2_i32_297 = arith.constant 2 : i32
    %684 = arith.cmpi sge, %c2_i32_297, %667 : i32
    %c2_i32_298 = arith.constant 2 : i32
    %685 = arith.cmpi slt, %c2_i32_298, %673 : i32
    %686 = arith.andi %684, %685 : i1
    %687 = arith.select %686, %487, %1 : vector<8x128xf32>
    %688 = arith.maximumf %683, %687 : vector<8x128xf32>
    %c3_i32_299 = arith.constant 3 : i32
    %689 = arith.cmpi sge, %c3_i32_299, %667 : i32
    %c3_i32_300 = arith.constant 3 : i32
    %690 = arith.cmpi slt, %c3_i32_300, %673 : i32
    %691 = arith.andi %689, %690 : i1
    %692 = arith.select %691, %490, %1 : vector<8x128xf32>
    %693 = arith.maximumf %688, %692 : vector<8x128xf32>
    %c4_i32_301 = arith.constant 4 : i32
    %694 = arith.cmpi sge, %c4_i32_301, %667 : i32
    %c4_i32_302 = arith.constant 4 : i32
    %695 = arith.cmpi slt, %c4_i32_302, %673 : i32
    %696 = arith.andi %694, %695 : i1
    %697 = arith.select %696, %493, %1 : vector<8x128xf32>
    %698 = arith.maximumf %693, %697 : vector<8x128xf32>
    %c5_i32_303 = arith.constant 5 : i32
    %699 = arith.cmpi sge, %c5_i32_303, %667 : i32
    %c5_i32_304 = arith.constant 5 : i32
    %700 = arith.cmpi slt, %c5_i32_304, %673 : i32
    %701 = arith.andi %699, %700 : i1
    %702 = arith.select %701, %496, %1 : vector<8x128xf32>
    %703 = arith.maximumf %698, %702 : vector<8x128xf32>
    %c6_i32_305 = arith.constant 6 : i32
    %704 = arith.cmpi sge, %c6_i32_305, %667 : i32
    %c6_i32_306 = arith.constant 6 : i32
    %705 = arith.cmpi slt, %c6_i32_306, %673 : i32
    %706 = arith.andi %704, %705 : i1
    %707 = arith.select %706, %499, %1 : vector<8x128xf32>
    %708 = arith.maximumf %703, %707 : vector<8x128xf32>
    %c7_i32_307 = arith.constant 7 : i32
    %709 = arith.cmpi sge, %c7_i32_307, %667 : i32
    %c7_i32_308 = arith.constant 7 : i32
    %710 = arith.cmpi slt, %c7_i32_308, %673 : i32
    %711 = arith.andi %709, %710 : i1
    %712 = arith.select %711, %502, %1 : vector<8x128xf32>
    %713 = arith.maximumf %708, %712 : vector<8x128xf32>
    %714 = arith.cmpi sle, %673, %667 : i32
    %c4_i32_309 = arith.constant 4 : i32
    %715 = arith.muli %476, %c4_i32_309 : i32
    %c0_i32_310 = arith.constant 0 : i32
    %716 = arith.addi %715, %c0_i32_310 : i32
    %c2_i32_311 = arith.constant 2 : i32
    %717 = arith.muli %716, %c2_i32_311 : i32
    %c0_i32_312 = arith.constant 0 : i32
    %718 = arith.addi %717, %c0_i32_312 : i32
    %719 = arith.index_cast %718 : i32 to index
    %720 = memref.load %arg2[%719] : memref<96xi32, #tpu.memory_space<smem>>
    %c4_i32_313 = arith.constant 4 : i32
    %721 = arith.muli %476, %c4_i32_313 : i32
    %c0_i32_314 = arith.constant 0 : i32
    %722 = arith.addi %721, %c0_i32_314 : i32
    %c2_i32_315 = arith.constant 2 : i32
    %723 = arith.muli %722, %c2_i32_315 : i32
    %c1_i32_316 = arith.constant 1 : i32
    %724 = arith.addi %723, %c1_i32_316 : i32
    %725 = arith.index_cast %724 : i32 to index
    %726 = memref.load %arg2[%725] : memref<96xi32, #tpu.memory_space<smem>>
    %727 = vector.broadcast %720 : i32 to vector<8x1xi32>
    %728 = arith.cmpi sge, %0, %727 : vector<8x1xi32>
    %729 = vector.broadcast %726 : i32 to vector<8x1xi32>
    %730 = arith.cmpi slt, %0, %729 : vector<8x1xi32>
    %731 = arith.andi %728, %730 : vector<8x1xi1>
    %732 = arith.cmpi sle, %726, %720 : i32
    %cst_317 = arith.constant 0xFF800000 : f32
    %733 = vector.shape_cast %731 : vector<8x1xi1> to vector<8x1xi1>
    %734 = vector.broadcast %733 : vector<8x1xi1> to vector<8x128xi1>
    %735 = vector.broadcast %cst_317 : f32 to vector<8x128xf32>
    %736 = arith.select %734, %554, %735 : vector<8x128xi1>, vector<8x128xf32>
    %cst_318 = arith.constant dense<0xFF800000> : vector<128xf32>
    %737 = vector.multi_reduction <maximumf>, %736, %cst_318 [0] : vector<8x128xf32> to vector<128xf32>
    %738 = vector.shape_cast %737 : vector<128xf32> to vector<1x128xf32>
    %739 = arith.ori %732, %555 : i1
    %cst_319 = arith.constant 0.000000e+00 : f32
    %740 = vector.broadcast %cst_319 : f32 to vector<1x128xf32>
    %741 = arith.select %739, %740, %738 : vector<1x128xf32>
    %742 = arith.addf %474, %741 : vector<1x128xf32>
    %cst_320 = arith.constant 0xFF800000 : f32
    %743 = vector.shape_cast %731 : vector<8x1xi1> to vector<8x1xi1>
    %744 = vector.broadcast %743 : vector<8x1xi1> to vector<8x128xi1>
    %745 = vector.broadcast %cst_320 : f32 to vector<8x128xf32>
    %746 = arith.select %744, %607, %745 : vector<8x128xi1>, vector<8x128xf32>
    %cst_321 = arith.constant dense<0xFF800000> : vector<128xf32>
    %747 = vector.multi_reduction <maximumf>, %746, %cst_321 [0] : vector<8x128xf32> to vector<128xf32>
    %748 = vector.shape_cast %747 : vector<128xf32> to vector<1x128xf32>
    %749 = arith.ori %732, %608 : i1
    %cst_322 = arith.constant 0.000000e+00 : f32
    %750 = vector.broadcast %cst_322 : f32 to vector<1x128xf32>
    %751 = arith.select %749, %750, %748 : vector<1x128xf32>
    %752 = arith.addf %742, %751 : vector<1x128xf32>
    %cst_323 = arith.constant 0xFF800000 : f32
    %753 = vector.shape_cast %731 : vector<8x1xi1> to vector<8x1xi1>
    %754 = vector.broadcast %753 : vector<8x1xi1> to vector<8x128xi1>
    %755 = vector.broadcast %cst_323 : f32 to vector<8x128xf32>
    %756 = arith.select %754, %660, %755 : vector<8x128xi1>, vector<8x128xf32>
    %cst_324 = arith.constant dense<0xFF800000> : vector<128xf32>
    %757 = vector.multi_reduction <maximumf>, %756, %cst_324 [0] : vector<8x128xf32> to vector<128xf32>
    %758 = vector.shape_cast %757 : vector<128xf32> to vector<1x128xf32>
    %759 = arith.ori %732, %661 : i1
    %cst_325 = arith.constant 0.000000e+00 : f32
    %760 = vector.broadcast %cst_325 : f32 to vector<1x128xf32>
    %761 = arith.select %759, %760, %758 : vector<1x128xf32>
    %762 = arith.addf %752, %761 : vector<1x128xf32>
    %cst_326 = arith.constant 0xFF800000 : f32
    %763 = vector.shape_cast %731 : vector<8x1xi1> to vector<8x1xi1>
    %764 = vector.broadcast %763 : vector<8x1xi1> to vector<8x128xi1>
    %765 = vector.broadcast %cst_326 : f32 to vector<8x128xf32>
    %766 = arith.select %764, %713, %765 : vector<8x128xi1>, vector<8x128xf32>
    %cst_327 = arith.constant dense<0xFF800000> : vector<128xf32>
    %767 = vector.multi_reduction <maximumf>, %766, %cst_327 [0] : vector<8x128xf32> to vector<128xf32>
    %768 = vector.shape_cast %767 : vector<128xf32> to vector<1x128xf32>
    %769 = arith.ori %732, %714 : i1
    %cst_328 = arith.constant 0.000000e+00 : f32
    %770 = vector.broadcast %cst_328 : f32 to vector<1x128xf32>
    %771 = arith.select %769, %770, %768 : vector<1x128xf32>
    %772 = arith.addf %762, %771 : vector<1x128xf32>
    %c4_i32_329 = arith.constant 4 : i32
    %773 = arith.muli %476, %c4_i32_329 : i32
    %c1_i32_330 = arith.constant 1 : i32
    %774 = arith.addi %773, %c1_i32_330 : i32
    %c2_i32_331 = arith.constant 2 : i32
    %775 = arith.muli %774, %c2_i32_331 : i32
    %c0_i32_332 = arith.constant 0 : i32
    %776 = arith.addi %775, %c0_i32_332 : i32
    %777 = arith.index_cast %776 : i32 to index
    %778 = memref.load %arg2[%777] : memref<96xi32, #tpu.memory_space<smem>>
    %c4_i32_333 = arith.constant 4 : i32
    %779 = arith.muli %476, %c4_i32_333 : i32
    %c1_i32_334 = arith.constant 1 : i32
    %780 = arith.addi %779, %c1_i32_334 : i32
    %c2_i32_335 = arith.constant 2 : i32
    %781 = arith.muli %780, %c2_i32_335 : i32
    %c1_i32_336 = arith.constant 1 : i32
    %782 = arith.addi %781, %c1_i32_336 : i32
    %783 = arith.index_cast %782 : i32 to index
    %784 = memref.load %arg2[%783] : memref<96xi32, #tpu.memory_space<smem>>
    %785 = vector.broadcast %778 : i32 to vector<8x1xi32>
    %786 = arith.cmpi sge, %0, %785 : vector<8x1xi32>
    %787 = vector.broadcast %784 : i32 to vector<8x1xi32>
    %788 = arith.cmpi slt, %0, %787 : vector<8x1xi32>
    %789 = arith.andi %786, %788 : vector<8x1xi1>
    %790 = arith.cmpi sle, %784, %778 : i32
    %cst_337 = arith.constant 0xFF800000 : f32
    %791 = vector.shape_cast %789 : vector<8x1xi1> to vector<8x1xi1>
    %792 = vector.broadcast %791 : vector<8x1xi1> to vector<8x128xi1>
    %793 = vector.broadcast %cst_337 : f32 to vector<8x128xf32>
    %794 = arith.select %792, %554, %793 : vector<8x128xi1>, vector<8x128xf32>
    %cst_338 = arith.constant dense<0xFF800000> : vector<128xf32>
    %795 = vector.multi_reduction <maximumf>, %794, %cst_338 [0] : vector<8x128xf32> to vector<128xf32>
    %796 = vector.shape_cast %795 : vector<128xf32> to vector<1x128xf32>
    %797 = arith.ori %790, %555 : i1
    %cst_339 = arith.constant 0.000000e+00 : f32
    %798 = vector.broadcast %cst_339 : f32 to vector<1x128xf32>
    %799 = arith.select %797, %798, %796 : vector<1x128xf32>
    %800 = arith.addf %772, %799 : vector<1x128xf32>
    %cst_340 = arith.constant 0xFF800000 : f32
    %801 = vector.shape_cast %789 : vector<8x1xi1> to vector<8x1xi1>
    %802 = vector.broadcast %801 : vector<8x1xi1> to vector<8x128xi1>
    %803 = vector.broadcast %cst_340 : f32 to vector<8x128xf32>
    %804 = arith.select %802, %607, %803 : vector<8x128xi1>, vector<8x128xf32>
    %cst_341 = arith.constant dense<0xFF800000> : vector<128xf32>
    %805 = vector.multi_reduction <maximumf>, %804, %cst_341 [0] : vector<8x128xf32> to vector<128xf32>
    %806 = vector.shape_cast %805 : vector<128xf32> to vector<1x128xf32>
    %807 = arith.ori %790, %608 : i1
    %cst_342 = arith.constant 0.000000e+00 : f32
    %808 = vector.broadcast %cst_342 : f32 to vector<1x128xf32>
    %809 = arith.select %807, %808, %806 : vector<1x128xf32>
    %810 = arith.addf %800, %809 : vector<1x128xf32>
    %cst_343 = arith.constant 0xFF800000 : f32
    %811 = vector.shape_cast %789 : vector<8x1xi1> to vector<8x1xi1>
    %812 = vector.broadcast %811 : vector<8x1xi1> to vector<8x128xi1>
    %813 = vector.broadcast %cst_343 : f32 to vector<8x128xf32>
    %814 = arith.select %812, %660, %813 : vector<8x128xi1>, vector<8x128xf32>
    %cst_344 = arith.constant dense<0xFF800000> : vector<128xf32>
    %815 = vector.multi_reduction <maximumf>, %814, %cst_344 [0] : vector<8x128xf32> to vector<128xf32>
    %816 = vector.shape_cast %815 : vector<128xf32> to vector<1x128xf32>
    %817 = arith.ori %790, %661 : i1
    %cst_345 = arith.constant 0.000000e+00 : f32
    %818 = vector.broadcast %cst_345 : f32 to vector<1x128xf32>
    %819 = arith.select %817, %818, %816 : vector<1x128xf32>
    %820 = arith.addf %810, %819 : vector<1x128xf32>
    %cst_346 = arith.constant 0xFF800000 : f32
    %821 = vector.shape_cast %789 : vector<8x1xi1> to vector<8x1xi1>
    %822 = vector.broadcast %821 : vector<8x1xi1> to vector<8x128xi1>
    %823 = vector.broadcast %cst_346 : f32 to vector<8x128xf32>
    %824 = arith.select %822, %713, %823 : vector<8x128xi1>, vector<8x128xf32>
    %cst_347 = arith.constant dense<0xFF800000> : vector<128xf32>
    %825 = vector.multi_reduction <maximumf>, %824, %cst_347 [0] : vector<8x128xf32> to vector<128xf32>
    %826 = vector.shape_cast %825 : vector<128xf32> to vector<1x128xf32>
    %827 = arith.ori %790, %714 : i1
    %cst_348 = arith.constant 0.000000e+00 : f32
    %828 = vector.broadcast %cst_348 : f32 to vector<1x128xf32>
    %829 = arith.select %827, %828, %826 : vector<1x128xf32>
    %830 = arith.addf %820, %829 : vector<1x128xf32>
    %c4_i32_349 = arith.constant 4 : i32
    %831 = arith.muli %476, %c4_i32_349 : i32
    %c2_i32_350 = arith.constant 2 : i32
    %832 = arith.addi %831, %c2_i32_350 : i32
    %c2_i32_351 = arith.constant 2 : i32
    %833 = arith.muli %832, %c2_i32_351 : i32
    %c0_i32_352 = arith.constant 0 : i32
    %834 = arith.addi %833, %c0_i32_352 : i32
    %835 = arith.index_cast %834 : i32 to index
    %836 = memref.load %arg2[%835] : memref<96xi32, #tpu.memory_space<smem>>
    %c4_i32_353 = arith.constant 4 : i32
    %837 = arith.muli %476, %c4_i32_353 : i32
    %c2_i32_354 = arith.constant 2 : i32
    %838 = arith.addi %837, %c2_i32_354 : i32
    %c2_i32_355 = arith.constant 2 : i32
    %839 = arith.muli %838, %c2_i32_355 : i32
    %c1_i32_356 = arith.constant 1 : i32
    %840 = arith.addi %839, %c1_i32_356 : i32
    %841 = arith.index_cast %840 : i32 to index
    %842 = memref.load %arg2[%841] : memref<96xi32, #tpu.memory_space<smem>>
    %843 = vector.broadcast %836 : i32 to vector<8x1xi32>
    %844 = arith.cmpi sge, %0, %843 : vector<8x1xi32>
    %845 = vector.broadcast %842 : i32 to vector<8x1xi32>
    %846 = arith.cmpi slt, %0, %845 : vector<8x1xi32>
    %847 = arith.andi %844, %846 : vector<8x1xi1>
    %848 = arith.cmpi sle, %842, %836 : i32
    %cst_357 = arith.constant 0xFF800000 : f32
    %849 = vector.shape_cast %847 : vector<8x1xi1> to vector<8x1xi1>
    %850 = vector.broadcast %849 : vector<8x1xi1> to vector<8x128xi1>
    %851 = vector.broadcast %cst_357 : f32 to vector<8x128xf32>
    %852 = arith.select %850, %554, %851 : vector<8x128xi1>, vector<8x128xf32>
    %cst_358 = arith.constant dense<0xFF800000> : vector<128xf32>
    %853 = vector.multi_reduction <maximumf>, %852, %cst_358 [0] : vector<8x128xf32> to vector<128xf32>
    %854 = vector.shape_cast %853 : vector<128xf32> to vector<1x128xf32>
    %855 = arith.ori %848, %555 : i1
    %cst_359 = arith.constant 0.000000e+00 : f32
    %856 = vector.broadcast %cst_359 : f32 to vector<1x128xf32>
    %857 = arith.select %855, %856, %854 : vector<1x128xf32>
    %858 = arith.addf %830, %857 : vector<1x128xf32>
    %cst_360 = arith.constant 0xFF800000 : f32
    %859 = vector.shape_cast %847 : vector<8x1xi1> to vector<8x1xi1>
    %860 = vector.broadcast %859 : vector<8x1xi1> to vector<8x128xi1>
    %861 = vector.broadcast %cst_360 : f32 to vector<8x128xf32>
    %862 = arith.select %860, %607, %861 : vector<8x128xi1>, vector<8x128xf32>
    %cst_361 = arith.constant dense<0xFF800000> : vector<128xf32>
    %863 = vector.multi_reduction <maximumf>, %862, %cst_361 [0] : vector<8x128xf32> to vector<128xf32>
    %864 = vector.shape_cast %863 : vector<128xf32> to vector<1x128xf32>
    %865 = arith.ori %848, %608 : i1
    %cst_362 = arith.constant 0.000000e+00 : f32
    %866 = vector.broadcast %cst_362 : f32 to vector<1x128xf32>
    %867 = arith.select %865, %866, %864 : vector<1x128xf32>
    %868 = arith.addf %858, %867 : vector<1x128xf32>
    %cst_363 = arith.constant 0xFF800000 : f32
    %869 = vector.shape_cast %847 : vector<8x1xi1> to vector<8x1xi1>
    %870 = vector.broadcast %869 : vector<8x1xi1> to vector<8x128xi1>
    %871 = vector.broadcast %cst_363 : f32 to vector<8x128xf32>
    %872 = arith.select %870, %660, %871 : vector<8x128xi1>, vector<8x128xf32>
    %cst_364 = arith.constant dense<0xFF800000> : vector<128xf32>
    %873 = vector.multi_reduction <maximumf>, %872, %cst_364 [0] : vector<8x128xf32> to vector<128xf32>
    %874 = vector.shape_cast %873 : vector<128xf32> to vector<1x128xf32>
    %875 = arith.ori %848, %661 : i1
    %cst_365 = arith.constant 0.000000e+00 : f32
    %876 = vector.broadcast %cst_365 : f32 to vector<1x128xf32>
    %877 = arith.select %875, %876, %874 : vector<1x128xf32>
    %878 = arith.addf %868, %877 : vector<1x128xf32>
    %cst_366 = arith.constant 0xFF800000 : f32
    %879 = vector.shape_cast %847 : vector<8x1xi1> to vector<8x1xi1>
    %880 = vector.broadcast %879 : vector<8x1xi1> to vector<8x128xi1>
    %881 = vector.broadcast %cst_366 : f32 to vector<8x128xf32>
    %882 = arith.select %880, %713, %881 : vector<8x128xi1>, vector<8x128xf32>
    %cst_367 = arith.constant dense<0xFF800000> : vector<128xf32>
    %883 = vector.multi_reduction <maximumf>, %882, %cst_367 [0] : vector<8x128xf32> to vector<128xf32>
    %884 = vector.shape_cast %883 : vector<128xf32> to vector<1x128xf32>
    %885 = arith.ori %848, %714 : i1
    %cst_368 = arith.constant 0.000000e+00 : f32
    %886 = vector.broadcast %cst_368 : f32 to vector<1x128xf32>
    %887 = arith.select %885, %886, %884 : vector<1x128xf32>
    %888 = arith.addf %878, %887 : vector<1x128xf32>
    %c4_i32_369 = arith.constant 4 : i32
    %889 = arith.muli %476, %c4_i32_369 : i32
    %c3_i32_370 = arith.constant 3 : i32
    %890 = arith.addi %889, %c3_i32_370 : i32
    %c2_i32_371 = arith.constant 2 : i32
    %891 = arith.muli %890, %c2_i32_371 : i32
    %c0_i32_372 = arith.constant 0 : i32
    %892 = arith.addi %891, %c0_i32_372 : i32
    %893 = arith.index_cast %892 : i32 to index
    %894 = memref.load %arg2[%893] : memref<96xi32, #tpu.memory_space<smem>>
    %c4_i32_373 = arith.constant 4 : i32
    %895 = arith.muli %476, %c4_i32_373 : i32
    %c3_i32_374 = arith.constant 3 : i32
    %896 = arith.addi %895, %c3_i32_374 : i32
    %c2_i32_375 = arith.constant 2 : i32
    %897 = arith.muli %896, %c2_i32_375 : i32
    %c1_i32_376 = arith.constant 1 : i32
    %898 = arith.addi %897, %c1_i32_376 : i32
    %899 = arith.index_cast %898 : i32 to index
    %900 = memref.load %arg2[%899] : memref<96xi32, #tpu.memory_space<smem>>
    %901 = vector.broadcast %894 : i32 to vector<8x1xi32>
    %902 = arith.cmpi sge, %0, %901 : vector<8x1xi32>
    %903 = vector.broadcast %900 : i32 to vector<8x1xi32>
    %904 = arith.cmpi slt, %0, %903 : vector<8x1xi32>
    %905 = arith.andi %902, %904 : vector<8x1xi1>
    %906 = arith.cmpi sle, %900, %894 : i32
    %cst_377 = arith.constant 0xFF800000 : f32
    %907 = vector.shape_cast %905 : vector<8x1xi1> to vector<8x1xi1>
    %908 = vector.broadcast %907 : vector<8x1xi1> to vector<8x128xi1>
    %909 = vector.broadcast %cst_377 : f32 to vector<8x128xf32>
    %910 = arith.select %908, %554, %909 : vector<8x128xi1>, vector<8x128xf32>
    %cst_378 = arith.constant dense<0xFF800000> : vector<128xf32>
    %911 = vector.multi_reduction <maximumf>, %910, %cst_378 [0] : vector<8x128xf32> to vector<128xf32>
    %912 = vector.shape_cast %911 : vector<128xf32> to vector<1x128xf32>
    %913 = arith.ori %906, %555 : i1
    %cst_379 = arith.constant 0.000000e+00 : f32
    %914 = vector.broadcast %cst_379 : f32 to vector<1x128xf32>
    %915 = arith.select %913, %914, %912 : vector<1x128xf32>
    %916 = arith.addf %888, %915 : vector<1x128xf32>
    %cst_380 = arith.constant 0xFF800000 : f32
    %917 = vector.shape_cast %905 : vector<8x1xi1> to vector<8x1xi1>
    %918 = vector.broadcast %917 : vector<8x1xi1> to vector<8x128xi1>
    %919 = vector.broadcast %cst_380 : f32 to vector<8x128xf32>
    %920 = arith.select %918, %607, %919 : vector<8x128xi1>, vector<8x128xf32>
    %cst_381 = arith.constant dense<0xFF800000> : vector<128xf32>
    %921 = vector.multi_reduction <maximumf>, %920, %cst_381 [0] : vector<8x128xf32> to vector<128xf32>
    %922 = vector.shape_cast %921 : vector<128xf32> to vector<1x128xf32>
    %923 = arith.ori %906, %608 : i1
    %cst_382 = arith.constant 0.000000e+00 : f32
    %924 = vector.broadcast %cst_382 : f32 to vector<1x128xf32>
    %925 = arith.select %923, %924, %922 : vector<1x128xf32>
    %926 = arith.addf %916, %925 : vector<1x128xf32>
    %cst_383 = arith.constant 0xFF800000 : f32
    %927 = vector.shape_cast %905 : vector<8x1xi1> to vector<8x1xi1>
    %928 = vector.broadcast %927 : vector<8x1xi1> to vector<8x128xi1>
    %929 = vector.broadcast %cst_383 : f32 to vector<8x128xf32>
    %930 = arith.select %928, %660, %929 : vector<8x128xi1>, vector<8x128xf32>
    %cst_384 = arith.constant dense<0xFF800000> : vector<128xf32>
    %931 = vector.multi_reduction <maximumf>, %930, %cst_384 [0] : vector<8x128xf32> to vector<128xf32>
    %932 = vector.shape_cast %931 : vector<128xf32> to vector<1x128xf32>
    %933 = arith.ori %906, %661 : i1
    %cst_385 = arith.constant 0.000000e+00 : f32
    %934 = vector.broadcast %cst_385 : f32 to vector<1x128xf32>
    %935 = arith.select %933, %934, %932 : vector<1x128xf32>
    %936 = arith.addf %926, %935 : vector<1x128xf32>
    %cst_386 = arith.constant 0xFF800000 : f32
    %937 = vector.shape_cast %905 : vector<8x1xi1> to vector<8x1xi1>
    %938 = vector.broadcast %937 : vector<8x1xi1> to vector<8x128xi1>
    %939 = vector.broadcast %cst_386 : f32 to vector<8x128xf32>
    %940 = arith.select %938, %713, %939 : vector<8x128xi1>, vector<8x128xf32>
    %cst_387 = arith.constant dense<0xFF800000> : vector<128xf32>
    %941 = vector.multi_reduction <maximumf>, %940, %cst_387 [0] : vector<8x128xf32> to vector<128xf32>
    %942 = vector.shape_cast %941 : vector<128xf32> to vector<1x128xf32>
    %943 = arith.ori %906, %714 : i1
    %cst_388 = arith.constant 0.000000e+00 : f32
    %944 = vector.broadcast %cst_388 : f32 to vector<1x128xf32>
    %945 = arith.select %943, %944, %942 : vector<1x128xf32>
    %946 = arith.addf %936, %945 : vector<1x128xf32>
    %c4_i32_389 = arith.constant 4 : i32
    %947 = arith.muli %arg0, %c4_i32_389 : i32
    %c2_i32_390 = arith.constant 2 : i32
    %948 = arith.addi %947, %c2_i32_390 : i32
    %949 = arith.index_cast %948 : i32 to index
    %950 = memref.load %arg1[%949] : memref<12xi32, #tpu.memory_space<smem>>
    %951 = arith.index_cast %950 : i32 to index
    %c0_391 = arith.constant 0 : index
    %c0_392 = arith.constant 0 : index
    %c0_393 = arith.constant 0 : index
    %952 = vector.load %arg4[%951, %c0_391, %c0_392, %c0_393] : memref<8x8x8x128xf32, #tpu.memory_space<vmem>>, vector<1x1x8x128xf32>
    %953 = vector.shape_cast %952 : vector<1x1x8x128xf32> to vector<8x128xf32>
    %954 = arith.index_cast %950 : i32 to index
    %c1_394 = arith.constant 1 : index
    %c0_395 = arith.constant 0 : index
    %c0_396 = arith.constant 0 : index
    %955 = vector.load %arg4[%954, %c1_394, %c0_395, %c0_396] : memref<8x8x8x128xf32, #tpu.memory_space<vmem>>, vector<1x1x8x128xf32>
    %956 = vector.shape_cast %955 : vector<1x1x8x128xf32> to vector<8x128xf32>
    %957 = arith.index_cast %950 : i32 to index
    %c2_397 = arith.constant 2 : index
    %c0_398 = arith.constant 0 : index
    %c0_399 = arith.constant 0 : index
    %958 = vector.load %arg4[%957, %c2_397, %c0_398, %c0_399] : memref<8x8x8x128xf32, #tpu.memory_space<vmem>>, vector<1x1x8x128xf32>
    %959 = vector.shape_cast %958 : vector<1x1x8x128xf32> to vector<8x128xf32>
    %960 = arith.index_cast %950 : i32 to index
    %c3_400 = arith.constant 3 : index
    %c0_401 = arith.constant 0 : index
    %c0_402 = arith.constant 0 : index
    %961 = vector.load %arg4[%960, %c3_400, %c0_401, %c0_402] : memref<8x8x8x128xf32, #tpu.memory_space<vmem>>, vector<1x1x8x128xf32>
    %962 = vector.shape_cast %961 : vector<1x1x8x128xf32> to vector<8x128xf32>
    %963 = arith.index_cast %950 : i32 to index
    %c4_403 = arith.constant 4 : index
    %c0_404 = arith.constant 0 : index
    %c0_405 = arith.constant 0 : index
    %964 = vector.load %arg4[%963, %c4_403, %c0_404, %c0_405] : memref<8x8x8x128xf32, #tpu.memory_space<vmem>>, vector<1x1x8x128xf32>
    %965 = vector.shape_cast %964 : vector<1x1x8x128xf32> to vector<8x128xf32>
    %966 = arith.index_cast %950 : i32 to index
    %c5_406 = arith.constant 5 : index
    %c0_407 = arith.constant 0 : index
    %c0_408 = arith.constant 0 : index
    %967 = vector.load %arg4[%966, %c5_406, %c0_407, %c0_408] : memref<8x8x8x128xf32, #tpu.memory_space<vmem>>, vector<1x1x8x128xf32>
    %968 = vector.shape_cast %967 : vector<1x1x8x128xf32> to vector<8x128xf32>
    %969 = arith.index_cast %950 : i32 to index
    %c6_409 = arith.constant 6 : index
    %c0_410 = arith.constant 0 : index
    %c0_411 = arith.constant 0 : index
    %970 = vector.load %arg4[%969, %c6_409, %c0_410, %c0_411] : memref<8x8x8x128xf32, #tpu.memory_space<vmem>>, vector<1x1x8x128xf32>
    %971 = vector.shape_cast %970 : vector<1x1x8x128xf32> to vector<8x128xf32>
    %972 = arith.index_cast %950 : i32 to index
    %c7_412 = arith.constant 7 : index
    %c0_413 = arith.constant 0 : index
    %c0_414 = arith.constant 0 : index
    %973 = vector.load %arg4[%972, %c7_412, %c0_413, %c0_414] : memref<8x8x8x128xf32, #tpu.memory_space<vmem>>, vector<1x1x8x128xf32>
    %974 = vector.shape_cast %973 : vector<1x1x8x128xf32> to vector<8x128xf32>
    %c4_i32_415 = arith.constant 4 : i32
    %975 = arith.muli %948, %c4_i32_415 : i32
    %c0_i32_416 = arith.constant 0 : i32
    %976 = arith.addi %975, %c0_i32_416 : i32
    %c2_i32_417 = arith.constant 2 : i32
    %977 = arith.muli %976, %c2_i32_417 : i32
    %c0_i32_418 = arith.constant 0 : i32
    %978 = arith.addi %977, %c0_i32_418 : i32
    %979 = arith.index_cast %978 : i32 to index
    %980 = memref.load %arg3[%979] : memref<96xi32, #tpu.memory_space<smem>>
    %c4_i32_419 = arith.constant 4 : i32
    %981 = arith.muli %948, %c4_i32_419 : i32
    %c0_i32_420 = arith.constant 0 : i32
    %982 = arith.addi %981, %c0_i32_420 : i32
    %c2_i32_421 = arith.constant 2 : i32
    %983 = arith.muli %982, %c2_i32_421 : i32
    %c1_i32_422 = arith.constant 1 : i32
    %984 = arith.addi %983, %c1_i32_422 : i32
    %985 = arith.index_cast %984 : i32 to index
    %986 = memref.load %arg3[%985] : memref<96xi32, #tpu.memory_space<smem>>
    %c0_i32_423 = arith.constant 0 : i32
    %987 = arith.cmpi sge, %c0_i32_423, %980 : i32
    %c0_i32_424 = arith.constant 0 : i32
    %988 = arith.cmpi slt, %c0_i32_424, %986 : i32
    %989 = arith.andi %987, %988 : i1
    %990 = arith.select %989, %953, %1 : vector<8x128xf32>
    %991 = arith.maximumf %1, %990 : vector<8x128xf32>
    %c1_i32_425 = arith.constant 1 : i32
    %992 = arith.cmpi sge, %c1_i32_425, %980 : i32
    %c1_i32_426 = arith.constant 1 : i32
    %993 = arith.cmpi slt, %c1_i32_426, %986 : i32
    %994 = arith.andi %992, %993 : i1
    %995 = arith.select %994, %956, %1 : vector<8x128xf32>
    %996 = arith.maximumf %991, %995 : vector<8x128xf32>
    %c2_i32_427 = arith.constant 2 : i32
    %997 = arith.cmpi sge, %c2_i32_427, %980 : i32
    %c2_i32_428 = arith.constant 2 : i32
    %998 = arith.cmpi slt, %c2_i32_428, %986 : i32
    %999 = arith.andi %997, %998 : i1
    %1000 = arith.select %999, %959, %1 : vector<8x128xf32>
    %1001 = arith.maximumf %996, %1000 : vector<8x128xf32>
    %c3_i32_429 = arith.constant 3 : i32
    %1002 = arith.cmpi sge, %c3_i32_429, %980 : i32
    %c3_i32_430 = arith.constant 3 : i32
    %1003 = arith.cmpi slt, %c3_i32_430, %986 : i32
    %1004 = arith.andi %1002, %1003 : i1
    %1005 = arith.select %1004, %962, %1 : vector<8x128xf32>
    %1006 = arith.maximumf %1001, %1005 : vector<8x128xf32>
    %c4_i32_431 = arith.constant 4 : i32
    %1007 = arith.cmpi sge, %c4_i32_431, %980 : i32
    %c4_i32_432 = arith.constant 4 : i32
    %1008 = arith.cmpi slt, %c4_i32_432, %986 : i32
    %1009 = arith.andi %1007, %1008 : i1
    %1010 = arith.select %1009, %965, %1 : vector<8x128xf32>
    %1011 = arith.maximumf %1006, %1010 : vector<8x128xf32>
    %c5_i32_433 = arith.constant 5 : i32
    %1012 = arith.cmpi sge, %c5_i32_433, %980 : i32
    %c5_i32_434 = arith.constant 5 : i32
    %1013 = arith.cmpi slt, %c5_i32_434, %986 : i32
    %1014 = arith.andi %1012, %1013 : i1
    %1015 = arith.select %1014, %968, %1 : vector<8x128xf32>
    %1016 = arith.maximumf %1011, %1015 : vector<8x128xf32>
    %c6_i32_435 = arith.constant 6 : i32
    %1017 = arith.cmpi sge, %c6_i32_435, %980 : i32
    %c6_i32_436 = arith.constant 6 : i32
    %1018 = arith.cmpi slt, %c6_i32_436, %986 : i32
    %1019 = arith.andi %1017, %1018 : i1
    %1020 = arith.select %1019, %971, %1 : vector<8x128xf32>
    %1021 = arith.maximumf %1016, %1020 : vector<8x128xf32>
    %c7_i32_437 = arith.constant 7 : i32
    %1022 = arith.cmpi sge, %c7_i32_437, %980 : i32
    %c7_i32_438 = arith.constant 7 : i32
    %1023 = arith.cmpi slt, %c7_i32_438, %986 : i32
    %1024 = arith.andi %1022, %1023 : i1
    %1025 = arith.select %1024, %974, %1 : vector<8x128xf32>
    %1026 = arith.maximumf %1021, %1025 : vector<8x128xf32>
    %1027 = arith.cmpi sle, %986, %980 : i32
    %c4_i32_439 = arith.constant 4 : i32
    %1028 = arith.muli %948, %c4_i32_439 : i32
    %c1_i32_440 = arith.constant 1 : i32
    %1029 = arith.addi %1028, %c1_i32_440 : i32
    %c2_i32_441 = arith.constant 2 : i32
    %1030 = arith.muli %1029, %c2_i32_441 : i32
    %c0_i32_442 = arith.constant 0 : i32
    %1031 = arith.addi %1030, %c0_i32_442 : i32
    %1032 = arith.index_cast %1031 : i32 to index
    %1033 = memref.load %arg3[%1032] : memref<96xi32, #tpu.memory_space<smem>>
    %c4_i32_443 = arith.constant 4 : i32
    %1034 = arith.muli %948, %c4_i32_443 : i32
    %c1_i32_444 = arith.constant 1 : i32
    %1035 = arith.addi %1034, %c1_i32_444 : i32
    %c2_i32_445 = arith.constant 2 : i32
    %1036 = arith.muli %1035, %c2_i32_445 : i32
    %c1_i32_446 = arith.constant 1 : i32
    %1037 = arith.addi %1036, %c1_i32_446 : i32
    %1038 = arith.index_cast %1037 : i32 to index
    %1039 = memref.load %arg3[%1038] : memref<96xi32, #tpu.memory_space<smem>>
    %c0_i32_447 = arith.constant 0 : i32
    %1040 = arith.cmpi sge, %c0_i32_447, %1033 : i32
    %c0_i32_448 = arith.constant 0 : i32
    %1041 = arith.cmpi slt, %c0_i32_448, %1039 : i32
    %1042 = arith.andi %1040, %1041 : i1
    %1043 = arith.select %1042, %953, %1 : vector<8x128xf32>
    %1044 = arith.maximumf %1, %1043 : vector<8x128xf32>
    %c1_i32_449 = arith.constant 1 : i32
    %1045 = arith.cmpi sge, %c1_i32_449, %1033 : i32
    %c1_i32_450 = arith.constant 1 : i32
    %1046 = arith.cmpi slt, %c1_i32_450, %1039 : i32
    %1047 = arith.andi %1045, %1046 : i1
    %1048 = arith.select %1047, %956, %1 : vector<8x128xf32>
    %1049 = arith.maximumf %1044, %1048 : vector<8x128xf32>
    %c2_i32_451 = arith.constant 2 : i32
    %1050 = arith.cmpi sge, %c2_i32_451, %1033 : i32
    %c2_i32_452 = arith.constant 2 : i32
    %1051 = arith.cmpi slt, %c2_i32_452, %1039 : i32
    %1052 = arith.andi %1050, %1051 : i1
    %1053 = arith.select %1052, %959, %1 : vector<8x128xf32>
    %1054 = arith.maximumf %1049, %1053 : vector<8x128xf32>
    %c3_i32_453 = arith.constant 3 : i32
    %1055 = arith.cmpi sge, %c3_i32_453, %1033 : i32
    %c3_i32_454 = arith.constant 3 : i32
    %1056 = arith.cmpi slt, %c3_i32_454, %1039 : i32
    %1057 = arith.andi %1055, %1056 : i1
    %1058 = arith.select %1057, %962, %1 : vector<8x128xf32>
    %1059 = arith.maximumf %1054, %1058 : vector<8x128xf32>
    %c4_i32_455 = arith.constant 4 : i32
    %1060 = arith.cmpi sge, %c4_i32_455, %1033 : i32
    %c4_i32_456 = arith.constant 4 : i32
    %1061 = arith.cmpi slt, %c4_i32_456, %1039 : i32
    %1062 = arith.andi %1060, %1061 : i1
    %1063 = arith.select %1062, %965, %1 : vector<8x128xf32>
    %1064 = arith.maximumf %1059, %1063 : vector<8x128xf32>
    %c5_i32_457 = arith.constant 5 : i32
    %1065 = arith.cmpi sge, %c5_i32_457, %1033 : i32
    %c5_i32_458 = arith.constant 5 : i32
    %1066 = arith.cmpi slt, %c5_i32_458, %1039 : i32
    %1067 = arith.andi %1065, %1066 : i1
    %1068 = arith.select %1067, %968, %1 : vector<8x128xf32>
    %1069 = arith.maximumf %1064, %1068 : vector<8x128xf32>
    %c6_i32_459 = arith.constant 6 : i32
    %1070 = arith.cmpi sge, %c6_i32_459, %1033 : i32
    %c6_i32_460 = arith.constant 6 : i32
    %1071 = arith.cmpi slt, %c6_i32_460, %1039 : i32
    %1072 = arith.andi %1070, %1071 : i1
    %1073 = arith.select %1072, %971, %1 : vector<8x128xf32>
    %1074 = arith.maximumf %1069, %1073 : vector<8x128xf32>
    %c7_i32_461 = arith.constant 7 : i32
    %1075 = arith.cmpi sge, %c7_i32_461, %1033 : i32
    %c7_i32_462 = arith.constant 7 : i32
    %1076 = arith.cmpi slt, %c7_i32_462, %1039 : i32
    %1077 = arith.andi %1075, %1076 : i1
    %1078 = arith.select %1077, %974, %1 : vector<8x128xf32>
    %1079 = arith.maximumf %1074, %1078 : vector<8x128xf32>
    %1080 = arith.cmpi sle, %1039, %1033 : i32
    %c4_i32_463 = arith.constant 4 : i32
    %1081 = arith.muli %948, %c4_i32_463 : i32
    %c2_i32_464 = arith.constant 2 : i32
    %1082 = arith.addi %1081, %c2_i32_464 : i32
    %c2_i32_465 = arith.constant 2 : i32
    %1083 = arith.muli %1082, %c2_i32_465 : i32
    %c0_i32_466 = arith.constant 0 : i32
    %1084 = arith.addi %1083, %c0_i32_466 : i32
    %1085 = arith.index_cast %1084 : i32 to index
    %1086 = memref.load %arg3[%1085] : memref<96xi32, #tpu.memory_space<smem>>
    %c4_i32_467 = arith.constant 4 : i32
    %1087 = arith.muli %948, %c4_i32_467 : i32
    %c2_i32_468 = arith.constant 2 : i32
    %1088 = arith.addi %1087, %c2_i32_468 : i32
    %c2_i32_469 = arith.constant 2 : i32
    %1089 = arith.muli %1088, %c2_i32_469 : i32
    %c1_i32_470 = arith.constant 1 : i32
    %1090 = arith.addi %1089, %c1_i32_470 : i32
    %1091 = arith.index_cast %1090 : i32 to index
    %1092 = memref.load %arg3[%1091] : memref<96xi32, #tpu.memory_space<smem>>
    %c0_i32_471 = arith.constant 0 : i32
    %1093 = arith.cmpi sge, %c0_i32_471, %1086 : i32
    %c0_i32_472 = arith.constant 0 : i32
    %1094 = arith.cmpi slt, %c0_i32_472, %1092 : i32
    %1095 = arith.andi %1093, %1094 : i1
    %1096 = arith.select %1095, %953, %1 : vector<8x128xf32>
    %1097 = arith.maximumf %1, %1096 : vector<8x128xf32>
    %c1_i32_473 = arith.constant 1 : i32
    %1098 = arith.cmpi sge, %c1_i32_473, %1086 : i32
    %c1_i32_474 = arith.constant 1 : i32
    %1099 = arith.cmpi slt, %c1_i32_474, %1092 : i32
    %1100 = arith.andi %1098, %1099 : i1
    %1101 = arith.select %1100, %956, %1 : vector<8x128xf32>
    %1102 = arith.maximumf %1097, %1101 : vector<8x128xf32>
    %c2_i32_475 = arith.constant 2 : i32
    %1103 = arith.cmpi sge, %c2_i32_475, %1086 : i32
    %c2_i32_476 = arith.constant 2 : i32
    %1104 = arith.cmpi slt, %c2_i32_476, %1092 : i32
    %1105 = arith.andi %1103, %1104 : i1
    %1106 = arith.select %1105, %959, %1 : vector<8x128xf32>
    %1107 = arith.maximumf %1102, %1106 : vector<8x128xf32>
    %c3_i32_477 = arith.constant 3 : i32
    %1108 = arith.cmpi sge, %c3_i32_477, %1086 : i32
    %c3_i32_478 = arith.constant 3 : i32
    %1109 = arith.cmpi slt, %c3_i32_478, %1092 : i32
    %1110 = arith.andi %1108, %1109 : i1
    %1111 = arith.select %1110, %962, %1 : vector<8x128xf32>
    %1112 = arith.maximumf %1107, %1111 : vector<8x128xf32>
    %c4_i32_479 = arith.constant 4 : i32
    %1113 = arith.cmpi sge, %c4_i32_479, %1086 : i32
    %c4_i32_480 = arith.constant 4 : i32
    %1114 = arith.cmpi slt, %c4_i32_480, %1092 : i32
    %1115 = arith.andi %1113, %1114 : i1
    %1116 = arith.select %1115, %965, %1 : vector<8x128xf32>
    %1117 = arith.maximumf %1112, %1116 : vector<8x128xf32>
    %c5_i32_481 = arith.constant 5 : i32
    %1118 = arith.cmpi sge, %c5_i32_481, %1086 : i32
    %c5_i32_482 = arith.constant 5 : i32
    %1119 = arith.cmpi slt, %c5_i32_482, %1092 : i32
    %1120 = arith.andi %1118, %1119 : i1
    %1121 = arith.select %1120, %968, %1 : vector<8x128xf32>
    %1122 = arith.maximumf %1117, %1121 : vector<8x128xf32>
    %c6_i32_483 = arith.constant 6 : i32
    %1123 = arith.cmpi sge, %c6_i32_483, %1086 : i32
    %c6_i32_484 = arith.constant 6 : i32
    %1124 = arith.cmpi slt, %c6_i32_484, %1092 : i32
    %1125 = arith.andi %1123, %1124 : i1
    %1126 = arith.select %1125, %971, %1 : vector<8x128xf32>
    %1127 = arith.maximumf %1122, %1126 : vector<8x128xf32>
    %c7_i32_485 = arith.constant 7 : i32
    %1128 = arith.cmpi sge, %c7_i32_485, %1086 : i32
    %c7_i32_486 = arith.constant 7 : i32
    %1129 = arith.cmpi slt, %c7_i32_486, %1092 : i32
    %1130 = arith.andi %1128, %1129 : i1
    %1131 = arith.select %1130, %974, %1 : vector<8x128xf32>
    %1132 = arith.maximumf %1127, %1131 : vector<8x128xf32>
    %1133 = arith.cmpi sle, %1092, %1086 : i32
    %c4_i32_487 = arith.constant 4 : i32
    %1134 = arith.muli %948, %c4_i32_487 : i32
    %c3_i32_488 = arith.constant 3 : i32
    %1135 = arith.addi %1134, %c3_i32_488 : i32
    %c2_i32_489 = arith.constant 2 : i32
    %1136 = arith.muli %1135, %c2_i32_489 : i32
    %c0_i32_490 = arith.constant 0 : i32
    %1137 = arith.addi %1136, %c0_i32_490 : i32
    %1138 = arith.index_cast %1137 : i32 to index
    %1139 = memref.load %arg3[%1138] : memref<96xi32, #tpu.memory_space<smem>>
    %c4_i32_491 = arith.constant 4 : i32
    %1140 = arith.muli %948, %c4_i32_491 : i32
    %c3_i32_492 = arith.constant 3 : i32
    %1141 = arith.addi %1140, %c3_i32_492 : i32
    %c2_i32_493 = arith.constant 2 : i32
    %1142 = arith.muli %1141, %c2_i32_493 : i32
    %c1_i32_494 = arith.constant 1 : i32
    %1143 = arith.addi %1142, %c1_i32_494 : i32
    %1144 = arith.index_cast %1143 : i32 to index
    %1145 = memref.load %arg3[%1144] : memref<96xi32, #tpu.memory_space<smem>>
    %c0_i32_495 = arith.constant 0 : i32
    %1146 = arith.cmpi sge, %c0_i32_495, %1139 : i32
    %c0_i32_496 = arith.constant 0 : i32
    %1147 = arith.cmpi slt, %c0_i32_496, %1145 : i32
    %1148 = arith.andi %1146, %1147 : i1
    %1149 = arith.select %1148, %953, %1 : vector<8x128xf32>
    %1150 = arith.maximumf %1, %1149 : vector<8x128xf32>
    %c1_i32_497 = arith.constant 1 : i32
    %1151 = arith.cmpi sge, %c1_i32_497, %1139 : i32
    %c1_i32_498 = arith.constant 1 : i32
    %1152 = arith.cmpi slt, %c1_i32_498, %1145 : i32
    %1153 = arith.andi %1151, %1152 : i1
    %1154 = arith.select %1153, %956, %1 : vector<8x128xf32>
    %1155 = arith.maximumf %1150, %1154 : vector<8x128xf32>
    %c2_i32_499 = arith.constant 2 : i32
    %1156 = arith.cmpi sge, %c2_i32_499, %1139 : i32
    %c2_i32_500 = arith.constant 2 : i32
    %1157 = arith.cmpi slt, %c2_i32_500, %1145 : i32
    %1158 = arith.andi %1156, %1157 : i1
    %1159 = arith.select %1158, %959, %1 : vector<8x128xf32>
    %1160 = arith.maximumf %1155, %1159 : vector<8x128xf32>
    %c3_i32_501 = arith.constant 3 : i32
    %1161 = arith.cmpi sge, %c3_i32_501, %1139 : i32
    %c3_i32_502 = arith.constant 3 : i32
    %1162 = arith.cmpi slt, %c3_i32_502, %1145 : i32
    %1163 = arith.andi %1161, %1162 : i1
    %1164 = arith.select %1163, %962, %1 : vector<8x128xf32>
    %1165 = arith.maximumf %1160, %1164 : vector<8x128xf32>
    %c4_i32_503 = arith.constant 4 : i32
    %1166 = arith.cmpi sge, %c4_i32_503, %1139 : i32
    %c4_i32_504 = arith.constant 4 : i32
    %1167 = arith.cmpi slt, %c4_i32_504, %1145 : i32
    %1168 = arith.andi %1166, %1167 : i1
    %1169 = arith.select %1168, %965, %1 : vector<8x128xf32>
    %1170 = arith.maximumf %1165, %1169 : vector<8x128xf32>
    %c5_i32_505 = arith.constant 5 : i32
    %1171 = arith.cmpi sge, %c5_i32_505, %1139 : i32
    %c5_i32_506 = arith.constant 5 : i32
    %1172 = arith.cmpi slt, %c5_i32_506, %1145 : i32
    %1173 = arith.andi %1171, %1172 : i1
    %1174 = arith.select %1173, %968, %1 : vector<8x128xf32>
    %1175 = arith.maximumf %1170, %1174 : vector<8x128xf32>
    %c6_i32_507 = arith.constant 6 : i32
    %1176 = arith.cmpi sge, %c6_i32_507, %1139 : i32
    %c6_i32_508 = arith.constant 6 : i32
    %1177 = arith.cmpi slt, %c6_i32_508, %1145 : i32
    %1178 = arith.andi %1176, %1177 : i1
    %1179 = arith.select %1178, %971, %1 : vector<8x128xf32>
    %1180 = arith.maximumf %1175, %1179 : vector<8x128xf32>
    %c7_i32_509 = arith.constant 7 : i32
    %1181 = arith.cmpi sge, %c7_i32_509, %1139 : i32
    %c7_i32_510 = arith.constant 7 : i32
    %1182 = arith.cmpi slt, %c7_i32_510, %1145 : i32
    %1183 = arith.andi %1181, %1182 : i1
    %1184 = arith.select %1183, %974, %1 : vector<8x128xf32>
    %1185 = arith.maximumf %1180, %1184 : vector<8x128xf32>
    %1186 = arith.cmpi sle, %1145, %1139 : i32
    %c4_i32_511 = arith.constant 4 : i32
    %1187 = arith.muli %948, %c4_i32_511 : i32
    %c0_i32_512 = arith.constant 0 : i32
    %1188 = arith.addi %1187, %c0_i32_512 : i32
    %c2_i32_513 = arith.constant 2 : i32
    %1189 = arith.muli %1188, %c2_i32_513 : i32
    %c0_i32_514 = arith.constant 0 : i32
    %1190 = arith.addi %1189, %c0_i32_514 : i32
    %1191 = arith.index_cast %1190 : i32 to index
    %1192 = memref.load %arg2[%1191] : memref<96xi32, #tpu.memory_space<smem>>
    %c4_i32_515 = arith.constant 4 : i32
    %1193 = arith.muli %948, %c4_i32_515 : i32
    %c0_i32_516 = arith.constant 0 : i32
    %1194 = arith.addi %1193, %c0_i32_516 : i32
    %c2_i32_517 = arith.constant 2 : i32
    %1195 = arith.muli %1194, %c2_i32_517 : i32
    %c1_i32_518 = arith.constant 1 : i32
    %1196 = arith.addi %1195, %c1_i32_518 : i32
    %1197 = arith.index_cast %1196 : i32 to index
    %1198 = memref.load %arg2[%1197] : memref<96xi32, #tpu.memory_space<smem>>
    %1199 = vector.broadcast %1192 : i32 to vector<8x1xi32>
    %1200 = arith.cmpi sge, %0, %1199 : vector<8x1xi32>
    %1201 = vector.broadcast %1198 : i32 to vector<8x1xi32>
    %1202 = arith.cmpi slt, %0, %1201 : vector<8x1xi32>
    %1203 = arith.andi %1200, %1202 : vector<8x1xi1>
    %1204 = arith.cmpi sle, %1198, %1192 : i32
    %cst_519 = arith.constant 0xFF800000 : f32
    %1205 = vector.shape_cast %1203 : vector<8x1xi1> to vector<8x1xi1>
    %1206 = vector.broadcast %1205 : vector<8x1xi1> to vector<8x128xi1>
    %1207 = vector.broadcast %cst_519 : f32 to vector<8x128xf32>
    %1208 = arith.select %1206, %1026, %1207 : vector<8x128xi1>, vector<8x128xf32>
    %cst_520 = arith.constant dense<0xFF800000> : vector<128xf32>
    %1209 = vector.multi_reduction <maximumf>, %1208, %cst_520 [0] : vector<8x128xf32> to vector<128xf32>
    %1210 = vector.shape_cast %1209 : vector<128xf32> to vector<1x128xf32>
    %1211 = arith.ori %1204, %1027 : i1
    %cst_521 = arith.constant 0.000000e+00 : f32
    %1212 = vector.broadcast %cst_521 : f32 to vector<1x128xf32>
    %1213 = arith.select %1211, %1212, %1210 : vector<1x128xf32>
    %1214 = arith.addf %946, %1213 : vector<1x128xf32>
    %cst_522 = arith.constant 0xFF800000 : f32
    %1215 = vector.shape_cast %1203 : vector<8x1xi1> to vector<8x1xi1>
    %1216 = vector.broadcast %1215 : vector<8x1xi1> to vector<8x128xi1>
    %1217 = vector.broadcast %cst_522 : f32 to vector<8x128xf32>
    %1218 = arith.select %1216, %1079, %1217 : vector<8x128xi1>, vector<8x128xf32>
    %cst_523 = arith.constant dense<0xFF800000> : vector<128xf32>
    %1219 = vector.multi_reduction <maximumf>, %1218, %cst_523 [0] : vector<8x128xf32> to vector<128xf32>
    %1220 = vector.shape_cast %1219 : vector<128xf32> to vector<1x128xf32>
    %1221 = arith.ori %1204, %1080 : i1
    %cst_524 = arith.constant 0.000000e+00 : f32
    %1222 = vector.broadcast %cst_524 : f32 to vector<1x128xf32>
    %1223 = arith.select %1221, %1222, %1220 : vector<1x128xf32>
    %1224 = arith.addf %1214, %1223 : vector<1x128xf32>
    %cst_525 = arith.constant 0xFF800000 : f32
    %1225 = vector.shape_cast %1203 : vector<8x1xi1> to vector<8x1xi1>
    %1226 = vector.broadcast %1225 : vector<8x1xi1> to vector<8x128xi1>
    %1227 = vector.broadcast %cst_525 : f32 to vector<8x128xf32>
    %1228 = arith.select %1226, %1132, %1227 : vector<8x128xi1>, vector<8x128xf32>
    %cst_526 = arith.constant dense<0xFF800000> : vector<128xf32>
    %1229 = vector.multi_reduction <maximumf>, %1228, %cst_526 [0] : vector<8x128xf32> to vector<128xf32>
    %1230 = vector.shape_cast %1229 : vector<128xf32> to vector<1x128xf32>
    %1231 = arith.ori %1204, %1133 : i1
    %cst_527 = arith.constant 0.000000e+00 : f32
    %1232 = vector.broadcast %cst_527 : f32 to vector<1x128xf32>
    %1233 = arith.select %1231, %1232, %1230 : vector<1x128xf32>
    %1234 = arith.addf %1224, %1233 : vector<1x128xf32>
    %cst_528 = arith.constant 0xFF800000 : f32
    %1235 = vector.shape_cast %1203 : vector<8x1xi1> to vector<8x1xi1>
    %1236 = vector.broadcast %1235 : vector<8x1xi1> to vector<8x128xi1>
    %1237 = vector.broadcast %cst_528 : f32 to vector<8x128xf32>
    %1238 = arith.select %1236, %1185, %1237 : vector<8x128xi1>, vector<8x128xf32>
    %cst_529 = arith.constant dense<0xFF800000> : vector<128xf32>
    %1239 = vector.multi_reduction <maximumf>, %1238, %cst_529 [0] : vector<8x128xf32> to vector<128xf32>
    %1240 = vector.shape_cast %1239 : vector<128xf32> to vector<1x128xf32>
    %1241 = arith.ori %1204, %1186 : i1
    %cst_530 = arith.constant 0.000000e+00 : f32
    %1242 = vector.broadcast %cst_530 : f32 to vector<1x128xf32>
    %1243 = arith.select %1241, %1242, %1240 : vector<1x128xf32>
    %1244 = arith.addf %1234, %1243 : vector<1x128xf32>
    %c4_i32_531 = arith.constant 4 : i32
    %1245 = arith.muli %948, %c4_i32_531 : i32
    %c1_i32_532 = arith.constant 1 : i32
    %1246 = arith.addi %1245, %c1_i32_532 : i32
    %c2_i32_533 = arith.constant 2 : i32
    %1247 = arith.muli %1246, %c2_i32_533 : i32
    %c0_i32_534 = arith.constant 0 : i32
    %1248 = arith.addi %1247, %c0_i32_534 : i32
    %1249 = arith.index_cast %1248 : i32 to index
    %1250 = memref.load %arg2[%1249] : memref<96xi32, #tpu.memory_space<smem>>
    %c4_i32_535 = arith.constant 4 : i32
    %1251 = arith.muli %948, %c4_i32_535 : i32
    %c1_i32_536 = arith.constant 1 : i32
    %1252 = arith.addi %1251, %c1_i32_536 : i32
    %c2_i32_537 = arith.constant 2 : i32
    %1253 = arith.muli %1252, %c2_i32_537 : i32
    %c1_i32_538 = arith.constant 1 : i32
    %1254 = arith.addi %1253, %c1_i32_538 : i32
    %1255 = arith.index_cast %1254 : i32 to index
    %1256 = memref.load %arg2[%1255] : memref<96xi32, #tpu.memory_space<smem>>
    %1257 = vector.broadcast %1250 : i32 to vector<8x1xi32>
    %1258 = arith.cmpi sge, %0, %1257 : vector<8x1xi32>
    %1259 = vector.broadcast %1256 : i32 to vector<8x1xi32>
    %1260 = arith.cmpi slt, %0, %1259 : vector<8x1xi32>
    %1261 = arith.andi %1258, %1260 : vector<8x1xi1>
    %1262 = arith.cmpi sle, %1256, %1250 : i32
    %cst_539 = arith.constant 0xFF800000 : f32
    %1263 = vector.shape_cast %1261 : vector<8x1xi1> to vector<8x1xi1>
    %1264 = vector.broadcast %1263 : vector<8x1xi1> to vector<8x128xi1>
    %1265 = vector.broadcast %cst_539 : f32 to vector<8x128xf32>
    %1266 = arith.select %1264, %1026, %1265 : vector<8x128xi1>, vector<8x128xf32>
    %cst_540 = arith.constant dense<0xFF800000> : vector<128xf32>
    %1267 = vector.multi_reduction <maximumf>, %1266, %cst_540 [0] : vector<8x128xf32> to vector<128xf32>
    %1268 = vector.shape_cast %1267 : vector<128xf32> to vector<1x128xf32>
    %1269 = arith.ori %1262, %1027 : i1
    %cst_541 = arith.constant 0.000000e+00 : f32
    %1270 = vector.broadcast %cst_541 : f32 to vector<1x128xf32>
    %1271 = arith.select %1269, %1270, %1268 : vector<1x128xf32>
    %1272 = arith.addf %1244, %1271 : vector<1x128xf32>
    %cst_542 = arith.constant 0xFF800000 : f32
    %1273 = vector.shape_cast %1261 : vector<8x1xi1> to vector<8x1xi1>
    %1274 = vector.broadcast %1273 : vector<8x1xi1> to vector<8x128xi1>
    %1275 = vector.broadcast %cst_542 : f32 to vector<8x128xf32>
    %1276 = arith.select %1274, %1079, %1275 : vector<8x128xi1>, vector<8x128xf32>
    %cst_543 = arith.constant dense<0xFF800000> : vector<128xf32>
    %1277 = vector.multi_reduction <maximumf>, %1276, %cst_543 [0] : vector<8x128xf32> to vector<128xf32>
    %1278 = vector.shape_cast %1277 : vector<128xf32> to vector<1x128xf32>
    %1279 = arith.ori %1262, %1080 : i1
    %cst_544 = arith.constant 0.000000e+00 : f32
    %1280 = vector.broadcast %cst_544 : f32 to vector<1x128xf32>
    %1281 = arith.select %1279, %1280, %1278 : vector<1x128xf32>
    %1282 = arith.addf %1272, %1281 : vector<1x128xf32>
    %cst_545 = arith.constant 0xFF800000 : f32
    %1283 = vector.shape_cast %1261 : vector<8x1xi1> to vector<8x1xi1>
    %1284 = vector.broadcast %1283 : vector<8x1xi1> to vector<8x128xi1>
    %1285 = vector.broadcast %cst_545 : f32 to vector<8x128xf32>
    %1286 = arith.select %1284, %1132, %1285 : vector<8x128xi1>, vector<8x128xf32>
    %cst_546 = arith.constant dense<0xFF800000> : vector<128xf32>
    %1287 = vector.multi_reduction <maximumf>, %1286, %cst_546 [0] : vector<8x128xf32> to vector<128xf32>
    %1288 = vector.shape_cast %1287 : vector<128xf32> to vector<1x128xf32>
    %1289 = arith.ori %1262, %1133 : i1
    %cst_547 = arith.constant 0.000000e+00 : f32
    %1290 = vector.broadcast %cst_547 : f32 to vector<1x128xf32>
    %1291 = arith.select %1289, %1290, %1288 : vector<1x128xf32>
    %1292 = arith.addf %1282, %1291 : vector<1x128xf32>
    %cst_548 = arith.constant 0xFF800000 : f32
    %1293 = vector.shape_cast %1261 : vector<8x1xi1> to vector<8x1xi1>
    %1294 = vector.broadcast %1293 : vector<8x1xi1> to vector<8x128xi1>
    %1295 = vector.broadcast %cst_548 : f32 to vector<8x128xf32>
    %1296 = arith.select %1294, %1185, %1295 : vector<8x128xi1>, vector<8x128xf32>
    %cst_549 = arith.constant dense<0xFF800000> : vector<128xf32>
    %1297 = vector.multi_reduction <maximumf>, %1296, %cst_549 [0] : vector<8x128xf32> to vector<128xf32>
    %1298 = vector.shape_cast %1297 : vector<128xf32> to vector<1x128xf32>
    %1299 = arith.ori %1262, %1186 : i1
    %cst_550 = arith.constant 0.000000e+00 : f32
    %1300 = vector.broadcast %cst_550 : f32 to vector<1x128xf32>
    %1301 = arith.select %1299, %1300, %1298 : vector<1x128xf32>
    %1302 = arith.addf %1292, %1301 : vector<1x128xf32>
    %c4_i32_551 = arith.constant 4 : i32
    %1303 = arith.muli %948, %c4_i32_551 : i32
    %c2_i32_552 = arith.constant 2 : i32
    %1304 = arith.addi %1303, %c2_i32_552 : i32
    %c2_i32_553 = arith.constant 2 : i32
    %1305 = arith.muli %1304, %c2_i32_553 : i32
    %c0_i32_554 = arith.constant 0 : i32
    %1306 = arith.addi %1305, %c0_i32_554 : i32
    %1307 = arith.index_cast %1306 : i32 to index
    %1308 = memref.load %arg2[%1307] : memref<96xi32, #tpu.memory_space<smem>>
    %c4_i32_555 = arith.constant 4 : i32
    %1309 = arith.muli %948, %c4_i32_555 : i32
    %c2_i32_556 = arith.constant 2 : i32
    %1310 = arith.addi %1309, %c2_i32_556 : i32
    %c2_i32_557 = arith.constant 2 : i32
    %1311 = arith.muli %1310, %c2_i32_557 : i32
    %c1_i32_558 = arith.constant 1 : i32
    %1312 = arith.addi %1311, %c1_i32_558 : i32
    %1313 = arith.index_cast %1312 : i32 to index
    %1314 = memref.load %arg2[%1313] : memref<96xi32, #tpu.memory_space<smem>>
    %1315 = vector.broadcast %1308 : i32 to vector<8x1xi32>
    %1316 = arith.cmpi sge, %0, %1315 : vector<8x1xi32>
    %1317 = vector.broadcast %1314 : i32 to vector<8x1xi32>
    %1318 = arith.cmpi slt, %0, %1317 : vector<8x1xi32>
    %1319 = arith.andi %1316, %1318 : vector<8x1xi1>
    %1320 = arith.cmpi sle, %1314, %1308 : i32
    %cst_559 = arith.constant 0xFF800000 : f32
    %1321 = vector.shape_cast %1319 : vector<8x1xi1> to vector<8x1xi1>
    %1322 = vector.broadcast %1321 : vector<8x1xi1> to vector<8x128xi1>
    %1323 = vector.broadcast %cst_559 : f32 to vector<8x128xf32>
    %1324 = arith.select %1322, %1026, %1323 : vector<8x128xi1>, vector<8x128xf32>
    %cst_560 = arith.constant dense<0xFF800000> : vector<128xf32>
    %1325 = vector.multi_reduction <maximumf>, %1324, %cst_560 [0] : vector<8x128xf32> to vector<128xf32>
    %1326 = vector.shape_cast %1325 : vector<128xf32> to vector<1x128xf32>
    %1327 = arith.ori %1320, %1027 : i1
    %cst_561 = arith.constant 0.000000e+00 : f32
    %1328 = vector.broadcast %cst_561 : f32 to vector<1x128xf32>
    %1329 = arith.select %1327, %1328, %1326 : vector<1x128xf32>
    %1330 = arith.addf %1302, %1329 : vector<1x128xf32>
    %cst_562 = arith.constant 0xFF800000 : f32
    %1331 = vector.shape_cast %1319 : vector<8x1xi1> to vector<8x1xi1>
    %1332 = vector.broadcast %1331 : vector<8x1xi1> to vector<8x128xi1>
    %1333 = vector.broadcast %cst_562 : f32 to vector<8x128xf32>
    %1334 = arith.select %1332, %1079, %1333 : vector<8x128xi1>, vector<8x128xf32>
    %cst_563 = arith.constant dense<0xFF800000> : vector<128xf32>
    %1335 = vector.multi_reduction <maximumf>, %1334, %cst_563 [0] : vector<8x128xf32> to vector<128xf32>
    %1336 = vector.shape_cast %1335 : vector<128xf32> to vector<1x128xf32>
    %1337 = arith.ori %1320, %1080 : i1
    %cst_564 = arith.constant 0.000000e+00 : f32
    %1338 = vector.broadcast %cst_564 : f32 to vector<1x128xf32>
    %1339 = arith.select %1337, %1338, %1336 : vector<1x128xf32>
    %1340 = arith.addf %1330, %1339 : vector<1x128xf32>
    %cst_565 = arith.constant 0xFF800000 : f32
    %1341 = vector.shape_cast %1319 : vector<8x1xi1> to vector<8x1xi1>
    %1342 = vector.broadcast %1341 : vector<8x1xi1> to vector<8x128xi1>
    %1343 = vector.broadcast %cst_565 : f32 to vector<8x128xf32>
    %1344 = arith.select %1342, %1132, %1343 : vector<8x128xi1>, vector<8x128xf32>
    %cst_566 = arith.constant dense<0xFF800000> : vector<128xf32>
    %1345 = vector.multi_reduction <maximumf>, %1344, %cst_566 [0] : vector<8x128xf32> to vector<128xf32>
    %1346 = vector.shape_cast %1345 : vector<128xf32> to vector<1x128xf32>
    %1347 = arith.ori %1320, %1133 : i1
    %cst_567 = arith.constant 0.000000e+00 : f32
    %1348 = vector.broadcast %cst_567 : f32 to vector<1x128xf32>
    %1349 = arith.select %1347, %1348, %1346 : vector<1x128xf32>
    %1350 = arith.addf %1340, %1349 : vector<1x128xf32>
    %cst_568 = arith.constant 0xFF800000 : f32
    %1351 = vector.shape_cast %1319 : vector<8x1xi1> to vector<8x1xi1>
    %1352 = vector.broadcast %1351 : vector<8x1xi1> to vector<8x128xi1>
    %1353 = vector.broadcast %cst_568 : f32 to vector<8x128xf32>
    %1354 = arith.select %1352, %1185, %1353 : vector<8x128xi1>, vector<8x128xf32>
    %cst_569 = arith.constant dense<0xFF800000> : vector<128xf32>
    %1355 = vector.multi_reduction <maximumf>, %1354, %cst_569 [0] : vector<8x128xf32> to vector<128xf32>
    %1356 = vector.shape_cast %1355 : vector<128xf32> to vector<1x128xf32>
    %1357 = arith.ori %1320, %1186 : i1
    %cst_570 = arith.constant 0.000000e+00 : f32
    %1358 = vector.broadcast %cst_570 : f32 to vector<1x128xf32>
    %1359 = arith.select %1357, %1358, %1356 : vector<1x128xf32>
    %1360 = arith.addf %1350, %1359 : vector<1x128xf32>
    %c4_i32_571 = arith.constant 4 : i32
    %1361 = arith.muli %948, %c4_i32_571 : i32
    %c3_i32_572 = arith.constant 3 : i32
    %1362 = arith.addi %1361, %c3_i32_572 : i32
    %c2_i32_573 = arith.constant 2 : i32
    %1363 = arith.muli %1362, %c2_i32_573 : i32
    %c0_i32_574 = arith.constant 0 : i32
    %1364 = arith.addi %1363, %c0_i32_574 : i32
    %1365 = arith.index_cast %1364 : i32 to index
    %1366 = memref.load %arg2[%1365] : memref<96xi32, #tpu.memory_space<smem>>
    %c4_i32_575 = arith.constant 4 : i32
    %1367 = arith.muli %948, %c4_i32_575 : i32
    %c3_i32_576 = arith.constant 3 : i32
    %1368 = arith.addi %1367, %c3_i32_576 : i32
    %c2_i32_577 = arith.constant 2 : i32
    %1369 = arith.muli %1368, %c2_i32_577 : i32
    %c1_i32_578 = arith.constant 1 : i32
    %1370 = arith.addi %1369, %c1_i32_578 : i32
    %1371 = arith.index_cast %1370 : i32 to index
    %1372 = memref.load %arg2[%1371] : memref<96xi32, #tpu.memory_space<smem>>
    %1373 = vector.broadcast %1366 : i32 to vector<8x1xi32>
    %1374 = arith.cmpi sge, %0, %1373 : vector<8x1xi32>
    %1375 = vector.broadcast %1372 : i32 to vector<8x1xi32>
    %1376 = arith.cmpi slt, %0, %1375 : vector<8x1xi32>
    %1377 = arith.andi %1374, %1376 : vector<8x1xi1>
    %1378 = arith.cmpi sle, %1372, %1366 : i32
    %cst_579 = arith.constant 0xFF800000 : f32
    %1379 = vector.shape_cast %1377 : vector<8x1xi1> to vector<8x1xi1>
    %1380 = vector.broadcast %1379 : vector<8x1xi1> to vector<8x128xi1>
    %1381 = vector.broadcast %cst_579 : f32 to vector<8x128xf32>
    %1382 = arith.select %1380, %1026, %1381 : vector<8x128xi1>, vector<8x128xf32>
    %cst_580 = arith.constant dense<0xFF800000> : vector<128xf32>
    %1383 = vector.multi_reduction <maximumf>, %1382, %cst_580 [0] : vector<8x128xf32> to vector<128xf32>
    %1384 = vector.shape_cast %1383 : vector<128xf32> to vector<1x128xf32>
    %1385 = arith.ori %1378, %1027 : i1
    %cst_581 = arith.constant 0.000000e+00 : f32
    %1386 = vector.broadcast %cst_581 : f32 to vector<1x128xf32>
    %1387 = arith.select %1385, %1386, %1384 : vector<1x128xf32>
    %1388 = arith.addf %1360, %1387 : vector<1x128xf32>
    %cst_582 = arith.constant 0xFF800000 : f32
    %1389 = vector.shape_cast %1377 : vector<8x1xi1> to vector<8x1xi1>
    %1390 = vector.broadcast %1389 : vector<8x1xi1> to vector<8x128xi1>
    %1391 = vector.broadcast %cst_582 : f32 to vector<8x128xf32>
    %1392 = arith.select %1390, %1079, %1391 : vector<8x128xi1>, vector<8x128xf32>
    %cst_583 = arith.constant dense<0xFF800000> : vector<128xf32>
    %1393 = vector.multi_reduction <maximumf>, %1392, %cst_583 [0] : vector<8x128xf32> to vector<128xf32>
    %1394 = vector.shape_cast %1393 : vector<128xf32> to vector<1x128xf32>
    %1395 = arith.ori %1378, %1080 : i1
    %cst_584 = arith.constant 0.000000e+00 : f32
    %1396 = vector.broadcast %cst_584 : f32 to vector<1x128xf32>
    %1397 = arith.select %1395, %1396, %1394 : vector<1x128xf32>
    %1398 = arith.addf %1388, %1397 : vector<1x128xf32>
    %cst_585 = arith.constant 0xFF800000 : f32
    %1399 = vector.shape_cast %1377 : vector<8x1xi1> to vector<8x1xi1>
    %1400 = vector.broadcast %1399 : vector<8x1xi1> to vector<8x128xi1>
    %1401 = vector.broadcast %cst_585 : f32 to vector<8x128xf32>
    %1402 = arith.select %1400, %1132, %1401 : vector<8x128xi1>, vector<8x128xf32>
    %cst_586 = arith.constant dense<0xFF800000> : vector<128xf32>
    %1403 = vector.multi_reduction <maximumf>, %1402, %cst_586 [0] : vector<8x128xf32> to vector<128xf32>
    %1404 = vector.shape_cast %1403 : vector<128xf32> to vector<1x128xf32>
    %1405 = arith.ori %1378, %1133 : i1
    %cst_587 = arith.constant 0.000000e+00 : f32
    %1406 = vector.broadcast %cst_587 : f32 to vector<1x128xf32>
    %1407 = arith.select %1405, %1406, %1404 : vector<1x128xf32>
    %1408 = arith.addf %1398, %1407 : vector<1x128xf32>
    %cst_588 = arith.constant 0xFF800000 : f32
    %1409 = vector.shape_cast %1377 : vector<8x1xi1> to vector<8x1xi1>
    %1410 = vector.broadcast %1409 : vector<8x1xi1> to vector<8x128xi1>
    %1411 = vector.broadcast %cst_588 : f32 to vector<8x128xf32>
    %1412 = arith.select %1410, %1185, %1411 : vector<8x128xi1>, vector<8x128xf32>
    %cst_589 = arith.constant dense<0xFF800000> : vector<128xf32>
    %1413 = vector.multi_reduction <maximumf>, %1412, %cst_589 [0] : vector<8x128xf32> to vector<128xf32>
    %1414 = vector.shape_cast %1413 : vector<128xf32> to vector<1x128xf32>
    %1415 = arith.ori %1378, %1186 : i1
    %cst_590 = arith.constant 0.000000e+00 : f32
    %1416 = vector.broadcast %cst_590 : f32 to vector<1x128xf32>
    %1417 = arith.select %1415, %1416, %1414 : vector<1x128xf32>
    %1418 = arith.addf %1408, %1417 : vector<1x128xf32>
    %c4_i32_591 = arith.constant 4 : i32
    %1419 = arith.muli %arg0, %c4_i32_591 : i32
    %c3_i32_592 = arith.constant 3 : i32
    %1420 = arith.addi %1419, %c3_i32_592 : i32
    %1421 = arith.index_cast %1420 : i32 to index
    %1422 = memref.load %arg1[%1421] : memref<12xi32, #tpu.memory_space<smem>>
    %1423 = arith.index_cast %1422 : i32 to index
    %c0_593 = arith.constant 0 : index
    %c0_594 = arith.constant 0 : index
    %c0_595 = arith.constant 0 : index
    %1424 = vector.load %arg4[%1423, %c0_593, %c0_594, %c0_595] : memref<8x8x8x128xf32, #tpu.memory_space<vmem>>, vector<1x1x8x128xf32>
    %1425 = vector.shape_cast %1424 : vector<1x1x8x128xf32> to vector<8x128xf32>
    %1426 = arith.index_cast %1422 : i32 to index
    %c1_596 = arith.constant 1 : index
    %c0_597 = arith.constant 0 : index
    %c0_598 = arith.constant 0 : index
    %1427 = vector.load %arg4[%1426, %c1_596, %c0_597, %c0_598] : memref<8x8x8x128xf32, #tpu.memory_space<vmem>>, vector<1x1x8x128xf32>
    %1428 = vector.shape_cast %1427 : vector<1x1x8x128xf32> to vector<8x128xf32>
    %1429 = arith.index_cast %1422 : i32 to index
    %c2_599 = arith.constant 2 : index
    %c0_600 = arith.constant 0 : index
    %c0_601 = arith.constant 0 : index
    %1430 = vector.load %arg4[%1429, %c2_599, %c0_600, %c0_601] : memref<8x8x8x128xf32, #tpu.memory_space<vmem>>, vector<1x1x8x128xf32>
    %1431 = vector.shape_cast %1430 : vector<1x1x8x128xf32> to vector<8x128xf32>
    %1432 = arith.index_cast %1422 : i32 to index
    %c3_602 = arith.constant 3 : index
    %c0_603 = arith.constant 0 : index
    %c0_604 = arith.constant 0 : index
    %1433 = vector.load %arg4[%1432, %c3_602, %c0_603, %c0_604] : memref<8x8x8x128xf32, #tpu.memory_space<vmem>>, vector<1x1x8x128xf32>
    %1434 = vector.shape_cast %1433 : vector<1x1x8x128xf32> to vector<8x128xf32>
    %1435 = arith.index_cast %1422 : i32 to index
    %c4_605 = arith.constant 4 : index
    %c0_606 = arith.constant 0 : index
    %c0_607 = arith.constant 0 : index
    %1436 = vector.load %arg4[%1435, %c4_605, %c0_606, %c0_607] : memref<8x8x8x128xf32, #tpu.memory_space<vmem>>, vector<1x1x8x128xf32>
    %1437 = vector.shape_cast %1436 : vector<1x1x8x128xf32> to vector<8x128xf32>
    %1438 = arith.index_cast %1422 : i32 to index
    %c5_608 = arith.constant 5 : index
    %c0_609 = arith.constant 0 : index
    %c0_610 = arith.constant 0 : index
    %1439 = vector.load %arg4[%1438, %c5_608, %c0_609, %c0_610] : memref<8x8x8x128xf32, #tpu.memory_space<vmem>>, vector<1x1x8x128xf32>
    %1440 = vector.shape_cast %1439 : vector<1x1x8x128xf32> to vector<8x128xf32>
    %1441 = arith.index_cast %1422 : i32 to index
    %c6_611 = arith.constant 6 : index
    %c0_612 = arith.constant 0 : index
    %c0_613 = arith.constant 0 : index
    %1442 = vector.load %arg4[%1441, %c6_611, %c0_612, %c0_613] : memref<8x8x8x128xf32, #tpu.memory_space<vmem>>, vector<1x1x8x128xf32>
    %1443 = vector.shape_cast %1442 : vector<1x1x8x128xf32> to vector<8x128xf32>
    %1444 = arith.index_cast %1422 : i32 to index
    %c7_614 = arith.constant 7 : index
    %c0_615 = arith.constant 0 : index
    %c0_616 = arith.constant 0 : index
    %1445 = vector.load %arg4[%1444, %c7_614, %c0_615, %c0_616] : memref<8x8x8x128xf32, #tpu.memory_space<vmem>>, vector<1x1x8x128xf32>
    %1446 = vector.shape_cast %1445 : vector<1x1x8x128xf32> to vector<8x128xf32>
    %c4_i32_617 = arith.constant 4 : i32
    %1447 = arith.muli %1420, %c4_i32_617 : i32
    %c0_i32_618 = arith.constant 0 : i32
    %1448 = arith.addi %1447, %c0_i32_618 : i32
    %c2_i32_619 = arith.constant 2 : i32
    %1449 = arith.muli %1448, %c2_i32_619 : i32
    %c0_i32_620 = arith.constant 0 : i32
    %1450 = arith.addi %1449, %c0_i32_620 : i32
    %1451 = arith.index_cast %1450 : i32 to index
    %1452 = memref.load %arg3[%1451] : memref<96xi32, #tpu.memory_space<smem>>
    %c4_i32_621 = arith.constant 4 : i32
    %1453 = arith.muli %1420, %c4_i32_621 : i32
    %c0_i32_622 = arith.constant 0 : i32
    %1454 = arith.addi %1453, %c0_i32_622 : i32
    %c2_i32_623 = arith.constant 2 : i32
    %1455 = arith.muli %1454, %c2_i32_623 : i32
    %c1_i32_624 = arith.constant 1 : i32
    %1456 = arith.addi %1455, %c1_i32_624 : i32
    %1457 = arith.index_cast %1456 : i32 to index
    %1458 = memref.load %arg3[%1457] : memref<96xi32, #tpu.memory_space<smem>>
    %c0_i32_625 = arith.constant 0 : i32
    %1459 = arith.cmpi sge, %c0_i32_625, %1452 : i32
    %c0_i32_626 = arith.constant 0 : i32
    %1460 = arith.cmpi slt, %c0_i32_626, %1458 : i32
    %1461 = arith.andi %1459, %1460 : i1
    %1462 = arith.select %1461, %1425, %1 : vector<8x128xf32>
    %1463 = arith.maximumf %1, %1462 : vector<8x128xf32>
    %c1_i32_627 = arith.constant 1 : i32
    %1464 = arith.cmpi sge, %c1_i32_627, %1452 : i32
    %c1_i32_628 = arith.constant 1 : i32
    %1465 = arith.cmpi slt, %c1_i32_628, %1458 : i32
    %1466 = arith.andi %1464, %1465 : i1
    %1467 = arith.select %1466, %1428, %1 : vector<8x128xf32>
    %1468 = arith.maximumf %1463, %1467 : vector<8x128xf32>
    %c2_i32_629 = arith.constant 2 : i32
    %1469 = arith.cmpi sge, %c2_i32_629, %1452 : i32
    %c2_i32_630 = arith.constant 2 : i32
    %1470 = arith.cmpi slt, %c2_i32_630, %1458 : i32
    %1471 = arith.andi %1469, %1470 : i1
    %1472 = arith.select %1471, %1431, %1 : vector<8x128xf32>
    %1473 = arith.maximumf %1468, %1472 : vector<8x128xf32>
    %c3_i32_631 = arith.constant 3 : i32
    %1474 = arith.cmpi sge, %c3_i32_631, %1452 : i32
    %c3_i32_632 = arith.constant 3 : i32
    %1475 = arith.cmpi slt, %c3_i32_632, %1458 : i32
    %1476 = arith.andi %1474, %1475 : i1
    %1477 = arith.select %1476, %1434, %1 : vector<8x128xf32>
    %1478 = arith.maximumf %1473, %1477 : vector<8x128xf32>
    %c4_i32_633 = arith.constant 4 : i32
    %1479 = arith.cmpi sge, %c4_i32_633, %1452 : i32
    %c4_i32_634 = arith.constant 4 : i32
    %1480 = arith.cmpi slt, %c4_i32_634, %1458 : i32
    %1481 = arith.andi %1479, %1480 : i1
    %1482 = arith.select %1481, %1437, %1 : vector<8x128xf32>
    %1483 = arith.maximumf %1478, %1482 : vector<8x128xf32>
    %c5_i32_635 = arith.constant 5 : i32
    %1484 = arith.cmpi sge, %c5_i32_635, %1452 : i32
    %c5_i32_636 = arith.constant 5 : i32
    %1485 = arith.cmpi slt, %c5_i32_636, %1458 : i32
    %1486 = arith.andi %1484, %1485 : i1
    %1487 = arith.select %1486, %1440, %1 : vector<8x128xf32>
    %1488 = arith.maximumf %1483, %1487 : vector<8x128xf32>
    %c6_i32_637 = arith.constant 6 : i32
    %1489 = arith.cmpi sge, %c6_i32_637, %1452 : i32
    %c6_i32_638 = arith.constant 6 : i32
    %1490 = arith.cmpi slt, %c6_i32_638, %1458 : i32
    %1491 = arith.andi %1489, %1490 : i1
    %1492 = arith.select %1491, %1443, %1 : vector<8x128xf32>
    %1493 = arith.maximumf %1488, %1492 : vector<8x128xf32>
    %c7_i32_639 = arith.constant 7 : i32
    %1494 = arith.cmpi sge, %c7_i32_639, %1452 : i32
    %c7_i32_640 = arith.constant 7 : i32
    %1495 = arith.cmpi slt, %c7_i32_640, %1458 : i32
    %1496 = arith.andi %1494, %1495 : i1
    %1497 = arith.select %1496, %1446, %1 : vector<8x128xf32>
    %1498 = arith.maximumf %1493, %1497 : vector<8x128xf32>
    %1499 = arith.cmpi sle, %1458, %1452 : i32
    %c4_i32_641 = arith.constant 4 : i32
    %1500 = arith.muli %1420, %c4_i32_641 : i32
    %c1_i32_642 = arith.constant 1 : i32
    %1501 = arith.addi %1500, %c1_i32_642 : i32
    %c2_i32_643 = arith.constant 2 : i32
    %1502 = arith.muli %1501, %c2_i32_643 : i32
    %c0_i32_644 = arith.constant 0 : i32
    %1503 = arith.addi %1502, %c0_i32_644 : i32
    %1504 = arith.index_cast %1503 : i32 to index
    %1505 = memref.load %arg3[%1504] : memref<96xi32, #tpu.memory_space<smem>>
    %c4_i32_645 = arith.constant 4 : i32
    %1506 = arith.muli %1420, %c4_i32_645 : i32
    %c1_i32_646 = arith.constant 1 : i32
    %1507 = arith.addi %1506, %c1_i32_646 : i32
    %c2_i32_647 = arith.constant 2 : i32
    %1508 = arith.muli %1507, %c2_i32_647 : i32
    %c1_i32_648 = arith.constant 1 : i32
    %1509 = arith.addi %1508, %c1_i32_648 : i32
    %1510 = arith.index_cast %1509 : i32 to index
    %1511 = memref.load %arg3[%1510] : memref<96xi32, #tpu.memory_space<smem>>
    %c0_i32_649 = arith.constant 0 : i32
    %1512 = arith.cmpi sge, %c0_i32_649, %1505 : i32
    %c0_i32_650 = arith.constant 0 : i32
    %1513 = arith.cmpi slt, %c0_i32_650, %1511 : i32
    %1514 = arith.andi %1512, %1513 : i1
    %1515 = arith.select %1514, %1425, %1 : vector<8x128xf32>
    %1516 = arith.maximumf %1, %1515 : vector<8x128xf32>
    %c1_i32_651 = arith.constant 1 : i32
    %1517 = arith.cmpi sge, %c1_i32_651, %1505 : i32
    %c1_i32_652 = arith.constant 1 : i32
    %1518 = arith.cmpi slt, %c1_i32_652, %1511 : i32
    %1519 = arith.andi %1517, %1518 : i1
    %1520 = arith.select %1519, %1428, %1 : vector<8x128xf32>
    %1521 = arith.maximumf %1516, %1520 : vector<8x128xf32>
    %c2_i32_653 = arith.constant 2 : i32
    %1522 = arith.cmpi sge, %c2_i32_653, %1505 : i32
    %c2_i32_654 = arith.constant 2 : i32
    %1523 = arith.cmpi slt, %c2_i32_654, %1511 : i32
    %1524 = arith.andi %1522, %1523 : i1
    %1525 = arith.select %1524, %1431, %1 : vector<8x128xf32>
    %1526 = arith.maximumf %1521, %1525 : vector<8x128xf32>
    %c3_i32_655 = arith.constant 3 : i32
    %1527 = arith.cmpi sge, %c3_i32_655, %1505 : i32
    %c3_i32_656 = arith.constant 3 : i32
    %1528 = arith.cmpi slt, %c3_i32_656, %1511 : i32
    %1529 = arith.andi %1527, %1528 : i1
    %1530 = arith.select %1529, %1434, %1 : vector<8x128xf32>
    %1531 = arith.maximumf %1526, %1530 : vector<8x128xf32>
    %c4_i32_657 = arith.constant 4 : i32
    %1532 = arith.cmpi sge, %c4_i32_657, %1505 : i32
    %c4_i32_658 = arith.constant 4 : i32
    %1533 = arith.cmpi slt, %c4_i32_658, %1511 : i32
    %1534 = arith.andi %1532, %1533 : i1
    %1535 = arith.select %1534, %1437, %1 : vector<8x128xf32>
    %1536 = arith.maximumf %1531, %1535 : vector<8x128xf32>
    %c5_i32_659 = arith.constant 5 : i32
    %1537 = arith.cmpi sge, %c5_i32_659, %1505 : i32
    %c5_i32_660 = arith.constant 5 : i32
    %1538 = arith.cmpi slt, %c5_i32_660, %1511 : i32
    %1539 = arith.andi %1537, %1538 : i1
    %1540 = arith.select %1539, %1440, %1 : vector<8x128xf32>
    %1541 = arith.maximumf %1536, %1540 : vector<8x128xf32>
    %c6_i32_661 = arith.constant 6 : i32
    %1542 = arith.cmpi sge, %c6_i32_661, %1505 : i32
    %c6_i32_662 = arith.constant 6 : i32
    %1543 = arith.cmpi slt, %c6_i32_662, %1511 : i32
    %1544 = arith.andi %1542, %1543 : i1
    %1545 = arith.select %1544, %1443, %1 : vector<8x128xf32>
    %1546 = arith.maximumf %1541, %1545 : vector<8x128xf32>
    %c7_i32_663 = arith.constant 7 : i32
    %1547 = arith.cmpi sge, %c7_i32_663, %1505 : i32
    %c7_i32_664 = arith.constant 7 : i32
    %1548 = arith.cmpi slt, %c7_i32_664, %1511 : i32
    %1549 = arith.andi %1547, %1548 : i1
    %1550 = arith.select %1549, %1446, %1 : vector<8x128xf32>
    %1551 = arith.maximumf %1546, %1550 : vector<8x128xf32>
    %1552 = arith.cmpi sle, %1511, %1505 : i32
    %c4_i32_665 = arith.constant 4 : i32
    %1553 = arith.muli %1420, %c4_i32_665 : i32
    %c2_i32_666 = arith.constant 2 : i32
    %1554 = arith.addi %1553, %c2_i32_666 : i32
    %c2_i32_667 = arith.constant 2 : i32
    %1555 = arith.muli %1554, %c2_i32_667 : i32
    %c0_i32_668 = arith.constant 0 : i32
    %1556 = arith.addi %1555, %c0_i32_668 : i32
    %1557 = arith.index_cast %1556 : i32 to index
    %1558 = memref.load %arg3[%1557] : memref<96xi32, #tpu.memory_space<smem>>
    %c4_i32_669 = arith.constant 4 : i32
    %1559 = arith.muli %1420, %c4_i32_669 : i32
    %c2_i32_670 = arith.constant 2 : i32
    %1560 = arith.addi %1559, %c2_i32_670 : i32
    %c2_i32_671 = arith.constant 2 : i32
    %1561 = arith.muli %1560, %c2_i32_671 : i32
    %c1_i32_672 = arith.constant 1 : i32
    %1562 = arith.addi %1561, %c1_i32_672 : i32
    %1563 = arith.index_cast %1562 : i32 to index
    %1564 = memref.load %arg3[%1563] : memref<96xi32, #tpu.memory_space<smem>>
    %c0_i32_673 = arith.constant 0 : i32
    %1565 = arith.cmpi sge, %c0_i32_673, %1558 : i32
    %c0_i32_674 = arith.constant 0 : i32
    %1566 = arith.cmpi slt, %c0_i32_674, %1564 : i32
    %1567 = arith.andi %1565, %1566 : i1
    %1568 = arith.select %1567, %1425, %1 : vector<8x128xf32>
    %1569 = arith.maximumf %1, %1568 : vector<8x128xf32>
    %c1_i32_675 = arith.constant 1 : i32
    %1570 = arith.cmpi sge, %c1_i32_675, %1558 : i32
    %c1_i32_676 = arith.constant 1 : i32
    %1571 = arith.cmpi slt, %c1_i32_676, %1564 : i32
    %1572 = arith.andi %1570, %1571 : i1
    %1573 = arith.select %1572, %1428, %1 : vector<8x128xf32>
    %1574 = arith.maximumf %1569, %1573 : vector<8x128xf32>
    %c2_i32_677 = arith.constant 2 : i32
    %1575 = arith.cmpi sge, %c2_i32_677, %1558 : i32
    %c2_i32_678 = arith.constant 2 : i32
    %1576 = arith.cmpi slt, %c2_i32_678, %1564 : i32
    %1577 = arith.andi %1575, %1576 : i1
    %1578 = arith.select %1577, %1431, %1 : vector<8x128xf32>
    %1579 = arith.maximumf %1574, %1578 : vector<8x128xf32>
    %c3_i32_679 = arith.constant 3 : i32
    %1580 = arith.cmpi sge, %c3_i32_679, %1558 : i32
    %c3_i32_680 = arith.constant 3 : i32
    %1581 = arith.cmpi slt, %c3_i32_680, %1564 : i32
    %1582 = arith.andi %1580, %1581 : i1
    %1583 = arith.select %1582, %1434, %1 : vector<8x128xf32>
    %1584 = arith.maximumf %1579, %1583 : vector<8x128xf32>
    %c4_i32_681 = arith.constant 4 : i32
    %1585 = arith.cmpi sge, %c4_i32_681, %1558 : i32
    %c4_i32_682 = arith.constant 4 : i32
    %1586 = arith.cmpi slt, %c4_i32_682, %1564 : i32
    %1587 = arith.andi %1585, %1586 : i1
    %1588 = arith.select %1587, %1437, %1 : vector<8x128xf32>
    %1589 = arith.maximumf %1584, %1588 : vector<8x128xf32>
    %c5_i32_683 = arith.constant 5 : i32
    %1590 = arith.cmpi sge, %c5_i32_683, %1558 : i32
    %c5_i32_684 = arith.constant 5 : i32
    %1591 = arith.cmpi slt, %c5_i32_684, %1564 : i32
    %1592 = arith.andi %1590, %1591 : i1
    %1593 = arith.select %1592, %1440, %1 : vector<8x128xf32>
    %1594 = arith.maximumf %1589, %1593 : vector<8x128xf32>
    %c6_i32_685 = arith.constant 6 : i32
    %1595 = arith.cmpi sge, %c6_i32_685, %1558 : i32
    %c6_i32_686 = arith.constant 6 : i32
    %1596 = arith.cmpi slt, %c6_i32_686, %1564 : i32
    %1597 = arith.andi %1595, %1596 : i1
    %1598 = arith.select %1597, %1443, %1 : vector<8x128xf32>
    %1599 = arith.maximumf %1594, %1598 : vector<8x128xf32>
    %c7_i32_687 = arith.constant 7 : i32
    %1600 = arith.cmpi sge, %c7_i32_687, %1558 : i32
    %c7_i32_688 = arith.constant 7 : i32
    %1601 = arith.cmpi slt, %c7_i32_688, %1564 : i32
    %1602 = arith.andi %1600, %1601 : i1
    %1603 = arith.select %1602, %1446, %1 : vector<8x128xf32>
    %1604 = arith.maximumf %1599, %1603 : vector<8x128xf32>
    %1605 = arith.cmpi sle, %1564, %1558 : i32
    %c4_i32_689 = arith.constant 4 : i32
    %1606 = arith.muli %1420, %c4_i32_689 : i32
    %c3_i32_690 = arith.constant 3 : i32
    %1607 = arith.addi %1606, %c3_i32_690 : i32
    %c2_i32_691 = arith.constant 2 : i32
    %1608 = arith.muli %1607, %c2_i32_691 : i32
    %c0_i32_692 = arith.constant 0 : i32
    %1609 = arith.addi %1608, %c0_i32_692 : i32
    %1610 = arith.index_cast %1609 : i32 to index
    %1611 = memref.load %arg3[%1610] : memref<96xi32, #tpu.memory_space<smem>>
    %c4_i32_693 = arith.constant 4 : i32
    %1612 = arith.muli %1420, %c4_i32_693 : i32
    %c3_i32_694 = arith.constant 3 : i32
    %1613 = arith.addi %1612, %c3_i32_694 : i32
    %c2_i32_695 = arith.constant 2 : i32
    %1614 = arith.muli %1613, %c2_i32_695 : i32
    %c1_i32_696 = arith.constant 1 : i32
    %1615 = arith.addi %1614, %c1_i32_696 : i32
    %1616 = arith.index_cast %1615 : i32 to index
    %1617 = memref.load %arg3[%1616] : memref<96xi32, #tpu.memory_space<smem>>
    %c0_i32_697 = arith.constant 0 : i32
    %1618 = arith.cmpi sge, %c0_i32_697, %1611 : i32
    %c0_i32_698 = arith.constant 0 : i32
    %1619 = arith.cmpi slt, %c0_i32_698, %1617 : i32
    %1620 = arith.andi %1618, %1619 : i1
    %1621 = arith.select %1620, %1425, %1 : vector<8x128xf32>
    %1622 = arith.maximumf %1, %1621 : vector<8x128xf32>
    %c1_i32_699 = arith.constant 1 : i32
    %1623 = arith.cmpi sge, %c1_i32_699, %1611 : i32
    %c1_i32_700 = arith.constant 1 : i32
    %1624 = arith.cmpi slt, %c1_i32_700, %1617 : i32
    %1625 = arith.andi %1623, %1624 : i1
    %1626 = arith.select %1625, %1428, %1 : vector<8x128xf32>
    %1627 = arith.maximumf %1622, %1626 : vector<8x128xf32>
    %c2_i32_701 = arith.constant 2 : i32
    %1628 = arith.cmpi sge, %c2_i32_701, %1611 : i32
    %c2_i32_702 = arith.constant 2 : i32
    %1629 = arith.cmpi slt, %c2_i32_702, %1617 : i32
    %1630 = arith.andi %1628, %1629 : i1
    %1631 = arith.select %1630, %1431, %1 : vector<8x128xf32>
    %1632 = arith.maximumf %1627, %1631 : vector<8x128xf32>
    %c3_i32_703 = arith.constant 3 : i32
    %1633 = arith.cmpi sge, %c3_i32_703, %1611 : i32
    %c3_i32_704 = arith.constant 3 : i32
    %1634 = arith.cmpi slt, %c3_i32_704, %1617 : i32
    %1635 = arith.andi %1633, %1634 : i1
    %1636 = arith.select %1635, %1434, %1 : vector<8x128xf32>
    %1637 = arith.maximumf %1632, %1636 : vector<8x128xf32>
    %c4_i32_705 = arith.constant 4 : i32
    %1638 = arith.cmpi sge, %c4_i32_705, %1611 : i32
    %c4_i32_706 = arith.constant 4 : i32
    %1639 = arith.cmpi slt, %c4_i32_706, %1617 : i32
    %1640 = arith.andi %1638, %1639 : i1
    %1641 = arith.select %1640, %1437, %1 : vector<8x128xf32>
    %1642 = arith.maximumf %1637, %1641 : vector<8x128xf32>
    %c5_i32_707 = arith.constant 5 : i32
    %1643 = arith.cmpi sge, %c5_i32_707, %1611 : i32
    %c5_i32_708 = arith.constant 5 : i32
    %1644 = arith.cmpi slt, %c5_i32_708, %1617 : i32
    %1645 = arith.andi %1643, %1644 : i1
    %1646 = arith.select %1645, %1440, %1 : vector<8x128xf32>
    %1647 = arith.maximumf %1642, %1646 : vector<8x128xf32>
    %c6_i32_709 = arith.constant 6 : i32
    %1648 = arith.cmpi sge, %c6_i32_709, %1611 : i32
    %c6_i32_710 = arith.constant 6 : i32
    %1649 = arith.cmpi slt, %c6_i32_710, %1617 : i32
    %1650 = arith.andi %1648, %1649 : i1
    %1651 = arith.select %1650, %1443, %1 : vector<8x128xf32>
    %1652 = arith.maximumf %1647, %1651 : vector<8x128xf32>
    %c7_i32_711 = arith.constant 7 : i32
    %1653 = arith.cmpi sge, %c7_i32_711, %1611 : i32
    %c7_i32_712 = arith.constant 7 : i32
    %1654 = arith.cmpi slt, %c7_i32_712, %1617 : i32
    %1655 = arith.andi %1653, %1654 : i1
    %1656 = arith.select %1655, %1446, %1 : vector<8x128xf32>
    %1657 = arith.maximumf %1652, %1656 : vector<8x128xf32>
    %1658 = arith.cmpi sle, %1617, %1611 : i32
    %c4_i32_713 = arith.constant 4 : i32
    %1659 = arith.muli %1420, %c4_i32_713 : i32
    %c0_i32_714 = arith.constant 0 : i32
    %1660 = arith.addi %1659, %c0_i32_714 : i32
    %c2_i32_715 = arith.constant 2 : i32
    %1661 = arith.muli %1660, %c2_i32_715 : i32
    %c0_i32_716 = arith.constant 0 : i32
    %1662 = arith.addi %1661, %c0_i32_716 : i32
    %1663 = arith.index_cast %1662 : i32 to index
    %1664 = memref.load %arg2[%1663] : memref<96xi32, #tpu.memory_space<smem>>
    %c4_i32_717 = arith.constant 4 : i32
    %1665 = arith.muli %1420, %c4_i32_717 : i32
    %c0_i32_718 = arith.constant 0 : i32
    %1666 = arith.addi %1665, %c0_i32_718 : i32
    %c2_i32_719 = arith.constant 2 : i32
    %1667 = arith.muli %1666, %c2_i32_719 : i32
    %c1_i32_720 = arith.constant 1 : i32
    %1668 = arith.addi %1667, %c1_i32_720 : i32
    %1669 = arith.index_cast %1668 : i32 to index
    %1670 = memref.load %arg2[%1669] : memref<96xi32, #tpu.memory_space<smem>>
    %1671 = vector.broadcast %1664 : i32 to vector<8x1xi32>
    %1672 = arith.cmpi sge, %0, %1671 : vector<8x1xi32>
    %1673 = vector.broadcast %1670 : i32 to vector<8x1xi32>
    %1674 = arith.cmpi slt, %0, %1673 : vector<8x1xi32>
    %1675 = arith.andi %1672, %1674 : vector<8x1xi1>
    %1676 = arith.cmpi sle, %1670, %1664 : i32
    %cst_721 = arith.constant 0xFF800000 : f32
    %1677 = vector.shape_cast %1675 : vector<8x1xi1> to vector<8x1xi1>
    %1678 = vector.broadcast %1677 : vector<8x1xi1> to vector<8x128xi1>
    %1679 = vector.broadcast %cst_721 : f32 to vector<8x128xf32>
    %1680 = arith.select %1678, %1498, %1679 : vector<8x128xi1>, vector<8x128xf32>
    %cst_722 = arith.constant dense<0xFF800000> : vector<128xf32>
    %1681 = vector.multi_reduction <maximumf>, %1680, %cst_722 [0] : vector<8x128xf32> to vector<128xf32>
    %1682 = vector.shape_cast %1681 : vector<128xf32> to vector<1x128xf32>
    %1683 = arith.ori %1676, %1499 : i1
    %cst_723 = arith.constant 0.000000e+00 : f32
    %1684 = vector.broadcast %cst_723 : f32 to vector<1x128xf32>
    %1685 = arith.select %1683, %1684, %1682 : vector<1x128xf32>
    %1686 = arith.addf %1418, %1685 : vector<1x128xf32>
    %cst_724 = arith.constant 0xFF800000 : f32
    %1687 = vector.shape_cast %1675 : vector<8x1xi1> to vector<8x1xi1>
    %1688 = vector.broadcast %1687 : vector<8x1xi1> to vector<8x128xi1>
    %1689 = vector.broadcast %cst_724 : f32 to vector<8x128xf32>
    %1690 = arith.select %1688, %1551, %1689 : vector<8x128xi1>, vector<8x128xf32>
    %cst_725 = arith.constant dense<0xFF800000> : vector<128xf32>
    %1691 = vector.multi_reduction <maximumf>, %1690, %cst_725 [0] : vector<8x128xf32> to vector<128xf32>
    %1692 = vector.shape_cast %1691 : vector<128xf32> to vector<1x128xf32>
    %1693 = arith.ori %1676, %1552 : i1
    %cst_726 = arith.constant 0.000000e+00 : f32
    %1694 = vector.broadcast %cst_726 : f32 to vector<1x128xf32>
    %1695 = arith.select %1693, %1694, %1692 : vector<1x128xf32>
    %1696 = arith.addf %1686, %1695 : vector<1x128xf32>
    %cst_727 = arith.constant 0xFF800000 : f32
    %1697 = vector.shape_cast %1675 : vector<8x1xi1> to vector<8x1xi1>
    %1698 = vector.broadcast %1697 : vector<8x1xi1> to vector<8x128xi1>
    %1699 = vector.broadcast %cst_727 : f32 to vector<8x128xf32>
    %1700 = arith.select %1698, %1604, %1699 : vector<8x128xi1>, vector<8x128xf32>
    %cst_728 = arith.constant dense<0xFF800000> : vector<128xf32>
    %1701 = vector.multi_reduction <maximumf>, %1700, %cst_728 [0] : vector<8x128xf32> to vector<128xf32>
    %1702 = vector.shape_cast %1701 : vector<128xf32> to vector<1x128xf32>
    %1703 = arith.ori %1676, %1605 : i1
    %cst_729 = arith.constant 0.000000e+00 : f32
    %1704 = vector.broadcast %cst_729 : f32 to vector<1x128xf32>
    %1705 = arith.select %1703, %1704, %1702 : vector<1x128xf32>
    %1706 = arith.addf %1696, %1705 : vector<1x128xf32>
    %cst_730 = arith.constant 0xFF800000 : f32
    %1707 = vector.shape_cast %1675 : vector<8x1xi1> to vector<8x1xi1>
    %1708 = vector.broadcast %1707 : vector<8x1xi1> to vector<8x128xi1>
    %1709 = vector.broadcast %cst_730 : f32 to vector<8x128xf32>
    %1710 = arith.select %1708, %1657, %1709 : vector<8x128xi1>, vector<8x128xf32>
    %cst_731 = arith.constant dense<0xFF800000> : vector<128xf32>
    %1711 = vector.multi_reduction <maximumf>, %1710, %cst_731 [0] : vector<8x128xf32> to vector<128xf32>
    %1712 = vector.shape_cast %1711 : vector<128xf32> to vector<1x128xf32>
    %1713 = arith.ori %1676, %1658 : i1
    %cst_732 = arith.constant 0.000000e+00 : f32
    %1714 = vector.broadcast %cst_732 : f32 to vector<1x128xf32>
    %1715 = arith.select %1713, %1714, %1712 : vector<1x128xf32>
    %1716 = arith.addf %1706, %1715 : vector<1x128xf32>
    %c4_i32_733 = arith.constant 4 : i32
    %1717 = arith.muli %1420, %c4_i32_733 : i32
    %c1_i32_734 = arith.constant 1 : i32
    %1718 = arith.addi %1717, %c1_i32_734 : i32
    %c2_i32_735 = arith.constant 2 : i32
    %1719 = arith.muli %1718, %c2_i32_735 : i32
    %c0_i32_736 = arith.constant 0 : i32
    %1720 = arith.addi %1719, %c0_i32_736 : i32
    %1721 = arith.index_cast %1720 : i32 to index
    %1722 = memref.load %arg2[%1721] : memref<96xi32, #tpu.memory_space<smem>>
    %c4_i32_737 = arith.constant 4 : i32
    %1723 = arith.muli %1420, %c4_i32_737 : i32
    %c1_i32_738 = arith.constant 1 : i32
    %1724 = arith.addi %1723, %c1_i32_738 : i32
    %c2_i32_739 = arith.constant 2 : i32
    %1725 = arith.muli %1724, %c2_i32_739 : i32
    %c1_i32_740 = arith.constant 1 : i32
    %1726 = arith.addi %1725, %c1_i32_740 : i32
    %1727 = arith.index_cast %1726 : i32 to index
    %1728 = memref.load %arg2[%1727] : memref<96xi32, #tpu.memory_space<smem>>
    %1729 = vector.broadcast %1722 : i32 to vector<8x1xi32>
    %1730 = arith.cmpi sge, %0, %1729 : vector<8x1xi32>
    %1731 = vector.broadcast %1728 : i32 to vector<8x1xi32>
    %1732 = arith.cmpi slt, %0, %1731 : vector<8x1xi32>
    %1733 = arith.andi %1730, %1732 : vector<8x1xi1>
    %1734 = arith.cmpi sle, %1728, %1722 : i32
    %cst_741 = arith.constant 0xFF800000 : f32
    %1735 = vector.shape_cast %1733 : vector<8x1xi1> to vector<8x1xi1>
    %1736 = vector.broadcast %1735 : vector<8x1xi1> to vector<8x128xi1>
    %1737 = vector.broadcast %cst_741 : f32 to vector<8x128xf32>
    %1738 = arith.select %1736, %1498, %1737 : vector<8x128xi1>, vector<8x128xf32>
    %cst_742 = arith.constant dense<0xFF800000> : vector<128xf32>
    %1739 = vector.multi_reduction <maximumf>, %1738, %cst_742 [0] : vector<8x128xf32> to vector<128xf32>
    %1740 = vector.shape_cast %1739 : vector<128xf32> to vector<1x128xf32>
    %1741 = arith.ori %1734, %1499 : i1
    %cst_743 = arith.constant 0.000000e+00 : f32
    %1742 = vector.broadcast %cst_743 : f32 to vector<1x128xf32>
    %1743 = arith.select %1741, %1742, %1740 : vector<1x128xf32>
    %1744 = arith.addf %1716, %1743 : vector<1x128xf32>
    %cst_744 = arith.constant 0xFF800000 : f32
    %1745 = vector.shape_cast %1733 : vector<8x1xi1> to vector<8x1xi1>
    %1746 = vector.broadcast %1745 : vector<8x1xi1> to vector<8x128xi1>
    %1747 = vector.broadcast %cst_744 : f32 to vector<8x128xf32>
    %1748 = arith.select %1746, %1551, %1747 : vector<8x128xi1>, vector<8x128xf32>
    %cst_745 = arith.constant dense<0xFF800000> : vector<128xf32>
    %1749 = vector.multi_reduction <maximumf>, %1748, %cst_745 [0] : vector<8x128xf32> to vector<128xf32>
    %1750 = vector.shape_cast %1749 : vector<128xf32> to vector<1x128xf32>
    %1751 = arith.ori %1734, %1552 : i1
    %cst_746 = arith.constant 0.000000e+00 : f32
    %1752 = vector.broadcast %cst_746 : f32 to vector<1x128xf32>
    %1753 = arith.select %1751, %1752, %1750 : vector<1x128xf32>
    %1754 = arith.addf %1744, %1753 : vector<1x128xf32>
    %cst_747 = arith.constant 0xFF800000 : f32
    %1755 = vector.shape_cast %1733 : vector<8x1xi1> to vector<8x1xi1>
    %1756 = vector.broadcast %1755 : vector<8x1xi1> to vector<8x128xi1>
    %1757 = vector.broadcast %cst_747 : f32 to vector<8x128xf32>
    %1758 = arith.select %1756, %1604, %1757 : vector<8x128xi1>, vector<8x128xf32>
    %cst_748 = arith.constant dense<0xFF800000> : vector<128xf32>
    %1759 = vector.multi_reduction <maximumf>, %1758, %cst_748 [0] : vector<8x128xf32> to vector<128xf32>
    %1760 = vector.shape_cast %1759 : vector<128xf32> to vector<1x128xf32>
    %1761 = arith.ori %1734, %1605 : i1
    %cst_749 = arith.constant 0.000000e+00 : f32
    %1762 = vector.broadcast %cst_749 : f32 to vector<1x128xf32>
    %1763 = arith.select %1761, %1762, %1760 : vector<1x128xf32>
    %1764 = arith.addf %1754, %1763 : vector<1x128xf32>
    %cst_750 = arith.constant 0xFF800000 : f32
    %1765 = vector.shape_cast %1733 : vector<8x1xi1> to vector<8x1xi1>
    %1766 = vector.broadcast %1765 : vector<8x1xi1> to vector<8x128xi1>
    %1767 = vector.broadcast %cst_750 : f32 to vector<8x128xf32>
    %1768 = arith.select %1766, %1657, %1767 : vector<8x128xi1>, vector<8x128xf32>
    %cst_751 = arith.constant dense<0xFF800000> : vector<128xf32>
    %1769 = vector.multi_reduction <maximumf>, %1768, %cst_751 [0] : vector<8x128xf32> to vector<128xf32>
    %1770 = vector.shape_cast %1769 : vector<128xf32> to vector<1x128xf32>
    %1771 = arith.ori %1734, %1658 : i1
    %cst_752 = arith.constant 0.000000e+00 : f32
    %1772 = vector.broadcast %cst_752 : f32 to vector<1x128xf32>
    %1773 = arith.select %1771, %1772, %1770 : vector<1x128xf32>
    %1774 = arith.addf %1764, %1773 : vector<1x128xf32>
    %c4_i32_753 = arith.constant 4 : i32
    %1775 = arith.muli %1420, %c4_i32_753 : i32
    %c2_i32_754 = arith.constant 2 : i32
    %1776 = arith.addi %1775, %c2_i32_754 : i32
    %c2_i32_755 = arith.constant 2 : i32
    %1777 = arith.muli %1776, %c2_i32_755 : i32
    %c0_i32_756 = arith.constant 0 : i32
    %1778 = arith.addi %1777, %c0_i32_756 : i32
    %1779 = arith.index_cast %1778 : i32 to index
    %1780 = memref.load %arg2[%1779] : memref<96xi32, #tpu.memory_space<smem>>
    %c4_i32_757 = arith.constant 4 : i32
    %1781 = arith.muli %1420, %c4_i32_757 : i32
    %c2_i32_758 = arith.constant 2 : i32
    %1782 = arith.addi %1781, %c2_i32_758 : i32
    %c2_i32_759 = arith.constant 2 : i32
    %1783 = arith.muli %1782, %c2_i32_759 : i32
    %c1_i32_760 = arith.constant 1 : i32
    %1784 = arith.addi %1783, %c1_i32_760 : i32
    %1785 = arith.index_cast %1784 : i32 to index
    %1786 = memref.load %arg2[%1785] : memref<96xi32, #tpu.memory_space<smem>>
    %1787 = vector.broadcast %1780 : i32 to vector<8x1xi32>
    %1788 = arith.cmpi sge, %0, %1787 : vector<8x1xi32>
    %1789 = vector.broadcast %1786 : i32 to vector<8x1xi32>
    %1790 = arith.cmpi slt, %0, %1789 : vector<8x1xi32>
    %1791 = arith.andi %1788, %1790 : vector<8x1xi1>
    %1792 = arith.cmpi sle, %1786, %1780 : i32
    %cst_761 = arith.constant 0xFF800000 : f32
    %1793 = vector.shape_cast %1791 : vector<8x1xi1> to vector<8x1xi1>
    %1794 = vector.broadcast %1793 : vector<8x1xi1> to vector<8x128xi1>
    %1795 = vector.broadcast %cst_761 : f32 to vector<8x128xf32>
    %1796 = arith.select %1794, %1498, %1795 : vector<8x128xi1>, vector<8x128xf32>
    %cst_762 = arith.constant dense<0xFF800000> : vector<128xf32>
    %1797 = vector.multi_reduction <maximumf>, %1796, %cst_762 [0] : vector<8x128xf32> to vector<128xf32>
    %1798 = vector.shape_cast %1797 : vector<128xf32> to vector<1x128xf32>
    %1799 = arith.ori %1792, %1499 : i1
    %cst_763 = arith.constant 0.000000e+00 : f32
    %1800 = vector.broadcast %cst_763 : f32 to vector<1x128xf32>
    %1801 = arith.select %1799, %1800, %1798 : vector<1x128xf32>
    %1802 = arith.addf %1774, %1801 : vector<1x128xf32>
    %cst_764 = arith.constant 0xFF800000 : f32
    %1803 = vector.shape_cast %1791 : vector<8x1xi1> to vector<8x1xi1>
    %1804 = vector.broadcast %1803 : vector<8x1xi1> to vector<8x128xi1>
    %1805 = vector.broadcast %cst_764 : f32 to vector<8x128xf32>
    %1806 = arith.select %1804, %1551, %1805 : vector<8x128xi1>, vector<8x128xf32>
    %cst_765 = arith.constant dense<0xFF800000> : vector<128xf32>
    %1807 = vector.multi_reduction <maximumf>, %1806, %cst_765 [0] : vector<8x128xf32> to vector<128xf32>
    %1808 = vector.shape_cast %1807 : vector<128xf32> to vector<1x128xf32>
    %1809 = arith.ori %1792, %1552 : i1
    %cst_766 = arith.constant 0.000000e+00 : f32
    %1810 = vector.broadcast %cst_766 : f32 to vector<1x128xf32>
    %1811 = arith.select %1809, %1810, %1808 : vector<1x128xf32>
    %1812 = arith.addf %1802, %1811 : vector<1x128xf32>
    %cst_767 = arith.constant 0xFF800000 : f32
    %1813 = vector.shape_cast %1791 : vector<8x1xi1> to vector<8x1xi1>
    %1814 = vector.broadcast %1813 : vector<8x1xi1> to vector<8x128xi1>
    %1815 = vector.broadcast %cst_767 : f32 to vector<8x128xf32>
    %1816 = arith.select %1814, %1604, %1815 : vector<8x128xi1>, vector<8x128xf32>
    %cst_768 = arith.constant dense<0xFF800000> : vector<128xf32>
    %1817 = vector.multi_reduction <maximumf>, %1816, %cst_768 [0] : vector<8x128xf32> to vector<128xf32>
    %1818 = vector.shape_cast %1817 : vector<128xf32> to vector<1x128xf32>
    %1819 = arith.ori %1792, %1605 : i1
    %cst_769 = arith.constant 0.000000e+00 : f32
    %1820 = vector.broadcast %cst_769 : f32 to vector<1x128xf32>
    %1821 = arith.select %1819, %1820, %1818 : vector<1x128xf32>
    %1822 = arith.addf %1812, %1821 : vector<1x128xf32>
    %cst_770 = arith.constant 0xFF800000 : f32
    %1823 = vector.shape_cast %1791 : vector<8x1xi1> to vector<8x1xi1>
    %1824 = vector.broadcast %1823 : vector<8x1xi1> to vector<8x128xi1>
    %1825 = vector.broadcast %cst_770 : f32 to vector<8x128xf32>
    %1826 = arith.select %1824, %1657, %1825 : vector<8x128xi1>, vector<8x128xf32>
    %cst_771 = arith.constant dense<0xFF800000> : vector<128xf32>
    %1827 = vector.multi_reduction <maximumf>, %1826, %cst_771 [0] : vector<8x128xf32> to vector<128xf32>
    %1828 = vector.shape_cast %1827 : vector<128xf32> to vector<1x128xf32>
    %1829 = arith.ori %1792, %1658 : i1
    %cst_772 = arith.constant 0.000000e+00 : f32
    %1830 = vector.broadcast %cst_772 : f32 to vector<1x128xf32>
    %1831 = arith.select %1829, %1830, %1828 : vector<1x128xf32>
    %1832 = arith.addf %1822, %1831 : vector<1x128xf32>
    %c4_i32_773 = arith.constant 4 : i32
    %1833 = arith.muli %1420, %c4_i32_773 : i32
    %c3_i32_774 = arith.constant 3 : i32
    %1834 = arith.addi %1833, %c3_i32_774 : i32
    %c2_i32_775 = arith.constant 2 : i32
    %1835 = arith.muli %1834, %c2_i32_775 : i32
    %c0_i32_776 = arith.constant 0 : i32
    %1836 = arith.addi %1835, %c0_i32_776 : i32
    %1837 = arith.index_cast %1836 : i32 to index
    %1838 = memref.load %arg2[%1837] : memref<96xi32, #tpu.memory_space<smem>>
    %c4_i32_777 = arith.constant 4 : i32
    %1839 = arith.muli %1420, %c4_i32_777 : i32
    %c3_i32_778 = arith.constant 3 : i32
    %1840 = arith.addi %1839, %c3_i32_778 : i32
    %c2_i32_779 = arith.constant 2 : i32
    %1841 = arith.muli %1840, %c2_i32_779 : i32
    %c1_i32_780 = arith.constant 1 : i32
    %1842 = arith.addi %1841, %c1_i32_780 : i32
    %1843 = arith.index_cast %1842 : i32 to index
    %1844 = memref.load %arg2[%1843] : memref<96xi32, #tpu.memory_space<smem>>
    %1845 = vector.broadcast %1838 : i32 to vector<8x1xi32>
    %1846 = arith.cmpi sge, %0, %1845 : vector<8x1xi32>
    %1847 = vector.broadcast %1844 : i32 to vector<8x1xi32>
    %1848 = arith.cmpi slt, %0, %1847 : vector<8x1xi32>
    %1849 = arith.andi %1846, %1848 : vector<8x1xi1>
    %1850 = arith.cmpi sle, %1844, %1838 : i32
    %cst_781 = arith.constant 0xFF800000 : f32
    %1851 = vector.shape_cast %1849 : vector<8x1xi1> to vector<8x1xi1>
    %1852 = vector.broadcast %1851 : vector<8x1xi1> to vector<8x128xi1>
    %1853 = vector.broadcast %cst_781 : f32 to vector<8x128xf32>
    %1854 = arith.select %1852, %1498, %1853 : vector<8x128xi1>, vector<8x128xf32>
    %cst_782 = arith.constant dense<0xFF800000> : vector<128xf32>
    %1855 = vector.multi_reduction <maximumf>, %1854, %cst_782 [0] : vector<8x128xf32> to vector<128xf32>
    %1856 = vector.shape_cast %1855 : vector<128xf32> to vector<1x128xf32>
    %1857 = arith.ori %1850, %1499 : i1
    %cst_783 = arith.constant 0.000000e+00 : f32
    %1858 = vector.broadcast %cst_783 : f32 to vector<1x128xf32>
    %1859 = arith.select %1857, %1858, %1856 : vector<1x128xf32>
    %1860 = arith.addf %1832, %1859 : vector<1x128xf32>
    %cst_784 = arith.constant 0xFF800000 : f32
    %1861 = vector.shape_cast %1849 : vector<8x1xi1> to vector<8x1xi1>
    %1862 = vector.broadcast %1861 : vector<8x1xi1> to vector<8x128xi1>
    %1863 = vector.broadcast %cst_784 : f32 to vector<8x128xf32>
    %1864 = arith.select %1862, %1551, %1863 : vector<8x128xi1>, vector<8x128xf32>
    %cst_785 = arith.constant dense<0xFF800000> : vector<128xf32>
    %1865 = vector.multi_reduction <maximumf>, %1864, %cst_785 [0] : vector<8x128xf32> to vector<128xf32>
    %1866 = vector.shape_cast %1865 : vector<128xf32> to vector<1x128xf32>
    %1867 = arith.ori %1850, %1552 : i1
    %cst_786 = arith.constant 0.000000e+00 : f32
    %1868 = vector.broadcast %cst_786 : f32 to vector<1x128xf32>
    %1869 = arith.select %1867, %1868, %1866 : vector<1x128xf32>
    %1870 = arith.addf %1860, %1869 : vector<1x128xf32>
    %cst_787 = arith.constant 0xFF800000 : f32
    %1871 = vector.shape_cast %1849 : vector<8x1xi1> to vector<8x1xi1>
    %1872 = vector.broadcast %1871 : vector<8x1xi1> to vector<8x128xi1>
    %1873 = vector.broadcast %cst_787 : f32 to vector<8x128xf32>
    %1874 = arith.select %1872, %1604, %1873 : vector<8x128xi1>, vector<8x128xf32>
    %cst_788 = arith.constant dense<0xFF800000> : vector<128xf32>
    %1875 = vector.multi_reduction <maximumf>, %1874, %cst_788 [0] : vector<8x128xf32> to vector<128xf32>
    %1876 = vector.shape_cast %1875 : vector<128xf32> to vector<1x128xf32>
    %1877 = arith.ori %1850, %1605 : i1
    %cst_789 = arith.constant 0.000000e+00 : f32
    %1878 = vector.broadcast %cst_789 : f32 to vector<1x128xf32>
    %1879 = arith.select %1877, %1878, %1876 : vector<1x128xf32>
    %1880 = arith.addf %1870, %1879 : vector<1x128xf32>
    %cst_790 = arith.constant 0xFF800000 : f32
    %1881 = vector.shape_cast %1849 : vector<8x1xi1> to vector<8x1xi1>
    %1882 = vector.broadcast %1881 : vector<8x1xi1> to vector<8x128xi1>
    %1883 = vector.broadcast %cst_790 : f32 to vector<8x128xf32>
    %1884 = arith.select %1882, %1657, %1883 : vector<8x128xi1>, vector<8x128xf32>
    %cst_791 = arith.constant dense<0xFF800000> : vector<128xf32>
    %1885 = vector.multi_reduction <maximumf>, %1884, %cst_791 [0] : vector<8x128xf32> to vector<128xf32>
    %1886 = vector.shape_cast %1885 : vector<128xf32> to vector<1x128xf32>
    %1887 = arith.ori %1850, %1658 : i1
    %cst_792 = arith.constant 0.000000e+00 : f32
    %1888 = vector.broadcast %cst_792 : f32 to vector<1x128xf32>
    %1889 = arith.select %1887, %1888, %1886 : vector<1x128xf32>
    %1890 = arith.addf %1880, %1889 : vector<1x128xf32>
    %c0_793 = arith.constant 0 : index
    %c0_794 = arith.constant 0 : index
    %1891 = vector.load %arg5[%c0_793, %c0_794] : memref<128x128xf32, #tpu.memory_space<vmem>>, vector<128x128xf32>
    %cst_795 = arith.constant dense<0.000000e+00> : vector<1x128xf32>
    %1892 = tpu.matmul %1890, %1891, %cst_795 {dimension_numbers = #tpu.dot_dimension_numbers<[1], [0], [0], [1], [0, 0, 1, 1], [], []>} : vector<1x128xf32>, vector<128x128xf32>, vector<1x128xf32> -> vector<1x128xf32>
    %c0_796 = arith.constant 0 : index
    %c0_797 = arith.constant 0 : index
    %1893 = vector.load %arg6[%c0_796, %c0_797] : memref<1x128xf32, #tpu.memory_space<vmem>>, vector<1x128xf32>
    %1894 = arith.addf %1892, %1893 : vector<1x128xf32>
    %c0_798 = arith.constant 0 : index
    %c0_799 = arith.constant 0 : index
    %c0_800 = arith.constant 0 : index
    %1895 = vector.load %arg7[%c0_798, %c0_799, %c0_800] : memref<1x1x128xf32, #tpu.memory_space<vmem>>, vector<1x1x128xf32>
    %1896 = vector.shape_cast %1895 : vector<1x1x128xf32> to vector<1x128xf32>
    %1897 = vector.shape_cast %1894 : vector<1x128xf32> to vector<1x1x128xf32>
    tpu.vector_store %arg7[%c0_798, %c0_799, %c0_800], %1897 {strides = array<i32>} : memref<1x1x128xf32, #tpu.memory_space<vmem>>, vector<1x1x128xf32>,
    return
  }
  func.func @transform_0(%arg0: i32, %arg1: memref<12xi32, #tpu.memory_space<smem>>, %arg2: memref<96xi32, #tpu.memory_space<smem>>, %arg3: memref<96xi32, #tpu.memory_space<smem>>) -> (i32, i32, i32, i32) {
    %c0_i32 = arith.constant 0 : i32
    %c0_i32_0 = arith.constant 0 : i32
    %c0_i32_1 = arith.constant 0 : i32
    %c0_i32_2 = arith.constant 0 : i32
    %c0_i32_3 = arith.constant 0 : i32
    return %c0_i32, %c0_i32_0, %c0_i32_1, %c0_i32_2 : i32, i32, i32, i32
  }
  func.func @transform_1(%arg0: i32, %arg1: memref<12xi32, #tpu.memory_space<smem>>, %arg2: memref<96xi32, #tpu.memory_space<smem>>, %arg3: memref<96xi32, #tpu.memory_space<smem>>) -> (i32, i32) {
    %c0_i32 = arith.constant 0 : i32
    %c0_i32_0 = arith.constant 0 : i32
    %c0_i32_1 = arith.constant 0 : i32
    return %c0_i32, %c0_i32_0 : i32, i32
  }
  func.func @transform_2(%arg0: i32, %arg1: memref<12xi32, #tpu.memory_space<smem>>, %arg2: memref<96xi32, #tpu.memory_space<smem>>, %arg3: memref<96xi32, #tpu.memory_space<smem>>) -> (i32, i32) {
    %c0_i32 = arith.constant 0 : i32
    %c0_i32_0 = arith.constant 0 : i32
    %c0_i32_1 = arith.constant 0 : i32
    return %c0_i32, %c0_i32_0 : i32, i32
  }
  func.func @transform_3(%arg0: i32, %arg1: memref<12xi32, #tpu.memory_space<smem>>, %arg2: memref<96xi32, #tpu.memory_space<smem>>, %arg3: memref<96xi32, #tpu.memory_space<smem>>) -> (i32, i32, i32) {
    %c0_i32 = arith.constant 0 : i32
    %c0_i32_0 = arith.constant 0 : i32
    %c0_i32_1 = arith.constant 0 : i32
    return %arg0, %c0_i32, %c0_i32_0 : i32, i32, i32
  }
}

</mosaic_0001>

<bundles_post_ra>
// kernel: tpu_custom_call.1
= control target key start
LH: loop header
LB: loop body
LE: loop exit
PB: predicated region body
PF: predicated region fallthrough
CT: control target
= control target key end

     0   :  { %s3339_s21 = smov [#allocation3]   ;;  %s7277_s0 = inlined_call_operand.hbm [shape: s32[12], index: 0, kind: input, shape index: {}]   ;;  %s7278_s3 = inlined_call_operand.hbm [shape: f32[8,8,8,128], index: 3, kind: input, shape index: {}]   ;;  %s7279_s4 = inlined_call_operand.hbm [shape: f32[128,128], index: 4, kind: input, shape index: {}]   ;;  %s7280_s5 = inlined_call_operand.vmem [shape: f32[1,128], index: 5, kind: input, shape index: {}]   ;;  %s7281_s6 = inlined_call_operand.hbm [shape: f32[3,1,128], index: 6, kind: output, shape index: {}]   ;;  %s7282_s1 = inlined_call_operand.vmem [shape: s32[96], index: 1, kind: input, shape index: {}]   ;;  %s7283_s2 = inlined_call_operand.vmem [shape: s32[96], index: 2, kind: input, shape index: {}]  }
   0x1   :  { %7567 = sst [smem:[#allocation74_spill]] %s7278_s3  ;;  %s13_s26 = sshll.u32 %s7282_s1, 4  ;;  %s14_s26 = int_to_ptr.vmem [resolvable:$true] %s13_s26 }
   0x2   :  { %7568 = sst [smem:[#allocation75_spill]] %s7279_s4  ;;  %s17_s29 = sshll.u32 %s7283_s2, 4  ;;  %s18_s29 = int_to_ptr.vmem [resolvable:$true] %s17_s29 }
   0x3   :  { %7569 = sst [smem:[#allocation76_spill]] %s7280_s5  ;;  %s3191_s30 = scalar_lea.vmem %s14_s26, 16 }
   0x4   :  { %7570 = sst [smem:[#allocation77_spill]] %s7281_s6  ;;  %p3192_p0 = scmp.ne.s32.totalorder %s14_s26, %s3191_s30 }
   0x5   :  { %12 = dma.hbm_to_smem %s7277_s0, 16, %s3339_s21, [#allocation2] }
   0x6   :  { %p3196_p1 = scmp.lt.s32.totalorder %s14_s26, %s14_s26  ;;  %p3197_p2 = scmp.lt.s32.totalorder %s3191_s30, %s3191_s30 }
   0x8   :  { %p3198_p3 = por %p3197_p2, %p3196_p1 }
   0xa   :  { %p3199_p4 = pnand %p3198_p3, %p3192_p0 }
   0xc   :  { %3202 = shalt.err (!%p3199_p4)  }
   0xd   :  { %s3340_s7 = smov [#allocation4]   ;;  %s3203_s0 = scalar_lea.vmem %s18_s29, 16 }
   0xe   :  { %16 = dma.vmem_to_smem %s14_s26, 16, %s3340_s7, [#allocation2] }
   0xf   :  { %p3204_p5 = scmp.ne.s32.totalorder %s18_s29, %s3203_s0  ;;  %p3208_p6 = scmp.lt.s32.totalorder %s18_s29, %s18_s29 }
  0x10   :  { %p3209_p7 = scmp.lt.s32.totalorder %s3203_s0, %s3203_s0 }
  0x12   :  { %p3210_p8 = por %p3209_p7, %p3208_p6 }
  0x14   :  { %p3211_p9 = pnand %p3210_p8, %p3204_p5 }
  0x16   :  { %3214 = shalt.err (!%p3211_p9)  }
  0x17   :  { %s3341_s1 = smov [#allocation5]  }
  0x18   :  { %20 = dma.vmem_to_smem %s18_s29, 16, %s3341_s1, [#allocation2] }
  0x19   :  { %3309 = dma.done.wait [#allocation2], 48 }
  0x1a   :  { %3310 = vsyncadd [#allocation2], 4294967248 }
  0x1b   :  { %22 = sfence }
  0x1c   :  { %23 = vsyncpa [#allocation7], 0 }
  0x1d   :  { %24 = vsyncpa [#allocation10], 0 }
  0x1e   :  { %25 = vsyncpa [#allocation8], 0 }
  0x1f   :  { %27 = vsyncpa [#allocation8 + $0x1], 0  ;;  %s3393_s2 = smov 0   ;;  %s3395_s8 = smov 0  }
  0x20   :  { %s3397_s9 = smov 0   ;;  %s3399_s10 = smov 0  }
  0x21 LB: > { %7571 = sst [smem:[#allocation16_spill]] %s3325_s2  ;;  %s3414_s11 = sadd.s32 4294967295, %s3337_s10   ;;  %s3337_s10 = sphi %s3399_s10, %s8480_s10   ;;  %s3333_s9 = sphi %s3397_s9, %s8483_s9   ;;  %s3329_s8 = sphi %s3395_s8, %s8482_s8   ;;  %s3325_s2 = sphi %s3393_s2, %s8481_s2  }
  0x22   : > { %7572 = sst [smem:[#allocation17_spill]] %s3329_s8  ;;  %s2781_s12 = sadd.s32 4294967294, %s3337_s10  }
  0x23   : > { %7573 = sst [smem:[#allocation18_spill]] %s3333_s9  ;;  %s3418_s13 = sadd.s32 1, %s3337_s10  }
  0x24   : > { %7574 = sst [smem:[#allocation19_spill]] %s3337_s10  ;;  %s103_s14 = sadd.s32 1, %s3333_s9 }
  0x25   : > { %7575 = sst [smem:[#allocation20_spill]] %s3414_s11  ;;  %s100_s15 = ssub.s32 %s3337_s10, %s3418_s13 }
  0x26   : > { %7576 = sst [smem:[#allocation21_spill]] %s3418_s13  ;;  %p113_p10 = scmp.ne.s32.totalorder %s3333_s9, %s3329_s8 }
  0x27   : > { %p101_p11 = scmp.eq.s32.totalorder %s100_s15, 0  ;;  %p114_p12 = scmp.eq.s32.totalorder %s3414_s11, 2 }
  0x28   : > { %p119_p13 = scmp.ne.s32.totalorder %s3329_s8, %s3325_s2  ;;  %p120_p0 = scmp.eq.s32.totalorder %s2781_s12, 2 }
  0x29   : > { %s3429_s16 = scalar_select %p101_p11, %s3333_s9, %s103_s14  }
  0x2a   : > { %p3431_p1 = por %p114_p12, %p113_p10  ;;  %p3435_p2 = por %p120_p0, %p119_p13 }
  0x2b   : > { %7577 = sst [smem:[#allocation22_spill]] %s3429_s16  ;;  %p2782_p3 = scmp.ge.s32.totalorder %s3337_s10, 1 }
  0x2c   : > { %s7578_s17 = scalar_select %p3431_p1, 1, 0 }
  0x2d   : > { %s7580_s18 = scalar_select %p3435_p2, 1, 0 }
  0x2e   : > { %7579 = sst [smem:[#allocation23_spill]] %s7578_s17  ;;  %p127_p4 = scmp.lt.s32.totalorder %s3337_s10, 4 }
  0x2f   : > { %7581 = sst [smem:[#allocation24_spill]] %s7580_s18  ;;  %p7284_p5 = scmp.eq.s32.totalorder %s3414_s11, 0 }
  0x30   : > { %p3442_p6 = pnand %p2782_p3, %p127_p4  ;;  %s3342_s20 = smov [#allocation6]  }
  0x31   : > { %s139_s21 = sshll.u32 %s3342_s20, 4  ;;  %s3343_s23 = smov [#allocation9]   ;;  %s140_s21 = int_to_ptr.vmem [resolvable:$true] %s139_s21 }
  0x32   : > { %p3126_p7 = pneg %p3442_p6  ;;  %s152_s24 = sshll.u32 %s3343_s23, 4  ;;  %s153_s24 = int_to_ptr.vmem [resolvable:$true] %s152_s24 }
  0x33   : > { %s3226_s25 = scalar_lea.vmem %s140_s21, 8192  ;;  %p3234_p13 = scmp.lt.s32.totalorder %s140_s21, %s140_s21 }
  0x34   : > { %p3450_p8 = pnand %p7284_p5, %p3126_p7  ;;  %p3227_p10 = scmp.ne.s32.totalorder %s140_s21, %s3226_s25 }
  0x35   : > { %p3235_p0 = scmp.lt.s32.totalorder %s3226_s25, %s3226_s25 }
  0x36   : > { %p3217_p9 = pneg %p3450_p8 }
  0x37   : > { %p3236_p3 = por %p3235_p0, %p3234_p13 }
  0x38   : > { %p3229_p11 = pnand %p3227_p10, %p3217_p9 }
  0x3a   : > { %p3230_p12 = pneg %p3229_p11 }
  0x3c   : > { %p3237_p4 = pnand %p3236_p3, %p3230_p12 }
  0x3e   : > { %3240 = shalt.err (!%p3237_p4)
}
  0x3f   : > { %s3344_s26 = smov 128   ;;  %s3345_s27 = smov 8  }
  0x40   : > { %s7584_s3 = sld [smem:[#allocation74_spill]]  ;;  %s3252_s30 = scalar_lea.vmem %s153_s24, 2048 }
  0x41   : > { %p3253_p7 = scmp.ne.s32.totalorder %s153_s24, %s3252_s30  ;;  %p3260_p5 = scmp.lt.s32.totalorder %s153_s24, %s153_s24 }
  0x42   : > { %p3261_p2 = scmp.lt.s32.totalorder %s3252_s30, %s3252_s30 }
  0x43   : > { %p3255_p10 = pnand %p3253_p7, %p3217_p9 }
  0x44   : > { %p3262_p13 = por %p3261_p2, %p3260_p5 }
  0x45   : > { %p3256_p11 = pneg %p3255_p10 }
  0x46   : > { %3129 = dma.hbm_to_vmem [thread:$0]  (!%p3450_p8), %s7584_s3, 8192, %s140_s21, [#allocation7], %s3344_s26, %s3344_s26, %s3345_s27  }
  0x47   : > { %p3263_p12 = pnand %p3262_p13, %p3256_p11 }
  0x49   : > { %3266 = shalt.err (!%p3263_p12)
}
  0x4a   : > { %s7585_s4 = sld [smem:[#allocation75_spill]] }
  0x4c   : > { %171 = sbr.rel (%p3442_p6) target bundleno = 1156 (0x484), region = 32 }
  0x50   : > { %3132 = dma.hbm_to_vmem [thread:$0]  (!%p3450_p8), %s7585_s4, 2048, %s153_s24, [#allocation10], %s3344_s26, %s3344_s26, %s3345_s27  }
  0x51   : > { %p7586_p0 = scmp.eq.s32.totalorder %s3414_s11, 0 }
  0x53   : > { %3312 = dma.done.wait (%p7586_p0), [#allocation7], 8192   ;;  %p7587_p9 = pmov %p7586_p0 }
  0x54   : > { %p7588_p3 = pmov %p7586_p0 }
  0x55   : > { %3314 = vsyncadd (%p7587_p9), [#allocation7], 4294959104 }
  0x56   : > { %3316 = dma.done.wait (%p7588_p3), [#allocation10], 2048   ;;  %p7589_p2 = pmov %p7586_p0 }
  0x57   : > { %s3483_s1 = sshll.u32 %s3414_s11, 5  ;;  %v3346_v0 = vmov 0.0   ;;  %vm3347_vm0 = vmmov 0   ;;  %v2538_v1 = vld [vmem:[#allocation9 + $0x78] sm:$0xff]  ;;  %v2537_v2 = vld [vmem:[#allocation9 + $0x70] sm:$0xff]  ;;  %v2536_v3 = vld [vmem:[#allocation9 + $0x68] sm:$0xff]  ;;  %v193_v31 = vlaneseq }
  0x58   : > { %3318 = vsyncadd (%p7589_p2), [#allocation10], 4294965248  ;;  %7590 = sst [smem:[#allocation25_spill]] %s3483_s1  ;;  %3081 = vmatprep.subr.mxu0 %v3346_v0  ;;  %3113 = vmatprep.mubr.msk.f32.mxu0 %vm3347_vm0, %v3346_v0  ;;  %s7286_s12 = sadd.s32 1, %s3483_s1  ;;  %v2535_v4 = vld [vmem:[#allocation9 + $0x60] sm:$0xff]  ;;  %v2534_v5 = vld [vmem:[#allocation9 + $0x58] sm:$0xff] }
  0x59   : > { %s3489_s14 = sld [smem:[#allocation5 + %s3483_s1]]  ;;  %s3492_s15 = sadd.s32 2, %s3483_s1  ;;  %3082 = vmatpush3.msra.mxu0 %v2538_v1  ;;  %v2533_v6 = vld [vmem:[#allocation9 + $0x50] sm:$0xff]  ;;  %v2532_v7 = vld [vmem:[#allocation9 + $0x48] sm:$0xff]  ;;  %v2531_v8 = vld [vmem:[#allocation9 + $0x40] sm:$0xff]  ;;  %v4164_v42 = vshrl.u32 %v193_v31, 7 }
  0x5a   : > { %s3496_s19 = sld [smem:[#allocation5 + %s7286_s12]]  ;;  %s7285_s20 = sadd.s32 1, %s3492_s15  ;;  %3083 = vmatprep.subr.mxu0 %v3346_v0  ;;  %v2530_v9 = vld [vmem:[#allocation9 + $0x38] sm:$0xff]  ;;  %v2529_v10 = vld [vmem:[#allocation9 + $0x30] sm:$0xff]  ;;  %v2528_v11 = vld [vmem:[#allocation9 + $0x28] sm:$0xff] }
  0x5b   : > { %s3500_s21 = sadd.s32 4, %s3483_s1  ;;  %s3503_s22 = sld [smem:[#allocation5 + %s3492_s15]]  ;;  %3084 = vmatpush3.msra.mxu0 %v2537_v2  ;;  %v2527_v12 = vld [vmem:[#allocation9 + $0x20] sm:$0xff]  ;;  %v2526_v13 = vld [vmem:[#allocation9 + $0x18] sm:$0xff]  ;;  %v2525_v14 = vld [vmem:[#allocation9 + $0x10] sm:$0xff] }
  0x5c   : > { %s3507_s23 = sld [smem:[#allocation5 + %s7285_s20]]  ;;  %s7287_s24 = sadd.s32 1, %s3500_s21  ;;  %3085 = vmatprep.subr.mxu0 %v3346_v0  ;;  %v2524_v15 = vld [vmem:[#allocation9 + $0x8] sm:$0xff]  ;;  %v2523_v16 = vld [vmem:[#allocation9] sm:$0xff] }
  0x5d   : > { %s3512_s25 = sld [smem:[#allocation5 + %s3500_s21]]  ;;  %3086 = vmatpush3.msra.mxu0 %v2536_v3 }
  0x5e   : > { %3087 = vmatprep.subr.mxu0 %v3346_v0  ;;  %s3585_s12 = sld [smem:[#allocation5 + %s7287_s24]] }
  0x5f   : > { %p225_p5 = scmp.le.s32.totalorder %s3489_s14, 0  ;;  %p233_p8 = scmp.le.s32.totalorder %s3489_s14, 1  ;;  %3088 = vmatpush3.msra.mxu0 %v2535_v4 }
  0x60   : > { %p226_p6 = scmp.gt.s32.totalorder %s3496_s19, 0  ;;  %p234_p4 = scmp.gt.s32.totalorder %s3496_s19, 1  ;;  %3089 = vmatprep.subr.mxu0 %v3346_v0 }
  0x61   : > { %p242_p7 = scmp.le.s32.totalorder %s3489_s14, 2  ;;  %p243_p11 = scmp.gt.s32.totalorder %s3496_s19, 2  ;;  %3090 = vmatpush3.msra.mxu0 %v2534_v5 }
  0x62   : > { %p3520_p10 = pnand %p226_p6, %p225_p5  ;;  %p3525_p13 = pnand %p234_p4, %p233_p8  ;;  %3091 = vmatprep.subr.mxu0 %v3346_v0 }
  0x63   : > { %p251_p12 = scmp.le.s32.totalorder %s3489_s14, 3  ;;  %p3538_p0 = pnand %p243_p11, %p242_p7  ;;  %3092 = vmatpush3.msra.mxu0 %v2533_v6 }
  0x64   : > { %p252_p9 = scmp.gt.s32.totalorder %s3496_s19, 3  ;;  %p260_p3 = scmp.le.s32.totalorder %s3489_s14, 4  ;;  %3093 = vmatprep.subr.mxu0 %v3346_v0 }
  0x65   : > { %s7593_s30 = scalar_select %p3538_p0, 1, 0  ;;  %3094 = vmatpush3.msra.mxu0 %v2532_v7 }
  0x66   : > { %p261_p2 = scmp.gt.s32.totalorder %s3496_s19, 4  ;;  %p3550_p5 = pnand %p252_p9, %p251_p12  ;;  %3095 = vmatprep.subr.mxu0 %v3346_v0 }
  0x67   : > { %7594 = sst [smem:[#allocation26_spill]] %s7593_s30  ;;  %p269_p8 = scmp.le.s32.totalorder %s3489_s14, 5  ;;  %3096 = vmatpush3.msra.mxu0 %v2531_v8 }
  0x68   : > { %s7595_s0 = scalar_select %p3550_p5, 1, 0  ;;  %3097 = vmatprep.subr.mxu0 %v3346_v0 }
  0x69   : > { %p3554_p6 = pnand %p261_p2, %p260_p3  ;;  %p270_p4 = scmp.gt.s32.totalorder %s3496_s19, 5  ;;  %3098 = vmatpush3.msra.mxu0 %v2530_v9 }
  0x6a   : > { %7596 = sst [smem:[#allocation27_spill]] %s7595_s0  ;;  %p278_p11 = scmp.le.s32.totalorder %s3489_s14, 6  ;;  %3099 = vmatprep.subr.mxu0 %v3346_v0 }
  0x6b   : > { %s7597_s29 = scalar_select %p3554_p6, 1, 0  ;;  %3100 = vmatpush3.msra.mxu0 %v2529_v10 }
  0x6c   : > { %p3566_p7 = pnand %p270_p4, %p269_p8  ;;  %p279_p12 = scmp.gt.s32.totalorder %s3496_s19, 6  ;;  %3101 = vmatprep.subr.mxu0 %v3346_v0 }
  0x6d   : > { %7598 = sst [smem:[#allocation28_spill]] %s7597_s29  ;;  %p287_p9 = scmp.le.s32.totalorder %s3489_s14, 7  ;;  %3102 = vmatpush3.msra.mxu0 %v2528_v11 }
  0x6e   : > { %s7599_s20 = scalar_select %p3566_p7, 1, 0  ;;  %3103 = vmatprep.subr.mxu0 %v3346_v0 }
  0x6f   : > { %p3577_p3 = pnand %p279_p12, %p278_p11  ;;  %p288_p2 = scmp.gt.s32.totalorder %s3496_s19, 7  ;;  %3104 = vmatpush3.msra.mxu0 %v2527_v12 }
  0x70   : > { %7600 = sst [smem:[#allocation29_spill]] %s7599_s20  ;;  %p304_p11 = scmp.gt.s32.totalorder %s3507_s23, 0  ;;  %3105 = vmatprep.subr.mxu0 %v3346_v0 }
  0x71   : > { %s7601_s28 = scalar_select %p3577_p3, 1, 0  ;;  %3106 = vmatpush3.msra.mxu0 %v2526_v13 }
  0x72   : > { %p3592_p4 = pnand %p288_p2, %p287_p9  ;;  %p311_p12 = scmp.le.s32.totalorder %s3503_s22, 1  ;;  %3107 = vmatprep.subr.mxu0 %v3346_v0 }
  0x73   : > { %7602 = sst [smem:[#allocation30_spill]] %s7601_s28  ;;  %p312_p8 = scmp.gt.s32.totalorder %s3507_s23, 1  ;;  %3108 = vmatpush3.msra.mxu0 %v2525_v14 }
  0x74   : > { %s7603_s3 = scalar_select %p3592_p4, 1, 0  ;;  %3109 = vmatprep.subr.mxu0 %v3346_v0 }
  0x75   : > { %p7605_p1 = scmp.le.s32.totalorder %s3503_s22, 0  ;;  %p3609_p2 = pnand %p312_p8, %p311_p12  ;;  %3110 = vmatpush3.msra.mxu0 %v2524_v15 }
  0x76   : > { %7604 = sst [smem:[#allocation31_spill]] %s7603_s3  ;;  %p320_p3 = scmp.le.s32.totalorder %s3503_s22, 2  ;;  %3111 = vmatprep.subr.mxu0 %v3346_v0 }
  0x77   : > { %p3605_p9 = pnand %p304_p11, %p7605_p1  ;;  %p321_p4 = scmp.gt.s32.totalorder %s3507_s23, 2  ;;  %3112 = vmatpush3.msra.mxu0 %v2523_v16 }
  0x78   : > { %s7607_s4 = scalar_select %p3609_p2, 1, 0 }
  0x79   : > { %s7606_s7 = scalar_select %p3605_p9, 1, 0 }
  0x7a   : > { %p3621_p1 = pnand %p321_p4, %p320_p3  ;;  %p329_p8 = scmp.le.s32.totalorder %s3503_s22, 3 }
  0x7b   : > { %p330_p11 = scmp.gt.s32.totalorder %s3507_s23, 3  ;;  %p338_p12 = scmp.le.s32.totalorder %s3503_s22, 4 }
  0x7c   : > { %s7608_s9 = scalar_select %p3621_p1, 1, 0 }
  0x7d   : > { %p3631_p7 = pnand %p330_p11, %p329_p8  ;;  %p339_p3 = scmp.gt.s32.totalorder %s3507_s23, 4 }
  0x7e   : > { %7609 = sst [smem:[#allocation32_spill]] %s7608_s9  ;;  %p347_p4 = scmp.le.s32.totalorder %s3503_s22, 5 }
  0x7f   : > { %s7610_s24 = scalar_select %p3631_p7, 1, 0 }
  0x80   : > { %p348_p6 = scmp.gt.s32.totalorder %s3507_s23, 5  ;;  %p3640_p5 = pnand %p339_p3, %p338_p12 }
  0x81   : > { %7611 = sst [smem:[#allocation33_spill]] %s7610_s24  ;;  %p356_p8 = scmp.le.s32.totalorder %s3503_s22, 6 }
  0x82   : > { %s7612_s18 = scalar_select %p3640_p5, 1, 0 }
  0x83   : > { %p3644_p1 = pnand %p348_p6, %p347_p4  ;;  %p357_p11 = scmp.gt.s32.totalorder %s3507_s23, 6 }
  0x84   : > { %7613 = sst [smem:[#allocation34_spill]] %s7612_s18  ;;  %p365_p12 = scmp.le.s32.totalorder %s3503_s22, 7 }
  0x85   : > { %s7614_s16 = scalar_select %p3644_p1, 1, 0 }
  0x86   : > { %p3654_p7 = pnand %p357_p11, %p356_p8  ;;  %p366_p6 = scmp.gt.s32.totalorder %s3507_s23, 7 }
  0x87   : > { %7615 = sst [smem:[#allocation35_spill]] %s7614_s16  ;;  %p380_p4 = scmp.le.s32.totalorder %s3512_s25, 0 }
  0x88   : > { %s7616_s13 = scalar_select %p3654_p7, 1, 0 }
  0x89   : > { %p3662_p3 = pnand %p366_p6, %p365_p12  ;;  %p381_p5 = scmp.gt.s32.totalorder %s3585_s12, 0 }
  0x8a   : > { %7617 = sst [smem:[#allocation36_spill]] %s7616_s13  ;;  %p388_p8 = scmp.le.s32.totalorder %s3512_s25, 1 }
  0x8b   : > { %s7618_s5 = scalar_select %p3662_p3, 1, 0 }
  0x8c   : > { %p3671_p11 = pnand %p381_p5, %p380_p4  ;;  %p389_p1 = scmp.gt.s32.totalorder %s3585_s12, 1 }
  0x8d   : > { %7619 = sst [smem:[#allocation37_spill]] %s7618_s5  ;;  %p397_p12 = scmp.le.s32.totalorder %s3512_s25, 2 }
  0x8e   : > { %s7620_s2 = scalar_select %p3671_p11, 1, 0 }
  0x8f   : > { %p398_p6 = scmp.gt.s32.totalorder %s3585_s12, 2  ;;  %p3680_p7 = pnand %p389_p1, %p388_p8 }
  0x90   : > { %p406_p5 = scmp.le.s32.totalorder %s3512_s25, 3  ;;  %p407_p4 = scmp.gt.s32.totalorder %s3585_s12, 3 }
  0x91   : > { %s7621_s17 = scalar_select %p3680_p7, 1, 0 }
  0x92   : > { %p3684_p0 = pnand %p398_p6, %p397_p12  ;;  %p3694_p3 = pnand %p407_p4, %p406_p5 }
  0x93   : > { %p415_p1 = scmp.le.s32.totalorder %s3512_s25, 4  ;;  %p416_p8 = scmp.gt.s32.totalorder %s3585_s12, 4 }
  0x94   : > { %s7622_s10 = scalar_select %p3684_p0, 1, 0 }
  0x95   : > { %s7624_s6 = scalar_select %p3694_p3, 1, 0 }
  0x96   : > { %7623 = sst [smem:[#allocation38_spill]] %s7622_s10  ;;  %p424_p12 = scmp.le.s32.totalorder %s3512_s25, 5 }
  0x97   : > { %7625 = sst [smem:[#allocation39_spill]] %s7624_s6  ;;  %p3703_p6 = pnand %p416_p8, %p415_p1 }
  0x98   : > { %p425_p7 = scmp.gt.s32.totalorder %s3585_s12, 5  ;;  %p433_p0 = scmp.le.s32.totalorder %s3512_s25, 6 }
  0x99   : > { %s7626_s13 = scalar_select %p3703_p6, 1, 0 }
  0x9a   : > { %p434_p5 = scmp.gt.s32.totalorder %s3585_s12, 6  ;;  %p3712_p4 = pnand %p425_p7, %p424_p12 }
  0x9b   : > { %7627 = sst [smem:[#allocation40_spill]] %s7626_s13  ;;  %p442_p1 = scmp.le.s32.totalorder %s3512_s25, 7 }
  0x9c   : > { %s7628_s8 = scalar_select %p3712_p4, 1, 0 }
  0x9d   : > { %p443_p8 = scmp.gt.s32.totalorder %s3585_s12, 7  ;;  %p3718_p3 = pnand %p434_p5, %p433_p0 }
  0x9e   : > { %7629 = sst [smem:[#allocation41_spill]] %s7628_s8  ;;  %s3723_s28 = sadd.s32 6, %s3483_s1 }
  0x9f   : > { %s7630_s3 = scalar_select %p3718_p3, 1, 0 }
  0xa0   : > { %s3728_s16 = sshll.u32 %s3414_s11, 2  ;;  %p3730_p7 = pnand %p443_p8, %p442_p1 }
  0xa1   : > { %7631 = sst [smem:[#allocation42_spill]] %s7630_s3  ;;  %s7334_s18 = sadd.s32 1, %s3723_s28 }
  0xa2   : > { %7632 = sst [smem:[#allocation43_spill]] %s3728_s16  ;;  %s7636_s29 = sadd.s32 1, %s3483_s1 }
  0xa3   : > { %s7633_s20 = scalar_select %p3730_p7, 1, 0 }
  0xa4   : > { %s3735_s13 = sld [smem:[#allocation5 + %s3723_s28]]  ;;  %s7654_s3 = sadd.s32 1, %s3492_s15 }
  0xa5   : > { %7634 = sst [smem:[#allocation44_spill]] %s7633_s20  ;;  %s7668_s9 = sadd.s32 1, %s3500_s21 }
  0xa6   : > { %s3744_s6 = sld [smem:[#allocation5 + %s7334_s18]]  ;;  %s7731_s27 = sadd.s32 1, %s3728_s16 }
  0xa7   : > { %s3751_s11 = sld [smem:[#allocation4 + %s3483_s1]] }
  0xa8   : > { %s3757_s24 = sld [smem:[#allocation4 + %s7636_s29]] }
  0xa9   : > { %s3878_s30 = sld [smem:[#allocation4 + %s7668_s9]] }
  0xaa   : > { %p457_p1 = scmp.le.s32.totalorder %s3735_s13, 0  ;;  %p465_p8 = scmp.le.s32.totalorder %s3735_s13, 1 }
  0xab   : > { %p474_p0 = scmp.le.s32.totalorder %s3735_s13, 2  ;;  %p483_p3 = scmp.le.s32.totalorder %s3735_s13, 3 }
  0xac   : > { %p458_p4 = scmp.gt.s32.totalorder %s3744_s6, 0  ;;  %p466_p6 = scmp.gt.s32.totalorder %s3744_s6, 1 }
  0xad   : > { %7635 = sst [smem:[#allocation45_spill]] %s3751_s11  ;;  %p475_p11 = scmp.gt.s32.totalorder %s3744_s6, 2 }
  0xae   : > { %7637 = sst [smem:[#allocation46_spill]] %s3757_s24  ;;  %p484_p7 = scmp.gt.s32.totalorder %s3744_s6, 3 }
  0xaf   : > { %p3767_p12 = pnand %p458_p4, %p457_p1  ;;  %p3771_p5 = pnand %p466_p6, %p465_p8 }
  0xb0   : > { %p3775_p2 = pnand %p475_p11, %p474_p0  ;;  %p3779_p9 = pnand %p484_p7, %p483_p3 }
  0xb1   : > { %s7638_s5 = scalar_select %p3767_p12, 1, 0 }
  0xb2   : > { %s7640_s29 = scalar_select %p3771_p5, 1, 0 }
  0xb3   : > { %7639 = sst [smem:[#allocation47_spill]] %s7638_s5  ;;  %p492_p11 = scmp.le.s32.totalorder %s3735_s13, 4 }
  0xb4   : > { %7641 = sst [smem:[#allocation48_spill]] %s7640_s29  ;;  %p493_p6 = scmp.gt.s32.totalorder %s3744_s6, 4 }
  0xb5   : > { %s7642_s8 = scalar_select %p3775_p2, 1, 0 }
  0xb6   : > { %s7644_s18 = scalar_select %p3779_p9, 1, 0 }
  0xb7   : > { %7643 = sst [smem:[#allocation49_spill]] %s7642_s8  ;;  %p501_p3 = scmp.le.s32.totalorder %s3735_s13, 5 }
  0xb8   : > { %7645 = sst [smem:[#allocation50_spill]] %s7644_s18  ;;  %p502_p4 = scmp.gt.s32.totalorder %s3744_s6, 5 }
  0xb9   : > { %p3795_p7 = pnand %p493_p6, %p492_p11  ;;  %p510_p0 = scmp.le.s32.totalorder %s3735_s13, 6 }
  0xba   : > { %p3800_p1 = pnand %p502_p4, %p501_p3  ;;  %p511_p8 = scmp.gt.s32.totalorder %s3744_s6, 6 }
  0xbb   : > { %s7646_s5 = scalar_select %p3795_p7, 1, 0 }
  0xbc   : > { %s7648_s10 = scalar_select %p3800_p1, 1, 0 }
  0xbd   : > { %7647 = sst [smem:[#allocation51_spill]] %s7646_s5  ;;  %p3809_p11 = pnand %p511_p8, %p510_p0 }
  0xbe   : > { %7649 = sst [smem:[#allocation52_spill]] %s7648_s10  ;;  %p519_p6 = scmp.le.s32.totalorder %s3735_s13, 7 }
  0xbf   : > { %s7650_s20 = scalar_select %p3809_p11, 1, 0 }
  0xc0   : > { %p520_p3 = scmp.gt.s32.totalorder %s3744_s6, 7  ;;  %s3816_s18 = sld [smem:[#allocation4 + %s3492_s15]] }
  0xc1   : > { %7651 = sst [smem:[#allocation53_spill]] %s7650_s20  ;;  %p536_p0 = scmp.le.s32.totalorder %s3757_s24, %s3751_s11 }
  0xc2   : > { %p3820_p4 = pnand %p520_p3, %p519_p6  ;;  %s3830_s10 = sld [smem:[#allocation4 + %s7654_s3]] }
  0xc3   : > { %p7655_p11 = scmp.le.s32.totalorder %s3496_s19, %s3489_s14  ;;  %p7658_p3 = scmp.le.s32.totalorder %s3507_s23, %s3503_s22 }
  0xc4   : > { %s7652_s0 = scalar_select %p3820_p4, 1, 0 }
  0xc5   : > { %p3837_p6 = por %p536_p0, %p7655_p11  ;;  %p3844_p1 = por %p536_p0, %p7658_p3 }
  0xc6   : > { %7653 = sst [smem:[#allocation54_spill]] %s7652_s0  ;;  %p7661_p8 = scmp.le.s32.totalorder %s3585_s12, %s3512_s25 }
  0xc7   : > { %s7656_s20 = scalar_select %p3837_p6, 1, 0 }
  0xc8   : > { %s7659_s24 = scalar_select %p3844_p1, 1, 0 }
  0xc9   : > { %7657 = sst [smem:[#allocation55_spill]] %s7656_s20  ;;  %p3854_p7 = por %p536_p0, %p7661_p8 }
  0xca   : > { %7660 = sst [smem:[#allocation56_spill]] %s7659_s24  ;;  %p7664_p4 = scmp.le.s32.totalorder %s3744_s6, %s3735_s13 }
  0xcb   : > { %s3849_s15 = sld [smem:[#allocation3 + %s3728_s16]]  ;;  %p598_p8 = scmp.le.s32.totalorder %s3830_s10, %s3816_s18 }
  0xcc   : > { %s7662_s3 = scalar_select %p3854_p7, 1, 0 }
  0xcd   : > { %p3861_p11 = por %p536_p0, %p7664_p4  ;;  %s3874_s29 = sld [smem:[#allocation4 + %s3500_s21]] }
  0xce   : > { %7663 = sst [smem:[#allocation57_spill]] %s7662_s3  ;;  %p7670_p4 = scmp.le.s32.totalorder %s3496_s19, %s3489_s14 }
  0xcf   : > { %s7665_s5 = scalar_select %p3861_p11, 1, 0 }
  0xd0   : > { %7669 = sst [smem:[#allocation60_spill]] %s3878_s30  ;;  %p3883_p0 = por %p598_p8, %p7670_p4 }
  0xd1   : > { %7666 = sst [smem:[#allocation58_spill]] %s7665_s5  ;;  %p3890_p7 = por %p598_p8, %p7658_p3 }
  0xd2   : > { %s7671_s11 = scalar_select %p3883_p0, 1, 0 }
  0xd3   : > { %7667 = sst [smem:[#allocation59_spill]] %s3874_s29  ;;  %p7675_p1 = scmp.le.s32.totalorder %s3585_s12, %s3512_s25 }
  0xd4   : > { %7672 = sst [smem:[#allocation61_spill]] %s7671_s11  ;;  %p7678_p4 = scmp.le.s32.totalorder %s3744_s6, %s3735_s13 }
  0xd5   : > { %s7673_s8 = scalar_select %p3890_p7, 1, 0 }
  0xd6   : > { %p3898_p6 = por %p598_p8, %p7675_p1  ;;  %p3913_p3 = por %p598_p8, %p7678_p4 }
  0xd7   : > { %7674 = sst [smem:[#allocation62_spill]] %s7673_s8  ;;  %p660_p1 = scmp.le.s32.totalorder %s3878_s30, %s3874_s29 }
  0xd8   : > { %s7676_s9 = scalar_select %p3898_p6, 1, 0 }
  0xd9   : > { %s7679_s21 = scalar_select %p3913_p3, 1, 0 }
  0xda   : > { %7677 = sst [smem:[#allocation63_spill]] %s7676_s9  ;;  %p7681_p11 = scmp.le.s32.totalorder %s3496_s19, %s3489_s14 }
  0xdb   : > { %7680 = sst [smem:[#allocation64_spill]] %s7679_s21  ;;  %s7683_s24 = sadd.s32 1, %s3723_s28 }
  0xdc   : > { %s3920_s5 = sld [smem:[#allocation4 + %s3723_s28]]  ;;  %p3925_p9 = por %p660_p1, %p7681_p11 }
  0xdd   : > { %s3931_s20 = sld [smem:[#allocation4 + %s7683_s24]]  ;;  %p7684_p8 = scmp.le.s32.totalorder %s3507_s23, %s3503_s22 }
  0xde   : > { %s7682_s3 = scalar_select %p3925_p9, 1, 0 }
  0xdf   : > { %p3936_p4 = por %p660_p1, %p7684_p8  ;;  %p7686_p11 = scmp.le.s32.totalorder %s3585_s12, %s3512_s25 }
  0xe0   : > { %p7689_p7 = scmp.le.s32.totalorder %s3744_s6, %s3735_s13  ;;  %s3963_s9 = sadd.s32 8, %s3483_s1 }
  0xe1   : > { %s7685_s0 = scalar_select %p3936_p4, 1, 0 }
  0xe2   : > { %p3945_p6 = por %p660_p1, %p7686_p11  ;;  %p3952_p0 = por %p660_p1, %p7689_p7 }
  0xe3   : > { %p722_p8 = scmp.le.s32.totalorder %s3931_s20, %s3920_s5  ;;  %p7692_p7 = scmp.le.s32.totalorder %s3496_s19, %s3489_s14 }
  0xe4   : > { %s7687_s28 = scalar_select %p3945_p6, 1, 0 }
  0xe5   : > { %s7690_s24 = scalar_select %p3952_p0, 1, 0 }
  0xe6   : > { %7688 = sst [smem:[#allocation65_spill]] %s7687_s28  ;;  %p3972_p1 = por %p722_p8, %p7692_p7 }
  0xe7   : > { %7691 = sst [smem:[#allocation66_spill]] %s7690_s24  ;;  %s7388_s1 = sadd.s32 1, %s3963_s9 }
  0xe8   : > { %s7693_s29 = scalar_select %p3972_p1, 1, 0 }
  0xe9   : > { %s3978_s8 = sld [smem:[#allocation5 + %s3963_s9]]  ;;  %p7695_p11 = scmp.le.s32.totalorder %s3507_s23, %s3503_s22 }
  0xea   : > { %7694 = sst [smem:[#allocation67_spill]] %s7693_s29  ;;  %s3989_s14 = sadd.s32 2, %s3963_s9 }
  0xeb   : > { %p3984_p4 = por %p722_p8, %p7695_p11  ;;  %p7698_p7 = scmp.le.s32.totalorder %s3585_s12, %s3512_s25 }
  0xec   : > { %p7701_p6 = scmp.le.s32.totalorder %s3744_s6, %s3735_s13  ;;  %s4009_s23 = sld [smem:[#allocation5 + %s7388_s1]] }
  0xed   : > { %s7696_s28 = scalar_select %p3984_p4, 1, 0 }
  0xee   : > { %p3994_p0 = por %p722_p8, %p7698_p7  ;;  %p4001_p9 = por %p722_p8, %p7701_p6 }
  0xef   : > { %7697 = sst [smem:[#allocation68_spill]] %s7696_s28  ;;  %s4012_s12 = sadd.s32 4, %s3963_s9 }
  0xf0   : > { %s7699_s19 = scalar_select %p3994_p0, 1, 0 }
  0xf1   : > { %s7702_s30 = scalar_select %p4001_p9, 1, 0 }
  0xf2   : > { %7700 = sst [smem:[#allocation69_spill]] %s7699_s19  ;;  %p807_p6 = scmp.le.s32.totalorder %s3978_s8, 0 }
  0xf3   : > { %7703 = sst [smem:[#allocation70_spill]] %s7702_s30  ;;  %p815_p8 = scmp.le.s32.totalorder %s3978_s8, 1 }
  0xf4   : > { %p824_p11 = scmp.le.s32.totalorder %s3978_s8, 2  ;;  %p833_p7 = scmp.le.s32.totalorder %s3978_s8, 3 }
  0xf5   : > { %p808_p1 = scmp.gt.s32.totalorder %s4009_s23, 0  ;;  %p816_p3 = scmp.gt.s32.totalorder %s4009_s23, 1 }
  0xf6   : > { %p825_p2 = scmp.gt.s32.totalorder %s4009_s23, 2  ;;  %p834_p5 = scmp.gt.s32.totalorder %s4009_s23, 3 }
  0xf7   : > { %p4028_p4 = pnand %p808_p1, %p807_p6  ;;  %p4032_p9 = pnand %p816_p3, %p815_p8 }
  0xf8   : > { %p4036_p0 = pnand %p825_p2, %p824_p11  ;;  %p4040_p12 = pnand %p834_p5, %p833_p7 }
  0xf9   : > { %p842_p2 = scmp.le.s32.totalorder %s3978_s8, 4  ;;  %p843_p3 = scmp.gt.s32.totalorder %s4009_s23, 4 }
  0xfa   : > { %s7706_s25 = scalar_select %p4036_p0, 1, 0 }
  0xfb   : > { %s7708_s22 = scalar_select %p4040_p12, 1, 0 }
  0xfc   : > { %7707 = sst [smem:[#allocation71_spill]] %s7706_s25  ;;  %p7712_p5 = scmp.ne.s32.totalorder %s7606_s7, 0 }
  0xfd   : > { %7709 = sst [smem:[#allocation72_spill]] %s7708_s22  ;;  %p7714_p1 = scmp.ne.s32.totalorder %s7607_s4, 0 }
  0xfe   : > { %s7710_s19 = scalar_select %p3520_p10, 0, 1 }
  0xff   : > { %s7711_s28 = scalar_select %p3525_p13, 0, 1 }
 0x100   : > { %v230_v17 = vstv %s7710_s19  ;;  %s7713_s29 = scalar_select %p7712_p5, 0, 1 }
 0x101   : > { %v238_v18 = vstv %s7711_s28  ;;  %s7715_s11 = scalar_select %p7714_p1, 0, 1  ;;  %vm231_vm1 = vcmp.eq.s32.totalorder %v230_v17, 1 }
 0x102   : > { %v308_v19 = vstv %s7713_s29  ;;  %p851_p6 = scmp.le.s32.totalorder %s3978_s8, 5  ;;  %p852_p8 = scmp.gt.s32.totalorder %s4009_s23, 5  ;;  %vm239_vm2 = vcmp.eq.s32.totalorder %v238_v18, 1 }
 0x103   : > { %v316_v20 = vstv %s7715_s11  ;;  %p4068_p11 = pnand %p843_p3, %p842_p2  ;;  %s7718_s26 = sld [smem:[#allocation26_spill]]  ;;  %vm309_vm3 = vcmp.eq.s32.totalorder %v308_v19, 1 }
 0x104   : > { %s7719_s28 = sshll.u32 %s3849_s15, 6  ;;  %s7720_s7 = sld [smem:[#allocation32_spill]]  ;;  %vm317_vm4 = vcmp.eq.s32.totalorder %v316_v20, 1 }
 0x105   : > { %s7716_s30 = scalar_select %p4068_p11, 1, 0 }
 0x106   : > { %s4075_s19 = scalar_lea.vmem [#allocation6], %s7719_s28  ;;  %p860_p10 = scmp.le.s32.totalorder %s3978_s8, 6 }
 0x107   : > { %7717 = sst [smem:[#allocation73_spill]] %s7716_s30  ;;  %v4078_v21 = vld [vmem:[%s4075_s19] sm:$0xff]  ;;  %p861_p13 = scmp.gt.s32.totalorder %s4009_s23, 6  ;;  %v4083_v22 = vld [vmem:[%s4075_s19 + $0x8] sm:$0xff]  ;;  %v4127_v32 = vld [vmem:[%s4075_s19 + $0x10] sm:$0xff] }
 0x108   : > { %p4087_p7 = pnand %p852_p8, %p851_p6  ;;  %p7723_p2 = scmp.ne.s32.totalorder %s7620_s2, 0  ;;  %v232_v27 = vsel %vm231_vm1, %v4078_v21, -inf  ;;  %v240_v28 = vsel %vm239_vm2, %v4083_v22, -inf  ;;  %v310_v29 = vsel %vm309_vm3, %v4078_v21, -inf  ;;  %v318_v30 = vsel %vm317_vm4, %v4083_v22, -inf  ;;  %v4173_v45 = vld [vmem:[%s4075_s19 + $0x18] sm:$0xff] }
 0x109   : > { %p7725_p3 = scmp.ne.s32.totalorder %s7621_s17, 0  ;;  %p7727_p5 = scmp.ne.s32.totalorder %s7718_s26, 0  ;;  %v241_v34 = vmax.f32 %v232_v27, %v240_v28  ;;  %v319_v36 = vmax.f32 %v310_v29, %v318_v30  ;;  %v4206_v56 = vld [vmem:[%s4075_s19 + $0x20] sm:$0xff]  ;;  %v4256_v6 = vld [vmem:[%s4075_s19 + $0x28] sm:$0xff]  ;;  %v4287_v19 = vld [vmem:[%s4075_s19 + $0x30] sm:$0xff] }
 0x10a   : > { %s7721_s4 = scalar_select %p4087_p7, 1, 0 }
 0x10b   : > { %s7724_s29 = scalar_select %p7723_p2, 0, 1 }
 0x10c   : > { %7722 = sst [smem:[#allocation26_spill]] %s7721_s4  ;;  %p7729_p1 = scmp.ne.s32.totalorder %s7720_s7, 0 }
 0x10d   : > { %v385_v23 = vstv %s7724_s29  ;;  %s7726_s15 = scalar_select %p7725_p3, 0, 1 }
 0x10e   : > { %s7728_s21 = scalar_select %p7727_p5, 0, 1  ;;  %vm386_vm5 = vcmp.eq.s32.totalorder %v385_v23, 1 }
 0x10f   : > { %v393_v24 = vstv %s7726_s15  ;;  %s7730_s1 = scalar_select %p7729_p1, 0, 1  ;;  %v387_v38 = vsel %vm386_vm5, %v4078_v21, -inf }
 0x110   : > { %v247_v25 = vstv %s7728_s21  ;;  %s7732_s24 = sld [smem:[#allocation38_spill]]  ;;  %p869_p6 = scmp.le.s32.totalorder %s3978_s8, 7  ;;  %vm394_vm6 = vcmp.eq.s32.totalorder %v393_v24, 1 }
 0x111   : > { %v325_v26 = vstv %s7730_s1  ;;  %s4108_s22 = sld [smem:[#allocation3 + %s7731_s27]]  ;;  %p4119_p8 = pnand %p861_p13, %p860_p10  ;;  %vm248_vm7 = vcmp.eq.s32.totalorder %v247_v25, 1  ;;  %v395_v39 = vsel %vm394_vm6, %v4083_v22, -inf }
 0x112   : > { %s7733_s2 = sld [smem:[#allocation27_spill]]  ;;  %p870_p2 = scmp.gt.s32.totalorder %s4009_s23, 7  ;;  %vm326_vm8 = vcmp.eq.s32.totalorder %v325_v26, 1  ;;  %v249_v43 = vsel %vm248_vm7, %v4127_v32, -inf  ;;  %v396_v49 = vmax.f32 %v387_v38, %v395_v39 }
 0x113   : > { %s7734_s17 = sld [smem:[#allocation33_spill]]  ;;  %s4152_s4 = sadd.s32 6, %s3963_s9  ;;  %v327_v44 = vsel %vm326_vm8, %v4127_v32, -inf  ;;  %v250_v50 = vmax.f32 %v241_v34, %v249_v43 }
 0x114   : > { %s7735_s1 = scalar_select %p4119_p8, 1, 0  ;;  %v328_v51 = vmax.f32 %v319_v36, %v327_v44 }
 0x115   : > { %s7737_s21 = sld [smem:[#allocation47_spill]]  ;;  %p4134_p10 = pnand %p870_p2, %p869_p6 }
 0x116   : > { %7736 = sst [smem:[#allocation32_spill]] %s7735_s1  ;;  %p7739_p3 = scmp.ne.s32.totalorder %s7732_s24, 0 }
 0x117   : > { %s7738_s27 = sld [smem:[#allocation48_spill]]  ;;  %s7748_s24 = sadd.s32 1, %s3989_s14 }
 0x118   : > { %s7740_s7 = scalar_select %p7739_p3, 0, 1 }
 0x119   : > { %s7741_s29 = scalar_select %p4134_p10, 1, 0 }
 0x11a   : > { %v402_v33 = vstv %s7740_s7  ;;  %s4139_s15 = sld [smem:[#allocation5 + %s3989_s14]]  ;;  %p7743_p13 = scmp.ne.s32.totalorder %s7733_s2, 0 }
 0x11b   : > { %7742 = sst [smem:[#allocation38_spill]] %s7741_s29  ;;  %p7745_p5 = scmp.ne.s32.totalorder %s7734_s17, 0  ;;  %vm403_vm9 = vcmp.eq.s32.totalorder %v402_v33, 1 }
 0x11c   : > { %s7744_s26 = scalar_select %p7743_p13, 0, 1  ;;  %v404_v52 = vsel %vm403_vm9, %v4127_v32, -inf }
 0x11d   : > { %s7746_s28 = scalar_select %p7745_p5, 0, 1  ;;  %v405_v62 = vmax.f32 %v396_v49, %v404_v52 }
 0x11e   : > { %v256_v35 = vstv %s7744_s26  ;;  %s7747_s11 = sld [smem:[#allocation28_spill]]  ;;  %p7751_p1 = scmp.ne.s32.totalorder %s7737_s21, 0 }
 0x11f   : > { %v334_v37 = vstv %s7746_s28  ;;  %s4149_s7 = sld [smem:[#allocation5 + %s7748_s24]]  ;;  %p7753_p6 = scmp.ne.s32.totalorder %s7738_s27, 0  ;;  %vm257_vm10 = vcmp.eq.s32.totalorder %v256_v35, 1 }
 0x120   : > { %s7749_s16 = sld [smem:[#allocation39_spill]]  ;;  %vm335_vm11 = vcmp.eq.s32.totalorder %v334_v37, 1  ;;  %s7762_s21 = sadd.s32 1, %s4012_s12  ;;  %v258_v54 = vsel %vm257_vm10, %v4173_v45, -inf }
 0x121   : > { %s7750_s30 = sld [smem:[#allocation34_spill]]  ;;  %v336_v55 = vsel %vm335_vm11, %v4173_v45, -inf  ;;  %p7778_p8 = scmp.le.s32.totalorder %s4139_s15, 1  ;;  %v259_v63 = vmax.f32 %v250_v50, %v258_v54 }
 0x122   : > { %s7752_s2 = scalar_select %p7751_p1, 0, 1  ;;  %v337_v0 = vmax.f32 %v328_v51, %v336_v55 }
 0x123   : > { %s7754_s17 = scalar_select %p7753_p6, 0, 1 }
 0x124   : > { %v462_v40 = vstv %s7752_s2  ;;  %s7755_s26 = sld [smem:[#allocation49_spill]]  ;;  %p7756_p2 = scmp.ne.s32.totalorder %s7747_s11, 0 }
 0x125   : > { %v470_v41 = vstv %s7754_s17  ;;  %s4182_s2 = sld [smem:[#allocation5 + %s4012_s12]]  ;;  %vm463_vm12 = vcmp.eq.s32.totalorder %v462_v40, 1  ;;  %p903_p6 = scmp.gt.s32.totalorder %s4149_s7, 2 }
 0x126   : > { %s7757_s27 = scalar_select %p7756_p2, 0, 1  ;;  %vm471_vm13 = vcmp.eq.s32.totalorder %v470_v41, 1  ;;  %v464_v58 = vsel %vm463_vm12, %v4078_v21, -inf }
 0x127   : > { %p7758_p3 = scmp.ne.s32.totalorder %s7749_s16, 0  ;;  %p7760_p13 = scmp.ne.s32.totalorder %s7750_s30, 0  ;;  %v472_v59 = vsel %vm471_vm13, %v4083_v22, -inf }
 0x128   : > { %v265_v46 = vstv %s7757_s27  ;;  %s4189_s11 = sld [smem:[#allocation5 + %s7762_s21]]  ;;  %p886_p2 = scmp.gt.s32.totalorder %s4149_s7, 0  ;;  %v473_v5 = vmax.f32 %v464_v58, %v472_v59 }
 0x129   : > { %s7759_s24 = scalar_select %p7758_p3, 0, 1  ;;  %vm266_vm14 = vcmp.eq.s32.totalorder %v265_v46, 1 }
 0x12a   : > { %s7761_s17 = scalar_select %p7760_p13, 0, 1  ;;  %v267_v3 = vsel %vm266_vm14, %v4206_v56, -inf }
 0x12b   : > { %v411_v47 = vstv %s7759_s24  ;;  %s7763_s28 = sld [smem:[#allocation40_spill]]  ;;  %p7764_p5 = scmp.ne.s32.totalorder %s7755_s26, 0  ;;  %v268_v12 = vmax.f32 %v259_v63, %v267_v3  ;;  %v593_v63 = vstv %s3816_s18 }
 0x12c   : > { %v343_v48 = vstv %s7761_s17  ;;  %s7766_s30 = sld [smem:[#allocation29_spill]]  ;;  %vm412_vm15 = vcmp.eq.s32.totalorder %v411_v47, 1  ;;  %p7779_p7 = scmp.gt.s32.totalorder %s4149_s7, 1 }
 0x12d   : > { %s7765_s16 = scalar_select %p7764_p5, 0, 1  ;;  %vm344_vm0 = vcmp.eq.s32.totalorder %v343_v48, 1  ;;  %v413_v1 = vsel %vm412_vm15, %v4173_v45, -inf }
 0x12e   : > { %s7767_s24 = sld [smem:[#allocation35_spill]]  ;;  %p902_p5 = scmp.le.s32.totalorder %s4139_s15, 2  ;;  %v345_v4 = vsel %vm344_vm0, %v4206_v56, -inf  ;;  %v414_v11 = vmax.f32 %v405_v62, %v413_v1 }
 0x12f   : > { %v479_v53 = vstv %s7765_s16  ;;  %s7768_s21 = sld [smem:[#allocation50_spill]]  ;;  %p4235_p11 = pnand %p7779_p7, %p7778_p8  ;;  %v346_v13 = vmax.f32 %v337_v0, %v345_v4  ;;  %v595_v0 = vstv %s3830_s10 }
 0x130   : > { %vm480_vm1 = vcmp.eq.s32.totalorder %v479_v53, 1  ;;  %s7788_s29 = sld [smem:[#allocation51_spill]] }
 0x131   : > { %p7769_p13 = scmp.ne.s32.totalorder %s7763_s28, 0  ;;  %v481_v8 = vsel %vm480_vm1, %v4127_v32, -inf  ;;  %v2803_v32 = vld [vmem:[%s4075_s19 + $0x38] sm:$0xff] }
 0x132   : > { %p7771_p1 = scmp.ne.s32.totalorder %s7766_s30, 0  ;;  %v482_v18 = vmax.f32 %v473_v5, %v481_v8 }
 0x133   : > { %s7770_s26 = scalar_select %p7769_p13, 0, 1 }
 0x134   : > { %s7772_s17 = scalar_select %p7771_p1, 0, 1 }
 0x135   : > { %v420_v57 = vstv %s7770_s26  ;;  %p7773_p3 = scmp.ne.s32.totalorder %s7767_s24, 0  ;;  %p7775_p13 = scmp.le.s32.totalorder %s4139_s15, 0 }
 0x136   : > { %v274_v60 = vstv %s7772_s17  ;;  %s7780_s26 = sld [smem:[#allocation41_spill]]  ;;  %p7783_p1 = scmp.ne.s32.totalorder %s7768_s21, 0  ;;  %vm421_vm2 = vcmp.eq.s32.totalorder %v420_v57, 1 }
 0x137   : > { %s7774_s16 = scalar_select %p7773_p3, 0, 1  ;;  %vm275_vm3 = vcmp.eq.s32.totalorder %v274_v60, 1  ;;  %v422_v14 = vsel %vm421_vm2, %v4206_v56, -inf }
 0x138   : > { %p4227_p10 = pnand %p886_p2, %p7775_p13  ;;  %s7782_s24 = sld [smem:[#allocation30_spill]]  ;;  %v276_v16 = vsel %vm275_vm3, %v4256_v6, -inf  ;;  %v423_v24 = vmax.f32 %v414_v11, %v422_v14 }
 0x139   : > { %v352_v61 = vstv %s7774_s16  ;;  %s7781_s30 = scalar_select %p4235_p11, 1, 0  ;;  %v277_v25 = vmax.f32 %v268_v12, %v276_v16 }
 0x13a   : > { %s7776_s28 = scalar_select %p4227_p10, 1, 0  ;;  %vm353_vm4 = vcmp.eq.s32.totalorder %v352_v61, 1 }
 0x13b   : > { %s7784_s17 = scalar_select %p7783_p1, 0, 1  ;;  %v354_v17 = vsel %vm353_vm4, %v4256_v6, -inf  ;;  %vm594_vm4 = vcmp.ge.s32.totalorder %v4164_v42, %v593_v63 }
 0x13c   : > { %7777 = sst [smem:[#allocation27_spill]] %s7776_s28  ;;  %p4244_p2 = pnand %p903_p6, %p902_p5  ;;  %v355_v26 = vmax.f32 %v346_v13, %v354_v17 }
 0x13d   : > { %s7785_s16 = sld [smem:[#allocation36_spill]]  ;;  %v488_v2 = vstv %s7784_s17  ;;  %p911_p3 = scmp.le.s32.totalorder %s4139_s15, 3 }
 0x13e   : > { %s7786_s27 = scalar_select %p4244_p2, 1, 0  ;;  %vm489_vm5 = vcmp.eq.s32.totalorder %v488_v2, 1 }
 0x13f   : > { %p7789_p7 = scmp.ne.s32.totalorder %s7780_s26, 0  ;;  %p7791_p8 = scmp.ne.s32.totalorder %s7782_s24, 0  ;;  %v490_v21 = vsel %vm489_vm5, %v4173_v45, -inf  ;;  %vm596_vm5 = vcmp.lt.s32.totalorder %v4164_v42, %v595_v0 }
 0x140   : > { %7787 = sst [smem:[#allocation33_spill]] %s7786_s27  ;;  %p7796_p5 = scmp.ne.s32.totalorder %s7788_s29, 0  ;;  %v491_v31 = vmax.f32 %v482_v18, %v490_v21 }
 0x141   : > { %s7790_s17 = scalar_select %p7789_p7, 0, 1 }
 0x142   : > { %s7792_s25 = scalar_select %p7791_p8, 0, 1 }
 0x143   : > { %v429_v7 = vstv %s7790_s17  ;;  %p7793_p6 = scmp.ne.s32.totalorder %s7785_s16, 0  ;;  %s7795_s28 = sld [smem:[#allocation42_spill]] }
 0x144   : > { %v283_v9 = vstv %s7792_s25  ;;  %s7797_s24 = scalar_select %p7796_p5, 0, 1  ;;  %vm430_vm6 = vcmp.eq.s32.totalorder %v429_v7, 1 }
 0x145   : > { %s7794_s21 = scalar_select %p7793_p6, 0, 1  ;;  %vm284_vm7 = vcmp.eq.s32.totalorder %v283_v9, 1  ;;  %v431_v27 = vsel %vm430_vm6, %v4256_v6, -inf  ;;  %vm4462_vm6 = vmand %vm594_vm4, %vm596_vm5 }
 0x146   : > { %v497_v15 = vstv %s7797_s24  ;;  %s7798_s25 = sld [smem:[#allocation31_spill]]  ;;  %p912_p13 = scmp.gt.s32.totalorder %s4149_s7, 3  ;;  %v285_v29 = vsel %vm284_vm7, %v4287_v19, -inf  ;;  %v432_v35 = vmax.f32 %v423_v24, %v431_v27 }
 0x147   : > { %v361_v10 = vstv %s7794_s21  ;;  %s7799_s16 = sld [smem:[#allocation37_spill]]  ;;  %p930_p7 = scmp.gt.s32.totalorder %s4149_s7, 5  ;;  %vm498_vm9 = vcmp.eq.s32.totalorder %v497_v15, 1  ;;  %v286_v38 = vmax.f32 %v277_v25, %v285_v29 }
 0x148   : > { %s7800_s29 = sld [smem:[#allocation52_spill]]  ;;  %vm362_vm8 = vcmp.eq.s32.totalorder %v361_v10, 1  ;;  %p4298_p5 = pnand %p912_p13, %p911_p3  ;;  %v499_v34 = vsel %vm498_vm9, %v4206_v56, -inf }
 0x149   : > { %p7801_p6 = scmp.ne.s32.totalorder %s7795_s28, 0  ;;  %p7810_p2 = scmp.gt.s32.totalorder %s4149_s7, 4  ;;  %v363_v30 = vsel %vm362_vm8, %v4287_v19, -inf  ;;  %v500_v45 = vmax.f32 %v491_v31, %v499_v34 }
 0x14a   : > { %s7803_s17 = scalar_select %p4298_p5, 1, 0  ;;  %v364_v39 = vmax.f32 %v355_v26, %v363_v30 }
 0x14b   : > { %s7802_s21 = scalar_select %p7801_p6, 0, 1 }
 0x14c   : > { %7804 = sst [smem:[#allocation47_spill]] %s7803_s17  ;;  %p7805_p8 = scmp.ne.s32.totalorder %s7798_s25, 0 }
 0x14d   : > { %v438_v20 = vstv %s7802_s21  ;;  %p7807_p1 = scmp.ne.s32.totalorder %s7799_s16, 0  ;;  %p7809_p6 = scmp.le.s32.totalorder %s4139_s15, 4 }
 0x14e   : > { %s7806_s24 = scalar_select %p7805_p8, 0, 1  ;;  %vm439_vm10 = vcmp.eq.s32.totalorder %v438_v20, 1 }
 0x14f   : > { %s7808_s26 = scalar_select %p7807_p1, 0, 1  ;;  %v440_v40 = vsel %vm439_vm10, %v4287_v19, -inf }
 0x150   : > { %v292_v22 = vstv %s7806_s24  ;;  %s7811_s28 = sld [smem:[#allocation44_spill]]  ;;  %p4313_p11 = pnand %p7810_p2, %p7809_p6  ;;  %v441_v47 = vmax.f32 %v432_v35, %v440_v40 }
 0x151   : > { %v370_v23 = vstv %s7808_s26  ;;  %p938_p3 = scmp.le.s32.totalorder %s4139_s15, 6  ;;  %p7814_p13 = scmp.ne.s32.totalorder %s7800_s29, 0  ;;  %vm293_vm11 = vcmp.eq.s32.totalorder %v292_v22, 1 }
 0x152   : > { %s7812_s21 = scalar_select %p4313_p11, 1, 0  ;;  %vm371_vm12 = vcmp.eq.s32.totalorder %v370_v23, 1  ;;  %v294_v43 = vsel %vm293_vm11, %v2803_v32, -inf }
 0x153   : > { %s7815_s26 = scalar_select %p7814_p13, 0, 1  ;;  %v372_v44 = vsel %vm371_vm12, %v2803_v32, -inf  ;;  %v4381_v48 = vmax.f32 %v286_v38, %v294_v43 }
 0x154   : > { %7813 = sst [smem:[#allocation48_spill]] %s7812_s21  ;;  %p7821_p1 = scmp.le.s32.totalorder %s4139_s15, 5  ;;  %v4383_v49 = vmax.f32 %v364_v39, %v372_v44 }
 0x155   : > { %v506_v28 = vstv %s7815_s26  ;;  %s7816_s25 = sld [smem:[#allocation45_spill]]  ;;  %p939_p6 = scmp.gt.s32.totalorder %s4149_s7, 6  ;;  %v601_v11 = vsel %vm4462_vm6, %v4381_v48, -inf }
 0x156   : > { %s7817_s24 = sld [smem:[#allocation46_spill]]  ;;  %p7819_p2 = scmp.ne.s32.totalorder %s7811_s28, 0  ;;  %vm507_vm13 = vcmp.eq.s32.totalorder %v506_v28, 1  ;;  %v602_v16 = vrot.slane %v601_v11, 4  ;;  %v614_v17 = vsel %vm4462_vm6, %v4383_v49, -inf }
 0x157   : > { %s7818_s29 = sld [smem:[#allocation53_spill]]  ;;  %p4341_p8 = pnand %p930_p7, %p7821_p1  ;;  %v508_v46 = vsel %vm507_vm13, %v4256_v6, -inf  ;;  %v615_v21 = vrot.slane %v614_v17, 4 }
 0x158   : > { %s7820_s26 = scalar_select %p7819_p2, 0, 1  ;;  %v509_v52 = vmax.f32 %v500_v45, %v508_v46  ;;  %v603_v24 = vmax.f32 %v601_v11, %v602_v16 }
 0x159   : > { %s7822_s16 = scalar_select %p4341_p8, 1, 0  ;;  %v616_v31 = vmax.f32 %v614_v17, %v615_v21 }
 0x15a   : > { %v447_v33 = vstv %s7820_s26  ;;  %p947_p13 = scmp.le.s32.totalorder %s4139_s15, 7  ;;  %p948_p2 = scmp.gt.s32.totalorder %s4149_s7, 7 }
 0x15b   : > { %7823 = sst [smem:[#allocation28_spill]] %s7822_s16  ;;  %v531_v36 = vstv %s7816_s25  ;;  %vm448_vm14 = vcmp.eq.s32.totalorder %v447_v33, 1  ;;  %p4363_p1 = pnand %p939_p6, %p938_p3  ;;  %v617_v44 = vrot.slane %v616_v31, 2 }
 0x15c   : > { %v533_v37 = vstv %s7817_s24  ;;  %s7826_s25 = sld [smem:[#allocation54_spill]]  ;;  %p4367_p11 = pnand %p948_p2, %p947_p13  ;;  %vm532_vm15 = vcmp.ge.s32.totalorder %v4164_v42, %v531_v36  ;;  %v449_v50 = vsel %vm448_vm14, %v2803_v32, -inf }
 0x15d   : > { %p7824_p7 = scmp.ne.s32.totalorder %s7818_s29, 0  ;;  %vm534_vm0 = vcmp.lt.s32.totalorder %v4164_v42, %v533_v37  ;;  %s4377_s26 = sld [smem:[#allocation5 + %s4152_s4]]  ;;  %v4399_v55 = vmax.f32 %v441_v47, %v449_v50  ;;  %v604_v37 = vrot.slane %v603_v24, 2 }
 0x15e   : > { %s7827_s24 = scalar_select %p4363_p1, 1, 0  ;;  %vm4390_vm2 = vmand %vm532_vm15, %vm534_vm0 }
 0x15f   : > { %s7825_s19 = scalar_select %p7824_p7, 0, 1  ;;  %v539_v56 = vsel %vm4390_vm2, %v4381_v48, -inf  ;;  %v552_v57 = vsel %vm4390_vm2, %v4383_v49, -inf  ;;  %v565_v62 = vsel %vm4390_vm2, %v4399_v55, -inf  ;;  %v627_v22 = vsel %vm4462_vm6, %v4399_v55, -inf }
 0x160   : > { %7828 = sst [smem:[#allocation39_spill]] %s7827_s24  ;;  %p963_p13 = scmp.gt.s32.totalorder %s4189_s11, 0  ;;  %v540_v60 = vrot.slane %v539_v56, 4  ;;  %v553_v61 = vrot.slane %v552_v57, 4  ;;  %v566_v2 = vrot.slane %v565_v62, 4  ;;  %v628_v30 = vrot.slane %v627_v22, 4 }
 0x161   : > { %v515_v41 = vstv %s7825_s19  ;;  %s7829_s29 = scalar_select %p4367_p11, 1, 0  ;;  %v605_v50 = vmax.f32 %v603_v24, %v604_v37 }
 0x162   : > { %vm516_vm1 = vcmp.eq.s32.totalorder %v515_v41, 1  ;;  %p7831_p6 = scmp.ne.s32.totalorder %s7826_s25, 0  ;;  %p970_p2 = scmp.le.s32.totalorder %s4182_s2, 1  ;;  %v541_v3 = vmax.f32 %v539_v56, %v540_v60  ;;  %v554_v4 = vmax.f32 %v552_v57, %v553_v61  ;;  %v567_v6 = vmax.f32 %v565_v62, %v566_v2 }
 0x163   : > { %7830 = sst [smem:[#allocation34_spill]] %s7829_s29  ;;  %v517_v54 = vsel %vm516_vm1, %v4287_v19, -inf  ;;  %p971_p7 = scmp.gt.s32.totalorder %s4189_s11, 1  ;;  %v629_v39 = vmax.f32 %v627_v22, %v628_v30  ;;  %v618_v57 = vmax.f32 %v616_v31, %v617_v44  ;;  %v606_v60 = vrot.slane %v605_v50, 1 }
 0x164   : > { %s7832_s28 = scalar_select %p7831_p6, 0, 1  ;;  %v518_v58 = vmax.f32 %v509_v52, %v517_v54  ;;  %v542_v8 = vrot.slane %v541_v3, 2  ;;  %v555_v9 = vrot.slane %v554_v4, 2  ;;  %v568_v12 = vrot.slane %v567_v6, 2 }
 0x165   : > { %p7835_p6 = scmp.le.s32.totalorder %s4182_s2, 0  ;;  %p980_p11 = scmp.gt.s32.totalorder %s4189_s11, 2  ;;  %v630_v53 = vrot.slane %v629_v39, 2 }
 0x166   : > { %v524_v51 = vstv %s7832_s28  ;;  %p4414_p3 = pnand %p971_p7, %p970_p2  ;;  %p989_p7 = scmp.gt.s32.totalorder %s4189_s11, 3  ;;  %v543_v13 = vmax.f32 %v541_v3, %v542_v8  ;;  %v556_v14 = vmax.f32 %v554_v4, %v555_v9  ;;  %v569_v18 = vmax.f32 %v567_v6, %v568_v12 }
 0x167   : > { %vm525_vm3 = vcmp.eq.s32.totalorder %v524_v51, 1  ;;  %p4403_p1 = pnand %p963_p13, %p7835_p6  ;;  %p7840_p6 = scmp.le.s32.totalorder %s4182_s2, 2  ;;  %v631_v63 = vmax.f32 %v629_v39, %v630_v53  ;;  %v619_v3 = vrot.slane %v618_v57, 1  ;;  %v607_v6 = vmax.f32 %v605_v50, %v606_v60 }
 0x168   : > { %s7838_s25 = scalar_select %p4414_p3, 1, 0  ;;  %v526_v59 = vsel %vm525_vm3, %v2803_v32, -inf  ;;  %v544_v19 = vrot.slane %v543_v13, 1  ;;  %v557_v20 = vrot.slane %v556_v14, 1  ;;  %v570_v29 = vrot.slane %v569_v18, 1 }
 0x169   : > { %s7836_s28 = scalar_select %p4403_p1, 1, 0  ;;  %v4437_v1 = vmax.f32 %v518_v58, %v526_v59  ;;  %v620_v16 = vmax.f32 %v618_v57, %v619_v3 }
 0x16a   : > { %7839 = sst [smem:[#allocation40_spill]] %s7838_s25  ;;  %p4428_p2 = pnand %p980_p11, %p7840_p6  ;;  %v545_v34 = vmax.f32 %v543_v13, %v544_v19  ;;  %v558_v35 = vmax.f32 %v556_v14, %v557_v20  ;;  %v571_v43 = vmax.f32 %v569_v18, %v570_v29  ;;  %v719_v29 = vstv %s3931_s20 }
 0x16b   : > { %7837 = sst [smem:[#allocation49_spill]] %s7836_s28  ;;  %p997_p13 = scmp.le.s32.totalorder %s4182_s2, 4  ;;  %v578_v5 = vsel %vm4390_vm2, %v4437_v1, -inf  ;;  %v640_v32 = vsel %vm4462_vm6, %v4437_v1, -inf  ;;  %vm4730_vm2 = vcmp.lt.s32.totalorder %v4164_v42, %v719_v29 }
 0x16c   : > { %s7841_s29 = scalar_select %p4428_p2, 1, 0  ;;  %v579_v10 = vrot.slane %v578_v5, 4  ;;  %v641_v40 = vrot.slane %v640_v32, 4 }
 0x16d   : > { %p998_p8 = scmp.gt.s32.totalorder %s4189_s11, 4  ;;  %p7843_p5 = scmp.le.s32.totalorder %s4182_s2, 3 }
 0x16e   : > { %7842 = sst [smem:[#allocation29_spill]] %s7841_s29  ;;  %p1006_p6 = scmp.le.s32.totalorder %s4182_s2, 5  ;;  %v580_v15 = vmax.f32 %v578_v5, %v579_v10  ;;  %v642_v54 = vmax.f32 %v640_v32, %v641_v40  ;;  %v632_v10 = vrot.slane %v631_v63, 1 }
 0x16f   : > { %p4443_p3 = pnand %p989_p7, %p7843_p5  ;;  %p4447_p11 = pnand %p998_p8, %p997_p13 }
 0x170   : > { %p1007_p2 = scmp.gt.s32.totalorder %s4189_s11, 5  ;;  %p1015_p8 = scmp.le.s32.totalorder %s4182_s2, 6  ;;  %v581_v23 = vrot.slane %v580_v15, 2  ;;  %v643_v0 = vrot.slane %v642_v54, 2  ;;  %v633_v20 = vmax.f32 %v631_v63, %v632_v10 }
 0x171   : > { %s7844_s1 = scalar_select %p4443_p3, 1, 0 }
 0x172   : > { %s7846_s24 = scalar_select %p4447_p11, 1, 0  ;;  %v582_v36 = vmax.f32 %v580_v15, %v581_v23  ;;  %v644_v11 = vmax.f32 %v642_v54, %v643_v0 }
 0x173   : > { %7845 = sst [smem:[#allocation35_spill]] %s7844_s1  ;;  %p4466_p5 = pnand %p1007_p2, %p1006_p6 }
 0x174   : > { %7847 = sst [smem:[#allocation50_spill]] %s7846_s24  ;;  %p1016_p13 = scmp.gt.s32.totalorder %s4189_s11, 6  ;;  %v583_v47 = vrot.slane %v582_v36, 1  ;;  %v645_v21 = vrot.slane %v644_v11, 1 }
 0x175   : > { %s7850_s19 = scalar_select %p4466_p5, 1, 0 }
 0x176   : > { %p1024_p7 = scmp.le.s32.totalorder %s4182_s2, 7  ;;  %p4478_p2 = pnand %p1016_p13, %p1015_p8  ;;  %v584_v59 = vmax.f32 %v582_v36, %v583_v47  ;;  %v646_v31 = vmax.f32 %v644_v11, %v645_v21 }
 0x177   : > { %7851 = sst [smem:[#allocation41_spill]] %s7850_s19  ;;  %p1025_p6 = scmp.gt.s32.totalorder %s4189_s11, 7 }
 0x178   : > { %s7852_s10 = scalar_select %p4478_p2, 1, 0 }
 0x179   : > { %s7854_s16 = sadd.s32 1, %s4152_s4  ;;  %s7855_s19 = sld [smem:[#allocation59_spill]] }
 0x17a   : > { %7853 = sst [smem:[#allocation30_spill]] %s7852_s10  ;;  %p4494_p8 = pnand %p1025_p6, %p1024_p7 }
 0x17b   : > { %s4485_s24 = sld [smem:[#allocation5 + %s7854_s16]]  ;;  %p7865_p7 = scmp.le.s32.totalorder %s4377_s26, 0 }
 0x17c   : > { %s7856_s21 = sld [smem:[#allocation60_spill]]  ;;  %p7868_p1 = scmp.le.s32.totalorder %s4377_s26, 1 }
 0x17d   : > { %s7857_s1 = scalar_select %p4494_p8, 1, 0 }
 0x17e   : > { %s7859_s16 = sld [smem:[#allocation55_spill]] }
 0x17f   : > { %7858 = sst [smem:[#allocation36_spill]] %s7857_s1  ;;  %v655_v25 = vstv %s7855_s19 }
 0x180   : > { %s7860_s10 = sld [smem:[#allocation56_spill]]  ;;  %vm4536_vm7 = vcmp.ge.s32.totalorder %v4164_v42, %v655_v25 }
 0x181   : > { %p1040_p2 = scmp.gt.s32.totalorder %s4485_s24, 0  ;;  %p1048_p5 = scmp.gt.s32.totalorder %s4485_s24, 1 }
 0x182   : > { %v657_v26 = vstv %s7856_s21  ;;  %p1057_p13 = scmp.gt.s32.totalorder %s4485_s24, 2  ;;  %p1066_p8 = scmp.gt.s32.totalorder %s4485_s24, 3 }
 0x183   : > { %p4522_p6 = pnand %p1040_p2, %p7865_p7  ;;  %s7869_s21 = sld [smem:[#allocation57_spill]]  ;;  %vm658_vm8 = vcmp.lt.s32.totalorder %v4164_v42, %v657_v26 }
 0x184   : > { %p7861_p11 = scmp.ne.s32.totalorder %s7859_s16, 0  ;;  %p4528_p10 = pnand %p1048_p5, %p7868_p1  ;;  %vm4562_vm11 = vmand %vm4536_vm7, %vm658_vm8 }
 0x185   : > { %s7866_s17 = scalar_select %p4522_p6, 1, 0  ;;  %v663_v51 = vsel %vm4562_vm11, %v4381_v48, -inf  ;;  %v676_v4 = vsel %vm4562_vm11, %v4383_v49, -inf  ;;  %v689_v8 = vsel %vm4562_vm11, %v4399_v55, -inf  ;;  %v702_v19 = vsel %vm4562_vm11, %v4437_v1, -inf }
 0x186   : > { %s7862_s18 = scalar_select %p7861_p11, 1, 0  ;;  %v664_v61 = vrot.slane %v663_v51, 4  ;;  %v677_v12 = vrot.slane %v676_v4, 4  ;;  %v690_v14 = vrot.slane %v689_v8, 4 }
 0x187   : > { %p7863_p3 = scmp.ne.s32.totalorder %s7860_s10, 0  ;;  %7867 = sst [smem:[#allocation51_spill]] %s7866_s17 }
 0x188   : > { %v548_v27 = vstv %s7862_s18  ;;  %s7870_s19 = scalar_select %p4528_p10, 1, 0  ;;  %v665_v7 = vmax.f32 %v663_v51, %v664_v61  ;;  %v678_v22 = vmax.f32 %v676_v4, %v677_v12  ;;  %v691_v24 = vmax.f32 %v689_v8, %v690_v14 }
 0x189   : > { %s7864_s1 = scalar_select %p7863_p3, 1, 0  ;;  %vm549_vm9 = vcmp.eq.s32.totalorder %v548_v27, 1  ;;  %v703_v27 = vrot.slane %v702_v19, 4 }
 0x18a   : > { %7871 = sst [smem:[#allocation42_spill]] %s7870_s19  ;;  %p7874_p3 = scmp.le.s32.totalorder %s4377_s26, 2  ;;  %v550_v45 = vsel %vm549_vm9, 0.0, %v545_v34  ;;  %v666_v18 = vrot.slane %v665_v7, 2  ;;  %v679_v33 = vrot.slane %v678_v22, 2 }
 0x18b   : > { %v561_v28 = vstv %s7864_s1  ;;  %p7877_p1 = scmp.le.s32.totalorder %s4377_s26, 3  ;;  %p7880_p2 = scmp.ne.s32.totalorder %s7869_s21, 0  ;;  %v704_v39 = vmax.f32 %v702_v19, %v703_v27 }
 0x18c   : > { %p4543_p11 = pnand %p1057_p13, %p7874_p3  ;;  %vm562_vm10 = vcmp.eq.s32.totalorder %v561_v28, 1  ;;  %s7882_s27 = sld [smem:[#allocation58_spill]]  ;;  %v667_v26 = vmax.f32 %v665_v7, %v666_v18  ;;  %v717_v28 = vstv %s3920_s5  ;;  %v680_v44 = vmax.f32 %v678_v22, %v679_v33 }
 0x18d   : > { %p4549_p5 = pnand %p1066_p8, %p7877_p1  ;;  %v563_v46 = vsel %vm562_vm10, 0.0, %v558_v35  ;;  %p1075_p8 = scmp.gt.s32.totalorder %s4485_s24, 4  ;;  %v692_v35 = vrot.slane %v691_v24, 2  ;;  %vm4725_vm1 = vcmp.ge.s32.totalorder %v4164_v42, %v717_v28  ;;  %v705_v57 = vrot.slane %v704_v39, 2 }
 0x18e   : > { %s7875_s1 = scalar_select %p4543_p11, 1, 0  ;;  %v564_v56 = vadd.f32 %v563_v46, %v550_v45  ;;  %vm4762_vm6 = vmand %vm4725_vm1, %vm4730_vm2  ;;  %v681_v60 = vrot.slane %v680_v44, 1 }
 0x18f   : > { %s7878_s10 = scalar_select %p4549_p5, 1, 0  ;;  %v693_v51 = vmax.f32 %v691_v24, %v692_v35  ;;  %v725_v61 = vsel %vm4762_vm6, %v4381_v48, -inf  ;;  %v738_v48 = vsel %vm4762_vm6, %v4383_v49, -inf  ;;  %v4841_v4 = vmax.f32 %v704_v39, %v705_v57 }
 0x190   : > { %7876 = sst [smem:[#allocation31_spill]] %s7875_s1  ;;  %p7888_p3 = scmp.le.s32.totalorder %s4377_s26, 4  ;;  %v726_v7 = vrot.slane %v725_v61, 4  ;;  %v682_v10 = vmax.f32 %v680_v44, %v681_v60  ;;  %v739_v11 = vrot.slane %v738_v48, 4  ;;  %v4862_v12 = vsel %vm4762_vm6, %v4399_v55, -inf }
 0x191   : > { %7879 = sst [smem:[#allocation37_spill]] %s7878_s10  ;;  %p1092_p5 = scmp.le.s32.totalorder %s4377_s26, 6  ;;  %v694_v0 = vrot.slane %v693_v51, 1 }
 0x192   : > { %s7881_s29 = scalar_select %p7880_p2, 1, 0  ;;  %v4913_v19 = vmax.f32 %v725_v61, %v726_v7  ;;  %v4954_v29 = vmax.f32 %v738_v48, %v739_v11 }
 0x193   : > { %p7885_p7 = scmp.ne.s32.totalorder %s7882_s27, 0  ;;  %s7887_s21 = sld [smem:[#allocation61_spill]] }
 0x194   : > { %v574_v38 = vstv %s7881_s29  ;;  %p4580_p1 = pnand %p1075_p8, %p7888_p3  ;;  %p1084_p2 = scmp.gt.s32.totalorder %s4485_s24, 5 }
 0x195   : > { %vm575_vm12 = vcmp.eq.s32.totalorder %v574_v38, 1  ;;  %s7886_s29 = scalar_select %p7885_p7, 1, 0  ;;  %v668_v38 = vrot.slane %v667_v26, 1 }
 0x196   : > { %s7889_s18 = scalar_select %p4580_p1, 1, 0  ;;  %v576_v58 = vsel %vm575_vm12, 0.0, %v571_v43 }
 0x197   : > { %v587_v52 = vstv %s7886_s29  ;;  %p7893_p3 = scmp.le.s32.totalorder %s4377_s26, 5  ;;  %s7895_s27 = sld [smem:[#allocation62_spill]]  ;;  %v577_v2 = vadd.f32 %v576_v58, %v564_v56  ;;  %v669_v56 = vmax.f32 %v667_v26, %v668_v38 }
 0x198   : > { %7890 = sst [smem:[#allocation52_spill]] %s7889_s18  ;;  %vm588_vm13 = vcmp.eq.s32.totalorder %v587_v52, 1  ;;  %p1102_p8 = scmp.gt.s32.totalorder %s4485_s24, 7 }
 0x199   : > { %p7891_p7 = scmp.ne.s32.totalorder %s7887_s21, 0  ;;  %p4598_p13 = pnand %p1084_p2, %p7893_p3  ;;  %v589_v5 = vsel %vm588_vm13, 0.0, %v584_v59 }
 0x19a   : > { %p7896_p1 = scmp.gt.s32.totalorder %s4485_s24, 6  ;;  %s7898_s21 = sld [smem:[#allocation63_spill]]  ;;  %v590_v13 = vadd.f32 %v589_v5, %v577_v2 }
 0x19b   : > { %s7892_s16 = scalar_select %p7891_p7, 1, 0 }
 0x19c   : > { %s7894_s10 = scalar_select %p4598_p13, 1, 0 }
 0x19d   : > { %v610_v62 = vstv %s7892_s16  ;;  %p7447_p7 = scmp.le.s32.totalorder %s4009_s23, %s3978_s8  ;;  %p4612_p11 = pnand %p7896_p1, %p1092_p5 }
 0x19e   : > { %p7449_p2 = scmp.le.s32.totalorder %s4149_s7, %s4139_s15  ;;  %s4622_s29 = sld [smem:[#allocation4 + %s3963_s9]]  ;;  %vm611_vm14 = vcmp.eq.s32.totalorder %v610_v62, 1 }
 0x19f   : > { %s7897_s16 = scalar_select %p4612_p11, 1, 0  ;;  %v612_v15 = vsel %vm611_vm14, 0.0, %v607_v6 }
 0x1a0   : > { %p7899_p3 = scmp.le.s32.totalorder %s4377_s26, 7  ;;  %s7902_s1 = sadd.s32 1, %s3963_s9  ;;  %v613_v23 = vadd.f32 %v612_v15, %v590_v13 }
 0x1a1   : > { %s4634_s19 = sld [smem:[#allocation4 + %s7902_s1]]  ;;  %p7903_p1 = scmp.ne.s32.totalorder %s7895_s27, 0 }
 0x1a2   : > { %p4628_p5 = pnand %p1102_p8, %p7899_p3  ;;  %p7905_p8 = scmp.ne.s32.totalorder %s7898_s21, 0 }
 0x1a3   : > { %s7904_s17 = scalar_select %p7903_p1, 1, 0 }
 0x1a4   : > { %s7900_s18 = scalar_select %p4628_p5, 1, 0 }
 0x1a5   : > { %v623_v9 = vstv %s7904_s17  ;;  %s7906_s9 = scalar_select %p7905_p8, 1, 0 }
 0x1a6   : > { %7901 = sst [smem:[#allocation44_spill]] %s7900_s18  ;;  %vm624_vm15 = vcmp.eq.s32.totalorder %v623_v9, 1  ;;  %s7908_s27 = sadd.s32 1, %s3989_s14 }
 0x1a7   : > { %v636_v17 = vstv %s7906_s9  ;;  %s4649_s17 = sld [smem:[#allocation4 + %s3989_s14]]  ;;  %p1118_p8 = scmp.le.s32.totalorder %s4634_s19, %s4622_s29  ;;  %v625_v25 = vsel %vm624_vm15, 0.0, %v620_v16  ;;  %v4897_v16 = vmax.f32 %v693_v51, %v694_v0 }
 0x1a8   : > { %s4660_s21 = sld [smem:[#allocation4 + %s7908_s27]]  ;;  %vm637_vm0 = vcmp.eq.s32.totalorder %v636_v17, 1  ;;  %s7911_s14 = sadd.s32 1, %s4012_s12  ;;  %v626_v34 = vadd.f32 %v625_v25, %v613_v23  ;;  %v707_v17 = vrot.slane %v4841_v4, 1 }
 0x1a9   : > { %s7910_s9 = sld [smem:[#allocation64_spill]]  ;;  %p4679_p1 = por %p1118_p8, %p7447_p7  ;;  %v638_v30 = vsel %vm637_vm0, 0.0, %v633_v20 }
 0x1aa   : > { %s4665_s1 = sld [smem:[#allocation4 + %s4012_s12]]  ;;  %p4689_p3 = por %p1118_p8, %p7449_p2  ;;  %v639_v47 = vadd.f32 %v638_v30, %v626_v34 }
 0x1ab   : > { %s4669_s27 = sld [smem:[#allocation4 + %s7911_s14]]  ;;  %p7919_p11 = scmp.le.s32.totalorder %s4189_s11, %s4182_s2 }
 0x1ac   : > { %s7913_s28 = scalar_select %p4679_p1, 1, 0 }
 0x1ad   : > { %7907 = sst [smem:[#allocation45_spill]] %s4649_s17  ;;  %p4702_p7 = por %p1118_p8, %p7919_p11 }
 0x1ae   : > { %7909 = sst [smem:[#allocation46_spill]] %s4660_s21  ;;  %p7922_p13 = scmp.le.s32.totalorder %s4485_s24, %s4377_s26 }
 0x1af   : > { %7914 = sst [smem:[#allocation54_spill]] %s7913_s28  ;;  %p7917_p5 = scmp.ne.s32.totalorder %s7910_s9, 0 }
 0x1b0   : > { %s7915_s25 = scalar_select %p4689_p3, 1, 0 }
 0x1b1   : > { %7912 = sst [smem:[#allocation53_spill]] %s4669_s27  ;;  %p4712_p2 = por %p1118_p8, %p7922_p13 }
 0x1b2   : > { %7916 = sst [smem:[#allocation59_spill]] %s7915_s25  ;;  %p1180_p11 = scmp.le.s32.totalorder %s4660_s21, %s4649_s17 }
 0x1b3   : > { %s7918_s12 = scalar_select %p7917_p5, 1, 0 }
 0x1b4   : > { %s7920_s5 = scalar_select %p4702_p7, 1, 0 }
 0x1b5   : > { %v649_v32 = vstv %s7918_s12  ;;  %s7923_s20 = scalar_select %p4712_p2, 1, 0 }
 0x1b6   : > { %7921 = sst [smem:[#allocation60_spill]] %s7920_s5  ;;  %vm650_vm3 = vcmp.eq.s32.totalorder %v649_v32, 1  ;;  %s7934_s12 = sshll.u32 %s4108_s22, 6 }
 0x1b7   : > { %7924 = sst [smem:[#allocation55_spill]] %s7923_s20  ;;  %s4743_s28 = scalar_lea.vmem [#allocation6], %s7934_s12  ;;  %v651_v54 = vsel %vm650_vm3, 0.0, %v646_v31 }
 0x1b8   : > { %s7925_s9 = scalar_select %p4028_p4, 0, 1  ;;  %v4746_v45 = vld [vmem:[%s4743_s28] sm:$0xff]  ;;  %v4749_v46 = vld [vmem:[%s4743_s28 + $0x8] sm:$0xff]  ;;  %v4810_v62 = vld [vmem:[%s4743_s28 + $0x10] sm:$0xff]  ;;  %v652_v63 = vadd.f32 %v651_v54, %v639_v47 }
 0x1b9   : > { %s7926_s14 = scalar_select %p4032_p9, 0, 1  ;;  %v4865_v13 = vld [vmem:[%s4743_s28 + $0x18] sm:$0xff]  ;;  %v4957_v30 = vld [vmem:[%s4743_s28 + $0x20] sm:$0xff]  ;;  %v5006_v41 = vld [vmem:[%s4743_s28 + $0x28] sm:$0xff] }
 0x1ba   : > { %v812_v36 = vstv %s7925_s9  ;;  %p7932_p9 = scmp.ne.s32.totalorder %s7682_s3, 0  ;;  %p7935_p4 = scmp.ne.s32.totalorder %s7685_s0, 0 }
 0x1bb   : > { %v820_v37 = vstv %s7926_s14  ;;  %vm813_vm4 = vcmp.eq.s32.totalorder %v812_v36, 1  ;;  %s7939_s22 = scalar_select %p4036_p0, 0, 1 }
 0x1bc   : > { %s7933_s14 = scalar_select %p7932_p9, 1, 0  ;;  %vm821_vm5 = vcmp.eq.s32.totalorder %v820_v37, 1  ;;  %v814_v58 = vsel %vm813_vm4, %v4746_v45, -inf }
 0x1bd   : > { %s7936_s3 = scalar_select %p7935_p4, 1, 0  ;;  %v829_v53 = vstv %s7939_s22  ;;  %v822_v59 = vsel %vm821_vm5, %v4749_v46, -inf }
 0x1be   : > { %v672_v43 = vstv %s7933_s14  ;;  %s4772_s0 = sld [smem:[#allocation4 + %s4152_s4]]  ;;  %s7940_s12 = sadd.s32 1, %s4152_s4  ;;  %vm830_vm9 = vcmp.eq.s32.totalorder %v829_v53, 1  ;;  %v823_v5 = vmax.f32 %v814_v58, %v822_v59  ;;  %v5058_v59 = vld [vmem:[%s4743_s28 + $0x30] sm:$0xff] }
 0x1bf   : > { %v4756_v50 = vstv %s7936_s3  ;;  %s4779_s6 = sld [smem:[#allocation4 + %s7940_s12]]  ;;  %vm673_vm7 = vcmp.eq.s32.totalorder %v672_v43, 1  ;;  %p7942_p0 = scmp.le.s32.totalorder %s4009_s23, %s3978_s8  ;;  %v831_v8 = vsel %vm830_vm9, %v4810_v62, -inf }
 0x1c0   : > { %p7945_p8 = scmp.le.s32.totalorder %s4149_s7, %s4139_s15  ;;  %s7948_s22 = sld [smem:[#allocation27_spill]]  ;;  %vm686_vm8 = vcmp.eq.s32.totalorder %v4756_v50, 1  ;;  %v674_v3 = vsel %vm673_vm7, 0.0, %v669_v56  ;;  %v832_v18 = vmax.f32 %v823_v5, %v831_v8 }
 0x1c1   : > { %p4791_p5 = por %p1180_p11, %p7942_p0  ;;  %s7949_s12 = sld [smem:[#allocation65_spill]]  ;;  %v4869_v14 = vadd.f32 %v674_v3, %v652_v63  ;;  %v4936_v23 = vsel %vm686_vm8, 0.0, %v682_v10  ;;  %v752_v63 = vrot.slane %v4862_v12, 4 }
 0x1c2   : > { %p4801_p9 = por %p1180_p11, %p7945_p8  ;;  %p7950_p4 = scmp.le.s32.totalorder %s4189_s11, %s4182_s2 }
 0x1c3   : > { %s7943_s3 = scalar_select %p4791_p5, 1, 0  ;;  %v753_v52 = vmax.f32 %v4862_v12, %v752_v63 }
 0x1c4   : > { %s7946_s4 = scalar_select %p4801_p9, 1, 0 }
 0x1c5   : > { %7944 = sst [smem:[#allocation56_spill]] %s7943_s3  ;;  %p4818_p0 = por %p1180_p11, %p7950_p4 }
 0x1c6   : > { %7947 = sst [smem:[#allocation57_spill]] %s7946_s4  ;;  %p7953_p8 = pmov %p7922_p13 }
 0x1c7   : > { %s7951_s9 = scalar_select %p4818_p0, 1, 0 }
 0x1c8   : > { %p4828_p13 = por %p1180_p11, %p7953_p8  ;;  %p7957_p11 = scmp.ne.s32.totalorder %s7948_s22, 0 }
 0x1c9   : > { %7952 = sst [smem:[#allocation58_spill]] %s7951_s9  ;;  %p7961_p4 = scmp.ne.s32.totalorder %s7949_s12, 0 }
 0x1ca   : > { %s7954_s13 = scalar_select %p4828_p13, 1, 0 }
 0x1cb   : > { %s7956_s20 = scalar_select %p4040_p12, 0, 1 }
 0x1cc   : > { %7955 = sst [smem:[#allocation61_spill]] %s7954_s13  ;;  %p7963_p12 = scmp.ne.s32.totalorder %s7781_s30, 0 }
 0x1cd   : > { %v838_v2 = vstv %s7956_s20  ;;  %s7958_s25 = scalar_select %p7957_p11, 0, 1 }
 0x1ce   : > { %s7959_s21 = sld [smem:[#allocation49_spill]]  ;;  %vm839_vm10 = vcmp.eq.s32.totalorder %v838_v2, 1  ;;  %p7975_p13 = scmp.le.s32.totalorder %s4149_s7, %s4139_s15 }
 0x1cf   : > { %v890_v6 = vstv %s7958_s25  ;;  %s7960_s17 = sld [smem:[#allocation40_spill]]  ;;  %v840_v20 = vsel %vm839_vm10, %v4865_v13, -inf  ;;  %p1304_p2 = scmp.le.s32.totalorder %s4779_s6, %s4772_s0 }
 0x1d0   : > { %s7962_s14 = scalar_select %p7961_p4, 1, 0  ;;  %vm891_vm11 = vcmp.eq.s32.totalorder %v890_v6, 1  ;;  %v841_v31 = vmax.f32 %v832_v18, %v840_v20 }
 0x1d1   : > { %s7964_s25 = scalar_select %p7963_p12, 0, 1  ;;  %v892_v24 = vsel %vm891_vm11, %v4746_v45, -inf }
 0x1d2   : > { %v4851_v49 = vstv %s7962_s14  ;;  %s7965_s22 = sld [smem:[#allocation25_spill]]  ;;  %p7972_p4 = scmp.le.s32.totalorder %s4009_s23, %s3978_s8 }
 0x1d3   : > { %v898_v9 = vstv %s7964_s25  ;;  %s7966_s30 = sld [smem:[#allocation73_spill]]  ;;  %p7973_p12 = scmp.le.s32.totalorder %s4669_s27, %s4665_s1 }
 0x1d4   : > { %s7967_s14 = sld [smem:[#allocation33_spill]]  ;;  %p7968_p8 = scmp.ne.s32.totalorder %s7959_s21, 0  ;;  %vm899_vm12 = vcmp.eq.s32.totalorder %v898_v9, 1 }
 0x1d5   : > { %p7970_p11 = scmp.ne.s32.totalorder %s7960_s17, 0  ;;  %p4883_p0 = por %p7973_p12, %p7972_p4  ;;  %v900_v25 = vsel %vm899_vm12, %v4749_v46, -inf }
 0x1d6   : > { %s7969_s25 = scalar_select %p7968_p8, 0, 1  ;;  %v901_v36 = vmax.f32 %v892_v24, %v900_v25  ;;  %v5115_v24 = vld [vmem:[%s4743_s28 + $0x38] sm:$0xff] }
 0x1d7   : > { %s7971_s20 = scalar_select %p7970_p11, 0, 1 }
 0x1d8   : > { %v967_v55 = vstv %s7969_s25  ;;  %p7976_p9 = pmov %p7973_p12  ;;  %s7978_s17 = sld [smem:[#allocation29_spill]] }
 0x1d9   : > { %v975_v15 = vstv %s7971_s20  ;;  %p7979_p8 = scmp.le.s32.totalorder %s4189_s11, %s4182_s2  ;;  %s4911_s5 = sadd.s32 16, %s7965_s22  ;;  %vm968_vm13 = vcmp.eq.s32.totalorder %v967_v55, 1  ;;  %v728_v55 = vrot.slane %v4913_v19, 2 }
 0x1da   : > { %p4893_p5 = por %p7976_p9, %p7975_p13  ;;  %p7980_p11 = pmov %p7976_p9  ;;  %vm976_vm14 = vcmp.eq.s32.totalorder %v975_v15, 1  ;;  %v969_v34 = vsel %vm968_vm13, %v4746_v45, -inf }
 0x1db   : > { %p7984_p13 = scmp.ne.s32.totalorder %s7966_s30, 0  ;;  %p7986_p9 = scmp.ne.s32.totalorder %s7967_s14, 0  ;;  %v977_v35 = vsel %vm976_vm14, %v4749_v46, -inf }
 0x1dc   : > { %p4906_p4 = por %p7980_p11, %p7979_p8  ;;  %p7988_p12 = scmp.le.s32.totalorder %s4485_s24, %s4377_s26  ;;  %v978_v44 = vmax.f32 %v969_v34, %v977_v35  ;;  %v1113_v34 = vstv %s4622_s29  ;;  %v1115_v35 = vstv %s4634_s19 }
 0x1dd   : > { %s7985_s13 = scalar_select %p7984_p13, 0, 1 }
 0x1de   : > { %s7982_s20 = scalar_select %p4906_p4, 1, 0 }
 0x1df   : > { %v847_v21 = vstv %s7985_s13  ;;  %s7987_s9 = scalar_select %p7986_p9, 0, 1 }
 0x1e0   : > { %p7989_p8 = pmov %p7980_p11  ;;  %s7991_s30 = sld [smem:[#allocation26_spill]]  ;;  %vm848_vm15 = vcmp.eq.s32.totalorder %v847_v21, 1 }
 0x1e1   : > { %v907_v22 = vstv %s7987_s9  ;;  %s7992_s13 = sld [smem:[#allocation47_spill]]  ;;  %p7993_p13 = scmp.ne.s32.totalorder %s7978_s17, 0  ;;  %v849_v37 = vsel %vm848_vm15, %v4957_v30, -inf }
 0x1e2   : > { %p4928_p11 = por %p7989_p8, %p7988_p12  ;;  %vm908_vm0 = vcmp.eq.s32.totalorder %v907_v22, 1  ;;  %s7997_s17 = sld [smem:[#allocation35_spill]]  ;;  %v850_v54 = vmax.f32 %v841_v31, %v849_v37 }
 0x1e3   : > { %s7994_s14 = scalar_select %p7993_p13, 0, 1  ;;  %v909_v38 = vsel %vm908_vm0, %v4810_v62, -inf  ;;  %vm699_vm0 = vcmp.eq.s32.totalorder %v4851_v49, 1 }
 0x1e4   : > { %s7990_s4 = scalar_select %p4928_p11, 1, 0  ;;  %v910_v56 = vmax.f32 %v901_v36, %v909_v38 }
 0x1e5   : > { %v984_v26 = vstv %s7994_s14  ;;  %s7995_s22 = scalar_select %p4522_p6, 0, 1 }
 0x1e6   : > { %s7996_s3 = scalar_select %p4528_p10, 0, 1  ;;  %vm985_vm1 = vcmp.eq.s32.totalorder %v984_v26, 1 }
 0x1e7   : > { %v1044_v27 = vstv %s7995_s22  ;;  %p7998_p6 = scmp.ne.s32.totalorder %s7991_s30, 0  ;;  %p8001_p10 = scmp.ne.s32.totalorder %s7992_s13, 0  ;;  %v986_v50 = vsel %vm985_vm1, %v4810_v62, -inf }
 0x1e8   : > { %v1052_v28 = vstv %s7996_s3  ;;  %s8000_s3 = sld [smem:[#allocation31_spill]]  ;;  %p8003_p9 = scmp.le.s32.totalorder %s4009_s23, %s3978_s8  ;;  %vm1045_vm2 = vcmp.eq.s32.totalorder %v1044_v27, 1  ;;  %v987_v60 = vmax.f32 %v978_v44, %v986_v50  ;;  %v741_v50 = vrot.slane %v4954_v29, 2 }
 0x1e9   : > { %s7999_s21 = scalar_select %p7998_p6, 0, 1  ;;  %vm1053_vm3 = vcmp.eq.s32.totalorder %v1052_v28, 1  ;;  %v1046_v51 = vsel %vm1045_vm2, %v4746_v45, -inf }
 0x1ea   : > { %s8002_s25 = scalar_select %p8001_p10, 0, 1  ;;  %v1054_v53 = vsel %vm1053_vm3, %v4749_v46, -inf  ;;  %v742_v49 = vmax.f32 %v4954_v29, %v741_v50 }
 0x1eb   : > { %v856_v32 = vstv %s7999_s21  ;;  %s8004_s14 = sld [smem:[#allocation32_spill]]  ;;  %p4977_p12 = por %p1304_p2, %p8003_p9  ;;  %v1055_v61 = vmax.f32 %v1046_v51, %v1054_v53  ;;  %v764_v51 = vsel %vm4762_vm6, %v4437_v1, -inf  ;;  %v729_v1 = vmax.f32 %v4913_v19, %v728_v55 }
 0x1ec   : > { %v916_v33 = vstv %s8002_s25  ;;  %s7469_s30 = sadd.s32 1, %s4911_s5  ;;  %s8007_s13 = sld [smem:[#allocation48_spill]]  ;;  %vm857_vm4 = vcmp.eq.s32.totalorder %v856_v32, 1  ;;  %v765_v12 = vrot.slane %v764_v51, 4 }
 0x1ed   : > { %s8005_s22 = scalar_select %p4977_p12, 1, 0  ;;  %vm917_vm5 = vcmp.eq.s32.totalorder %v916_v33, 1  ;;  %v858_v57 = vsel %vm857_vm4, %v5006_v41, -inf }
 0x1ee   : > { %p8008_p8 = scmp.le.s32.totalorder %s4149_s7, %s4139_s15  ;;  %s4993_s23 = sadd.s32 2, %s4911_s5  ;;  %v918_v58 = vsel %vm917_vm5, %v4865_v13, -inf  ;;  %v859_v3 = vmax.f32 %v850_v54, %v858_v57 }
 0x1ef   : > { %8006 = sst [smem:[#allocation62_spill]] %s8005_s22  ;;  %p8012_p6 = scmp.ne.s32.totalorder %s7997_s17, 0  ;;  %v919_v5 = vmax.f32 %v910_v56, %v918_v58 }
 0x1f0   : > { %p4988_p13 = por %p1304_p2, %p8008_p8  ;;  %8011 = sst [smem:[#allocation64_spill]] %s4993_s23 }
 0x1f1   : > { %s8013_s21 = scalar_select %p8012_p6, 0, 1 }
 0x1f2   : > { %s8009_s8 = scalar_select %p4988_p13, 1, 0 }
 0x1f3   : > { %v993_v39 = vstv %s8013_s21  ;;  %p8014_p10 = scmp.ne.s32.totalorder %s8000_s3, 0  ;;  %p8016_p9 = scmp.ne.s32.totalorder %s8004_s14, 0 }
 0x1f4   : > { %8010 = sst [smem:[#allocation63_spill]] %s8009_s8  ;;  %p8019_p8 = scmp.le.s32.totalorder %s4189_s11, %s4182_s2  ;;  %vm994_vm7 = vcmp.eq.s32.totalorder %v993_v39, 1 }
 0x1f5   : > { %s8015_s25 = scalar_select %p8014_p10, 0, 1  ;;  %v995_v48 = vsel %vm994_vm7, %v4865_v13, -inf  ;;  %vm5172_vm7 = vcmp.ge.s32.totalorder %v4164_v42, %v1113_v34 }
 0x1f6   : > { %s8017_s7 = scalar_select %p8016_p9, 0, 1  ;;  %v996_v10 = vmax.f32 %v987_v60, %v995_v48  ;;  %v688_v60 = vadd.f32 %v4936_v23, %v4869_v14  ;;  %v700_v48 = vsel %vm699_vm0, 0.0, %v4897_v16  ;;  %v708_v23 = vmax.f32 %v4841_v4, %v707_v17 }
 0x1f7   : > { %v1061_v40 = vstv %s8015_s25  ;;  %s8018_s27 = sld [smem:[#allocation50_spill]]  ;;  %p5017_p6 = por %p1304_p2, %p8019_p8  ;;  %v754_v16 = vrot.slane %v753_v52, 2 }
 0x1f8   : > { %v865_v43 = vstv %s8017_s7  ;;  %s8020_s17 = sld [smem:[#allocation37_spill]]  ;;  %p8023_p10 = scmp.le.s32.totalorder %s4485_s24, %s4377_s26  ;;  %vm1062_vm8 = vcmp.eq.s32.totalorder %v1061_v40, 1 }
 0x1f9   : > { %s8021_s21 = scalar_select %p5017_p6, 1, 0  ;;  %vm866_vm9 = vcmp.eq.s32.totalorder %v865_v43, 1  ;;  %v1063_v2 = vsel %vm1062_vm8, %v4810_v62, -inf  ;;  %vm5177_vm8 = vcmp.lt.s32.totalorder %v4164_v42, %v1115_v35 }
 0x1fa   : > { %p5027_p11 = por %p1304_p2, %p8023_p10  ;;  %p8026_p4 = scmp.ne.s32.totalorder %s8007_s13, 0  ;;  %v867_v6 = vsel %vm866_vm9, %v5058_v59, -inf  ;;  %v1064_v11 = vmax.f32 %v1055_v61, %v1063_v2  ;;  %vm5208_vm6 = vmand %vm5172_vm7, %vm5177_vm8 }
 0x1fb   : > { %8022 = sst [smem:[#allocation71_spill]] %s8021_s21  ;;  %v868_v21 = vmax.f32 %v859_v3, %v867_v6  ;;  %v766_v3 = vmax.f32 %v764_v51, %v765_v12 }
 0x1fc   : > { %s8024_s3 = scalar_select %p5027_p11, 1, 0 }
 0x1fd   : > { %s8027_s14 = scalar_select %p8026_p4, 0, 1  ;;  %v767_v55 = vrot.slane %v766_v3, 2 }
 0x1fe   : > { %8025 = sst [smem:[#allocation72_spill]] %s8024_s3  ;;  %p8029_p2 = scmp.ne.s32.totalorder %s8018_s27, 0 }
 0x1ff   : > { %v925_v47 = vstv %s8027_s14  ;;  %s8028_s11 = sld [smem:[#allocation28_spill]]  ;;  %p8031_p4 = scmp.ne.s32.totalorder %s8020_s17, 0 }
 0x200   : > { %s8030_s26 = scalar_select %p8029_p2, 0, 1  ;;  %vm926_vm10 = vcmp.eq.s32.totalorder %v925_v47, 1 }
 0x201   : > { %s8032_s13 = scalar_select %p8031_p4, 0, 1  ;;  %v927_v7 = vsel %vm926_vm10, %v4957_v30, -inf }
 0x202   : > { %v1002_v45 = vstv %s8030_s26  ;;  %s5054_s25 = sld [smem:[#allocation5 + %s4911_s5]]  ;;  %s5065_s26 = sadd.s32 4, %s4911_s5  ;;  %v928_v22 = vmax.f32 %v919_v5, %v927_v7  ;;  %v701_v7 = vadd.f32 %v700_v48, %v688_v60 }
 0x203   : > { %v1070_v46 = vstv %s8032_s13  ;;  %s8034_s14 = sld [smem:[#allocation41_spill]]  ;;  %vm1003_vm11 = vcmp.eq.s32.totalorder %v1002_v45, 1 }
 0x204   : > { %s8035_s24 = sld [smem:[#allocation52_spill]]  ;;  %vm1071_vm12 = vcmp.eq.s32.totalorder %v1070_v46, 1  ;;  %v1004_v18 = vsel %vm1003_vm11, %v4957_v30, -inf }
 0x205   : > { %s5062_s27 = sld [smem:[#allocation5 + %s7469_s30]]  ;;  %p8039_p9 = scmp.ne.s32.totalorder %s8028_s11, 0  ;;  %v1072_v20 = vsel %vm1071_vm12, %v4865_v13, -inf  ;;  %v1005_v28 = vmax.f32 %v996_v10, %v1004_v18  ;;  %v743_v10 = vrot.slane %v742_v49, 1 }
 0x206   : > { %s8037_s2 = sld [smem:[#allocation43_spill]]  ;;  %s8050_s11 = sadd.s32 1, %s4993_s23  ;;  %v1073_v31 = vmax.f32 %v1064_v11, %v1072_v20  ;;  %v755_v11 = vmax.f32 %v753_v52, %v754_v16 }
 0x207   : > { %8038 = sst [smem:[#allocation49_spill]] %s5065_s26 }
 0x208   : > { %8033 = sst [smem:[#allocation27_spill]] %s5054_s25  ;;  %p8062_p11 = scmp.le.s32.totalorder %s5054_s25, 0 }
 0x209   : > { %s8040_s17 = scalar_select %p8039_p9, 0, 1 }
 0x20a   : > { %s8041_s13 = sld [smem:[#allocation38_spill]]  ;;  %p8043_p8 = scmp.ne.s32.totalorder %s8034_s14, 0 }
 0x20b   : > { %8036 = sst [smem:[#allocation65_spill]] %s5062_s27  ;;  %v934_v0 = vstv %s8040_s17  ;;  %p8045_p10 = scmp.ne.s32.totalorder %s8035_s24, 0 }
 0x20c   : > { %s8042_s30 = sld [smem:[#allocation39_spill]]  ;;  %vm935_vm13 = vcmp.eq.s32.totalorder %v934_v0, 1  ;;  %p1406_p9 = scmp.le.s32.totalorder %s5054_s25, 2 }
 0x20d   : > { %s8044_s17 = scalar_select %p8043_p8, 0, 1  ;;  %v936_v13 = vsel %vm935_vm13, %v5006_v41, -inf }
 0x20e   : > { %s8046_s15 = scalar_select %p8045_p10, 0, 1  ;;  %v937_v37 = vmax.f32 %v928_v22, %v936_v13 }
 0x20f   : > { %v1011_v62 = vstv %s8044_s17  ;;  %s5091_s7 = sld [smem:[#allocation5 + %s4993_s23]]  ;;  %p8058_p8 = scmp.ne.s32.totalorder %s7894_s10, 0 }
 0x210   : > { %v1079_v8 = vstv %s8046_s15  ;;  %p8048_p2 = scmp.ne.s32.totalorder %s8041_s13, 0  ;;  %s5098_s14 = sld [smem:[#allocation5 + %s8050_s11]]  ;;  %vm1012_vm14 = vcmp.eq.s32.totalorder %v1011_v62, 1 }
 0x211   : > { %s8054_s24 = sld [smem:[#allocation30_spill]]  ;;  %vm1080_vm15 = vcmp.eq.s32.totalorder %v1079_v8, 1  ;;  %p1407_p10 = scmp.gt.s32.totalorder %s5062_s27, 2  ;;  %v1013_v32 = vsel %vm1012_vm14, %v5006_v41, -inf }
 0x212   : > { %s8049_s3 = scalar_select %p8048_p2, 0, 1  ;;  %v1081_v33 = vsel %vm1080_vm15, %v4957_v30, -inf  ;;  %v1014_v40 = vmax.f32 %v1005_v28, %v1013_v32  ;;  %v756_v28 = vrot.slane %v755_v11, 1  ;;  %v768_v32 = vmax.f32 %v766_v3, %v767_v55 }
 0x213   : > { %p8052_p4 = scmp.ne.s32.totalorder %s8042_s30, 0  ;;  %p8063_p6 = scmp.gt.s32.totalorder %s5062_s27, 0  ;;  %v1082_v43 = vmax.f32 %v1073_v31, %v1081_v33 }
 0x214   : > { %v874_v9 = vstv %s8049_s3  ;;  %s8055_s3 = sld [smem:[#allocation34_spill]]  ;;  %p8067_p12 = scmp.gt.s32.totalorder %s5062_s27, 1  ;;  %v769_v44 = vrot.slane %v768_v32, 1 }
 0x215   : > { %8047 = sst [smem:[#allocation40_spill]] %s5091_s7  ;;  %vm875_vm1 = vcmp.eq.s32.totalorder %v874_v9, 1  ;;  %p5134_p13 = pnand %p8063_p6, %p8062_p11 }
 0x216   : > { %8051 = sst [smem:[#allocation73_spill]] %s5098_s14  ;;  %p5152_p11 = pnand %p1407_p10, %p1406_p9  ;;  %v876_v36 = vsel %vm875_vm1, %v5115_v24, -inf }
 0x217   : > { %s8053_s15 = scalar_select %p8052_p4, 0, 1  ;;  %v5191_v56 = vmax.f32 %v868_v21, %v876_v36 }
 0x218   : > { %p8056_p4 = scmp.ne.s32.totalorder %s8054_s24, 0  ;;  %s8064_s28 = sld [smem:[#allocation36_spill]] }
 0x219   : > { %v943_v15 = vstv %s8053_s15  ;;  %s8059_s13 = scalar_select %p8058_p8, 0, 1  ;;  %v1121_v14 = vsel %vm5208_vm6, %v5191_v56, -inf }
 0x21a   : > { %s8057_s30 = scalar_select %p8056_p4, 0, 1  ;;  %vm944_vm2 = vcmp.eq.s32.totalorder %v943_v15, 1  ;;  %v1122_v6 = vrot.slane %v1121_v14, 4 }
 0x21b   : > { %v1088_v26 = vstv %s8059_s13  ;;  %p8060_p2 = scmp.ne.s32.totalorder %s8055_s3, 0  ;;  %p8066_p4 = scmp.le.s32.totalorder %s5054_s25, 1  ;;  %v945_v30 = vsel %vm944_vm2, %v5058_v59, -inf }
 0x21c   : > { %v1020_v25 = vstv %s8057_s30  ;;  %s8069_s15 = scalar_select %p5152_p11, 1, 0  ;;  %vm1089_vm4 = vcmp.eq.s32.totalorder %v1088_v26, 1  ;;  %v946_v57 = vmax.f32 %v937_v37, %v945_v30  ;;  %v1123_v20 = vmax.f32 %v1121_v14, %v1122_v6 }
 0x21d   : > { %s8061_s11 = scalar_select %p8060_p2, 0, 1  ;;  %vm1021_vm3 = vcmp.eq.s32.totalorder %v1020_v25, 1  ;;  %v1090_v54 = vsel %vm1089_vm4, %v5006_v41, -inf  ;;  %v1237_v14 = vstv %s4665_s1 }
 0x21e   : > { %p5142_p8 = pnand %p8067_p12, %p8066_p4  ;;  %p1415_p6 = scmp.le.s32.totalorder %s5054_s25, 3  ;;  %v1022_v53 = vsel %vm1021_vm3, %v5058_v59, -inf  ;;  %v1091_v46 = vmax.f32 %v1082_v43, %v1090_v54  ;;  %v1124_v34 = vrot.slane %v1123_v20, 2  ;;  %v757_v43 = vmax.f32 %v755_v11, %v756_v28 }
 0x21f   : > { %v952_v27 = vstv %s8061_s11  ;;  %p8070_p12 = scmp.ne.s32.totalorder %s8064_s28, 0  ;;  %p8072_p9 = scmp.ne.s32.totalorder %s7897_s16, 0  ;;  %v1023_v19 = vmax.f32 %v1014_v40, %v1022_v53 }
 0x220   : > { %s8068_s10 = scalar_select %p5142_p8, 1, 0  ;;  %vm953_vm5 = vcmp.eq.s32.totalorder %v952_v27, 1  ;;  %v744_v27 = vmax.f32 %v742_v49, %v743_v10  ;;  %v1125_v50 = vmax.f32 %v1123_v20, %v1124_v34 }
 0x221   : > { %s8071_s19 = scalar_select %p8070_p12, 0, 1  ;;  %v954_v41 = vsel %vm953_vm5, %v5115_v24, -inf  ;;  %vm1238_vm5 = vcmp.ge.s32.totalorder %v4164_v42, %v1237_v14 }
 0x222   : > { %s8073_s29 = scalar_select %p8072_p9, 0, 1  ;;  %v5242_v2 = vmax.f32 %v946_v57, %v954_v41  ;;  %v770_v41 = vmax.f32 %v768_v32, %v769_v44 }
 0x223   : > { %v1029_v38 = vstv %s8071_s19  ;;  %s8078_s30 = sld [smem:[#allocation44_spill]]  ;;  %p1416_p10 = scmp.gt.s32.totalorder %s5062_s27, 3 }
 0x224   : > { %v1097_v39 = vstv %s8073_s29  ;;  %vm1030_vm9 = vcmp.eq.s32.totalorder %v1029_v38, 1  ;;  %s8079_s13 = sld [smem:[#allocation66_spill]]  ;;  %p1425_p4 = scmp.gt.s32.totalorder %s5062_s27, 4  ;;  %v1134_v62 = vsel %vm5208_vm6, %v5242_v2, -inf }
 0x225   : > { %vm1098_vm10 = vcmp.eq.s32.totalorder %v1097_v39, 1  ;;  %p5216_p12 = pnand %p1416_p10, %p1415_p6  ;;  %p1434_p2 = scmp.gt.s32.totalorder %s5062_s27, 5  ;;  %v1031_v63 = vsel %vm1030_vm9, %v5115_v24, -inf  ;;  %v1135_v21 = vrot.slane %v1134_v62, 4 }
 0x226   : > { %v1099_v0 = vsel %vm1098_vm10, %v5058_v59, -inf  ;;  %v730_v59 = vrot.slane %v729_v1, 1  ;;  %p8090_p10 = scmp.le.s32.totalorder %s5054_s25, 5  ;;  %v5262_v5 = vmax.f32 %v1023_v19, %v1031_v63  ;;  %p1452_p8 = scmp.gt.s32.totalorder %s5062_s27, 7 }
 0x227   : > { %s8084_s28 = scalar_select %p5216_p12, 1, 0  ;;  %v1100_v4 = vmax.f32 %v1091_v46, %v1099_v0  ;;  %v1136_v35 = vmax.f32 %v1134_v62, %v1135_v21 }
 0x228   : > { %s8096_s16 = sld [smem:[#allocation45_spill]]  ;;  %v731_v9 = vmax.f32 %v729_v1, %v730_v59  ;;  %v1147_v18 = vsel %vm5208_vm6, %v5262_v5, -inf  ;;  %p1502_p12 = scmp.le.s32.totalorder %s5091_s7, 4 }
 0x229   : > { %p8080_p9 = scmp.ne.s32.totalorder %s8078_s30, 0  ;;  %s8102_s30 = sld [smem:[#allocation68_spill]]  ;;  %v1148_v31 = vrot.slane %v1147_v18, 4  ;;  %v1137_v51 = vrot.slane %v1136_v35, 2 }
 0x22a   : > { %p8087_p6 = scmp.ne.s32.totalorder %s8079_s13, 0  ;;  %s5290_s24 = sld [smem:[#allocation5 + %s5065_s26]] }
 0x22b   : > { %s8081_s11 = scalar_select %p8080_p9, 0, 1  ;;  %v1149_v30 = vmax.f32 %v1147_v18, %v1148_v31  ;;  %v1138_v45 = vmax.f32 %v1136_v35, %v1137_v51 }
 0x22c   : > { %p8085_p9 = scmp.le.s32.totalorder %s5054_s25, 4  ;;  %s8105_s22 = sld [smem:[#allocation69_spill]] }
 0x22d   : > { %v1106_v58 = vstv %s8081_s11  ;;  %s8088_s29 = scalar_select %p8087_p6, 1, 0  ;;  %v1150_v57 = vrot.slane %v1149_v30, 2  ;;  %v1139_v49 = vrot.slane %v1138_v45, 1 }
 0x22e   : > { %p5223_p11 = pnand %p1425_p4, %p8085_p9  ;;  %s8089_s11 = sld [smem:[#allocation67_spill]]  ;;  %vm1107_vm11 = vcmp.eq.s32.totalorder %v1106_v58, 1  ;;  %v1175_v22 = vstv %s8096_s16  ;;  %v1126_v58 = vrot.slane %v1125_v50, 1 }
 0x22f   : > { %v711_v61 = vstv %s8088_s29  ;;  %p5257_p4 = pnand %p1434_p2, %p8090_p10  ;;  %p1443_p9 = scmp.gt.s32.totalorder %s5062_s27, 6  ;;  %v1108_v29 = vsel %vm1107_vm11, %v5115_v24, -inf  ;;  %vm1176_vm14 = vcmp.ge.s32.totalorder %v4164_v42, %v1175_v22 }
 0x230   : > { %s8086_s19 = scalar_select %p5223_p11, 1, 0  ;;  %vm712_vm12 = vcmp.eq.s32.totalorder %v711_v61, 1  ;;  %v5292_v15 = vmax.f32 %v1100_v4, %v1108_v29  ;;  %v1151_v61 = vmax.f32 %v1149_v30, %v1150_v57  ;;  %v1127_v59 = vmax.f32 %v1125_v50, %v1126_v58 }
 0x231   : > { %s8091_s29 = scalar_select %p5257_p4, 1, 0  ;;  %v713_v8 = vsel %vm712_vm12, 0.0, %v708_v23 }
 0x232   : > { %p1451_p6 = scmp.le.s32.totalorder %s5054_s25, 7  ;;  %p8095_p2 = scmp.le.s32.totalorder %s5054_s25, 6  ;;  %v714_v13 = vadd.f32 %v713_v8, %v701_v7  ;;  %v1160_v33 = vsel %vm5208_vm6, %v5292_v15, -inf  ;;  %v1152_v29 = vrot.slane %v1151_v61, 1 }
 0x233   : > { %8092 = sst [smem:[#allocation33_spill]] %s8091_s29  ;;  %p8108_p4 = scmp.le.s32.totalorder %s5091_s7, 1  ;;  %v1161_v38 = vrot.slane %v1160_v33, 4 }
 0x234   : > { %p8093_p11 = scmp.ne.s32.totalorder %s8089_s11, 0  ;;  %p5280_p10 = pnand %p1443_p9, %p8095_p2 }
 0x235   : > { %s8099_s11 = sld [smem:[#allocation46_spill]]  ;;  %p1468_p9 = scmp.gt.s32.totalorder %s5098_s14, 0  ;;  %v1162_v1 = vmax.f32 %v1160_v33, %v1161_v38 }
 0x236   : > { %s8094_s13 = scalar_select %p8093_p11, 1, 0 }
 0x237   : > { %s8097_s3 = scalar_select %p5280_p10, 1, 0  ;;  %v1163_v63 = vrot.slane %v1162_v1, 2 }
 0x238   : > { %v734_v17 = vstv %s8094_s13  ;;  %p5284_p11 = pnand %p1452_p8, %p1451_p6  ;;  %p8103_p8 = scmp.ne.s32.totalorder %s8102_s30, 0 }
 0x239   : > { %8098 = sst [smem:[#allocation29_spill]] %s8097_s3  ;;  %vm735_vm13 = vcmp.eq.s32.totalorder %v734_v17, 1  ;;  %p1476_p2 = scmp.gt.s32.totalorder %s5098_s14, 1  ;;  %v1164_v6 = vmax.f32 %v1162_v1, %v1163_v63 }
 0x23a   : > { %s8100_s13 = scalar_select %p5284_p11, 1, 0  ;;  %v736_v26 = vsel %vm735_vm13, 0.0, %v731_v9  ;;  %v1140_v9 = vmax.f32 %v1138_v45, %v1139_v49 }
 0x23b   : > { %v1177_v24 = vstv %s8099_s11  ;;  %s8104_s8 = scalar_select %p8103_p8, 1, 0  ;;  %v737_v37 = vadd.f32 %v736_v26, %v714_v13  ;;  %v1165_v26 = vrot.slane %v1164_v6, 1 }
 0x23c   : > { %8101 = sst [smem:[#allocation51_spill]] %s8100_s13  ;;  %vm1178_vm15 = vcmp.lt.s32.totalorder %v4164_v42, %v1177_v24  ;;  %p8106_p8 = scmp.le.s32.totalorder %s5091_s7, 0 }
 0x23d   : > { %v747_v25 = vstv %s8104_s8  ;;  %p1485_p11 = scmp.gt.s32.totalorder %s5098_s14, 2  ;;  %s8109_s16 = sld [smem:[#allocation70_spill]]  ;;  %vm5334_vm1 = vmand %vm1176_vm14, %vm1178_vm15  ;;  %v1166_v30 = vmax.f32 %v1164_v6, %v1165_v26 }
 0x23e   : > { %p5317_p6 = pnand %p1468_p9, %p8106_p8  ;;  %vm748_vm0 = vcmp.eq.s32.totalorder %v747_v25, 1  ;;  %p5324_p10 = pnand %p1476_p2, %p8108_p4  ;;  %v1183_v53 = vsel %vm5334_vm1, %v5191_v56, -inf  ;;  %v1196_v19 = vsel %vm5334_vm1, %v5242_v2, -inf  ;;  %v1209_v3 = vsel %vm5334_vm1, %v5262_v5, -inf }
 0x23f   : > { %p8111_p9 = scmp.ne.s32.totalorder %s8105_s22, 0  ;;  %v749_v40 = vsel %vm748_vm0, 0.0, %v744_v27  ;;  %p8115_p4 = scmp.le.s32.totalorder %s5091_s7, 2  ;;  %v1184_v12 = vrot.slane %v1183_v53, 4  ;;  %v1197_v48 = vrot.slane %v1196_v19, 4  ;;  %v1210_v62 = vrot.slane %v1209_v3, 4 }
 0x240   : > { %s8107_s8 = scalar_select %p5317_p6, 1, 0  ;;  %v750_v54 = vadd.f32 %v749_v40, %v737_v37  ;;  %v1222_v11 = vsel %vm5334_vm1, %v5292_v15, -inf  ;;  %v1153_v25 = vmax.f32 %v1151_v61, %v1152_v29 }
 0x241   : > { %s8110_s30 = scalar_select %p5324_p10, 1, 0  ;;  %v1185_v16 = vmax.f32 %v1183_v53, %v1184_v12  ;;  %v1198_v7 = vmax.f32 %v1196_v19, %v1197_v48  ;;  %v1211_v22 = vmax.f32 %v1209_v3, %v1210_v62  ;;  %v1223_v24 = vrot.slane %v1222_v11, 4 }
 0x242   : > { %s8112_s11 = scalar_select %p8111_p9, 1, 0 }
 0x243   : > { %p5344_p2 = pnand %p1485_p11, %p8115_p4  ;;  %p1494_p8 = scmp.gt.s32.totalorder %s5098_s14, 3  ;;  %v1186_v10 = vrot.slane %v1185_v16, 2  ;;  %v1199_v21 = vrot.slane %v1198_v7, 2  ;;  %v1212_v35 = vrot.slane %v1211_v22, 2 }
 0x244   : > { %v760_v36 = vstv %s8112_s11  ;;  %p8117_p9 = scmp.ne.s32.totalorder %s8109_s16, 0  ;;  %p1503_p10 = scmp.gt.s32.totalorder %s5098_s14, 4 }
 0x245   : > { %s8116_s22 = scalar_select %p5344_p2, 1, 0  ;;  %vm761_vm2 = vcmp.eq.s32.totalorder %v760_v36, 1  ;;  %v1187_v27 = vmax.f32 %v1185_v16, %v1186_v10  ;;  %v1200_v34 = vmax.f32 %v1198_v7, %v1199_v21  ;;  %v1224_v36 = vmax.f32 %v1222_v11, %v1223_v24 }
 0x246   : > { %s8118_s11 = scalar_select %p8117_p9, 1, 0  ;;  %v762_v52 = vsel %vm761_vm2, 0.0, %v757_v43  ;;  %v1213_v50 = vmax.f32 %v1211_v22, %v1212_v35 }
 0x247   : > { %p8120_p11 = scmp.le.s32.totalorder %s5091_s7, 3  ;;  %p5365_p9 = pnand %p1503_p10, %p1502_p12  ;;  %v763_v46 = vadd.f32 %v762_v52, %v750_v54  ;;  %v1188_v38 = vrot.slane %v1187_v27, 1  ;;  %v1225_v51 = vrot.slane %v1224_v36, 2 }
 0x248   : > { %v773_v47 = vstv %s8118_s11  ;;  %p1511_p2 = scmp.le.s32.totalorder %s5091_s7, 5  ;;  %p1512_p6 = scmp.gt.s32.totalorder %s5098_s14, 5  ;;  %v1214_v12 = vrot.slane %v1213_v50, 1 }
 0x249   : > { %p5361_p4 = pnand %p1494_p8, %p8120_p11  ;;  %vm774_vm3 = vcmp.eq.s32.totalorder %v773_v47, 1  ;;  %s8124_s9 = sld [smem:[#allocation53_spill]]  ;;  %v1201_v47 = vrot.slane %v1200_v34, 1  ;;  %v1189_v54 = vmax.f32 %v1187_v27, %v1188_v38  ;;  %v1226_v19 = vmax.f32 %v1224_v36, %v1225_v51 }
 0x24a   : > { %s8122_s11 = scalar_select %p5365_p9, 1, 0  ;;  %v775_v0 = vsel %vm774_vm3, 0.0, %v770_v41 }
 0x24b   : > { %s8125_s3 = scalar_select %p4679_p1, 1, 0  ;;  %v776_v4 = vadd.f32 %v775_v0, %v763_v46  ;;  %v1202_v45 = vmax.f32 %v1200_v34, %v1201_v47  ;;  %v1227_v49 = vrot.slane %v1226_v19, 1 }
 0x24c   : > { %8123 = sst [smem:[#allocation42_spill]] %s8122_s11  ;;  %p5381_p12 = pnand %p1512_p6, %p1511_p2 }
 0x24d   : > { %v1130_v60 = vstv %s8125_s3  ;;  %p1520_p10 = scmp.le.s32.totalorder %s5091_s7, 6  ;;  %p1521_p8 = scmp.gt.s32.totalorder %s5098_s14, 6  ;;  %v1228_v10 = vmax.f32 %v1226_v19, %v1227_v49 }
 0x24e   : > { %s8126_s29 = scalar_select %p5381_p12, 1, 0  ;;  %vm1131_vm4 = vcmp.eq.s32.totalorder %v1130_v60, 1 }
 0x24f   : > { %v1239_v23 = vstv %s8124_s9  ;;  %p1529_p1 = scmp.le.s32.totalorder %s5091_s7, 7  ;;  %p5397_p6 = pnand %p1521_p8, %p1520_p10  ;;  %v1132_v8 = vsel %vm1131_vm4, 0.0, %v1127_v59  ;;  %v1215_v59 = vmax.f32 %v1213_v50, %v1214_v12 }
 0x250   : > { %8127 = sst [smem:[#allocation26_spill]] %s8126_s29  ;;  %p1530_p2 = scmp.gt.s32.totalorder %s5098_s14, 7  ;;  %vm1240_vm7 = vcmp.lt.s32.totalorder %v4164_v42, %v1239_v23  ;;  %v1133_v20 = vadd.f32 %v1132_v8, %v776_v4  ;;  %v1299_v4 = vstv %s4772_s0 }
 0x251   : > { %s8129_s3 = scalar_select %p5397_p6, 1, 0  ;;  %vm5436_vm9 = vmand %vm1238_vm5, %vm1240_vm7  ;;  %vm1300_vm14 = vcmp.ge.s32.totalorder %v4164_v42, %v1299_v4 }
 0x252   : > { %s8131_s1 = scalar_select %p4689_p3, 1, 0  ;;  %v1245_v28 = vsel %vm5436_vm9, %v5191_v56, -inf  ;;  %v1258_v32 = vsel %vm5436_vm9, %v5242_v2, -inf  ;;  %v1271_v41 = vsel %vm5436_vm9, %v5262_v5, -inf  ;;  %v1284_v48 = vsel %vm5436_vm9, %v5292_v15, -inf }
 0x253   : > { %8130 = sst [smem:[#allocation47_spill]] %s8129_s3  ;;  %s8132_s9 = sadd.s32 1, %s5065_s26  ;;  %v1246_v39 = vrot.slane %v1245_v28, 4  ;;  %v1259_v40 = vrot.slane %v1258_v32, 4  ;;  %v1272_v61 = vrot.slane %v1271_v41, 4  ;;  %v1285_v6 = vrot.slane %v1284_v48, 4 }
 0x254   : > { %v1143_v17 = vstv %s8131_s1  ;;  %s5407_s21 = sld [smem:[#allocation5 + %s8132_s9]]  ;;  %s5410_s13 = sadd.s32 6, %s4911_s5 }
 0x255   : > { %s8134_s1 = sadd.s32 2, %s8037_s2  ;;  %p5427_p3 = pnand %p1530_p2, %p1529_p1  ;;  %vm1144_vm8 = vcmp.eq.s32.totalorder %v1143_v17, 1  ;;  %v1247_v57 = vmax.f32 %v1245_v28, %v1246_v39  ;;  %v1260_v52 = vmax.f32 %v1258_v32, %v1259_v40  ;;  %v1273_v3 = vmax.f32 %v1271_v41, %v1272_v61 }
 0x256   : > { %s5421_s9 = sld [smem:[#allocation3 + %s8134_s1]]  ;;  %v1145_v13 = vsel %vm1144_vm8, 0.0, %v1140_v9  ;;  %p8143_p1 = scmp.le.s32.totalorder %s5290_s24, 0  ;;  %v1301_v17 = vstv %s4779_s6  ;;  %v1286_v21 = vmax.f32 %v1284_v48, %v1285_v6 }
 0x257   : > { %s8135_s26 = scalar_select %p5427_p3, 1, 0  ;;  %v1146_v33 = vadd.f32 %v1145_v13, %v1133_v20  ;;  %v1248_v60 = vrot.slane %v1247_v57, 2  ;;  %v1261_v63 = vrot.slane %v1260_v52, 2  ;;  %vm1302_vm15 = vcmp.lt.s32.totalorder %v4164_v42, %v1301_v17 }
 0x258   : > { %s8137_s27 = scalar_select %p4702_p7, 1, 0  ;;  %vm5579_vm1 = vmand %vm1300_vm14, %vm1302_vm15  ;;  %v1287_v32 = vrot.slane %v1286_v21, 2 }
 0x259   : > { %8136 = sst [smem:[#allocation35_spill]] %s8135_s26  ;;  %p8145_p6 = scmp.le.s32.totalorder %s5290_s24, 1  ;;  %v1249_v16 = vmax.f32 %v1247_v57, %v1248_v60  ;;  %v1262_v29 = vmax.f32 %v1260_v52, %v1261_v63  ;;  %v1320_v34 = vsel %vm5579_vm1, %v5242_v2, -inf  ;;  %v5701_v12 = vsel %vm5579_vm1, %v5262_v5, -inf }
 0x25a   : > { %v1156_v55 = vstv %s8137_s27  ;;  %s8140_s2 = sld [smem:[#allocation55_spill]]  ;;  %p1545_p7 = scmp.gt.s32.totalorder %s5407_s21, 0  ;;  %v1321_v47 = vrot.slane %v1320_v34, 4 }
 0x25b   : > { %p1553_p2 = scmp.gt.s32.totalorder %s5407_s21, 1  ;;  %vm1157_vm10 = vcmp.eq.s32.totalorder %v1156_v55, 1  ;;  %p1562_p10 = scmp.gt.s32.totalorder %s5407_s21, 2  ;;  %v1250_v11 = vrot.slane %v1249_v16, 1  ;;  %v1274_v55 = vrot.slane %v1273_v3, 2  ;;  %v1263_v18 = vrot.slane %v1262_v29, 1 }
 0x25c   : > { %p5459_p8 = pnand %p1545_p7, %p8143_p1  ;;  %s8147_s26 = sld [smem:[#allocation56_spill]]  ;;  %v1158_v37 = vsel %vm1157_vm10, 0.0, %v1153_v25  ;;  %v5711_v63 = vmax.f32 %v1320_v34, %v1321_v47 }
 0x25d   : > { %p5465_p12 = pnand %p1553_p2, %p8145_p6  ;;  %p8151_p6 = scmp.le.s32.totalorder %s5290_s24, 3  ;;  %v1159_v44 = vadd.f32 %v1158_v37, %v1146_v33  ;;  %v1251_v27 = vmax.f32 %v1249_v16, %v1250_v11  ;;  %v5593_v28 = vmax.f32 %v1273_v3, %v1274_v55  ;;  %v1307_v33 = vsel %vm5579_vm1, %v5191_v56, -inf }
 0x25e   : > { %p8152_p1 = scmp.gt.s32.totalorder %s5407_s21, 3  ;;  %s8155_s29 = sld [smem:[#allocation57_spill]] }
 0x25f   : > { %p1597_p2 = scmp.le.s32.totalorder %s5290_s24, 6  ;;  %p8160_p9 = scmp.le.s32.totalorder %s5290_s24, 4 }
 0x260   : > { %p8141_p3 = scmp.ne.s32.totalorder %s8140_s2, 0  ;;  %p5480_p7 = pnand %p8152_p1, %p8151_p6 }
 0x261   : > { %s8175_s6 = scalar_select %p4883_p0, 1, 0 }
 0x262   : > { %s8142_s23 = scalar_select %p8141_p3, 1, 0 }
 0x263   : > { %p8148_p3 = scmp.le.s32.totalorder %s5290_s24, 2  ;;  %v1254_v8 = vstv %s8175_s6  ;;  %s5570_s14 = sld [smem:[#allocation4 + %s4911_s5]] }
 0x264   : > { %v1169_v31 = vstv %s8142_s23  ;;  %s8153_s3 = scalar_select %p5480_p7, 1, 0  ;;  %vm1255_vm2 = vcmp.eq.s32.totalorder %v1254_v8, 1 }
 0x265   : > { %p5471_p11 = pnand %p1562_p10, %p8148_p3  ;;  %vm1170_vm6 = vcmp.eq.s32.totalorder %v1169_v31, 1  ;;  %p8156_p10 = scmp.ne.s32.totalorder %s8147_s26, 0  ;;  %v1264_v31 = vmax.f32 %v1262_v29, %v1263_v18  ;;  %v1256_v40 = vsel %vm1255_vm2, 0.0, %v1251_v27 }
 0x266   : > { %8154 = sst [smem:[#allocation32_spill]] %s8153_s3  ;;  %v1171_v53 = vsel %vm1170_vm6, 0.0, %v1166_v30  ;;  %p1580_p3 = scmp.gt.s32.totalorder %s5407_s21, 4 }
 0x267   : > { %s8149_s2 = scalar_select %p5471_p11, 1, 0  ;;  %v1172_v58 = vadd.f32 %v1171_v53, %v1159_v44  ;;  %v1308_v44 = vrot.slane %v1307_v33, 4 }
 0x268   : > { %s8157_s23 = scalar_select %p8156_p10, 1, 0 }
 0x269   : > { %8150 = sst [smem:[#allocation31_spill]] %s8149_s2  ;;  %p8158_p1 = scmp.ne.s32.totalorder %s8155_s29, 0  ;;  %v5709_v61 = vmax.f32 %v1307_v33, %v1308_v44 }
 0x26a   : > { %v1192_v43 = vstv %s8157_s23  ;;  %p1589_p10 = scmp.gt.s32.totalorder %s5407_s21, 5  ;;  %s8161_s23 = sld [smem:[#allocation58_spill]] }
 0x26b   : > { %vm1193_vm11 = vcmp.eq.s32.totalorder %v1192_v43, 1  ;;  %s8159_s26 = scalar_select %p8158_p1, 1, 0  ;;  %v1276_v43 = vrot.slane %v5593_v28, 1 }
 0x26c   : > { %p5506_p11 = pnand %p1580_p3, %p8160_p9  ;;  %v1194_v46 = vsel %vm1193_vm11, 0.0, %v1189_v54  ;;  %p8164_p9 = scmp.le.s32.totalorder %s5290_s24, 5  ;;  %v5675_v54 = vmax.f32 %v1286_v21, %v1287_v32 }
 0x26d   : > { %v1205_v1 = vstv %s8159_s26  ;;  %p1606_p1 = scmp.le.s32.totalorder %s5290_s24, 7  ;;  %p8168_p7 = scmp.gt.s32.totalorder %s5407_s21, 6  ;;  %v1195_v14 = vadd.f32 %v1194_v46, %v1172_v58 }
 0x26e   : > { %s8162_s7 = scalar_select %p5506_p11, 1, 0  ;;  %vm1206_vm12 = vcmp.eq.s32.totalorder %v1205_v1, 1 }
 0x26f   : > { %p5517_p3 = pnand %p1589_p10, %p8164_p9  ;;  %p5534_p10 = pnand %p8168_p7, %p1597_p2  ;;  %v1207_v23 = vsel %vm1206_vm12, 0.0, %v1202_v45 }
 0x270   : > { %8163 = sst [smem:[#allocation48_spill]] %s8162_s7  ;;  %p8166_p6 = scmp.ne.s32.totalorder %s8161_s23, 0  ;;  %v1208_v62 = vadd.f32 %v1207_v23, %v1195_v14  ;;  %v1334_v14 = vrot.slane %v5701_v12, 4 }
 0x271   : > { %s8165_s26 = scalar_select %p5517_p3, 1, 0 }
 0x272   : > { %s8167_s29 = scalar_select %p8166_p6, 1, 0 }
 0x273   : > { %s8169_s11 = scalar_select %p5534_p10, 1, 0 }
 0x274   : > { %v1218_v0 = vstv %s8167_s29  ;;  %p1607_p9 = scmp.gt.s32.totalorder %s5407_s21, 7  ;;  %s8170_s7 = sld [smem:[#allocation61_spill]] }
 0x275   : > { %s5541_s29 = sld [smem:[#allocation5 + %s5410_s13]]  ;;  %vm1219_vm13 = vcmp.eq.s32.totalorder %v1218_v0, 1  ;;  %s8172_s2 = sadd.s32 1, %s5410_s13 }
 0x276   : > { %p5551_p7 = pnand %p1607_p9, %p1606_p1  ;;  %s5557_s23 = sld [smem:[#allocation5 + %s8172_s2]]  ;;  %v1220_v9 = vsel %vm1219_vm13, 0.0, %v1215_v59 }
 0x277   : > { %v1221_v24 = vadd.f32 %v1220_v9, %v1208_v62  ;;  %s8185_s2 = sshll.u32 %s5421_s9, 6  ;;  %p8195_p11 = scmp.ne.s32.totalorder %s7982_s20, 0 }
 0x278   : > { %s8171_s3 = scalar_select %p5551_p7, 1, 0 }
 0x279   : > { %s5617_s6 = scalar_lea.vmem [#allocation6], %s8185_s2  ;;  %s8209_s1 = sld [smem:[#allocation31_spill]] }
 0x27a   : > { %p8173_p2 = scmp.ne.s32.totalorder %s8170_s7, 0  ;;  %v5620_v56 = vld [vmem:[%s5617_s6] sm:$0xff]  ;;  %v5623_v35 = vld [vmem:[%s5617_s6 + $0x8] sm:$0xff]  ;;  %v5678_v57 = vld [vmem:[%s5617_s6 + $0x10] sm:$0xff]  ;;  %s8214_s12 = sld [smem:[#allocation73_spill]] }
 0x27b   : > { %p1629_p6 = scmp.le.s32.totalorder %s5541_s29, 1  ;;  %p8192_p7 = scmp.le.s32.totalorder %s5541_s29, 3  ;;  %v5724_v0 = vld [vmem:[%s5617_s6 + $0x18] sm:$0xff]  ;;  %v5768_v62 = vld [vmem:[%s5617_s6 + $0x20] sm:$0xff]  ;;  %v5866_v44 = vld [vmem:[%s5617_s6 + $0x30] sm:$0xff] }
 0x27c   : > { %s8174_s25 = scalar_select %p8173_p2, 1, 0 }
 0x27d   : > { %s8179_s7 = scalar_select %p5134_p13, 0, 1 }
 0x27e   : > { %v1231_v7 = vstv %s8174_s25  ;;  %s8176_s25 = scalar_select %p4893_p5, 1, 0 }
 0x27f   : > { %vm1232_vm0 = vcmp.eq.s32.totalorder %v1231_v7, 1  ;;  %v1394_v13 = vstv %s8179_s7  ;;  %p8180_p5 = scmp.ne.s32.totalorder %s8068_s10, 0  ;;  %p1622_p2 = scmp.gt.s32.totalorder %s5557_s23, 0 }
 0x280   : > { %v1267_v20 = vstv %s8176_s25  ;;  %p1630_p0 = scmp.gt.s32.totalorder %s5557_s23, 1  ;;  %v1233_v26 = vsel %vm1232_vm0, 0.0, %v1228_v10  ;;  %p1639_p9 = scmp.gt.s32.totalorder %s5557_s23, 2  ;;  %vm1395_vm4 = vcmp.eq.s32.totalorder %v1394_v13, 1 }
 0x281   : > { %s8181_s18 = scalar_select %p8180_p5, 0, 1  ;;  %vm1268_vm3 = vcmp.eq.s32.totalorder %v1267_v20, 1  ;;  %v1234_v37 = vadd.f32 %v1233_v26, %v1221_v24  ;;  %v1396_v50 = vsel %vm1395_vm4, %v5620_v56, -inf }
 0x282   : > { %p8182_p5 = scmp.le.s32.totalorder %s5541_s29, 0  ;;  %p5611_p13 = pnand %p1630_p0, %p1629_p6  ;;  %v5673_v53 = vsel %vm1268_vm3, 0.0, %v1264_v31 }
 0x283   : > { %v1402_v25 = vstv %s8181_s18  ;;  %p8190_p0 = scmp.le.s32.totalorder %s5541_s29, 2  ;;  %p8193_p10 = scmp.gt.s32.totalorder %s5557_s23, 3  ;;  %v5685_v52 = vadd.f32 %v1256_v40, %v1234_v37 }
 0x284   : > { %p5605_p1 = pnand %p1622_p2, %p8182_p5  ;;  %vm1403_vm5 = vcmp.eq.s32.totalorder %v1402_v25, 1  ;;  %p8186_p2 = scmp.ne.s32.totalorder %s8107_s8, 0  ;;  %v5814_v25 = vld [vmem:[%s5617_s6 + $0x28] sm:$0xff] }
 0x285   : > { %p8188_p5 = scmp.ne.s32.totalorder %s8110_s30, 0  ;;  %p5635_p6 = pnand %p1639_p9, %p8190_p0  ;;  %v1404_v51 = vsel %vm1403_vm5, %v5623_v35, -inf }
 0x286   : > { %s8187_s25 = scalar_select %p8186_p2, 0, 1  ;;  %v1405_v19 = vmax.f32 %v1396_v50, %v1404_v51 }
 0x287   : > { %s8189_s7 = scalar_select %p8188_p5, 0, 1 }
 0x288   : > { %v1472_v2 = vstv %s8187_s25  ;;  %p5643_p3 = pnand %p8193_p10, %p8192_p7  ;;  %p8197_p2 = scmp.ne.s32.totalorder %s7990_s4, 0 }
 0x289   : > { %v1480_v36 = vstv %s8189_s7  ;;  %s8196_s8 = scalar_select %p8195_p11, 1, 0  ;;  %vm1473_vm7 = vcmp.eq.s32.totalorder %v1472_v2, 1 }
 0x28a   : > { %s8198_s30 = scalar_select %p8197_p2, 1, 0  ;;  %vm1481_vm8 = vcmp.eq.s32.totalorder %v1480_v36, 1  ;;  %v1474_v46 = vsel %vm1473_vm7, %v5620_v56, -inf }
 0x28b   : > { %v5650_v30 = vstv %s8196_s8  ;;  %p8199_p9 = scmp.ne.s32.totalorder %s8069_s15, 0  ;;  %p8201_p11 = scmp.ne.s32.totalorder %s8116_s22, 0  ;;  %v1482_v60 = vsel %vm1481_vm8, %v5623_v35, -inf }
 0x28c   : > { %v5655_v38 = vstv %s8198_s30  ;;  %s2937_s25 = scalar_select %p5605_p1, 0, 1  ;;  %v1483_v59 = vmax.f32 %v1474_v46, %v1482_v60 }
 0x28d   : > { %s8200_s2 = scalar_select %p8199_p9, 0, 1 }
 0x28e   : > { %s2938_s4 = scalar_select %p5611_p13, 0, 1  ;;  %v1626_v4 = vstv %s2937_s25 }
 0x28f   : > { %v1411_v39 = vstv %s8200_s2  ;;  %s2939_s20 = scalar_select %p5635_p6, 0, 1  ;;  %vm1627_vm0 = vcmp.eq.s32.totalorder %v1626_v4, 1 }
 0x290   : > { %vm1412_vm9 = vcmp.eq.s32.totalorder %v1411_v39, 1  ;;  %s8202_s15 = scalar_select %p8201_p11, 0, 1  ;;  %v1634_v17 = vstv %s2938_s4  ;;  %v1628_v27 = vsel %vm1627_vm0, %v5620_v56, -inf }
 0x291   : > { %s2940_s7 = scalar_select %p5643_p3, 0, 1  ;;  %v1413_v5 = vsel %vm1412_vm9, %v5678_v57, -inf  ;;  %vm1635_vm2 = vcmp.eq.s32.totalorder %v1634_v17, 1  ;;  %v1643_v21 = vstv %s2939_s20 }
 0x292   : > { %v1489_v1 = vstv %s8202_s15  ;;  %p8203_p10 = scmp.ne.s32.totalorder %s8084_s28, 0  ;;  %p1656_p7 = scmp.le.s32.totalorder %s5541_s29, 4  ;;  %v1414_v16 = vmax.f32 %v1405_v19, %v1413_v5  ;;  %v1636_v31 = vsel %vm1635_vm2, %v5623_v35, -inf  ;;  %vm1644_vm7 = vcmp.eq.s32.totalorder %v1643_v21, 1 }
 0x293   : > { %s8205_s30 = scalar_select %p5459_p8, 0, 1  ;;  %vm1490_vm10 = vcmp.eq.s32.totalorder %v1489_v1, 1  ;;  %v1652_v36 = vstv %s2940_s7  ;;  %v1637_v40 = vmax.f32 %v1628_v27, %v1636_v31  ;;  %v1645_v50 = vsel %vm1644_vm7, %v5678_v57, -inf }
 0x294   : > { %s8204_s8 = scalar_select %p8203_p10, 0, 1  ;;  %v1491_v3 = vsel %vm1490_vm10, %v5678_v57, -inf  ;;  %v1277_v31 = vmax.f32 %v5593_v28, %v1276_v43  ;;  %v1323_v28 = vrot.slane %v5711_v63, 2  ;;  %v1335_v43 = vmax.f32 %v5701_v12, %v1334_v14 }
 0x295   : > { %v1549_v58 = vstv %s8205_s30  ;;  %s8206_s2 = scalar_select %p5465_p12, 0, 1  ;;  %v1492_v10 = vmax.f32 %v1483_v59, %v1491_v3  ;;  %v1646_v22 = vmax.f32 %v1637_v40, %v1645_v50  ;;  %v1695_v3 = vstv %s5570_s14 }
 0x296   : > { %v1420_v41 = vstv %s8204_s8  ;;  %p1657_p5 = scmp.gt.s32.totalorder %s5557_s23, 4  ;;  %p1665_p12 = scmp.le.s32.totalorder %s5541_s29, 5  ;;  %vm1550_vm11 = vcmp.eq.s32.totalorder %v1549_v58, 1 }
 0x297   : > { %v1557_v45 = vstv %s8206_s2  ;;  %p1666_p8 = scmp.gt.s32.totalorder %s5557_s23, 5  ;;  %s8207_s28 = sld [smem:[#allocation27_spill]]  ;;  %vm1421_vm6 = vcmp.eq.s32.totalorder %v1420_v41, 1  ;;  %v1551_v6 = vsel %vm1550_vm11, %v5620_v56, -inf  ;;  %v5904_v41 = vsel %vm5579_vm1, %v5292_v15, -inf }
 0x298   : > { %s8208_s22 = sld [smem:[#allocation65_spill]]  ;;  %p5715_p0 = pnand %p1657_p5, %p1656_p7  ;;  %vm1558_vm12 = vcmp.eq.s32.totalorder %v1557_v45, 1  ;;  %v1422_v29 = vsel %vm1421_vm6, %v5724_v0, -inf  ;;  %vm1653_vm6 = vcmp.eq.s32.totalorder %v1652_v36, 1 }
 0x299   : > { %s8211_s15 = sadd.s32 1, %s4911_s5  ;;  %s8213_s2 = sld [smem:[#allocation40_spill]]  ;;  %v1559_v7 = vsel %vm1558_vm12, %v5623_v35, -inf  ;;  %v1423_v55 = vmax.f32 %v1414_v16, %v1422_v29  ;;  %v1654_v5 = vsel %vm1653_vm6, %v5724_v0, -inf }
 0x29a   : > { %s5721_s8 = sld [smem:[#allocation4 + %s8211_s15]]  ;;  %p1674_p2 = scmp.le.s32.totalorder %s5541_s29, 6  ;;  %v1560_v20 = vmax.f32 %v1551_v6, %v1559_v7  ;;  %v1655_v7 = vmax.f32 %v1646_v22, %v1654_v5 }
 0x29b   : > { %s8212_s30 = scalar_select %p5361_p4, 0, 1 }
 0x29c   : > { %p1675_p9 = scmp.gt.s32.totalorder %s5557_s23, 6  ;;  %p8215_p11 = scmp.ne.s32.totalorder %s8086_s19, 0 }
 0x29d   : > { %v1498_v48 = vstv %s8212_s30  ;;  %p8217_p7 = scmp.ne.s32.totalorder %s8209_s1, 0  ;;  %s8219_s15 = sld [smem:[#allocation33_spill]] }
 0x29e   : > { %s8216_s5 = scalar_select %p8215_p11, 0, 1  ;;  %vm1499_vm13 = vcmp.eq.s32.totalorder %v1498_v48, 1  ;;  %v5930_v48 = vld [vmem:[%s5617_s6 + $0x38] sm:$0xff] }
 0x29f   : > { %p7529_p10 = scmp.le.s32.totalorder %s8208_s22, %s8207_s28  ;;  %s8220_s30 = sld [smem:[#allocation42_spill]]  ;;  %v1500_v18 = vsel %vm1499_vm13, %v5724_v0, -inf  ;;  %vm1281_vm13 = vcmp.eq.s32.totalorder %v5650_v30, 1  ;;  %v1336_v30 = vrot.slane %v1335_v43, 2 }
 0x2a0   : > { %v1429_v23 = vstv %s8216_s5  ;;  %s8218_s16 = scalar_select %p8217_p7, 0, 1  ;;  %v1501_v33 = vmax.f32 %v1492_v10, %v1500_v18  ;;  %v1697_v4 = vstv %s5721_s8 }
 0x2a1   : > { %p5744_p4 = pnand %p1666_p8, %p1665_p12  ;;  %s8222_s19 = sld [smem:[#allocation32_spill]]  ;;  %vm1430_vm14 = vcmp.eq.s32.totalorder %v1429_v23, 1 }
 0x2a2   : > { %v1566_v49 = vstv %s8218_s16  ;;  %s2941_s1 = scalar_select %p5715_p0, 0, 1  ;;  %v1431_v24 = vsel %vm1430_vm14, %v5768_v62, -inf }
 0x2a3   : > { %p7521_p5 = scmp.le.s32.totalorder %s8214_s12, %s8213_s2  ;;  %p1683_p1 = scmp.le.s32.totalorder %s5541_s29, 7  ;;  %vm1567_vm15 = vcmp.eq.s32.totalorder %v1566_v49, 1  ;;  %v1432_v56 = vmax.f32 %v1423_v55, %v1431_v24  ;;  %v1310_v55 = vrot.slane %v5709_v61, 2 }
 0x2a4   : > { %p8223_p13 = scmp.ne.s32.totalorder %s8219_s15, 0  ;;  %p5780_p8 = pnand %p1675_p9, %p1674_p2  ;;  %v1568_v13 = vsel %vm1567_vm15, %v5678_v57, -inf  ;;  %v1661_v19 = vstv %s2941_s1 }
 0x2a5   : > { %p8225_p12 = scmp.ne.s32.totalorder %s8220_s30, 0  ;;  %p1684_p11 = scmp.gt.s32.totalorder %s5557_s23, 7  ;;  %v1569_v2 = vmax.f32 %v1560_v20, %v1568_v13  ;;  %vm1662_vm14 = vcmp.eq.s32.totalorder %v1661_v19, 1 }
 0x2a6   : > { %s8224_s17 = scalar_select %p8223_p13, 0, 1 }
 0x2a7   : > { %s8226_s10 = scalar_select %p8225_p12, 0, 1 }
 0x2a8   : > { %v1438_v8 = vstv %s8224_s17  ;;  %p8228_p7 = scmp.ne.s32.totalorder %s8222_s19, 0  ;;  %s8230_s5 = sld [smem:[#allocation26_spill]] }
 0x2a9   : > { %v1507_v9 = vstv %s8226_s10  ;;  %s8231_s15 = sld [smem:[#allocation29_spill]]  ;;  %p7524_p2 = scmp.le.s32.totalorder %s5407_s21, %s5290_s24  ;;  %vm1439_vm3 = vcmp.eq.s32.totalorder %v1438_v8, 1 }
 0x2aa   : > { %s8229_s4 = scalar_select %p8228_p7, 0, 1  ;;  %vm1508_vm4 = vcmp.eq.s32.totalorder %v1507_v9, 1  ;;  %v1440_v37 = vsel %vm1439_vm3, %v5814_v25, -inf  ;;  %v1663_v9 = vsel %vm1662_vm14, %v5768_v62, -inf  ;;  %vm5972_vm3 = vcmp.ge.s32.totalorder %v4164_v42, %v1695_v3 }
 0x2ab   : > { %s8232_s30 = sld [smem:[#allocation48_spill]]  ;;  %p1700_p9 = scmp.le.s32.totalorder %s5721_s8, %s5570_s14  ;;  %v1509_v35 = vsel %vm1508_vm4, %v5768_v62, -inf  ;;  %v1441_v46 = vmax.f32 %v1432_v56, %v1440_v37  ;;  %vm5977_vm4 = vcmp.lt.s32.totalorder %v4164_v42, %v1697_v4  ;;  %v1664_v27 = vmax.f32 %v1655_v7, %v1663_v9 }
 0x2ac   : > { %v1575_v11 = vstv %s8229_s4  ;;  %p5807_p13 = pnand %p1684_p11, %p1683_p1  ;;  %p7523_p6 = scmp.le.s32.totalorder %s5557_s23, %s5541_s29  ;;  %v1510_v51 = vmax.f32 %v1501_v33, %v1509_v35  ;;  %vm6031_vm7 = vmand %vm5972_vm3, %vm5977_vm4  ;;  %v1311_v56 = vmax.f32 %v5709_v61, %v1310_v55  ;;  %v1270_v37 = vadd.f32 %v5673_v53, %v5685_v52 }
 0x2ad   : > { %s8236_s19 = sld [smem:[#allocation64_spill]]  ;;  %vm1576_vm5 = vcmp.eq.s32.totalorder %v1575_v11, 1  ;;  %p5837_p7 = por %p1700_p9, %p7529_p10  ;;  %v1324_v53 = vmax.f32 %v5711_v63, %v1323_v28 }
 0x2ae   : > { %p8234_p12 = scmp.ne.s32.totalorder %s8230_s5, 0  ;;  %s8241_s5 = sld [smem:[#allocation51_spill]]  ;;  %v1577_v39 = vsel %vm1576_vm5, %v5724_v0, -inf }
 0x2af   : > { %p8237_p1 = scmp.ne.s32.totalorder %s8231_s15, 0  ;;  %s8243_s15 = sld [smem:[#allocation47_spill]]  ;;  %v1578_v45 = vmax.f32 %v1569_v2, %v1577_v39  ;;  %v1282_v39 = vsel %vm1281_vm13, 0.0, %v1277_v31 }
 0x2b0   : > { %s8235_s20 = scalar_select %p8234_p12, 0, 1 }
 0x2b1   : > { %s8238_s10 = scalar_select %p8237_p1, 0, 1 }
 0x2b2   : > { %v1516_v26 = vstv %s8235_s20  ;;  %p8239_p11 = scmp.ne.s32.totalorder %s8232_s30, 0  ;;  %p5852_p12 = por %p1700_p9, %p7521_p5 }
 0x2b3   : > { %v1447_v32 = vstv %s8238_s10  ;;  %s5857_s10 = sld [smem:[#allocation4 + %s8236_s19]]  ;;  %vm1517_vm8 = vcmp.eq.s32.totalorder %v1516_v26, 1  ;;  %p5879_p1 = por %p1700_p9, %p7524_p2 }
 0x2b4   : > { %s8240_s4 = scalar_select %p8239_p11, 0, 1  ;;  %vm1448_vm9 = vcmp.eq.s32.totalorder %v1447_v32, 1  ;;  %v1518_v58 = vsel %vm1517_vm8, %v5814_v25, -inf  ;;  %v1289_v32 = vrot.slane %v5675_v54, 1 }
 0x2b5   : > { %p8245_p3 = scmp.ne.s32.totalorder %s8241_s5, 0  ;;  %p5889_p11 = por %p1700_p9, %p7523_p6  ;;  %v1449_v60 = vsel %vm1448_vm9, %v5866_v44, -inf  ;;  %v1519_v23 = vmax.f32 %v1510_v51, %v1518_v58  ;;  %vm1294_vm9 = vcmp.eq.s32.totalorder %v5655_v38, 1 }
 0x2b6   : > { %v1584_v34 = vstv %s8240_s4  ;;  %s8247_s4 = scalar_select %p5879_p1, 1, 0  ;;  %v1450_v17 = vmax.f32 %v1441_v46, %v1449_v60  ;;  %v1290_v40 = vmax.f32 %v5675_v54, %v1289_v32  ;;  %v1312_v54 = vrot.slane %v1311_v56, 1 }
 0x2b7   : > { %s8246_s7 = scalar_select %p8245_p3, 0, 1  ;;  %vm1585_vm10 = vcmp.eq.s32.totalorder %v1584_v34, 1 }
 0x2b8   : > { %8248 = sst [smem:[#allocation50_spill]] %s8247_s4  ;;  %p8251_p3 = scmp.ne.s32.totalorder %s8243_s15, 0  ;;  %v1586_v15 = vsel %vm1585_vm10, %v5768_v62, -inf  ;;  %v1295_v58 = vsel %vm1294_vm9, 0.0, %v1290_v40  ;;  %v1313_v60 = vmax.f32 %v1311_v56, %v1312_v54 }
 0x2b9   : > { %v1456_v47 = vstv %s8246_s7  ;;  %s8250_s5 = sld [smem:[#allocation25_spill]]  ;;  %p8253_p5 = scmp.ne.s32.totalorder %s8165_s26, 0  ;;  %v1587_v16 = vmax.f32 %v1578_v45, %v1586_v15  ;;  %v1325_v45 = vrot.slane %v1324_v53, 1  ;;  %v1337_v15 = vmax.f32 %v1335_v43, %v1336_v30 }
 0x2ba   : > { %s8252_s7 = scalar_select %p8251_p3, 0, 1  ;;  %vm1457_vm1 = vcmp.eq.s32.totalorder %v1456_v47, 1 }
 0x2bb   : > { %s8254_s17 = scalar_select %p8253_p5, 0, 1  ;;  %v1458_v8 = vsel %vm1457_vm1, %v5930_v48, -inf }
 0x2bc   : > { %v1525_v1 = vstv %s8252_s7  ;;  %s8255_s26 = sld [smem:[#allocation35_spill]]  ;;  %s8256_s15 = sadd.s32 1, %s8236_s19  ;;  %v5995_v24 = vmax.f32 %v1450_v17, %v1458_v8  ;;  %v1326_v17 = vmax.f32 %v1324_v53, %v1325_v45 }
 0x2bd   : > { %v1593_v57 = vstv %s8254_s17  ;;  %s5919_s7 = sld [smem:[#allocation4 + %s8256_s15]]  ;;  %vm1526_vm11 = vcmp.eq.s32.totalorder %v1525_v1, 1  ;;  %p8262_p5 = scmp.ne.s32.totalorder %s8169_s11, 0  ;;  %v1283_v1 = vadd.f32 %v1282_v39, %v1270_v37 }
 0x2be   : > { %s8258_s1 = sld [smem:[#allocation49_spill]]  ;;  %vm1594_vm12 = vcmp.eq.s32.totalorder %v1593_v57, 1  ;;  %v1527_v29 = vsel %vm1526_vm11, %v5866_v44, -inf  ;;  %p8277_p3 = scmp.le.s32.totalorder %s8214_s12, %s8213_s2  ;;  %v1703_v61 = vsel %vm6031_vm7, %v5995_v24, -inf }
 0x2bf   : > { %s5922_s27 = sadd.s32 24, %s8250_s5  ;;  %s8259_s17 = sld [smem:[#allocation43_spill]]  ;;  %v1595_v6 = vsel %vm1594_vm12, %v5814_v25, -inf  ;;  %v1528_v18 = vmax.f32 %v1519_v23, %v1527_v29  ;;  %v1704_v63 = vrot.slane %v1703_v61, 4  ;;  %v1757_v23 = vstv %s5857_s10 }
 0x2c0   : > { %8257 = sst [smem:[#allocation37_spill]] %s5922_s27  ;;  %s5958_s14 = sadd.s32 2, %s5922_s27  ;;  %v1596_v20 = vmax.f32 %v1587_v16, %v1595_v6  ;;  %v1338_v29 = vrot.slane %v1337_v15, 1  ;;  %vm1758_vm11 = vcmp.ge.s32.totalorder %v4164_v42, %v1757_v23 }
 0x2c1   : > { %s8263_s5 = scalar_select %p8262_p5, 0, 1  ;;  %v1705_v22 = vmax.f32 %v1703_v61, %v1704_v63 }
 0x2c2   : > { %p8260_p0 = scmp.ne.s32.totalorder %s8255_s26, 0  ;;  %8266 = sst [smem:[#allocation28_spill]] %s5958_s14 }
 0x2c3   : > { %v1602_v49 = vstv %s8263_s5  ;;  %s8264_s4 = scalar_select %p5744_p4, 0, 1  ;;  %v1706_v6 = vrot.slane %v1705_v22, 2 }
 0x2c4   : > { %s8261_s19 = scalar_select %p8260_p0, 0, 1  ;;  %vm1603_vm0 = vcmp.eq.s32.totalorder %v1602_v49, 1  ;;  %v1296_v49 = vadd.f32 %v1295_v58, %v1283_v1 }
 0x2c5   : > { %v1670_v0 = vstv %s8264_s4  ;;  %s5946_s6 = sld [smem:[#allocation4 + %s8258_s1]]  ;;  %s8265_s11 = sadd.s32 1, %s8258_s1  ;;  %v1604_v26 = vsel %vm1603_vm0, %v5866_v44, -inf }
 0x2c6   : > { %v1534_v59 = vstv %s8261_s19  ;;  %s5955_s0 = sld [smem:[#allocation4 + %s8265_s11]]  ;;  %s7526_s4 = sadd.s32 1, %s5922_s27  ;;  %vm1671_vm2 = vcmp.eq.s32.totalorder %v1670_v0, 1  ;;  %v1605_v2 = vmax.f32 %v1596_v20, %v1604_v26  ;;  %v1707_v20 = vmax.f32 %v1705_v22, %v1706_v6 }
 0x2c7   : > { %vm1535_vm15 = vcmp.eq.s32.totalorder %v1534_v59, 1  ;;  %s5965_s8 = sld [smem:[#allocation4 + %s5410_s13]]  ;;  %p8267_p4 = scmp.ne.s32.totalorder %s8171_s3, 0  ;;  %v1672_v33 = vsel %vm1671_vm2, %v5814_v25, -inf  ;;  %v1347_v25 = vrot.slane %v5904_v41, 4  ;;  %v1759_v59 = vstv %s5919_s7 }
 0x2c8   : > { %p1762_p9 = scmp.le.s32.totalorder %s5919_s7, %s5857_s10  ;;  %s8273_s3 = sadd.s32 1, %s5410_s13  ;;  %v1536_v13 = vsel %vm1535_vm15, %v5930_v48, -inf  ;;  %v1673_v14 = vmax.f32 %v1664_v27, %v1672_v33  ;;  %vm1760_vm12 = vcmp.lt.s32.totalorder %v4164_v42, %v1759_v59  ;;  %v1708_v43 = vrot.slane %v1707_v20, 1 }
 0x2c9   : > { %s8268_s1 = scalar_select %p8267_p4, 0, 1  ;;  %v6063_v35 = vmax.f32 %v1528_v18, %v1536_v13  ;;  %v1348_v52 = vmax.f32 %v5904_v41, %v1347_v25  ;;  %v1339_v18 = vmax.f32 %v1337_v15, %v1338_v29  ;;  %vm6220_vm13 = vmand %vm1758_vm11, %vm1760_vm12 }
 0x2ca   : > { %s5985_s19 = sld [smem:[#allocation4 + %s8273_s3]]  ;;  %p6017_p0 = por %p1762_p9, %p8277_p3  ;;  %v1765_v33 = vsel %vm6220_vm13, %v5995_v24, -inf  ;;  %v1709_v39 = vmax.f32 %v1707_v20, %v1708_v43 }
 0x2cb   : > { %v1611_v10 = vstv %s8268_s1  ;;  %s8274_s5 = scalar_select %p5780_p8, 0, 1  ;;  %v1716_v50 = vsel %vm6031_vm7, %v6063_v35, -inf  ;;  %v1349_v19 = vrot.slane %v1348_v52, 2  ;;  %v1819_v54 = vstv %s5946_s6 }
 0x2cc   : > { %s5992_s11 = sld [smem:[#allocation5 + %s5922_s27]]  ;;  %p6007_p8 = por %p1762_p9, %p7529_p10  ;;  %vm1612_vm5 = vcmp.eq.s32.totalorder %v1611_v10, 1  ;;  %v1717_v46 = vrot.slane %v1716_v50, 4  ;;  %v1821_v63 = vstv %s5955_s0  ;;  %vm1820_vm3 = vcmp.ge.s32.totalorder %v4164_v42, %v1819_v54 }
 0x2cd   : > { %v1679_v21 = vstv %s8274_s5  ;;  %s8278_s1 = scalar_select %p6017_p0, 1, 0  ;;  %v1613_v12 = vsel %vm1612_vm5, %v5930_v48, -inf  ;;  %v1350_v16 = vmax.f32 %v1348_v52, %v1349_v19  ;;  %vm1822_vm4 = vcmp.lt.s32.totalorder %v4164_v42, %v1821_v63 }
 0x2ce   : > { %s8276_s25 = scalar_select %p6007_p8, 1, 0  ;;  %vm1680_vm8 = vcmp.eq.s32.totalorder %v1679_v21, 1  ;;  %v1718_v0 = vmax.f32 %v1716_v50, %v1717_v46 }
 0x2cf   : > { %p6041_p5 = por %p1762_p9, %p7524_p2  ;;  %p6051_p4 = por %p1762_p9, %p7523_p6  ;;  %v1681_v47 = vsel %vm1680_vm8, %v5866_v44, -inf  ;;  %v6094_v44 = vmax.f32 %v1605_v2, %v1613_v12  ;;  %v1351_v10 = vrot.slane %v1350_v16, 1  ;;  %v1766_v2 = vrot.slane %v1765_v33, 4 }
 0x2d0   : > { %s8285_s15 = scalar_select %p5807_p13, 0, 1  ;;  %v1682_v51 = vmax.f32 %v1673_v14, %v1681_v47  ;;  %v1719_v11 = vrot.slane %v1718_v0, 2 }
 0x2d1   : > { %s8281_s3 = scalar_select %p6041_p5, 1, 0  ;;  %v1729_v38 = vsel %vm6031_vm7, %v6094_v44, -inf  ;;  %v1352_v28 = vmax.f32 %v1350_v16, %v1351_v10  ;;  %v1767_v30 = vmax.f32 %v1765_v33, %v1766_v2  ;;  %v1791_v52 = vsel %vm6220_vm13, %v6094_v44, -inf }
 0x2d2   : > { %8275 = sst [smem:[#allocation41_spill]] %s5992_s11  ;;  %v1688_v36 = vstv %s8285_s15  ;;  %p1824_p13 = scmp.le.s32.totalorder %s5955_s0, %s5946_s6  ;;  %v1730_v3 = vrot.slane %v1729_v38, 4  ;;  %v1720_v31 = vmax.f32 %v1718_v0, %v1719_v11  ;;  %v1792_v19 = vrot.slane %v1791_v52, 4 }
 0x2d3   : > { %8282 = sst [smem:[#allocation52_spill]] %s8281_s3  ;;  %vm1689_vm10 = vcmp.eq.s32.totalorder %v1688_v36, 1  ;;  %p8290_p2 = pmov %p8277_p3  ;;  %v1778_v36 = vsel %vm6220_vm13, %v6063_v35, -inf  ;;  %v1768_v46 = vrot.slane %v1767_v30, 2 }
 0x2d4   : > { %s8283_s5 = scalar_select %p6051_p4, 1, 0  ;;  %v1690_v41 = vsel %vm1689_vm10, %v5930_v48, -inf  ;;  %v1731_v62 = vmax.f32 %v1729_v38, %v1730_v3  ;;  %v1721_v14 = vrot.slane %v1720_v31, 1  ;;  %v1779_v53 = vrot.slane %v1778_v36, 4 }
 0x2d5   : > { %s8286_s15 = sld [smem:[#allocation62_spill]]  ;;  %p6108_p6 = por %p1824_p13, %p7529_p10  ;;  %v6155_v5 = vmax.f32 %v1682_v51, %v1690_v41  ;;  %v1769_v0 = vmax.f32 %v1767_v30, %v1768_v46 }
 0x2d6   : > { %8284 = sst [smem:[#allocation38_spill]] %s8283_s5  ;;  %p6118_p4 = por %p1824_p13, %p8290_p2  ;;  %v1732_v32 = vrot.slane %v1731_v62, 2  ;;  %v1722_v51 = vmax.f32 %v1720_v31, %v1721_v14  ;;  %v1780_v45 = vmax.f32 %v1778_v36, %v1779_v53 }
 0x2d7   : > { %s6092_s13 = sld [smem:[#allocation5 + %s7526_s4]]  ;;  %p8295_p3 = scmp.le.s32.totalorder %s5407_s21, %s5290_s24  ;;  %v1742_v7 = vsel %vm6031_vm7, %v6155_v5, -inf  ;;  %vm6322_vm7 = vmand %vm1820_vm3, %vm1822_vm4  ;;  %v1770_v10 = vrot.slane %v1769_v0, 1 }
 0x2d8   : > { %s8288_s9 = scalar_select %p6108_p6, 1, 0  ;;  %v1743_v21 = vrot.slane %v1742_v7, 4  ;;  %v1733_v61 = vmax.f32 %v1731_v62, %v1732_v32  ;;  %v1781_v59 = vrot.slane %v1780_v45, 2  ;;  %v1840_v62 = vsel %vm6322_vm7, %v6063_v35, -inf }
 0x2d9   : > { %s8291_s4 = scalar_select %p6118_p4, 1, 0  ;;  %v1841_v32 = vrot.slane %v1840_v62, 4  ;;  %v1853_v33 = vsel %vm6322_vm7, %v6094_v44, -inf  ;;  %v1866_v2 = vsel %vm6322_vm7, %v6155_v5, -inf }
 0x2da   : > { %8289 = sst [smem:[#allocation30_spill]] %s8288_s9  ;;  %p6132_p9 = por %p1824_p13, %p8295_p3  ;;  %v1744_v25 = vmax.f32 %v1742_v7, %v1743_v21  ;;  %v1734_v1 = vrot.slane %v1733_v61, 1  ;;  %v1782_v7 = vmax.f32 %v1780_v45, %v1781_v59  ;;  %v1867_v53 = vrot.slane %v1866_v2, 4 }
 0x2db   : > { %8292 = sst [smem:[#allocation34_spill]] %s8291_s4  ;;  %p8293_p5 = scmp.ne.s32.totalorder %s8286_s15, 0  ;;  %v1842_v14 = vmax.f32 %v1840_v62, %v1841_v32 }
 0x2dc   : > { %s8296_s16 = sld [smem:[#allocation63_spill]]  ;;  %p8298_p10 = scmp.le.s32.totalorder %s5557_s23, %s5541_s29  ;;  %v1745_v40 = vrot.slane %v1744_v25, 2  ;;  %v1735_v38 = vmax.f32 %v1733_v61, %v1734_v1  ;;  %v1783_v21 = vrot.slane %v1782_v7, 1  ;;  %v1854_v61 = vrot.slane %v1853_v33, 4 }
 0x2dd   : > { %8287 = sst [smem:[#allocation39_spill]] %s6092_s13  ;;  %s6228_s10 = sadd.s32 4, %s5922_s27  ;;  %v1843_v54 = vrot.slane %v1842_v14, 2  ;;  %v1883_v1 = vstv %s5985_s19 }
 0x2de   : > { %s8294_s26 = scalar_select %p8293_p5, 1, 0  ;;  %v1746_v58 = vmax.f32 %v1744_v25, %v1745_v40  ;;  %v1784_v43 = vmax.f32 %v1782_v7, %v1783_v21  ;;  %v1855_v63 = vmax.f32 %v1853_v33, %v1854_v61  ;;  %vm1884_vm12 = vcmp.lt.s32.totalorder %v4164_v42, %v1883_v1 }
 0x2df   : > { %s8297_s5 = scalar_select %p6132_p9, 1, 0  ;;  %v1844_v46 = vmax.f32 %v1842_v14, %v1843_v54 }
 0x2e0   : > { %v1316_v57 = vstv %s8294_s26  ;;  %p6142_p2 = por %p1824_p13, %p8298_p10  ;;  %s8302_s4 = sld [smem:[#allocation71_spill]]  ;;  %v1747_v23 = vrot.slane %v1746_v58, 1 }
 0x2e1   : > { %vm1317_vm6 = vcmp.eq.s32.totalorder %v1316_v57, 1  ;;  %p8303_p5 = scmp.le.s32.totalorder %s8208_s22, %s8207_s28  ;;  %p8304_p13 = scmp.le.s32.totalorder %s5985_s19, %s5965_s8  ;;  %v1845_v59 = vrot.slane %v1844_v46, 1 }
 0x2e2   : > { %s8299_s3 = scalar_select %p6142_p2, 1, 0  ;;  %v1318_v4 = vsel %vm1317_vm6, 0.0, %v1313_v60  ;;  %v1804_v60 = vsel %vm6220_vm13, %v6155_v5, -inf  ;;  %v1748_v6 = vmax.f32 %v1746_v58, %v1747_v23  ;;  %v1868_v58 = vmax.f32 %v1866_v2, %v1867_v53 }
 0x2e3   : > { %p8300_p10 = scmp.ne.s32.totalorder %s8296_s16, 0  ;;  %p6172_p3 = por %p8304_p13, %p8303_p5  ;;  %v1319_v9 = vadd.f32 %v1318_v4, %v1296_v49  ;;  %v1793_v49 = vmax.f32 %v1791_v52, %v1792_v19  ;;  %v1805_v16 = vrot.slane %v1804_v60, 4  ;;  %v1827_v4 = vsel %vm6322_vm7, %v5995_v24, -inf }
 0x2e4   : > { %p8307_p9 = pmov %p8304_p13  ;;  %p8309_p2 = scmp.le.s32.totalorder %s5407_s21, %s5290_s24  ;;  %v1828_v11 = vrot.slane %v1827_v4, 4 }
 0x2e5   : > { %s8301_s9 = scalar_select %p8300_p10, 1, 0 }
 0x2e6   : > { %p8306_p10 = scmp.le.s32.totalorder %s8214_s12, %s8213_s2  ;;  %p8310_p6 = pmov %p8307_p9  ;;  %v1829_v31 = vmax.f32 %v1827_v4, %v1828_v11 }
 0x2e7   : > { %v1329_v48 = vstv %s8301_s9  ;;  %p8312_p5 = scmp.le.s32.totalorder %s5557_s23, %s5541_s29  ;;  %s8317_s23 = sld [smem:[#allocation72_spill]] }
 0x2e8   : > { %p6182_p4 = por %p8307_p9, %p8306_p10  ;;  %p6192_p0 = por %p8310_p6, %p8309_p2  ;;  %vm1330_vm1 = vcmp.eq.s32.totalorder %v1329_v48, 1 }
 0x2e9   : > { %p8313_p13 = pmov %p8310_p6  ;;  %p8315_p6 = scmp.ne.s32.totalorder %s8302_s4, 0  ;;  %v1331_v55 = vsel %vm1330_vm1, 0.0, %v1326_v17 }
 0x2ea   : > { %s8311_s28 = scalar_select %p6192_p0, 1, 0  ;;  %v1332_v27 = vadd.f32 %v1331_v55, %v1319_v9  ;;  %v1806_v9 = vmax.f32 %v1804_v60, %v1805_v16  ;;  %v1856_v60 = vrot.slane %v1855_v63, 2 }
 0x2eb   : > { %p6202_p8 = por %p8313_p13, %p8312_p5  ;;  %p1972_p9 = scmp.gt.s32.totalorder %s6092_s13, 0 }
 0x2ec   : > { %s8316_s21 = scalar_select %p8315_p6, 1, 0 }
 0x2ed   : > { %s8314_s12 = scalar_select %p6202_p8, 1, 0 }
 0x2ee   : > { %v1342_v8 = vstv %s8316_s21  ;;  %8320 = sst [smem:[#allocation36_spill]] %s6228_s10  ;;  %p8321_p2 = scmp.ne.s32.totalorder %s8317_s23, 0 }
 0x2ef   : > { %vm1343_vm14 = vcmp.eq.s32.totalorder %v1342_v8, 1  ;;  %p1979_p10 = scmp.le.s32.totalorder %s5992_s11, 1  ;;  %p1980_p5 = scmp.gt.s32.totalorder %s6092_s13, 1  ;;  %v1794_v8 = vrot.slane %v1793_v49, 2 }
 0x2f0   : > { %s8322_s7 = scalar_select %p8321_p2, 1, 0  ;;  %v1344_v34 = vsel %vm1343_vm14, 0.0, %v1339_v18 }
 0x2f1   : > { %p8323_p13 = scmp.le.s32.totalorder %s5992_s11, 0  ;;  %p1988_p8 = scmp.le.s32.totalorder %s5992_s11, 2  ;;  %v1345_v12 = vadd.f32 %v1344_v34, %v1332_v27  ;;  %v1795_v13 = vmax.f32 %v1793_v49, %v1794_v8  ;;  %v1771_v27 = vmax.f32 %v1769_v0, %v1770_v10  ;;  %v1857_v49 = vmax.f32 %v1855_v63, %v1856_v60 }
 0x2f2   : > { %v1355_v26 = vstv %s8322_s7  ;;  %p6245_p2 = pnand %p1980_p5, %p1979_p10  ;;  %p1989_p0 = scmp.gt.s32.totalorder %s6092_s13, 2 }
 0x2f3   : > { %p6240_p6 = pnand %p1972_p9, %p8323_p13  ;;  %vm1356_vm15 = vcmp.eq.s32.totalorder %v1355_v26, 1  ;;  %p1998_p10 = scmp.gt.s32.totalorder %s6092_s13, 3  ;;  %v1807_v26 = vrot.slane %v1806_v9, 2  ;;  %v1796_v25 = vrot.slane %v1795_v13, 1  ;;  %v1858_v7 = vrot.slane %v1857_v49, 1 }
 0x2f4   : > { %s8326_s23 = scalar_select %p5837_p7, 1, 0  ;;  %v1357_v37 = vsel %vm1356_vm15, 0.0, %v1352_v28 }
 0x2f5   : > { %p6262_p9 = pnand %p1989_p0, %p1988_p8  ;;  %p1997_p7 = scmp.le.s32.totalorder %s5992_s11, 3  ;;  %v1358_v50 = vadd.f32 %v1357_v37, %v1345_v12  ;;  %v1830_v12 = vrot.slane %v1829_v31, 2  ;;  %v1797_v40 = vmax.f32 %v1795_v13, %v1796_v25 }
 0x2f6   : > { %v1712_v56 = vstv %s8326_s23  ;;  %p2006_p5 = scmp.le.s32.totalorder %s5992_s11, 4  ;;  %p2015_p0 = scmp.le.s32.totalorder %s5992_s11, 5 }
 0x2f7   : > { %s8327_s2 = scalar_select %p6262_p9, 1, 0  ;;  %vm1713_vm0 = vcmp.eq.s32.totalorder %v1712_v56, 1  ;;  %v1808_v56 = vmax.f32 %v1806_v9, %v1807_v26  ;;  %v1831_v52 = vmax.f32 %v1829_v31, %v1830_v12 }
 0x2f8   : > { %s8328_s20 = scalar_select %p5852_p12, 1, 0  ;;  %v1714_v57 = vsel %vm1713_vm0, 0.0, %v1709_v39 }
 0x2f9   : > { %p6281_p8 = pnand %p1998_p10, %p1997_p7  ;;  %p2007_p12 = scmp.gt.s32.totalorder %s6092_s13, 4  ;;  %v1715_v15 = vadd.f32 %v1714_v57, %v1358_v50  ;;  %v1832_v19 = vrot.slane %v1831_v52, 1 }
 0x2fa   : > { %v1725_v47 = vstv %s8328_s20  ;;  %p2016_p13 = scmp.gt.s32.totalorder %s6092_s13, 5  ;;  %s8332_s0 = sadd.s32 3, %s8259_s17 }
 0x2fb   : > { %s8330_s29 = scalar_select %p6281_p8, 1, 0  ;;  %vm1726_vm2 = vcmp.eq.s32.totalorder %v1725_v47, 1  ;;  %v1809_v47 = vrot.slane %v1808_v56, 1  ;;  %v1833_v23 = vmax.f32 %v1831_v52, %v1832_v19 }
 0x2fc   : > { %s8331_s30 = scalar_select %p5879_p1, 1, 0  ;;  %v1727_v22 = vsel %vm1726_vm2, 0.0, %v1722_v51  ;;  %v1881_v51 = vstv %s5965_s8 }
 0x2fd   : > { %s6297_s20 = sld [smem:[#allocation3 + %s8332_s0]]  ;;  %p6303_p7 = pnand %p2007_p12, %p2006_p5  ;;  %v1728_v17 = vadd.f32 %v1727_v22, %v1715_v15  ;;  %vm1882_vm11 = vcmp.ge.s32.totalorder %v4164_v42, %v1881_v51 }
 0x2fe   : > { %v1738_v41 = vstv %s8331_s30  ;;  %p2024_p1 = scmp.le.s32.totalorder %s5992_s11, 6  ;;  %p2025_p10 = scmp.gt.s32.totalorder %s6092_s13, 6  ;;  %vm6462_vm13 = vmand %vm1882_vm11, %vm1884_vm12 }
 0x2ff   : > { %s8333_s22 = scalar_select %p6303_p7, 1, 0  ;;  %vm1739_vm5 = vcmp.eq.s32.totalorder %v1738_v41, 1  ;;  %v1810_v41 = vmax.f32 %v1808_v56, %v1809_v47  ;;  %v1902_v8 = vsel %vm6462_vm13, %v6063_v35, -inf  ;;  %v1915_v62 = vsel %vm6462_vm13, %v6094_v44, -inf }
 0x300   : > { %p6316_p8 = pnand %p2016_p13, %p2015_p0  ;;  %p2033_p5 = scmp.le.s32.totalorder %s5992_s11, 7  ;;  %v1740_v29 = vsel %vm1739_vm5, 0.0, %v1735_v38  ;;  %v1869_v38 = vrot.slane %v1868_v58, 2  ;;  %v1916_v21 = vrot.slane %v1915_v62, 4 }
 0x301   : > { %s6330_s0 = sadd.s32 6, %s5922_s27  ;;  %p6336_p12 = pnand %p2025_p10, %p2024_p1  ;;  %v1741_v55 = vadd.f32 %v1740_v29, %v1728_v17  ;;  %v1889_v17 = vsel %vm6462_vm13, %v5995_v24, -inf }
 0x302   : > { %s8334_s17 = scalar_select %p6316_p8, 1, 0  ;;  %v1870_v4 = vmax.f32 %v1868_v58, %v1869_v38  ;;  %v1890_v9 = vrot.slane %v1889_v17, 4 }
 0x303   : > { %s8337_s6 = scalar_select %p6336_p12, 1, 0 }
 0x304   : > { %p2034_p0 = scmp.gt.s32.totalorder %s6092_s13, 7  ;;  %s6355_s18 = sld [smem:[#allocation5 + %s5958_s14]]  ;;  %v1871_v11 = vrot.slane %v1870_v4, 1  ;;  %v1891_v44 = vmax.f32 %v1889_v17, %v1890_v9 }
 0x305   : > { %s8338_s30 = scalar_select %p5889_p11, 1, 0 }
 0x306   : > { %p6350_p13 = pnand %p2034_p0, %p2033_p5  ;;  %s8341_s21 = sadd.s32 1, %s5958_s14  ;;  %v1892_v2 = vrot.slane %v1891_v44, 2 }
 0x307   : > { %v1751_v3 = vstv %s8338_s30  ;;  %s6360_s24 = sld [smem:[#allocation5 + %s8341_s21]]  ;;  %p8343_p11 = scmp.ne.s32.totalorder %s8276_s25, 0 }
 0x308   : > { %s8339_s7 = scalar_select %p6350_p13, 1, 0  ;;  %vm1752_vm8 = vcmp.eq.s32.totalorder %v1751_v3, 1 }
 0x309   : > { %s8344_s30 = scalar_select %p8343_p11, 1, 0  ;;  %v1753_v20 = vsel %vm1752_vm8, 0.0, %v1748_v6  ;;  %v1846_v6 = vmax.f32 %v1844_v46, %v1845_v59 }
 0x30a   : > { %8340 = sst [smem:[#allocation44_spill]] %s6355_s18  ;;  %s8345_s15 = sadd.s32 1, %s6228_s10  ;;  %v1754_v34 = vadd.f32 %v1753_v20, %v1741_v55  ;;  %v1859_v55 = vmax.f32 %v1857_v49, %v1858_v7  ;;  %v1903_v20 = vrot.slane %v1902_v8, 4 }
 0x30b   : > { %v1774_v18 = vstv %s8344_s30  ;;  %s6373_s21 = sld [smem:[#allocation5 + %s6228_s10]]  ;;  %p2049_p1 = scmp.le.s32.totalorder %s6355_s18, 0 }
 0x30c   : > { %s6378_s11 = sld [smem:[#allocation5 + %s8345_s15]]  ;;  %vm1775_vm9 = vcmp.eq.s32.totalorder %v1774_v18, 1  ;;  %p8346_p11 = scmp.ne.s32.totalorder %s8278_s1, 0 }
 0x30d   : > { %8342 = sst [smem:[#allocation66_spill]] %s6360_s24  ;;  %p2050_p5 = scmp.gt.s32.totalorder %s6360_s24, 0  ;;  %v1776_v36 = vsel %vm1775_vm9, 0.0, %v1771_v27  ;;  %v1872_v27 = vmax.f32 %v1870_v4, %v1871_v11 }
 0x30e   : > { %p2058_p0 = scmp.gt.s32.totalorder %s6360_s24, 1  ;;  %p2066_p13 = scmp.le.s32.totalorder %s6355_s18, 2  ;;  %v1777_v39 = vadd.f32 %v1776_v36, %v1754_v34  ;;  %v1904_v34 = vmax.f32 %v1902_v8, %v1903_v20  ;;  %v1917_v36 = vmax.f32 %v1915_v62, %v1916_v21 }
 0x30f   : > { %s8347_s25 = scalar_select %p8346_p11, 1, 0 }
 0x310   : > { %s8348_s15 = sld [smem:[#allocation52_spill]]  ;;  %p2067_p12 = scmp.gt.s32.totalorder %s6360_s24, 2  ;;  %v1905_v47 = vrot.slane %v1904_v34, 2  ;;  %v1918_v51 = vrot.slane %v1917_v36, 2 }
 0x311   : > { %v1787_v28 = vstv %s8347_s25  ;;  %p6397_p10 = pnand %p2050_p5, %p2049_p1  ;;  %p8350_p8 = scmp.le.s32.totalorder %s6355_s18, 1 }
 0x312   : > { %p6407_p11 = pnand %p2067_p12, %p2066_p13  ;;  %p2075_p1 = scmp.le.s32.totalorder %s6355_s18, 3  ;;  %vm1788_vm10 = vcmp.eq.s32.totalorder %v1787_v28, 1  ;;  %v1928_v28 = vsel %vm6462_vm13, %v6155_v5, -inf  ;;  %v1906_v60 = vmax.f32 %v1904_v34, %v1905_v47 }
 0x313   : > { %p6403_p7 = pnand %p2058_p0, %p8350_p8  ;;  %s8355_s10 = sld [smem:[#allocation38_spill]]  ;;  %v1789_v30 = vsel %vm1788_vm10, 0.0, %v1784_v43 }
 0x314   : > { %s8352_s25 = scalar_select %p6407_p11, 1, 0  ;;  %v1790_v57 = vadd.f32 %v1789_v30, %v1777_v39  ;;  %v1929_v39 = vrot.slane %v1928_v28, 4 }
 0x315   : > { %s8351_s1 = scalar_select %p6403_p7, 1, 0 }
 0x316   : > { %p8353_p8 = scmp.ne.s32.totalorder %s8348_s15, 0  ;;  %p2076_p12 = scmp.gt.s32.totalorder %s6360_s24, 3 }
 0x317   : > { %p2084_p13 = scmp.le.s32.totalorder %s6355_s18, 4  ;;  %p2085_p5 = scmp.gt.s32.totalorder %s6360_s24, 4 }
 0x318   : > { %s8354_s13 = scalar_select %p8353_p8, 1, 0 }
 0x319   : > { %p8356_p8 = scmp.ne.s32.totalorder %s8355_s10, 0  ;;  %p6432_p9 = pnand %p2076_p12, %p2075_p1 }
 0x31a   : > { %v1800_v37 = vstv %s8354_s13  ;;  %s8359_s27 = sld [smem:[#allocation30_spill]]  ;;  %p2094_p11 = scmp.gt.s32.totalorder %s6360_s24, 5 }
 0x31b   : > { %vm1801_vm6 = vcmp.eq.s32.totalorder %v1800_v37, 1  ;;  %s8357_s13 = scalar_select %p8356_p8, 1, 0 }
 0x31c   : > { %s8358_s15 = scalar_select %p6432_p9, 1, 0  ;;  %v1802_v45 = vsel %vm1801_vm6, 0.0, %v1797_v40 }
 0x31d   : > { %v1813_v50 = vstv %s8357_s13  ;;  %p6437_p0 = pnand %p2085_p5, %p2084_p13  ;;  %p8363_p12 = scmp.le.s32.totalorder %s6355_s18, 5  ;;  %v1803_v22 = vadd.f32 %v1802_v45, %v1790_v57 }
 0x31e   : > { %vm1814_vm1 = vcmp.eq.s32.totalorder %v1813_v50, 1  ;;  %s8364_s14 = sld [smem:[#allocation34_spill]]  ;;  %p2103_p5 = scmp.gt.s32.totalorder %s6360_s24, 6  ;;  %v1893_v50 = vmax.f32 %v1891_v44, %v1892_v2 }
 0x31f   : > { %s8360_s10 = scalar_select %p6437_p0, 1, 0  ;;  %v1815_v48 = vsel %vm1814_vm1, 0.0, %v1810_v41  ;;  %v1930_v41 = vmax.f32 %v1928_v28, %v1929_v39 }
 0x320   : > { %p8361_p1 = scmp.ne.s32.totalorder %s8359_s27, 0  ;;  %p6455_p13 = pnand %p2094_p11, %p8363_p12  ;;  %v1816_v3 = vadd.f32 %v1815_v48, %v1803_v22  ;;  %v1894_v48 = vrot.slane %v1893_v50, 1 }
 0x321   : > { %p2111_p8 = scmp.le.s32.totalorder %s6355_s18, 7  ;;  %p2112_p9 = scmp.gt.s32.totalorder %s6360_s24, 7  ;;  %v1931_v17 = vrot.slane %v1930_v41, 2 }
 0x322   : > { %s8362_s13 = scalar_select %p8361_p1, 1, 0  ;;  %v1895_v9 = vmax.f32 %v1893_v50, %v1894_v48 }
 0x323   : > { %p8368_p11 = scmp.le.s32.totalorder %s6355_s18, 6  ;;  %p6474_p12 = pnand %p2112_p9, %p2111_p8  ;;  %v6715_v44 = vmax.f32 %v1930_v41, %v1931_v17 }
 0x324   : > { %v1836_v15 = vstv %s8362_s13  ;;  %p8371_p0 = scmp.ne.s32.totalorder %s8364_s14, 0  ;;  %p2126_p7 = scmp.le.s32.totalorder %s6373_s21, 0 }
 0x325   : > { %vm1837_vm14 = vcmp.eq.s32.totalorder %v1836_v15, 1  ;;  %p6470_p1 = pnand %p2103_p5, %p8368_p11  ;;  %s6483_s27 = sld [smem:[#allocation5 + %s6330_s0]] }
 0x326   : > { %s8370_s19 = scalar_select %p6474_p12, 1, 0  ;;  %v1838_v29 = vsel %vm1837_vm14, 0.0, %v1833_v23  ;;  %v1919_v23 = vmax.f32 %v1917_v36, %v1918_v51 }
 0x327   : > { %s8369_s13 = scalar_select %p6470_p1, 1, 0  ;;  %v1839_v10 = vadd.f32 %v1838_v29, %v1816_v3 }
 0x328   : > { %s8372_s8 = scalar_select %p8371_p0, 1, 0 }
 0x329   : > { %p2127_p9 = scmp.gt.s32.totalorder %s6378_s11, 0  ;;  %p8373_p8 = scmp.ne.s32.totalorder %s8297_s5, 0 }
 0x32a   : > { %v1849_v0 = vstv %s8372_s8  ;;  %p2135_p5 = scmp.gt.s32.totalorder %s6378_s11, 1  ;;  %p2144_p0 = scmp.gt.s32.totalorder %s6378_s11, 2 }
 0x32b   : > { %vm1850_vm15 = vcmp.eq.s32.totalorder %v1849_v0, 1  ;;  %s8374_s8 = scalar_select %p8373_p8, 1, 0 }
 0x32c   : > { %p6507_p12 = pnand %p2127_p9, %p2126_p7  ;;  %v1851_v35 = vsel %vm1850_vm15, 0.0, %v1846_v6  ;;  %p8376_p8 = scmp.ne.s32.totalorder %s8299_s3, 0  ;;  %v1907_v6 = vrot.slane %v1906_v60, 1 }
 0x32d   : > { %v1862_v24 = vstv %s8374_s8  ;;  %p8378_p11 = scmp.le.s32.totalorder %s6373_s21, 1  ;;  %p2152_p7 = scmp.le.s32.totalorder %s6373_s21, 3  ;;  %v1852_v26 = vadd.f32 %v1851_v35, %v1839_v10  ;;  %v1920_v35 = vrot.slane %v1919_v23, 1 }
 0x32e   : > { %s8377_s5 = scalar_select %p8376_p8, 1, 0  ;;  %vm1863_vm0 = vcmp.eq.s32.totalorder %v1862_v24, 1 }
 0x32f   : > { %p6517_p1 = pnand %p2135_p5, %p8378_p11  ;;  %p8382_p9 = scmp.le.s32.totalorder %s6373_s21, 2  ;;  %v1864_v32 = vsel %vm1863_vm0, 0.0, %v1859_v55 }
 0x330   : > { %v1875_v18 = vstv %s8377_s5  ;;  %s8380_s3 = scalar_select %p6240_p6, 0, 1  ;;  %v6595_v61 = vadd.f32 %v1864_v32, %v1852_v26  ;;  %v6721_v26 = vmax.f32 %v1906_v60, %v1907_v6 }
 0x331   : > { %s2981_s5 = scalar_select %p6517_p1, 0, 1  ;;  %vm1876_vm2 = vcmp.eq.s32.totalorder %v1875_v18, 1 }
 0x332   : > { %v1976_v13 = vstv %s8380_s3  ;;  %s8381_s18 = scalar_select %p6245_p2, 0, 1  ;;  %v6598_v37 = vsel %vm1876_vm2, 0.0, %v1872_v27 }
 0x333   : > { %p6536_p5 = pnand %p2144_p0, %p8382_p9  ;;  %p2153_p6 = scmp.gt.s32.totalorder %s6378_s11, 3  ;;  %vm1977_vm3 = vcmp.eq.s32.totalorder %v1976_v13, 1  ;;  %v2139_v63 = vstv %s2981_s5  ;;  %v1878_v13 = vadd.f32 %v6598_v37, %v6595_v61  ;;  %v1933_v37 = vrot.slane %v6715_v44, 1 }
 0x334   : > { %v1984_v31 = vstv %s8381_s18  ;;  %s8384_s4 = scalar_select %p6172_p3, 1, 0  ;;  %vm2140_vm1 = vcmp.eq.s32.totalorder %v2139_v63, 1 }
 0x335   : > { %p2161_p2 = scmp.le.s32.totalorder %s6373_s21, 4  ;;  %p2162_p0 = scmp.gt.s32.totalorder %s6378_s11, 4  ;;  %vm1985_vm4 = vcmp.eq.s32.totalorder %v1984_v31, 1 }
 0x336   : > { %v6544_v33 = vstv %s8384_s4  ;;  %s8385_s9 = scalar_select %p6182_p4, 1, 0 }
 0x337   : > { %s8386_s18 = sshll.u32 %s6297_s20, 6  ;;  %p8388_p3 = scmp.ne.s32.totalorder %s8351_s1, 0  ;;  %vm1899_vm9 = vcmp.eq.s32.totalorder %v6544_v33, 1  ;;  %v6777_v33 = vmax.f32 %v1919_v23, %v1920_v35 }
 0x338   : > { %v6554_v43 = vstv %s8385_s9  ;;  %s6558_s26 = scalar_lea.vmem [#allocation6], %s8386_s18  ;;  %p8390_p4 = scmp.ne.s32.totalorder %s8311_s28, 0 }
 0x339   : > { %v6561_v25 = vld [vmem:[%s6558_s26] sm:$0xff]  ;;  %s8387_s3 = scalar_select %p6397_p10, 0, 1  ;;  %v6577_v14 = vld [vmem:[%s6558_s26 + $0x8] sm:$0xff]  ;;  %v6627_v57 = vld [vmem:[%s6558_s26 + $0x10] sm:$0xff] }
 0x33a   : > { %s8389_s4 = scalar_select %p8388_p3, 0, 1  ;;  %v1978_v53 = vsel %vm1977_vm3, %v6561_v25, -inf  ;;  %v1986_v30 = vsel %vm1985_vm4, %v6577_v14, -inf  ;;  %v6666_v59 = vld [vmem:[%s6558_s26 + $0x18] sm:$0xff]  ;;  %v2141_v4 = vsel %vm2140_vm1, %v6577_v14, -inf }
 0x33b   : > { %v2054_v5 = vstv %s8387_s3  ;;  %s2982_s16 = scalar_select %p6536_p5, 0, 1  ;;  %v1987_v46 = vmax.f32 %v1978_v53, %v1986_v30  ;;  %v6702_v10 = vld [vmem:[%s6558_s26 + $0x20] sm:$0xff]  ;;  %v6731_v32 = vld [vmem:[%s6558_s26 + $0x28] sm:$0xff]  ;;  %v2959_v6 = vld [vmem:[%s6558_s26 + $0x38] sm:$0xff] }
 0x33c   : > { %v2062_v56 = vstv %s8389_s4  ;;  %s8391_s20 = scalar_select %p8390_p4, 1, 0  ;;  %vm2055_vm5 = vcmp.eq.s32.totalorder %v2054_v5, 1 }
 0x33d   : > { %p6583_p10 = pnand %p2153_p6, %p2152_p7  ;;  %p6591_p11 = pnand %p2162_p0, %p2161_p2  ;;  %vm2063_vm7 = vcmp.eq.s32.totalorder %v2062_v56, 1  ;;  %v2056_v45 = vsel %vm2055_vm5, %v6561_v25, -inf  ;;  %v2148_v38 = vstv %s2982_s16  ;;  %v1900_v56 = vsel %vm1899_vm9, 0.0, %v1895_v9 }
 0x33e   : > { %v6574_v12 = vstv %s8391_s20  ;;  %p8394_p8 = scmp.ne.s32.totalorder %s8327_s2, 0  ;;  %p2170_p7 = scmp.le.s32.totalorder %s6373_s21, 5  ;;  %v2064_v19 = vsel %vm2063_vm7, %v6577_v14, -inf  ;;  %vm2149_vm13 = vcmp.eq.s32.totalorder %v2148_v38, 1  ;;  %vm1912_vm5 = vcmp.eq.s32.totalorder %v6554_v43, 1 }
 0x33f   : > { %p2171_p9 = scmp.gt.s32.totalorder %s6378_s11, 5  ;;  %p8396_p6 = scmp.ne.s32.totalorder %s8352_s25, 0  ;;  %v2065_v49 = vmax.f32 %v2056_v45, %v2064_v19  ;;  %v2150_v20 = vsel %vm2149_vm13, %v6627_v57, -inf  ;;  %v6814_v45 = vld [vmem:[%s6558_s26 + $0x30] sm:$0xff] }
 0x340   : > { %s8395_s1 = scalar_select %p8394_p8, 0, 1 }
 0x341   : > { %s2983_s9 = scalar_select %p6583_p10, 0, 1 }
 0x342   : > { %v1993_v40 = vstv %s8395_s1  ;;  %s8397_s2 = scalar_select %p8396_p6, 0, 1 }
 0x343   : > { %s8398_s18 = scalar_select %p6507_p12, 0, 1  ;;  %vm1994_vm8 = vcmp.eq.s32.totalorder %v1993_v40, 1  ;;  %v2157_v24 = vstv %s2983_s9 }
 0x344   : > { %v2071_v52 = vstv %s8397_s2  ;;  %s2984_s3 = scalar_select %p6591_p11, 0, 1  ;;  %v1995_v15 = vsel %vm1994_vm8, %v6627_v57, -inf  ;;  %vm2158_vm0 = vcmp.eq.s32.totalorder %v2157_v24, 1 }
 0x345   : > { %v2131_v54 = vstv %s8398_s18  ;;  %p8399_p2 = scmp.ne.s32.totalorder %s8314_s12, 0  ;;  %p6633_p0 = pnand %p2171_p9, %p2170_p7  ;;  %vm2072_vm10 = vcmp.eq.s32.totalorder %v2071_v52, 1  ;;  %v1996_v29 = vmax.f32 %v1987_v46, %v1995_v15  ;;  %v2159_v61 = vsel %vm2158_vm0, %v6666_v59, -inf }
 0x346   : > { %p2179_p1 = scmp.le.s32.totalorder %s6373_s21, 6  ;;  %p8402_p12 = scmp.ne.s32.totalorder %s8330_s29, 0  ;;  %vm2132_vm6 = vcmp.eq.s32.totalorder %v2131_v54, 1  ;;  %v2073_v0 = vsel %vm2072_vm10, %v6627_v57, -inf  ;;  %v2166_v31 = vstv %s2984_s3 }
 0x347   : > { %s8400_s4 = scalar_select %p8399_p2, 1, 0  ;;  %v2133_v3 = vsel %vm2132_vm6, %v6561_v25, -inf  ;;  %v2074_v11 = vmax.f32 %v2065_v49, %v2073_v0  ;;  %vm2167_vm3 = vcmp.eq.s32.totalorder %v2166_v31, 1  ;;  %vm1925_vm6 = vcmp.eq.s32.totalorder %v6574_v12, 1 }
 0x348   : > { %s8403_s14 = scalar_select %p8402_p12, 0, 1  ;;  %v2142_v62 = vmax.f32 %v2133_v3, %v2141_v4  ;;  %v2168_v50 = vsel %vm2167_vm3, %v6702_v10, -inf  ;;  %v1926_v31 = vsel %vm1925_vm6, 0.0, %v6777_v33 }
 0x349   : > { %v6624_v1 = vstv %s8400_s4  ;;  %p2180_p3 = scmp.gt.s32.totalorder %s6378_s11, 6  ;;  %p2188_p4 = scmp.le.s32.totalorder %s6373_s21, 7 }
 0x34a   : > { %v2002_v58 = vstv %s8403_s14  ;;  %s2985_s12 = scalar_select %p6633_p0, 0, 1  ;;  %v2151_v5 = vmax.f32 %v2142_v62, %v2150_v20 }
 0x34b   : > { %p8404_p8 = scmp.ne.s32.totalorder %s8358_s15, 0  ;;  %p6660_p7 = pnand %p2180_p3, %p2179_p1  ;;  %vm2003_vm11 = vcmp.eq.s32.totalorder %v2002_v58, 1 }
 0x34c   : > { %p2189_p9 = scmp.gt.s32.totalorder %s6378_s11, 7  ;;  %s8407_s24 = sadd.s32 1, %s6330_s0  ;;  %v2004_v7 = vsel %vm2003_vm11, %v6666_v59, -inf  ;;  %v2175_v53 = vstv %s2985_s12  ;;  %v2160_v52 = vmax.f32 %v2151_v5, %v2159_v61 }
 0x34d   : > { %s8405_s29 = scalar_select %p8404_p8, 0, 1  ;;  %v2005_v21 = vmax.f32 %v1996_v29, %v2004_v7  ;;  %vm2176_vm9 = vcmp.eq.s32.totalorder %v2175_v53, 1 }
 0x34e   : > { %s6670_s15 = sld [smem:[#allocation5 + %s8407_s24]]  ;;  %p8408_p5 = scmp.ne.s32.totalorder %s8333_s22, 0  ;;  %v2169_v60 = vmax.f32 %v2160_v52, %v2168_v50  ;;  %v2177_v48 = vsel %vm2176_vm9, %v6731_v32, -inf }
 0x34f   : > { %v2080_v22 = vstv %s8405_s29  ;;  %s2986_s16 = scalar_select %p6660_p7, 0, 1 }
 0x350   : > { %s8409_s5 = scalar_select %p8408_p5, 0, 1  ;;  %vm2081_vm12 = vcmp.eq.s32.totalorder %v2080_v22, 1  ;;  %v2178_v4 = vmax.f32 %v2169_v60, %v2177_v48 }
 0x351   : > { %p6687_p6 = pnand %p2189_p9, %p2188_p4  ;;  %p2203_p2 = scmp.le.s32.totalorder %s6483_s27, 0  ;;  %v2082_v18 = vsel %vm2081_vm12, %v6666_v59, -inf  ;;  %v2184_v19 = vstv %s2986_s16 }
 0x352   : > { %v2011_v16 = vstv %s8409_s5  ;;  %p8411_p1 = scmp.ne.s32.totalorder %s8360_s10, 0  ;;  %p2211_p12 = scmp.le.s32.totalorder %s6483_s27, 1  ;;  %v2083_v28 = vmax.f32 %v2074_v11, %v2082_v18  ;;  %vm2185_vm13 = vcmp.eq.s32.totalorder %v2184_v19, 1  ;;  %v1913_v11 = vsel %vm1912_vm5, 0.0, %v6721_v26 }
 0x353   : > { %p2220_p3 = scmp.le.s32.totalorder %s6483_s27, 2  ;;  %vm2012_vm14 = vcmp.eq.s32.totalorder %v2011_v16, 1  ;;  %p8413_p4 = scmp.ne.s32.totalorder %s8334_s17, 0 }
 0x354   : > { %s8412_s20 = scalar_select %p8411_p1, 0, 1  ;;  %v2013_v27 = vsel %vm2012_vm14, %v6702_v10, -inf }
 0x355   : > { %s2987_s1 = scalar_select %p6687_p6, 0, 1  ;;  %v6780_v39 = vmax.f32 %v2005_v21, %v2013_v27 }
 0x356   : > { %v2089_v8 = vstv %s8412_s20  ;;  %s8414_s10 = scalar_select %p8413_p4, 0, 1 }
 0x357   : > { %vm2090_vm15 = vcmp.eq.s32.totalorder %v2089_v8, 1  ;;  %p2204_p9 = scmp.gt.s32.totalorder %s6670_s15, 0  ;;  %p2212_p5 = scmp.gt.s32.totalorder %s6670_s15, 1  ;;  %v2193_v0 = vstv %s2987_s1  ;;  %v2186_v8 = vsel %vm2185_vm13, %v6814_v45, -inf }
 0x358   : > { %v2020_v55 = vstv %s8414_s10  ;;  %p2221_p1 = scmp.gt.s32.totalorder %s6670_s15, 2  ;;  %p2230_p4 = scmp.gt.s32.totalorder %s6670_s15, 3  ;;  %v2091_v2 = vsel %vm2090_vm15, %v6702_v10, -inf  ;;  %vm1938_vm15 = vcmp.eq.s32.totalorder %v6624_v1, 1  ;;  %vm2194_vm3 = vcmp.eq.s32.totalorder %v2193_v0, 1 }
 0x359   : > { %vm2021_vm2 = vcmp.eq.s32.totalorder %v2020_v55, 1  ;;  %p8415_p8 = scmp.ne.s32.totalorder %s8337_s6, 0  ;;  %p6740_p10 = pnand %p2204_p9, %p2203_p2  ;;  %v6799_v30 = vmax.f32 %v2083_v28, %v2091_v2  ;;  %v2187_v18 = vmax.f32 %v2178_v4, %v2186_v8 }
 0x35a   : > { %p6748_p11 = pnand %p2212_p5, %p2211_p12  ;;  %p6765_p2 = pnand %p2221_p1, %p2220_p3  ;;  %v6786_v40 = vsel %vm2021_vm2, %v6731_v32, -inf }
 0x35b   : > { %s8416_s17 = scalar_select %p8415_p8, 0, 1 }
 0x35c   : > { %s8419_s6 = scalar_select %p6455_p13, 0, 1 }
 0x35d   : > { %v2029_v34 = vstv %s8416_s17  ;;  %p8421_p12 = scmp.le.s32.totalorder %s6483_s27, 3  ;;  %p8423_p13 = scmp.ne.s32.totalorder %s8339_s7, 0 }
 0x35e   : > { %v2098_v36 = vstv %s8419_s6  ;;  %s2989_s23 = scalar_select %p6740_p10, 0, 1  ;;  %vm2030_vm4 = vcmp.eq.s32.totalorder %v2029_v34, 1 }
 0x35f   : > { %p6773_p8 = pnand %p2230_p4, %p8421_p12  ;;  %vm2099_vm7 = vcmp.eq.s32.totalorder %v2098_v36, 1  ;;  %p8425_p3 = scmp.ne.s32.totalorder %s8369_s13, 0  ;;  %v2031_v23 = vsel %vm2030_vm4, %v6814_v45, -inf }
 0x360   : > { %s8424_s18 = scalar_select %p8423_p13, 0, 1  ;;  %v2208_v54 = vstv %s2989_s23  ;;  %v2100_v38 = vsel %vm2099_vm7, %v6731_v32, -inf }
 0x361   : > { %s2990_s3 = scalar_select %p6748_p11, 0, 1  ;;  %vm2209_vm8 = vcmp.eq.s32.totalorder %v2208_v54, 1  ;;  %v2101_v3 = vmax.f32 %v6799_v30, %v2100_v38 }
 0x362   : > { %v6791_v47 = vstv %s8424_s18  ;;  %s2991_s7 = scalar_select %p6765_p2, 0, 1  ;;  %v2210_v41 = vsel %vm2209_vm8, %v6561_v25, -inf }
 0x363   : > { %s8426_s4 = scalar_select %p8425_p3, 0, 1  ;;  %v2216_v51 = vstv %s2990_s3  ;;  %vm2039_vm14 = vcmp.eq.s32.totalorder %v6791_v47, 1 }
 0x364   : > { %s2992_s25 = scalar_select %p6773_p8, 0, 1  ;;  %vm2217_vm10 = vcmp.eq.s32.totalorder %v2216_v51, 1  ;;  %v2225_v58 = vstv %s2991_s7 }
 0x365   : > { %v2107_v63 = vstv %s8426_s4  ;;  %p2239_p0 = scmp.gt.s32.totalorder %s6670_s15, 4  ;;  %p2247_p10 = scmp.le.s32.totalorder %s6483_s27, 5  ;;  %v2218_v46 = vsel %vm2217_vm10, %v6577_v14, -inf  ;;  %vm2226_vm1 = vcmp.eq.s32.totalorder %v2225_v58, 1  ;;  %v1901_v14 = vadd.f32 %v1900_v56, %v1878_v13 }
 0x366   : > { %v2234_v25 = vstv %s2992_s25  ;;  %p2248_p9 = scmp.gt.s32.totalorder %s6670_s15, 5  ;;  %p2256_p5 = scmp.le.s32.totalorder %s6483_s27, 6  ;;  %v2219_v15 = vmax.f32 %v2210_v41, %v2218_v46  ;;  %v2227_v22 = vsel %vm2226_vm1, %v6627_v57, -inf  ;;  %vm2108_vm12 = vcmp.eq.s32.totalorder %v2107_v63, 1 }
 0x367   : > { %vm2235_vm11 = vcmp.eq.s32.totalorder %v2234_v25, 1  ;;  %p8427_p1 = scmp.le.s32.totalorder %s6483_s27, 4  ;;  %p2257_p7 = scmp.gt.s32.totalorder %s6670_s15, 6  ;;  %v2109_v7 = vsel %vm2108_vm12, %v6814_v45, -inf  ;;  %v2195_v13 = vsel %vm2194_vm3, %v2959_v6, -inf  ;;  %v1914_v27 = vadd.f32 %v1913_v11, %v1901_v14 }
 0x368   : > { %v2236_v57 = vsel %vm2235_vm11, %v6666_v59, -inf  ;;  %p6839_p11 = pnand %p2248_p9, %p2247_p10  ;;  %p2265_p2 = scmp.le.s32.totalorder %s6483_s27, 7  ;;  %v2228_v49 = vmax.f32 %v2219_v15, %v2227_v22  ;;  %v2023_v59 = vmax.f32 %v6780_v39, %v6786_v40  ;;  %v2110_v43 = vmax.f32 %v2101_v3, %v2109_v7 }
 0x369   : > { %p6827_p4 = pnand %p2239_p0, %p8427_p1  ;;  %p8430_p12 = scmp.ne.s32.totalorder %s8370_s19, 0 }
 0x36a   : > { %s8432_s8 = sld [smem:[#allocation37_spill]]  ;;  %v2237_v17 = vmax.f32 %v2228_v49, %v2236_v57  ;;  %p6865_p8 = pnand %p2257_p7, %p2256_p5  ;;  %v2032_v62 = vmax.f32 %v2023_v59, %v2031_v23 }
 0x36b   : > { %s2993_s12 = scalar_select %p6827_p4, 0, 1 }
 0x36c   : > { %s8431_s29 = scalar_select %p8430_p12, 0, 1 }
 0x36d   : > { %s2994_s24 = scalar_select %p6839_p11, 0, 1  ;;  %v2243_v29 = vstv %s2993_s12 }
 0x36e   : > { %v2116_v16 = vstv %s8431_s29  ;;  %p2266_p13 = scmp.gt.s32.totalorder %s6670_s15, 7  ;;  %vm2244_vm0 = vcmp.eq.s32.totalorder %v2243_v29, 1  ;;  %s8434_s16 = sld [smem:[#allocation28_spill]] }
 0x36f   : > { %v2252_v24 = vstv %s2994_s24  ;;  %vm2117_vm2 = vcmp.eq.s32.totalorder %v2116_v16, 1  ;;  %v2245_v9 = vsel %vm2244_vm0, %v6702_v10, -inf  ;;  %s2995_s22 = scalar_select %p6865_p8, 0, 1  ;;  %v2040_v10 = vsel %vm2039_vm14, %v2959_v6, -inf }
 0x370   : > { %s6876_s19 = sld [smem:[#allocation4 + %s8432_s8]]  ;;  %vm2253_vm4 = vcmp.eq.s32.totalorder %v2252_v24, 1  ;;  %v2246_v35 = vmax.f32 %v2237_v17, %v2245_v9  ;;  %p6889_p6 = pnand %p2266_p13, %p2265_p2  ;;  %v2118_v21 = vsel %vm2117_vm2, %v2959_v6, -inf  ;;  %v6917_v28 = vmax.f32 %v2032_v62, %v2040_v10 }
 0x371   : > { %v2254_v55 = vsel %vm2253_vm4, %v6731_v32, -inf  ;;  %s8436_s20 = sadd.s32 1, %s8432_s8  ;;  %s8437_s10 = sld [smem:[#allocation41_spill]]  ;;  %v2261_v20 = vstv %s2995_s22  ;;  %v1934_v32 = vmax.f32 %v6715_v44, %v1933_v37  ;;  %v6924_v2 = vmax.f32 %v2110_v43, %v2118_v21 }
 0x372   : > { %s6895_s1 = sld [smem:[#allocation4 + %s8436_s20]]  ;;  %v2255_v26 = vmax.f32 %v2246_v35, %v2254_v55  ;;  %vm2262_vm5 = vcmp.eq.s32.totalorder %v2261_v20, 1  ;;  %v6926_v44 = vmax.f32 %v2187_v18, %v2195_v13  ;;  %p2197_p10 = scmp.le.s32.totalorder %s6378_s11, %s6373_s21  ;;  %v1927_v37 = vadd.f32 %v1926_v31, %v1914_v27 }
 0x373   : > { %s8438_s17 = sld [smem:[#allocation39_spill]]  ;;  %v2263_v34 = vsel %vm2262_vm5, %v6814_v45, -inf  ;;  %p2274_p5 = scmp.le.s32.totalorder %s6670_s15, %s6483_s27  ;;  %v1939_v39 = vsel %vm1938_vm15, 0.0, %v1934_v32 }
 0x374   : > { %s8439_s30 = sld [smem:[#allocation44_spill]]  ;;  %s8441_s2 = sadd.s32 1, %s8434_s16  ;;  %v2264_v12 = vmax.f32 %v2255_v26, %v2263_v34  ;;  %v1940_v46 = vadd.f32 %v1939_v39, %v1927_v37 }
 0x375   : > { %s8440_s28 = sld [smem:[#allocation66_spill]]  ;;  %s8461_s13 = sadd.s32 1, %s6330_s0 }
 0x376   : > { %s6900_s6 = sld [smem:[#allocation4 + %s8434_s16]]  ;;  %v2277_v56 = vstv %s6876_s19 }
 0x377   : > { %s2996_s9 = scalar_select %p6889_p6, 0, 1  ;;  %vm2278_vm8 = vcmp.ge.s32.totalorder %v4164_v42, %v2277_v56 }
 0x378   : > { %s8442_s23 = sld [smem:[#allocation36_spill]]  ;;  %v2279_v61 = vstv %s6895_s1  ;;  %p2282_p9 = scmp.le.s32.totalorder %s6895_s1, %s6876_s19 }
 0x379   : > { %s6915_s18 = sld [smem:[#allocation4 + %s8441_s2]]  ;;  %p2042_p3 = scmp.le.s32.totalorder %s8438_s17, %s8437_s10  ;;  %v2270_v5 = vstv %s2996_s9  ;;  %vm2280_vm9 = vcmp.lt.s32.totalorder %v4164_v42, %v2279_v61 }
 0x37a   : > { %vm2271_vm7 = vcmp.eq.s32.totalorder %v2270_v5, 1  ;;  %vm2281_vm10 = vmand %vm2278_vm8, %vm2280_vm9  ;;  %p6978_p7 = por %p2282_p9, %p2197_p10  ;;  %p6991_p11 = por %p2282_p9, %p2274_p5 }
 0x37b   : > { %p2120_p0 = scmp.le.s32.totalorder %s8440_s28, %s8439_s30  ;;  %v2272_v36 = vsel %vm2271_vm7, %v2959_v6, -inf  ;;  %p6954_p1 = por %p2282_p9, %p2042_p3  ;;  %v2285_v40 = vsel %vm2281_vm10, %v6917_v28, -inf  ;;  %v2298_v47 = vsel %vm2281_vm10, %v6924_v2, -inf  ;;  %v2311_v53 = vsel %vm2281_vm10, %v6926_v44, -inf }
 0x37c   : > { %v6937_v33 = vmax.f32 %v2264_v12, %v2272_v36  ;;  %v2339_v1 = vstv %s6900_s6  ;;  %v2286_v52 = vrot.slane %v2285_v40, 4  ;;  %v2299_v54 = vrot.slane %v2298_v47, 4  ;;  %s2319_s24 = scalar_select %p6978_p7, 1, 0 }
 0x37d   : > { %p6964_p4 = por %p2282_p9, %p2120_p0  ;;  %v2312_v63 = vrot.slane %v2311_v53, 4  ;;  %vm2340_vm6 = vcmp.ge.s32.totalorder %v4164_v42, %v2339_v1  ;;  %s7135_s14 = sld [smem:[#allocation4 + %s8461_s13]] }
 0x37e   : > { %s6935_s3 = sld [smem:[#allocation4 + %s8442_s23]]  ;;  %s8443_s7 = sadd.s32 1, %s8442_s23  ;;  %v2324_v30 = vsel %vm2281_vm10, %v6937_v33, -inf  ;;  %v2287_v41 = vmax.f32 %v2285_v40, %v2286_v52  ;;  %v2300_v45 = vmax.f32 %v2298_v47, %v2299_v54  ;;  %v2320_v3 = vstv %s2319_s24 }
 0x37f   : > { %s6944_s4 = sld [smem:[#allocation4 + %s8443_s7]]  ;;  %v2325_v50 = vrot.slane %v2324_v30, 4  ;;  %v2341_v51 = vstv %s6915_s18  ;;  %v2313_v19 = vmax.f32 %v2311_v53, %v2312_v63  ;;  %p2344_p2 = scmp.le.s32.totalorder %s6915_s18, %s6900_s6  ;;  %vm2321_vm14 = vcmp.eq.s32.totalorder %v2320_v3, 1 }
 0x380   : > { %s2293_s12 = scalar_select %p6954_p1, 1, 0  ;;  %vm2342_vm1 = vcmp.lt.s32.totalorder %v4164_v42, %v2341_v51  ;;  %v2288_v60 = vrot.slane %v2287_v41, 2  ;;  %v2301_v15 = vrot.slane %v2300_v45, 2 }
 0x381   : > { %s2306_s8 = scalar_select %p6964_p4, 1, 0  ;;  %v2326_v25 = vmax.f32 %v2324_v30, %v2325_v50  ;;  %v2314_v22 = vrot.slane %v2313_v19, 2  ;;  %vm7002_vm11 = vmand %vm2340_vm6, %vm2342_vm1 }
 0x382   : > { %v2294_v58 = vstv %s2293_s12  ;;  %s2332_s5 = scalar_select %p6991_p11, 1, 0  ;;  %v2347_v57 = vsel %vm7002_vm11, %v6917_v28, -inf  ;;  %v2289_v49 = vmax.f32 %v2287_v41, %v2288_v60  ;;  %v2302_v59 = vmax.f32 %v2300_v45, %v2301_v15 }
 0x383   : > { %vm2295_vm12 = vcmp.eq.s32.totalorder %v2294_v58, 1  ;;  %v2327_v48 = vrot.slane %v2326_v25, 2  ;;  %v2307_v16 = vstv %s2306_s8  ;;  %v2315_v0 = vmax.f32 %v2313_v19, %v2314_v22  ;;  %p7021_p12 = por %p2344_p2, %p2042_p3  ;;  %p7031_p8 = por %p2344_p2, %p2120_p0 }
 0x384   : > { %v2401_v38 = vstv %s6935_s3  ;;  %v2348_v17 = vrot.slane %v2347_v57, 4  ;;  %v2360_v29 = vsel %vm7002_vm11, %v6924_v2, -inf  ;;  %v2290_v6 = vrot.slane %v2289_v49, 1  ;;  %p7046_p13 = por %p2344_p2, %p2197_p10  ;;  %p7056_p6 = por %p2344_p2, %p2274_p5 }
 0x385   : > { %v2403_v23 = vstv %s6944_s4  ;;  %v2328_v4 = vmax.f32 %v2326_v25, %v2327_v48  ;;  %v2303_v7 = vrot.slane %v2302_v59, 1  ;;  %v2316_v8 = vrot.slane %v2315_v0, 1  ;;  %s2355_s22 = scalar_select %p7021_p12, 1, 0 }
 0x386   : > { %v2361_v24 = vrot.slane %v2360_v29, 4  ;;  %vm2308_vm13 = vcmp.eq.s32.totalorder %v2307_v16, 1  ;;  %v2333_v11 = vstv %s2332_s5  ;;  %v2349_v62 = vmax.f32 %v2347_v57, %v2348_v17  ;;  %s2368_s1 = scalar_select %p7031_p8, 1, 0 }
 0x387   : > { %v2329_v9 = vrot.slane %v2328_v4, 1  ;;  %v2291_v35 = vmax.f32 %v2289_v49, %v2290_v6  ;;  %v2304_v55 = vmax.f32 %v2302_v59, %v2303_v7  ;;  %v2317_v10 = vmax.f32 %v2315_v0, %v2316_v8  ;;  %p2406_p9 = scmp.le.s32.totalorder %s6944_s4, %s6935_s3  ;;  %s7106_s18 = sld [smem:[#allocation4 + %s6330_s0]] }
 0x388   : > { %v2350_v43 = vrot.slane %v2349_v62, 2  ;;  %v2362_v18 = vmax.f32 %v2360_v29, %v2361_v24  ;;  %v2373_v20 = vsel %vm7002_vm11, %v6926_v44, -inf  ;;  %v2386_v21 = vsel %vm7002_vm11, %v6937_v33, -inf  ;;  %s2381_s6 = scalar_select %p7046_p13, 1, 0 }
 0x389   : > { %v2296_v13 = vsel %vm2295_vm12, 0.0, %v2291_v35  ;;  %v2309_v26 = vsel %vm2308_vm13, 0.0, %v2304_v55  ;;  %v2330_v27 = vmax.f32 %v2328_v4, %v2329_v9  ;;  %v2356_v31 = vstv %s2355_s22  ;;  %s2394_s9 = scalar_select %p7056_p6, 1, 0 }
 0x38a   : > { %v2297_v32 = vadd.f32 %v2296_v13, %v1940_v46  ;;  %vm2334_vm15 = vcmp.eq.s32.totalorder %v2333_v11, 1  ;;  %v2351_v34 = vmax.f32 %v2349_v62, %v2350_v43  ;;  %v2363_v12 = vrot.slane %v2362_v18, 2  ;;  %p7083_p1 = por %p2406_p9, %p2042_p3  ;;  %p7098_p4 = por %p2406_p9, %p2120_p0 }
 0x38b   : > { %v2322_v5 = vsel %vm2321_vm14, 0.0, %v2317_v10  ;;  %v2369_v56 = vstv %s2368_s1  ;;  %v2374_v36 = vrot.slane %v2373_v20, 4  ;;  %v2387_v61 = vrot.slane %v2386_v21, 4  ;;  %p7129_p7 = por %p2406_p9, %p2197_p10  ;;  %p7149_p11 = por %p2406_p9, %p2274_p5 }
 0x38c   : > { %v2310_v37 = vadd.f32 %v2309_v26, %v2297_v32  ;;  %v2352_v39 = vrot.slane %v2351_v34, 1  ;;  %vm2357_vm0 = vcmp.eq.s32.totalorder %v2356_v31, 1  ;;  %v2364_v1 = vmax.f32 %v2362_v18, %v2363_v12  ;;  %s2417_s7 = scalar_select %p7083_p1, 1, 0 }
 0x38d   : > { %v2335_v40 = vsel %vm2334_vm15, 0.0, %v2330_v27  ;;  %v2375_v47 = vmax.f32 %v2373_v20, %v2374_v36  ;;  %v2388_v53 = vmax.f32 %v2386_v21, %v2387_v61  ;;  %vm7088_vm2 = vcmp.ge.s32.totalorder %v4164_v42, %v2401_v38  ;;  %s2430_s12 = scalar_select %p7098_p4, 1, 0 }
 0x38e   : > { %v2323_v52 = vadd.f32 %v2322_v5, %v2310_v37  ;;  %v2353_v54 = vmax.f32 %v2351_v34, %v2352_v39  ;;  %v2365_v63 = vrot.slane %v2364_v1, 1  ;;  %vm2370_vm3 = vcmp.eq.s32.totalorder %v2369_v56, 1  ;;  %s2443_s29 = scalar_select %p7129_p7, 1, 0 }
 0x38f   : > { %v2376_v50 = vrot.slane %v2375_v47, 2  ;;  %v2382_v51 = vstv %s2381_s6  ;;  %v2389_v41 = vrot.slane %v2388_v53, 2  ;;  %vm2404_vm4 = vcmp.lt.s32.totalorder %v4164_v42, %v2403_v23  ;;  %p2468_p2 = scmp.le.s32.totalorder %s7135_s14, %s7106_s18  ;;  %s8469_s30 = sld [smem:[#allocation17_spill]] }
 0x390   : > { %v2336_v58 = vadd.f32 %v2335_v40, %v2323_v52  ;;  %v2358_v45 = vsel %vm2357_vm0, 0.0, %v2353_v54  ;;  %v2366_v19 = vmax.f32 %v2364_v1, %v2365_v63  ;;  %v2395_v46 = vstv %s2394_s9  ;;  %vm7111_vm5 = vmand %vm7088_vm2, %vm2404_vm4  ;;  %s2456_s3 = scalar_select %p7149_p11, 1, 0 }
 0x391   : > { %v2377_v60 = vmax.f32 %v2375_v47, %v2376_v50  ;;  %v2390_v15 = vmax.f32 %v2388_v53, %v2389_v41  ;;  %v2409_v22 = vsel %vm7111_vm5, %v6917_v28, -inf  ;;  %v2422_v14 = vsel %vm7111_vm5, %v6924_v2, -inf  ;;  %p7173_p12 = por %p2468_p2, %p2042_p3  ;;  %p7195_p3 = por %p2468_p2, %p2120_p0 }
 0x392   : > { %v2359_v38 = vadd.f32 %v2358_v45, %v2336_v58  ;;  %v2371_v48 = vsel %vm2370_vm3, 0.0, %v2366_v19  ;;  %v2410_v57 = vrot.slane %v2409_v22, 4  ;;  %v2423_v23 = vrot.slane %v2422_v14, 4  ;;  %p7205_p8 = por %p2468_p2, %p2197_p10  ;;  %p7221_p0 = por %p2468_p2, %p2274_p5 }
 0x393   : > { %v2378_v49 = vrot.slane %v2377_v60, 1  ;;  %vm2383_vm7 = vcmp.eq.s32.totalorder %v2382_v51, 1  ;;  %v2391_v59 = vrot.slane %v2390_v15, 1  ;;  %v2435_v16 = vsel %vm7111_vm5, %v6926_v44, -inf  ;;  %s2479_s8 = scalar_select %p7173_p12, 1, 0 }
 0x394   : > { %v2372_v0 = vadd.f32 %v2371_v48, %v2359_v38  ;;  %v2411_v3 = vmax.f32 %v2409_v22, %v2410_v57  ;;  %v2418_v4 = vstv %s2417_s7  ;;  %v2424_v17 = vmax.f32 %v2422_v14, %v2423_v23  ;;  %s2492_s21 = scalar_select %p7195_p3, 1, 0 }
 0x395   : > { %v2379_v29 = vmax.f32 %v2377_v60, %v2378_v49  ;;  %v2392_v6 = vmax.f32 %v2390_v15, %v2391_v59  ;;  %vm2396_vm8 = vcmp.eq.s32.totalorder %v2395_v46, 1  ;;  %v2436_v7 = vrot.slane %v2435_v16, 4  ;;  %s2505_s27 = scalar_select %p7205_p8, 1, 0 }
 0x396   : > { %v2412_v8 = vrot.slane %v2411_v3, 2  ;;  %v2425_v24 = vrot.slane %v2424_v17, 2  ;;  %v2431_v9 = vstv %s2430_s12  ;;  %v2448_v11 = vsel %vm7111_vm5, %v6937_v33, -inf  ;;  %s2518_s15 = scalar_select %p7221_p0, 1, 0 }
 0x397   : > { %v2384_v62 = vsel %vm2383_vm7, 0.0, %v2379_v29  ;;  %vm2419_vm9 = vcmp.eq.s32.totalorder %v2418_v4, 1  ;;  %v2437_v35 = vmax.f32 %v2435_v16, %v2436_v7  ;;  %v2449_v55 = vrot.slane %v2448_v11, 4  ;;  %s8470_s28 = sld [smem:[#allocation20_spill]]  ;;  %s191_s5 = sand.u32 1, %s8469_s30  }
 0x398   : > { %v2385_v10 = vadd.f32 %v2384_v62, %v2372_v0  ;;  %v2397_v43 = vsel %vm2396_vm8, 0.0, %v2392_v6  ;;  %v2413_v18 = vmax.f32 %v2411_v3, %v2412_v8  ;;  %v2426_v20 = vmax.f32 %v2424_v17, %v2425_v24  ;;  %s8471_s24 = sld [smem:[#allocation23_spill]]  ;;  %s192_s20 = scalar_lea.vmem [#allocation11], %s191_s5 }
 0x399   : > { %vm2432_vm10 = vcmp.eq.s32.totalorder %v2431_v9, 1  ;;  %v2438_v21 = vrot.slane %v2437_v35, 2  ;;  %v2450_v13 = vmax.f32 %v2448_v11, %v2449_v55  ;;  %v2463_v26 = vstv %s7106_s18  ;;  %s8472_s22 = sld [smem:[#allocation76_spill]]  ;;  %s2624_s1 = sshll.u32 %s192_s20, 4  ;;  %s2625_s1 = int_to_ptr.vmem [resolvable:$true] %s2624_s1 }
 0x39a   : > { %v2414_v27 = vrot.slane %v2413_v18, 1  ;;  %v2427_v31 = vrot.slane %v2426_v20, 1  ;;  %v2444_v32 = vstv %s2443_s29  ;;  %vm2464_vm6 = vcmp.ge.s32.totalorder %v4164_v42, %v2463_v26  ;;  %s8473_s2 = sld [smem:[#allocation77_spill]]  ;;  %s2612_s7 = scalar_lea.sflag [#allocation8], %s191_s5 }
 0x39b   : > { %v2398_v34 = vadd.f32 %v2397_v43, %v2385_v10  ;;  %v2439_v12 = vmax.f32 %v2437_v35, %v2438_v21  ;;  %v2451_v5 = vrot.slane %v2450_v13, 2  ;;  %v2465_v56 = vstv %s7135_s14  ;;  %s3267_s25 = scalar_lea.vmem %s2625_s1, 16  ;;  %s3348_s13 = smov [#allocation11]  }
 0x39c   : > { %v2415_v36 = vmax.f32 %v2413_v18, %v2414_v27  ;;  %v2428_v61 = vmax.f32 %v2426_v20, %v2427_v31  ;;  %vm2466_vm1 = vcmp.lt.s32.totalorder %v4164_v42, %v2465_v56  ;;  %vm2445_vm11 = vcmp.eq.s32.totalorder %v2444_v32, 1  ;;  %p3268_p10 = scmp.ne.s32.totalorder %s2625_s1, %s3267_s25  ;;  %s3271_s14 = sshll.u32 %s3348_s13, 4  ;;  %s3272_s14 = int_to_ptr.vmem [resolvable:$false] %s3271_s14 }
 0x39d   : > { %v2440_v37 = vrot.slane %v2439_v12, 1  ;;  %v2452_v39 = vmax.f32 %v2450_v13, %v2451_v5  ;;  %v2457_v1 = vstv %s2456_s3  ;;  %vm7177_vm12 = vmand %vm2464_vm6, %vm2466_vm1  ;;  %v2480_v22 = vstv %s2479_s8  ;;  %s3040_s26 = sshll.u32 %s8470_s28, 4  ;;  %s3273_s12 = scalar_lea.vmem %s3272_s14, 32 }
 0x39e   : > { %v2420_v42 = vsel %vm2419_vm9, 0.0, %v2415_v36  ;;  %v2433_v47 = vsel %vm2432_vm10, 0.0, %v2428_v61  ;;  %v2471_v53 = vsel %vm7177_vm12, %v6917_v28, -inf  ;;  %v2484_v30 = vsel %vm7177_vm12, %v6924_v2, -inf  ;;  %p8475_p5 = scmp.ne.s32.totalorder %s8471_s24, 0  ;;  %p3274_p9 = scmp.lt.s32.totalorder %s2625_s1, %s3272_s14 }
 0x39f   : > { %v2421_v52 = vadd.f32 %v2420_v42, %v2398_v34  ;;  %v2441_v54 = vmax.f32 %v2439_v12, %v2440_v37  ;;  %v2453_v63 = vrot.slane %v2452_v39, 1  ;;  %v2472_v50 = vrot.slane %v2471_v53, 4  ;;  %v2539_v27 = vld [vmem:[%s8472_s22] sm:$0x1]  ;;  %p3275_p1 = scmp.lt.s32.totalorder %s3273_s12, %s3267_s25 }
 0x3a0   : > { %v2485_v28 = vrot.slane %v2484_v30, 4  ;;  %v2497_v2 = vsel %vm7177_vm12, %v6926_v44, -inf  ;;  %vm2458_vm13 = vcmp.eq.s32.totalorder %v2457_v1, 1  ;;  %v2510_v44 = vsel %vm7177_vm12, %v6937_v33, -inf  ;;  %s8474_s23 = smov %s8473_s2  ;;  %s7242_s18 = scalar_lea.hbm %s8473_s2, %s3040_s26 }
 0x3a1   : > { %v2434_v51 = vadd.f32 %v2433_v47, %v2421_v52  ;;  %v2446_v41 = vsel %vm2445_vm11, 0.0, %v2441_v54  ;;  %v2454_v58 = vmax.f32 %v2452_v39, %v2453_v63  ;;  %v2473_v45 = vmax.f32 %v2471_v53, %v2472_v50  ;;  %p3269_p13 = pnand %p3268_p10, %p8475_p5  ;;  %p3276_p4 = por %p3275_p1, %p3274_p9 }
 0x3a2   : > { %v2486_v19 = vmax.f32 %v2484_v30, %v2485_v28  ;;  %v2498_v46 = vrot.slane %v2497_v2, 4  ;;  %v2511_v60 = vrot.slane %v2510_v44, 4  ;;  %v2493_v59 = vstv %s2492_s21 }
 0x3a3   : > { %v2474_v25 = vrot.slane %v2473_v45, 2  ;;  %v2447_v15 = vadd.f32 %v2446_v41, %v2434_v51  ;;  %v2459_v48 = vsel %vm2458_vm13, 0.0, %v2454_v58  ;;  %vm2481_vm14 = vcmp.eq.s32.totalorder %v2480_v22, 1  ;;  %p3270_p6 = pneg %p3269_p13 }
 0x3a4   : > { %v2487_v14 = vrot.slane %v2486_v19, 2  ;;  %v2499_v38 = vmax.f32 %v2497_v2, %v2498_v46  ;;  %v2512_v23 = vmax.f32 %v2510_v44, %v2511_v60  ;;  %v2506_v29 = vstv %s2505_s27 }
 0x3a5   : > { %v2475_v57 = vmax.f32 %v2473_v45, %v2474_v25  ;;  %v2460_v33 = vadd.f32 %v2459_v48, %v2447_v15  ;;  %vm2494_vm15 = vcmp.eq.s32.totalorder %v2493_v59, 1  ;;  %v2519_v8 = vstv %s2518_s15  ;;  %p3277_p7 = pnand %p3276_p4, %p3270_p6 }
 0x3a6   : > { %v2488_v49 = vmax.f32 %v2486_v19, %v2487_v14  ;;  %v2500_v16 = vrot.slane %v2499_v38, 2  ;;  %v2513_v3 = vrot.slane %v2512_v23, 2  ;;  %vm2507_vm0 = vcmp.eq.s32.totalorder %v2506_v29, 1 }
 0x3a7   : > { %v2476_v0 = vrot.slane %v2475_v57, 1  ;;  %vm2520_vm2 = vcmp.eq.s32.totalorder %v2519_v8, 1 }
 0x3a8   : > { %v2489_v4 = vrot.slane %v2488_v49, 1  ;;  %v2501_v17 = vmax.f32 %v2499_v38, %v2500_v16  ;;  %v2514_v7 = vmax.f32 %v2512_v23, %v2513_v3 }
 0x3a9   : > { %v2477_v6 = vmax.f32 %v2475_v57, %v2476_v0 }
 0x3aa   : > { %v2490_v24 = vmax.f32 %v2488_v49, %v2489_v4  ;;  %v2502_v9 = vrot.slane %v2501_v17, 1  ;;  %v2515_v62 = vrot.slane %v2514_v7, 1 }
 0x3ab   : > { %v2482_v11 = vsel %vm2481_vm14, 0.0, %v2477_v6 }
 0x3ac   : > { %v2483_v35 = vadd.f32 %v2482_v11, %v2460_v33  ;;  %v2495_v55 = vsel %vm2494_vm15, 0.0, %v2490_v24  ;;  %v2503_v10 = vmax.f32 %v2501_v17, %v2502_v9  ;;  %v2516_v43 = vmax.f32 %v2514_v7, %v2515_v62 }
 0x3ae   : > { %v2496_v18 = vadd.f32 %v2495_v55, %v2483_v35  ;;  %v2508_v20 = vsel %vm2507_vm0, 0.0, %v2503_v10  ;;  %v2521_v21 = vsel %vm2520_vm2, 0.0, %v2516_v43 }
 0x3b0   : > { %v2509_v13 = vadd.f32 %v2508_v20, %v2496_v18 }
 0x3b2   : > { %v2522_v26 = vadd.f32 %v2521_v21, %v2509_v13 }
 0x3b4   : > { %3114 = vmatmul.mubr.f32.vlgmr.msra.gmra.mxu0 %v2522_v26 }
 0x474   : > { %v2606_v31 = vpop.f32.mrf.mxu0 }
 0x475   : > { %v2607_v32 = vadd.f32 %v2606_v31, %v2539_v27 }
 0x476   : > { %v3115_v34 = vpop.f32.mrf.mxu0 }
 0x477   : > { %2610 = vst [vmem:[%s192_s20] sm:$0x1] %v2607_v32 }
 0x478   : > { %3280 = shalt.err (!%p3277_p7)
}
 0x479   : > { %s3281_s0 = scalar_lea.hbm %s7242_s18, 16  ;;  %s3285_s4 = scalar_lea.hbm %s8474_s23, 48 }
 0x47a   : > { %p3282_p11 = scmp.ne.s32.totalorder %s7242_s18, %s3281_s0  ;;  %p3286_p3 = scmp.lt.s32.totalorder %s7242_s18, %s8474_s23 }
 0x47b   : > { %p3287_p8 = scmp.lt.s32.totalorder %s3285_s4, %s3281_s0 }
 0x47c   : > { %p3283_p2 = pnand %p3282_p11, %p8475_p5 }
 0x47d   : > { %p3288_p0 = por %p3287_p8, %p3286_p3 }
 0x47e   : > { %p3284_p12 = pneg %p3283_p2 }
 0x480   : > { %p3289_p10 = pnand %p3288_p0, %p3284_p12 }
 0x482   : > { %3292 = shalt.err (!%p3289_p10)
}
 0x483   : > { %3124 = dma.vmem_to_hbm [thread:$0]  (%p8475_p5), %s2625_s1, 16, %s7242_s18, %s2612_s7  }
 0x484 PF: > { %s8476_s8 = sld [smem:[#allocation19_spill]] }
 0x485   : > { %s8477_s11 = sld [smem:[#allocation16_spill]] }
 0x486   : > { %s8478_s21 = sld [smem:[#allocation24_spill]] }
 0x48a   : > { %p3141_p13 = scmp.ge.s32.totalorder %s8476_s8, 2 }
 0x48b   : > { %s2636_s27 = sand.u32 1, %s8477_s11  }
 0x48c   : > { %p8479_p6 = scmp.ne.s32.totalorder %s8478_s21, 0  ;;  %s2637_s15 = scalar_lea.sflag [#allocation8], %s2636_s27 }
 0x48e   : > { %p3134_p9 = pnand %p3141_p13, %p8479_p6 }
 0x490   : > { %p3135_p1 = pneg %p3134_p9 }
 0x492   : > { %3320 = dma.done.wait (%p3135_p1), %s2637_s15, 16  }
 0x493   : > { %3322 = vsyncadd (%p3135_p1), %s2637_s15, 4294967280  ;;  %s8480_s10 = sld [smem:[#allocation21_spill]] }
 0x494   : > { %s8481_s2 = sld [smem:[#allocation17_spill]] }
 0x495   : > { %s8482_s8 = sld [smem:[#allocation18_spill]] }
 0x496   : > { %s8483_s9 = sld [smem:[#allocation22_spill]] }
 0x499   : > { %p30_p4 = scmp.ge.s32.totalorder %s8480_s10, 5  }
 0x49b   :  { %32 = sbr.rel (!%p30_p4) target bundleno = 33 (0x21), region = 105 }
 0x4a0   :  { %2641 = vsyncpa [#allocation7], 1 }
 0x4a1   :  { %2643 = vsyncpa [#allocation7 + $0x1], 1 }
 0x4a2   :  { %2644 = vsyncpa [#allocation10], 1 }
 0x4a3   :  { %2645 = vsyncpa [#allocation8], 1 }
 0x4a4   :  { %2647 = vsyncpa [#allocation8 + $0x1], 1 }

</bundles_post_ra>
